<compile_context>
chip_gen: v5e
topology: v5e:2x2
jax: 0.10.0
libtpu: 0.0.40
codegen_flags: <defaults>
</compile_context>

<pallas_src>
import functools
import numpy as np

import jax
import jax.numpy as jnp
from jax.experimental import pallas as pl
from jax.experimental.pallas import tpu as pltpu

# ----------------------------- config -----------------------------
IMG_SIZE = 32
PATCH = 4
EMBED_DIM = 32
DEPTHS = (2, 2)
NUM_HEADS = (2, 4)
WINDOW = 4
MLP_RATIO = 4
LN_EPS = 1e-5
DTYPE = jnp.float32
BF16 = jnp.bfloat16
NEG_INF = -1e9  # structural mask; exp(NEG_INF - rowmax) == 0.0 exactly in f32


# ----------------------------- in-kernel helpers -----------------------------
def _ln(x, g, b):
    """Row-wise LayerNorm (torch nn.LayerNorm semantics, eps=1e-5), f32."""
    mu = jnp.mean(x, axis=-1, keepdims=True)
    var = jnp.mean(jnp.square(x - mu), axis=-1, keepdims=True)
    return (x - mu) * jax.lax.rsqrt(var + LN_EPS) * g + b


def _gelu_exact(x):
    # exact (erf-based) GELU matching torch.nn.GELU(); erf via Abramowitz & Stegun 7.1.26
    # polynomial (|err| < 1.5e-7).
    a1, a2, a3, a4, a5 = 0.254829592, -0.284496736, 1.421413741, -1.453152027, 1.061405429
    p = 0.3275911
    z = x * 0.7071067811865476
    s = jnp.where(z >= 0.0, 1.0, -1.0)
    az = jnp.abs(z)
    t = 1.0 / (1.0 + p * az)
    poly = ((((a5 * t + a4) * t + a3) * t + a2) * t + a1) * t
    erf = s * (1.0 - poly * jnp.exp(-az * az))
    return 0.5 * x * (1.0 + erf)


def _swin_block(x, n1g, n1b, wqkv, bqkv, bias, wproj, bproj,
                n2g, n2b, w1, b1, w2, b2, *, heads):
    """One Swin block on VMEM-resident values. x: (L, C) f32, tokens in raster order.

    wqkv (C, 3C) bf16 (q columns pre-scaled by head_dim**-0.5), bqkv (1, 3C) f32,
    bias (heads, L, L) bf16 dense additive attention bias (rel-pos + shift mask + window
    structure), wproj (C, C) bf16, MLP weights bf16.
    """
    f32, bf16 = jnp.float32, jnp.bfloat16
    C = x.shape[-1]
    D = C // heads

    # --- LN1 + fused lane-dense QKV projection ---
    h = _ln(x, n1g, n1b)
    qkv = jnp.dot(h.astype(bf16), wqkv, preferred_element_type=f32) + bqkv      # (L, 3C)

    # --- masked dense attention per head (static unroll, 2 or 4 heads) ---
    outs = []
    for hd in range(heads):
        q = qkv[:, hd * D:(hd + 1) * D].astype(bf16)                            # pre-scaled
        k = qkv[:, C + hd * D:C + (hd + 1) * D].astype(bf16)
        v = qkv[:, 2 * C + hd * D:2 * C + (hd + 1) * D].astype(bf16)
        s = jax.lax.dot_general(q, k, (((1,), (1,)), ((), ())),
                                preferred_element_type=f32)                     # (L, L) = q @ k^T
        s = s + bias[hd].astype(f32)
        s = s - jnp.max(s, axis=-1, keepdims=True)
        p = jnp.exp(s)
        p = p * pl.reciprocal(jnp.sum(p, axis=-1, keepdims=True), approx=True)
        outs.append(jnp.dot(p.astype(bf16), v, preferred_element_type=f32))     # (L, D)

    o_all = jnp.concatenate(outs, axis=-1)                                      # (L, C), head-major
    x = x + jnp.dot(o_all.astype(bf16), wproj, preferred_element_type=f32) + bproj

    # --- MLP ---
    h2 = _ln(x, n2g, n2b)
    h2 = jnp.dot(h2.astype(bf16), w1, preferred_element_type=f32) + b1
    h2 = _gelu_exact(h2)
    h2 = jnp.dot(h2.astype(bf16), w2, preferred_element_type=f32) + b2
    return x + h2


# ----------------------------- the fused encoder kernel -----------------------------
def _encoder_kernel(xp_ref,
                    pe_w, pe_b, pe_g, pe_bt,
                    s1_n1g, s1_n1b, s1_wqkv, s1_bqkv, s1_bias, s1_wproj, s1_bproj,
                    s1_n2g, s1_n2b, s1_w1, s1_b1, s1_w2, s1_b2,
                    sel, mrg_g, mrg_b, mrg_w,
                    s2_n1g, s2_n1b, s2_wqkv, s2_bqkv, s2_bias, s2_wproj, s2_bproj,
                    s2_n2g, s2_n2b, s2_w1, s2_b1, s2_w2, s2_b2,
                    stage1_ref, stage2_ref,
                    *, heads1, heads2, depth1, depth2):
    """Whole forward for one image (grid axis = batch)."""
    f32, bf16 = jnp.float32, jnp.bfloat16

    # --- patch embed: Conv2d(3, C, k=4, s=4) as matmul over flattened patches, + LN ---
    x = jnp.dot(xp_ref[0].astype(bf16), pe_w[...], preferred_element_type=f32) + pe_b[...]
    x = _ln(x, pe_g[...], pe_bt[...])                                           # (L1, C1)

    # --- stage 1 blocks ---
    for bi in range(depth1):
        x = _swin_block(x, s1_n1g[bi], s1_n1b[bi], s1_wqkv[bi], s1_bqkv[bi], s1_bias[bi],
                        s1_wproj[bi], s1_bproj[bi], s1_n2g[bi], s1_n2b[bi],
                        s1_w1[bi], s1_b1[bi], s1_w2[bi], s1_b2[bi], heads=heads1)
    stage1_ref[0] = x.astype(stage1_ref.dtype)

    # --- patch merging: even/odd gathers via one-hot matmuls, LN(4C), 4C -> 2C reduction ---
    xb = x.astype(bf16)
    cat = jnp.concatenate(
        [jnp.dot(sel[q], xb, preferred_element_type=f32) for q in range(4)], axis=-1)
    x = jnp.dot(_ln(cat, mrg_g[...], mrg_b[...]).astype(bf16), mrg_w[...],
                preferred_element_type=f32)                                     # (L2, C2)

    # --- stage 2 blocks ---
    for bi in range(depth2):
        x = _swin_block(x, s2_n1g[bi], s2_n1b[bi], s2_wqkv[bi], s2_bqkv[bi], s2_bias[bi],
                        s2_wproj[bi], s2_bproj[bi], s2_n2g[bi], s2_n2b[bi],
                        s2_w1[bi], s2_b1[bi], s2_w2[bi], s2_b2[bi], heads=heads2)
    stage2_ref[0] = x.astype(stage2_ref.dtype)


# ----------------------------- prepare-time helpers -----------------------------
def _dense_attn_bias(rel_table, H, W, ws, shift, heads):
    """(heads, L, L) additive attention bias for one image's tokens in raster order.

    Encodes (i) the relative-position bias, (ii) the timm cyclic-shift region mask (-100),
    and (iii) the window structure (NEG_INF outside the own window).  Dense L x L attention
    with this bias is numerically equivalent to roll + window-partition + windowed attention
    + reverse.
    """
    L = H * W
    ii, jj = np.meshgrid(np.arange(H), np.arange(W), indexing="ij")
    ri, rj = (ii - shift) % H, (jj - shift) % W                  # position after roll(-shift)
    win = ((ri // ws) * (W // ws) + (rj // ws)).reshape(L)       # window id in the rolled grid
    a, b = (ri % ws).reshape(L), (rj % ws).reshape(L)            # within-window coords
    rel_idx = ((a[:, None] - a[None, :] + ws - 1) * (2 * ws - 1)
               + (b[:, None] - b[None, :] + ws - 1))             # (L, L)
    same_win = win[:, None] == win[None, :]

    if shift > 0:
        img_mask = np.zeros((H, W), np.float32)                  # timm region mask
        cnt = 0
        for hs in (slice(0, -ws), slice(-ws, -shift), slice(-shift, None)):
            for wsl in (slice(0, -ws), slice(-ws, -shift), slice(-shift, None)):
                img_mask[hs, wsl] = cnt
                cnt += 1
        region = img_mask[ri, rj].reshape(L)
        struct = np.where(region[:, None] != region[None, :], -100.0, 0.0)
    else:
        struct = np.zeros((L, L), np.float32)
    struct = np.where(same_win, struct, NEG_INF).astype(np.float32)

    rel = rel_table[rel_idx.reshape(-1)].reshape(L, L, heads)    # gather on the learned table
    return (jnp.transpose(rel, (2, 0, 1)) + jnp.asarray(struct)[None]).astype(jnp.float32)


def _merge_select(H, W):
    """(4, (H/2)*(W/2), H*W) one-hot selection matrices for PatchMerging's x0..x3 gathers."""
    Hn, Wn = H // 2, W // 2
    sel = np.zeros((4, Hn * Wn, H * W), np.float32)
    offs = ((0, 0), (1, 0), (0, 1), (1, 1))                      # x0, x1, x2, x3 (row, col)
    for q, (di, dj) in enumerate(offs):
        for i in range(Hn):
            for j in range(Wn):
                sel[q, i * Wn + j, (2 * i + di) * W + (2 * j + dj)] = 1.0
    return sel


def prepare_encoder(params):
    """One-time prep: kernel-ready weight layouts (bf16 MXU operands, fused QKV with folded
    q-scale, stacked per-block arrays) + per-block dense attention biases."""
    H = W = IMG_SIZE // PATCH
    dim = EMBED_DIM
    pe = params["patch_embed"]
    args = [
        pe["proj_w"].reshape(EMBED_DIM, -1).T.astype(BF16),      # (Cin*ps*ps, C)
        pe["proj_b"].reshape(1, -1).astype(DTYPE),
        pe["norm_g"].reshape(1, -1).astype(DTYPE),
        pe["norm_b"].reshape(1, -1).astype(DTYPE),
    ]
    statics = {"depth1": DEPTHS[0], "depth2": DEPTHS[1],
               "heads1": NUM_HEADS[0], "heads2": NUM_HEADS[1]}
    keys = ("n1g", "n1b", "wqkv", "bqkv", "bias", "wproj", "bproj",
            "n2g", "n2b", "w1", "b1", "w2", "b2")
    for li, depth in enumerate(DEPTHS):
        heads = NUM_HEADS[li]
        ws = WINDOW
        force_no_shift = False
        if min(H, W) <= WINDOW:                                  # timm rule for small resolutions
            ws = min(H, W)
            force_no_shift = True
        D = dim // heads
        scale = float(D) ** -0.5
        # fold q*scale into the q-columns of the fused QKV weight / bias
        sv = np.concatenate([np.full((dim,), scale, np.float32),
                             np.ones((2 * dim,), np.float32)])
        stk = {k: [] for k in keys}
        for bi in range(depth):
            bp = params["layers"][li]["blocks"][bi]
            shift = 0 if (bi % 2 == 0 or force_no_shift) else ws // 2
            stk["n1g"].append(bp["norm1_g"].reshape(1, dim))
            stk["n1b"].append(bp["norm1_b"].reshape(1, dim))
            stk["wqkv"].append((bp["qkv_w"] * sv[None, :]).astype(BF16))   # (C, 3C), lane-dense
            stk["bqkv"].append((bp["qkv_b"] * sv).reshape(1, 3 * dim).astype(DTYPE))
            stk["bias"].append(
                _dense_attn_bias(bp["rel_pos_table"], H, W, ws, shift, heads).astype(BF16))
            stk["wproj"].append(bp["proj_w"].astype(BF16))
            stk["bproj"].append(bp["proj_b"].reshape(1, dim))
            stk["n2g"].append(bp["norm2_g"].reshape(1, dim))
            stk["n2b"].append(bp["norm2_b"].reshape(1, dim))
            stk["w1"].append(bp["fc1_w"].astype(BF16))
            stk["b1"].append(bp["fc1_b"].reshape(1, -1))
            stk["w2"].append(bp["fc2_w"].astype(BF16))
            stk["b2"].append(bp["fc2_b"].reshape(1, dim))
        args += [jnp.stack(stk[k]) for k in keys]
        ds = params["layers"][li]["downsample"]
        if ds is not None:
            args += [jnp.asarray(_merge_select(H, W), BF16),
                     ds["norm_g"].reshape(1, -1).astype(DTYPE),
                     ds["norm_b"].reshape(1, -1).astype(DTYPE),
                     ds["red_w"].astype(BF16)]
            H, W = H // 2, W // 2
            dim *= 2
    return {"args": args, "statics": statics}


# ----------------------------- forward runner -----------------------------
def oda_swin_encoder(x, plan):
    """Returns list of per-stage token tensors, like ODASwinEncoder.forward."""
    # TODO(synk): the F.interpolate bilinear-resize branch of the reference forward is omitted.
    B = x.shape[0]
    ps = PATCH
    Hp = Wp = IMG_SIZE // ps
    L1, C1 = Hp * Wp, EMBED_DIM
    L2, C2 = L1 // 4, 2 * EMBED_DIM
    # extract non-overlapping 4x4 patches -> (B, L1, Cin*ps*ps) (conv-as-matmul layout)
    xp = (x.reshape(B, 3, Hp, ps, Wp, ps)
           .transpose(0, 2, 4, 1, 3, 5)
           .reshape(B, Hp * Wp, 3 * ps * ps))

    def img_spec(l, c):
        return pl.BlockSpec((1, l, c), lambda b: (b, 0, 0))

    def full_spec(a):
        return pl.BlockSpec(a.shape, lambda b, z=(0,) * a.ndim: z)   # weights shared across grid

    weights = plan["args"]
    kernel = functools.partial(_encoder_kernel, **plan["statics"])
    stage1, stage2 = pl.pallas_call(
        kernel,
        grid=(B,),
        in_specs=[img_spec(L1, 3 * ps * ps)] + [full_spec(a) for a in weights],
        out_specs=(img_spec(L1, C1), img_spec(L2, C2)),
        out_shape=(jax.ShapeDtypeStruct((B, L1, C1), DTYPE),
                   jax.ShapeDtypeStruct((B, L2, C2), DTYPE)),
        compiler_params=pltpu.CompilerParams(dimension_semantics=("parallel",)),
    )(xp, *weights)
    return [stage1, stage2]


# ----------------------------- deterministic params -----------------------------
def init_params(key):
    def normal(k, shape, std=0.02):
        return (std * jax.random.normal(k, shape)).astype(DTYPE)

    keys = iter(jax.random.split(key, 256))
    params = {
        "patch_embed": {
            "proj_w": normal(next(keys), (EMBED_DIM, 3, PATCH, PATCH)),
            "proj_b": jnp.zeros((EMBED_DIM,), DTYPE),
            "norm_g": jnp.ones((EMBED_DIM,), DTYPE),
            "norm_b": jnp.zeros((EMBED_DIM,), DTYPE),
        },
        "layers": [],
    }
    dim = EMBED_DIM
    for li, depth in enumerate(DEPTHS):
        heads = NUM_HEADS[li]
        blocks = []
        for _ in range(depth):
            hidden = dim * MLP_RATIO
            blocks.append({
                "norm1_g": jnp.ones((dim,), DTYPE), "norm1_b": jnp.zeros((dim,), DTYPE),
                "qkv_w": normal(next(keys), (dim, 3 * dim)), "qkv_b": jnp.zeros((3 * dim,), DTYPE),
                "rel_pos_table": normal(next(keys), ((2 * WINDOW - 1) ** 2, heads)),
                "proj_w": normal(next(keys), (dim, dim)), "proj_b": jnp.zeros((dim,), DTYPE),
                "norm2_g": jnp.ones((dim,), DTYPE), "norm2_b": jnp.zeros((dim,), DTYPE),
                "fc1_w": normal(next(keys), (dim, hidden)), "fc1_b": jnp.zeros((hidden,), DTYPE),
                "fc2_w": normal(next(keys), (hidden, dim)), "fc2_b": jnp.zeros((dim,), DTYPE),
            })
        layer = {"blocks": blocks}
        if li < len(DEPTHS) - 1:
            layer["downsample"] = {
                "norm_g": jnp.ones((4 * dim,), DTYPE), "norm_b": jnp.zeros((4 * dim,), DTYPE),
                "red_w": normal(next(keys), (4 * dim, 2 * dim)),
            }
            dim *= 2
        else:
            layer["downsample"] = None
        params["layers"].append(layer)
    return params


# ----------------------------- main -----------------------------
if __name__ == "__main__":
    key = jax.random.PRNGKey(0)
    pkey, xkey = jax.random.split(key)
    params = init_params(pkey)
    x = jax.random.normal(xkey, (2, 3, IMG_SIZE, IMG_SIZE), dtype=DTYPE)  # NCHW like PyTorch

    plan = prepare_encoder(params)                     # one-time weight/bias re-layout (bf16)
    fwd = jax.jit(lambda inp: oda_swin_encoder(inp, plan))

    stages = jax.block_until_ready(fwd(x))

    assert stages[0].shape == (2, (IMG_SIZE // 4) ** 2, EMBED_DIM)        # (2, 64, 32)
    assert stages[1].shape == (2, (IMG_SIZE // 8) ** 2, 2 * EMBED_DIM)    # (2, 16, 64)
    assert all(bool(jnp.all(jnp.isfinite(s))) for s in stages)
    print("KERNEL_OK")
</pallas_src>

<mosaic_0001>
module attributes {stable_mosaic.version = 11 : i64} {
  func.func @_encoder_kernel(%arg0: i32, %arg1: memref<1x64x48xf32, #tpu.memory_space<vmem>>, %arg2: memref<48x32xbf16, #tpu.memory_space<vmem>>, %arg3: memref<1x32xf32, #tpu.memory_space<vmem>>, %arg4: memref<1x32xf32, #tpu.memory_space<vmem>>, %arg5: memref<1x32xf32, #tpu.memory_space<vmem>>, %arg6: memref<2x1x32xf32, #tpu.memory_space<vmem>>, %arg7: memref<2x1x32xf32, #tpu.memory_space<vmem>>, %arg8: memref<2x32x96xbf16, #tpu.memory_space<vmem>>, %arg9: memref<2x1x96xf32, #tpu.memory_space<vmem>>, %arg10: memref<2x2x64x64xbf16, #tpu.memory_space<vmem>>, %arg11: memref<2x32x32xbf16, #tpu.memory_space<vmem>>, %arg12: memref<2x1x32xf32, #tpu.memory_space<vmem>>, %arg13: memref<2x1x32xf32, #tpu.memory_space<vmem>>, %arg14: memref<2x1x32xf32, #tpu.memory_space<vmem>>, %arg15: memref<2x32x128xbf16, #tpu.memory_space<vmem>>, %arg16: memref<2x1x128xf32, #tpu.memory_space<vmem>>, %arg17: memref<2x128x32xbf16, #tpu.memory_space<vmem>>, %arg18: memref<2x1x32xf32, #tpu.memory_space<vmem>>, %arg19: memref<4x16x64xbf16, #tpu.memory_space<vmem>>, %arg20: memref<1x128xf32, #tpu.memory_space<vmem>>, %arg21: memref<1x128xf32, #tpu.memory_space<vmem>>, %arg22: memref<128x64xbf16, #tpu.memory_space<vmem>>, %arg23: memref<2x1x64xf32, #tpu.memory_space<vmem>>, %arg24: memref<2x1x64xf32, #tpu.memory_space<vmem>>, %arg25: memref<2x64x192xbf16, #tpu.memory_space<vmem>>, %arg26: memref<2x1x192xf32, #tpu.memory_space<vmem>>, %arg27: memref<2x4x16x16xbf16, #tpu.memory_space<vmem>>, %arg28: memref<2x64x64xbf16, #tpu.memory_space<vmem>>, %arg29: memref<2x1x64xf32, #tpu.memory_space<vmem>>, %arg30: memref<2x1x64xf32, #tpu.memory_space<vmem>>, %arg31: memref<2x1x64xf32, #tpu.memory_space<vmem>>, %arg32: memref<2x64x256xbf16, #tpu.memory_space<vmem>>, %arg33: memref<2x1x256xf32, #tpu.memory_space<vmem>>, %arg34: memref<2x256x64xbf16, #tpu.memory_space<vmem>>, %arg35: memref<2x1x64xf32, #tpu.memory_space<vmem>>, %arg36: memref<1x64x32xf32, #tpu.memory_space<vmem>>, %arg37: memref<1x16x64xf32, #tpu.memory_space<vmem>>) attributes {dimension_semantics = [#tpu.dimension_semantics<parallel>], iteration_bounds = array<i64: 2>, scalar_prefetch = 0 : i64, scratch_operands = 0 : i64, tpu.core_type = #tpu.core_type<tc>, window_params = [{transform_indices = @transform_0, window_bounds = array<i64: 1, 64, 48>}, {pipeline_mode = #tpu.pipeline_mode<synchronous>, transform_indices = @transform_1, window_bounds = array<i64: 48, 32>}, {pipeline_mode = #tpu.pipeline_mode<synchronous>, transform_indices = @transform_2, window_bounds = array<i64: 1, 32>}, {pipeline_mode = #tpu.pipeline_mode<synchronous>, transform_indices = @transform_3, window_bounds = array<i64: 1, 32>}, {pipeline_mode = #tpu.pipeline_mode<synchronous>, transform_indices = @transform_4, window_bounds = array<i64: 1, 32>}, {pipeline_mode = #tpu.pipeline_mode<synchronous>, transform_indices = @transform_5, window_bounds = array<i64: 2, 1, 32>}, {pipeline_mode = #tpu.pipeline_mode<synchronous>, transform_indices = @transform_6, window_bounds = array<i64: 2, 1, 32>}, {pipeline_mode = #tpu.pipeline_mode<synchronous>, transform_indices = @transform_7, window_bounds = array<i64: 2, 32, 96>}, {pipeline_mode = #tpu.pipeline_mode<synchronous>, transform_indices = @transform_8, window_bounds = array<i64: 2, 1, 96>}, {pipeline_mode = #tpu.pipeline_mode<synchronous>, transform_indices = @transform_9, window_bounds = array<i64: 2, 2, 64, 64>}, {pipeline_mode = #tpu.pipeline_mode<synchronous>, transform_indices = @transform_10, window_bounds = array<i64: 2, 32, 32>}, {pipeline_mode = #tpu.pipeline_mode<synchronous>, transform_indices = @transform_11, window_bounds = array<i64: 2, 1, 32>}, {pipeline_mode = #tpu.pipeline_mode<synchronous>, transform_indices = @transform_12, window_bounds = array<i64: 2, 1, 32>}, {pipeline_mode = #tpu.pipeline_mode<synchronous>, transform_indices = @transform_13, window_bounds = array<i64: 2, 1, 32>}, {pipeline_mode = #tpu.pipeline_mode<synchronous>, transform_indices = @transform_14, window_bounds = array<i64: 2, 32, 128>}, {pipeline_mode = #tpu.pipeline_mode<synchronous>, transform_indices = @transform_15, window_bounds = array<i64: 2, 1, 128>}, {pipeline_mode = #tpu.pipeline_mode<synchronous>, transform_indices = @transform_16, window_bounds = array<i64: 2, 128, 32>}, {pipeline_mode = #tpu.pipeline_mode<synchronous>, transform_indices = @transform_17, window_bounds = array<i64: 2, 1, 32>}, {pipeline_mode = #tpu.pipeline_mode<synchronous>, transform_indices = @transform_18, window_bounds = array<i64: 4, 16, 64>}, {pipeline_mode = #tpu.pipeline_mode<synchronous>, transform_indices = @transform_19, window_bounds = array<i64: 1, 128>}, {pipeline_mode = #tpu.pipeline_mode<synchronous>, transform_indices = @transform_20, window_bounds = array<i64: 1, 128>}, {pipeline_mode = #tpu.pipeline_mode<synchronous>, transform_indices = @transform_21, window_bounds = array<i64: 128, 64>}, {pipeline_mode = #tpu.pipeline_mode<synchronous>, transform_indices = @transform_22, window_bounds = array<i64: 2, 1, 64>}, {pipeline_mode = #tpu.pipeline_mode<synchronous>, transform_indices = @transform_23, window_bounds = array<i64: 2, 1, 64>}, {pipeline_mode = #tpu.pipeline_mode<synchronous>, transform_indices = @transform_24, window_bounds = array<i64: 2, 64, 192>}, {pipeline_mode = #tpu.pipeline_mode<synchronous>, transform_indices = @transform_25, window_bounds = array<i64: 2, 1, 192>}, {pipeline_mode = #tpu.pipeline_mode<synchronous>, transform_indices = @transform_26, window_bounds = array<i64: 2, 4, 16, 16>}, {pipeline_mode = #tpu.pipeline_mode<synchronous>, transform_indices = @transform_27, window_bounds = array<i64: 2, 64, 64>}, {pipeline_mode = #tpu.pipeline_mode<synchronous>, transform_indices = @transform_28, window_bounds = array<i64: 2, 1, 64>}, {pipeline_mode = #tpu.pipeline_mode<synchronous>, transform_indices = @transform_29, window_bounds = array<i64: 2, 1, 64>}, {pipeline_mode = #tpu.pipeline_mode<synchronous>, transform_indices = @transform_30, window_bounds = array<i64: 2, 1, 64>}, {pipeline_mode = #tpu.pipeline_mode<synchronous>, transform_indices = @transform_31, window_bounds = array<i64: 2, 64, 256>}, {pipeline_mode = #tpu.pipeline_mode<synchronous>, transform_indices = @transform_32, window_bounds = array<i64: 2, 1, 256>}, {pipeline_mode = #tpu.pipeline_mode<synchronous>, transform_indices = @transform_33, window_bounds = array<i64: 2, 256, 64>}, {pipeline_mode = #tpu.pipeline_mode<synchronous>, transform_indices = @transform_34, window_bounds = array<i64: 2, 1, 64>}, {transform_indices = @transform_35, window_bounds = array<i64: 1, 64, 32>}, {transform_indices = @transform_36, window_bounds = array<i64: 1, 16, 64>}]} {
    %c0 = arith.constant 0 : index
    %c0_0 = arith.constant 0 : index
    %c0_1 = arith.constant 0 : index
    %0 = vector.load %arg1[%c0, %c0_0, %c0_1] : memref<1x64x48xf32, #tpu.memory_space<vmem>>, vector<1x64x48xf32>
    %1 = vector.shape_cast %0 : vector<1x64x48xf32> to vector<64x48xf32>
    %2 = arith.truncf %1 : vector<64x48xf32> to vector<64x48xbf16>
    %c0_2 = arith.constant 0 : index
    %c0_3 = arith.constant 0 : index
    %3 = vector.load %arg2[%c0_2, %c0_3] : memref<48x32xbf16, #tpu.memory_space<vmem>>, vector<48x32xbf16>
    %cst = arith.constant dense<0.000000e+00> : vector<64x32xf32>
    %4 = tpu.matmul %2, %3, %cst {dimension_numbers = #tpu.dot_dimension_numbers<[1], [0], [0], [1], [0, 0, 1, 1], [], []>} : vector<64x48xbf16>, vector<48x32xbf16>, vector<64x32xf32> -> vector<64x32xf32>
    %c0_4 = arith.constant 0 : index
    %c0_5 = arith.constant 0 : index
    %5 = vector.load %arg3[%c0_4, %c0_5] : memref<1x32xf32, #tpu.memory_space<vmem>>, vector<1x32xf32>
    %6 = vector.broadcast %5 : vector<1x32xf32> to vector<64x32xf32>
    %7 = arith.addf %4, %6 : vector<64x32xf32>
    %c0_6 = arith.constant 0 : index
    %c0_7 = arith.constant 0 : index
    %8 = vector.load %arg4[%c0_6, %c0_7] : memref<1x32xf32, #tpu.memory_space<vmem>>, vector<1x32xf32>
    %c0_8 = arith.constant 0 : index
    %c0_9 = arith.constant 0 : index
    %9 = vector.load %arg5[%c0_8, %c0_9] : memref<1x32xf32, #tpu.memory_space<vmem>>, vector<1x32xf32>
    %cst_10 = arith.constant dense<0.000000e+00> : vector<64xf32>
    %10 = vector.multi_reduction <add>, %7, %cst_10 [1] : vector<64x32xf32> to vector<64xf32>
    %11 = vector.shape_cast %10 : vector<64xf32> to vector<64x1xf32>
    %cst_11 = arith.constant 3.200000e+01 : f32
    %12 = vector.broadcast %cst_11 : f32 to vector<64x1xf32>
    %13 = arith.divf %11, %12 : vector<64x1xf32>
    %14 = vector.broadcast %13 : vector<64x1xf32> to vector<64x32xf32>
    %15 = arith.subf %7, %14 : vector<64x32xf32>
    %16 = arith.mulf %15, %15 : vector<64x32xf32>
    %cst_12 = arith.constant dense<0.000000e+00> : vector<64xf32>
    %17 = vector.multi_reduction <add>, %16, %cst_12 [1] : vector<64x32xf32> to vector<64xf32>
    %18 = vector.shape_cast %17 : vector<64xf32> to vector<64x1xf32>
    %cst_13 = arith.constant 3.200000e+01 : f32
    %19 = vector.broadcast %cst_13 : f32 to vector<64x1xf32>
    %20 = arith.divf %18, %19 : vector<64x1xf32>
    %21 = vector.broadcast %13 : vector<64x1xf32> to vector<64x32xf32>
    %22 = arith.subf %7, %21 : vector<64x32xf32>
    %cst_14 = arith.constant 9.99999974E-6 : f32
    %23 = vector.broadcast %cst_14 : f32 to vector<64x1xf32>
    %24 = arith.addf %20, %23 : vector<64x1xf32>
    %25 = math.rsqrt %24 : vector<64x1xf32>
    %26 = vector.broadcast %25 : vector<64x1xf32> to vector<64x32xf32>
    %27 = arith.mulf %22, %26 : vector<64x32xf32>
    %28 = vector.broadcast %8 : vector<1x32xf32> to vector<64x32xf32>
    %29 = arith.mulf %27, %28 : vector<64x32xf32>
    %30 = vector.broadcast %9 : vector<1x32xf32> to vector<64x32xf32>
    %31 = arith.addf %29, %30 : vector<64x32xf32>
    %c0_15 = arith.constant 0 : index
    %c0_16 = arith.constant 0 : index
    %c0_17 = arith.constant 0 : index
    %32 = vector.load %arg6[%c0_15, %c0_16, %c0_17] : memref<2x1x32xf32, #tpu.memory_space<vmem>>, vector<1x1x32xf32>
    %33 = vector.shape_cast %32 : vector<1x1x32xf32> to vector<1x32xf32>
    %c0_18 = arith.constant 0 : index
    %c0_19 = arith.constant 0 : index
    %c0_20 = arith.constant 0 : index
    %34 = vector.load %arg7[%c0_18, %c0_19, %c0_20] : memref<2x1x32xf32, #tpu.memory_space<vmem>>, vector<1x1x32xf32>
    %35 = vector.shape_cast %34 : vector<1x1x32xf32> to vector<1x32xf32>
    %c0_21 = arith.constant 0 : index
    %c0_22 = arith.constant 0 : index
    %c0_23 = arith.constant 0 : index
    %36 = vector.load %arg8[%c0_21, %c0_22, %c0_23] : memref<2x32x96xbf16, #tpu.memory_space<vmem>>, vector<1x32x96xbf16>
    %37 = vector.shape_cast %36 : vector<1x32x96xbf16> to vector<32x96xbf16>
    %c0_24 = arith.constant 0 : index
    %c0_25 = arith.constant 0 : index
    %c0_26 = arith.constant 0 : index
    %38 = vector.load %arg9[%c0_24, %c0_25, %c0_26] : memref<2x1x96xf32, #tpu.memory_space<vmem>>, vector<1x1x96xf32>
    %39 = vector.shape_cast %38 : vector<1x1x96xf32> to vector<1x96xf32>
    %c0_27 = arith.constant 0 : index
    %c0_28 = arith.constant 0 : index
    %c0_29 = arith.constant 0 : index
    %c0_30 = arith.constant 0 : index
    %40 = vector.load %arg10[%c0_27, %c0_28, %c0_29, %c0_30] : memref<2x2x64x64xbf16, #tpu.memory_space<vmem>>, vector<1x2x64x64xbf16>
    %41 = vector.shape_cast %40 : vector<1x2x64x64xbf16> to vector<2x64x64xbf16>
    %c0_31 = arith.constant 0 : index
    %c0_32 = arith.constant 0 : index
    %c0_33 = arith.constant 0 : index
    %42 = vector.load %arg11[%c0_31, %c0_32, %c0_33] : memref<2x32x32xbf16, #tpu.memory_space<vmem>>, vector<1x32x32xbf16>
    %43 = vector.shape_cast %42 : vector<1x32x32xbf16> to vector<32x32xbf16>
    %c0_34 = arith.constant 0 : index
    %c0_35 = arith.constant 0 : index
    %c0_36 = arith.constant 0 : index
    %44 = vector.load %arg12[%c0_34, %c0_35, %c0_36] : memref<2x1x32xf32, #tpu.memory_space<vmem>>, vector<1x1x32xf32>
    %45 = vector.shape_cast %44 : vector<1x1x32xf32> to vector<1x32xf32>
    %c0_37 = arith.constant 0 : index
    %c0_38 = arith.constant 0 : index
    %c0_39 = arith.constant 0 : index
    %46 = vector.load %arg13[%c0_37, %c0_38, %c0_39] : memref<2x1x32xf32, #tpu.memory_space<vmem>>, vector<1x1x32xf32>
    %47 = vector.shape_cast %46 : vector<1x1x32xf32> to vector<1x32xf32>
    %c0_40 = arith.constant 0 : index
    %c0_41 = arith.constant 0 : index
    %c0_42 = arith.constant 0 : index
    %48 = vector.load %arg14[%c0_40, %c0_41, %c0_42] : memref<2x1x32xf32, #tpu.memory_space<vmem>>, vector<1x1x32xf32>
    %49 = vector.shape_cast %48 : vector<1x1x32xf32> to vector<1x32xf32>
    %c0_43 = arith.constant 0 : index
    %c0_44 = arith.constant 0 : index
    %c0_45 = arith.constant 0 : index
    %50 = vector.load %arg15[%c0_43, %c0_44, %c0_45] : memref<2x32x128xbf16, #tpu.memory_space<vmem>>, vector<1x32x128xbf16>
    %51 = vector.shape_cast %50 : vector<1x32x128xbf16> to vector<32x128xbf16>
    %c0_46 = arith.constant 0 : index
    %c0_47 = arith.constant 0 : index
    %c0_48 = arith.constant 0 : index
    %52 = vector.load %arg16[%c0_46, %c0_47, %c0_48] : memref<2x1x128xf32, #tpu.memory_space<vmem>>, vector<1x1x128xf32>
    %53 = vector.shape_cast %52 : vector<1x1x128xf32> to vector<1x128xf32>
    %c0_49 = arith.constant 0 : index
    %c0_50 = arith.constant 0 : index
    %c0_51 = arith.constant 0 : index
    %54 = vector.load %arg17[%c0_49, %c0_50, %c0_51] : memref<2x128x32xbf16, #tpu.memory_space<vmem>>, vector<1x128x32xbf16>
    %55 = vector.shape_cast %54 : vector<1x128x32xbf16> to vector<128x32xbf16>
    %c0_52 = arith.constant 0 : index
    %c0_53 = arith.constant 0 : index
    %c0_54 = arith.constant 0 : index
    %56 = vector.load %arg18[%c0_52, %c0_53, %c0_54] : memref<2x1x32xf32, #tpu.memory_space<vmem>>, vector<1x1x32xf32>
    %57 = vector.shape_cast %56 : vector<1x1x32xf32> to vector<1x32xf32>
    %cst_55 = arith.constant dense<0.000000e+00> : vector<64xf32>
    %58 = vector.multi_reduction <add>, %31, %cst_55 [1] : vector<64x32xf32> to vector<64xf32>
    %59 = vector.shape_cast %58 : vector<64xf32> to vector<64x1xf32>
    %cst_56 = arith.constant 3.200000e+01 : f32
    %60 = vector.broadcast %cst_56 : f32 to vector<64x1xf32>
    %61 = arith.divf %59, %60 : vector<64x1xf32>
    %62 = vector.broadcast %61 : vector<64x1xf32> to vector<64x32xf32>
    %63 = arith.subf %31, %62 : vector<64x32xf32>
    %64 = arith.mulf %63, %63 : vector<64x32xf32>
    %cst_57 = arith.constant dense<0.000000e+00> : vector<64xf32>
    %65 = vector.multi_reduction <add>, %64, %cst_57 [1] : vector<64x32xf32> to vector<64xf32>
    %66 = vector.shape_cast %65 : vector<64xf32> to vector<64x1xf32>
    %cst_58 = arith.constant 3.200000e+01 : f32
    %67 = vector.broadcast %cst_58 : f32 to vector<64x1xf32>
    %68 = arith.divf %66, %67 : vector<64x1xf32>
    %69 = vector.broadcast %61 : vector<64x1xf32> to vector<64x32xf32>
    %70 = arith.subf %31, %69 : vector<64x32xf32>
    %cst_59 = arith.constant 9.99999974E-6 : f32
    %71 = vector.broadcast %cst_59 : f32 to vector<64x1xf32>
    %72 = arith.addf %68, %71 : vector<64x1xf32>
    %73 = math.rsqrt %72 : vector<64x1xf32>
    %74 = vector.broadcast %73 : vector<64x1xf32> to vector<64x32xf32>
    %75 = arith.mulf %70, %74 : vector<64x32xf32>
    %76 = vector.broadcast %33 : vector<1x32xf32> to vector<64x32xf32>
    %77 = arith.mulf %75, %76 : vector<64x32xf32>
    %78 = vector.broadcast %35 : vector<1x32xf32> to vector<64x32xf32>
    %79 = arith.addf %77, %78 : vector<64x32xf32>
    %80 = arith.truncf %79 : vector<64x32xf32> to vector<64x32xbf16>
    %cst_60 = arith.constant dense<0.000000e+00> : vector<64x96xf32>
    %81 = tpu.matmul %80, %37, %cst_60 {dimension_numbers = #tpu.dot_dimension_numbers<[1], [0], [0], [1], [0, 0, 1, 1], [], []>} : vector<64x32xbf16>, vector<32x96xbf16>, vector<64x96xf32> -> vector<64x96xf32>
    %82 = vector.broadcast %39 : vector<1x96xf32> to vector<64x96xf32>
    %83 = arith.addf %81, %82 : vector<64x96xf32>
    %84 = vector.extract_strided_slice %83 {offsets = [0, 0], sizes = [64, 16], strides = [1, 1]} : vector<64x96xf32> to vector<64x16xf32>
    %85 = arith.truncf %84 : vector<64x16xf32> to vector<64x16xbf16>
    %86 = vector.extract_strided_slice %83 {offsets = [0, 32], sizes = [64, 16], strides = [1, 1]} : vector<64x96xf32> to vector<64x16xf32>
    %87 = arith.truncf %86 : vector<64x16xf32> to vector<64x16xbf16>
    %88 = vector.extract_strided_slice %83 {offsets = [0, 64], sizes = [64, 16], strides = [1, 1]} : vector<64x96xf32> to vector<64x16xf32>
    %89 = arith.truncf %88 : vector<64x16xf32> to vector<64x16xbf16>
    %cst_61 = arith.constant dense<0.000000e+00> : vector<64x64xf32>
    %90 = tpu.matmul %85, %87, %cst_61 {dimension_numbers = #tpu.dot_dimension_numbers<[1], [1], [0], [0], [0, 0, 1, 0], [], []>} : vector<64x16xbf16>, vector<64x16xbf16>, vector<64x64xf32> -> vector<64x64xf32>
    %91 = vector.extract_strided_slice %41 {offsets = [0, 0, 0], sizes = [1, 64, 64], strides = [1, 1, 1]} : vector<2x64x64xbf16> to vector<1x64x64xbf16>
    %92 = vector.shape_cast %91 : vector<1x64x64xbf16> to vector<64x64xbf16>
    %93 = arith.extf %92 : vector<64x64xbf16> to vector<64x64xf32>
    %94 = arith.addf %90, %93 : vector<64x64xf32>
    %cst_62 = arith.constant dense<0xFF800000> : vector<64xf32>
    %95 = vector.multi_reduction <maximumf>, %94, %cst_62 [1] : vector<64x64xf32> to vector<64xf32>
    %96 = vector.shape_cast %95 : vector<64xf32> to vector<64x1xf32>
    %97 = vector.broadcast %96 : vector<64x1xf32> to vector<64x64xf32>
    %98 = arith.subf %94, %97 : vector<64x64xf32>
    %99 = math.exp %98 : vector<64x64xf32>
    %cst_63 = arith.constant dense<0.000000e+00> : vector<64xf32>
    %100 = vector.multi_reduction <add>, %99, %cst_63 [1] : vector<64x64xf32> to vector<64xf32>
    %101 = vector.shape_cast %100 : vector<64xf32> to vector<64x1xf32>
    %102 = tpu.reciprocal %101 {approx = true} : vector<64x1xf32> -> vector<64x1xf32>
    %103 = vector.broadcast %102 : vector<64x1xf32> to vector<64x64xf32>
    %104 = arith.mulf %99, %103 : vector<64x64xf32>
    %105 = arith.truncf %104 : vector<64x64xf32> to vector<64x64xbf16>
    %cst_64 = arith.constant dense<0.000000e+00> : vector<64x16xf32>
    %106 = tpu.matmul %105, %89, %cst_64 {dimension_numbers = #tpu.dot_dimension_numbers<[1], [0], [0], [1], [0, 0, 1, 1], [], []>} : vector<64x64xbf16>, vector<64x16xbf16>, vector<64x16xf32> -> vector<64x16xf32>
    %107 = vector.extract_strided_slice %83 {offsets = [0, 16], sizes = [64, 16], strides = [1, 1]} : vector<64x96xf32> to vector<64x16xf32>
    %108 = arith.truncf %107 : vector<64x16xf32> to vector<64x16xbf16>
    %109 = vector.extract_strided_slice %83 {offsets = [0, 48], sizes = [64, 16], strides = [1, 1]} : vector<64x96xf32> to vector<64x16xf32>
    %110 = arith.truncf %109 : vector<64x16xf32> to vector<64x16xbf16>
    %111 = vector.extract_strided_slice %83 {offsets = [0, 80], sizes = [64, 16], strides = [1, 1]} : vector<64x96xf32> to vector<64x16xf32>
    %112 = arith.truncf %111 : vector<64x16xf32> to vector<64x16xbf16>
    %cst_65 = arith.constant dense<0.000000e+00> : vector<64x64xf32>
    %113 = tpu.matmul %108, %110, %cst_65 {dimension_numbers = #tpu.dot_dimension_numbers<[1], [1], [0], [0], [0, 0, 1, 0], [], []>} : vector<64x16xbf16>, vector<64x16xbf16>, vector<64x64xf32> -> vector<64x64xf32>
    %114 = vector.extract_strided_slice %41 {offsets = [1, 0, 0], sizes = [1, 64, 64], strides = [1, 1, 1]} : vector<2x64x64xbf16> to vector<1x64x64xbf16>
    %115 = vector.shape_cast %114 : vector<1x64x64xbf16> to vector<64x64xbf16>
    %116 = arith.extf %115 : vector<64x64xbf16> to vector<64x64xf32>
    %117 = arith.addf %113, %116 : vector<64x64xf32>
    %cst_66 = arith.constant dense<0xFF800000> : vector<64xf32>
    %118 = vector.multi_reduction <maximumf>, %117, %cst_66 [1] : vector<64x64xf32> to vector<64xf32>
    %119 = vector.shape_cast %118 : vector<64xf32> to vector<64x1xf32>
    %120 = vector.broadcast %119 : vector<64x1xf32> to vector<64x64xf32>
    %121 = arith.subf %117, %120 : vector<64x64xf32>
    %122 = math.exp %121 : vector<64x64xf32>
    %cst_67 = arith.constant dense<0.000000e+00> : vector<64xf32>
    %123 = vector.multi_reduction <add>, %122, %cst_67 [1] : vector<64x64xf32> to vector<64xf32>
    %124 = vector.shape_cast %123 : vector<64xf32> to vector<64x1xf32>
    %125 = tpu.reciprocal %124 {approx = true} : vector<64x1xf32> -> vector<64x1xf32>
    %126 = vector.broadcast %125 : vector<64x1xf32> to vector<64x64xf32>
    %127 = arith.mulf %122, %126 : vector<64x64xf32>
    %128 = arith.truncf %127 : vector<64x64xf32> to vector<64x64xbf16>
    %cst_68 = arith.constant dense<0.000000e+00> : vector<64x16xf32>
    %129 = tpu.matmul %128, %112, %cst_68 {dimension_numbers = #tpu.dot_dimension_numbers<[1], [0], [0], [1], [0, 0, 1, 1], [], []>} : vector<64x64xbf16>, vector<64x16xbf16>, vector<64x16xf32> -> vector<64x16xf32>
    %130 = tpu.concatenate %106, %129 in 1 : vector<64x16xf32>, vector<64x16xf32> -> vector<64x32xf32>
    %131 = arith.truncf %130 : vector<64x32xf32> to vector<64x32xbf16>
    %cst_69 = arith.constant dense<0.000000e+00> : vector<64x32xf32>
    %132 = tpu.matmul %131, %43, %cst_69 {dimension_numbers = #tpu.dot_dimension_numbers<[1], [0], [0], [1], [0, 0, 1, 1], [], []>} : vector<64x32xbf16>, vector<32x32xbf16>, vector<64x32xf32> -> vector<64x32xf32>
    %133 = arith.addf %31, %132 : vector<64x32xf32>
    %134 = vector.broadcast %45 : vector<1x32xf32> to vector<64x32xf32>
    %135 = arith.addf %133, %134 : vector<64x32xf32>
    %cst_70 = arith.constant dense<0.000000e+00> : vector<64xf32>
    %136 = vector.multi_reduction <add>, %135, %cst_70 [1] : vector<64x32xf32> to vector<64xf32>
    %137 = vector.shape_cast %136 : vector<64xf32> to vector<64x1xf32>
    %cst_71 = arith.constant 3.200000e+01 : f32
    %138 = vector.broadcast %cst_71 : f32 to vector<64x1xf32>
    %139 = arith.divf %137, %138 : vector<64x1xf32>
    %140 = vector.broadcast %139 : vector<64x1xf32> to vector<64x32xf32>
    %141 = arith.subf %135, %140 : vector<64x32xf32>
    %142 = arith.mulf %141, %141 : vector<64x32xf32>
    %cst_72 = arith.constant dense<0.000000e+00> : vector<64xf32>
    %143 = vector.multi_reduction <add>, %142, %cst_72 [1] : vector<64x32xf32> to vector<64xf32>
    %144 = vector.shape_cast %143 : vector<64xf32> to vector<64x1xf32>
    %cst_73 = arith.constant 3.200000e+01 : f32
    %145 = vector.broadcast %cst_73 : f32 to vector<64x1xf32>
    %146 = arith.divf %144, %145 : vector<64x1xf32>
    %147 = vector.broadcast %139 : vector<64x1xf32> to vector<64x32xf32>
    %148 = arith.subf %135, %147 : vector<64x32xf32>
    %cst_74 = arith.constant 9.99999974E-6 : f32
    %149 = vector.broadcast %cst_74 : f32 to vector<64x1xf32>
    %150 = arith.addf %146, %149 : vector<64x1xf32>
    %151 = math.rsqrt %150 : vector<64x1xf32>
    %152 = vector.broadcast %151 : vector<64x1xf32> to vector<64x32xf32>
    %153 = arith.mulf %148, %152 : vector<64x32xf32>
    %154 = vector.broadcast %47 : vector<1x32xf32> to vector<64x32xf32>
    %155 = arith.mulf %153, %154 : vector<64x32xf32>
    %156 = vector.broadcast %49 : vector<1x32xf32> to vector<64x32xf32>
    %157 = arith.addf %155, %156 : vector<64x32xf32>
    %158 = arith.truncf %157 : vector<64x32xf32> to vector<64x32xbf16>
    %cst_75 = arith.constant dense<0.000000e+00> : vector<64x128xf32>
    %159 = tpu.matmul %158, %51, %cst_75 {dimension_numbers = #tpu.dot_dimension_numbers<[1], [0], [0], [1], [0, 0, 1, 1], [], []>} : vector<64x32xbf16>, vector<32x128xbf16>, vector<64x128xf32> -> vector<64x128xf32>
    %160 = vector.broadcast %53 : vector<1x128xf32> to vector<64x128xf32>
    %161 = arith.addf %159, %160 : vector<64x128xf32>
    %cst_76 = arith.constant 0.707106769 : f32
    %162 = vector.broadcast %cst_76 : f32 to vector<64x128xf32>
    %163 = arith.mulf %161, %162 : vector<64x128xf32>
    %cst_77 = arith.constant 0.000000e+00 : f32
    %164 = vector.broadcast %cst_77 : f32 to vector<64x128xf32>
    %165 = arith.cmpf oge, %163, %164 : vector<64x128xf32>
    %cst_78 = arith.constant 1.000000e+00 : f32
    %cst_79 = arith.constant -1.000000e+00 : f32
    %166 = vector.broadcast %cst_78 : f32 to vector<64x128xf32>
    %167 = vector.broadcast %cst_79 : f32 to vector<64x128xf32>
    %168 = arith.select %165, %166, %167 : vector<64x128xi1>, vector<64x128xf32>
    %169 = math.absf %163 : vector<64x128xf32>
    %cst_80 = arith.constant 0.327591091 : f32
    %170 = vector.broadcast %cst_80 : f32 to vector<64x128xf32>
    %171 = arith.mulf %170, %169 : vector<64x128xf32>
    %cst_81 = arith.constant 1.000000e+00 : f32
    %172 = vector.broadcast %cst_81 : f32 to vector<64x128xf32>
    %173 = arith.addf %172, %171 : vector<64x128xf32>
    %cst_82 = arith.constant 1.000000e+00 : f32
    %174 = vector.broadcast %cst_82 : f32 to vector<64x128xf32>
    %175 = arith.divf %174, %173 : vector<64x128xf32>
    %cst_83 = arith.constant 1.06140542 : f32
    %176 = vector.broadcast %cst_83 : f32 to vector<64x128xf32>
    %177 = arith.mulf %176, %175 : vector<64x128xf32>
    %cst_84 = arith.constant -1.45315206 : f32
    %178 = vector.broadcast %cst_84 : f32 to vector<64x128xf32>
    %179 = arith.addf %177, %178 : vector<64x128xf32>
    %180 = arith.mulf %179, %175 : vector<64x128xf32>
    %cst_85 = arith.constant 1.42141378 : f32
    %181 = vector.broadcast %cst_85 : f32 to vector<64x128xf32>
    %182 = arith.addf %180, %181 : vector<64x128xf32>
    %183 = arith.mulf %182, %175 : vector<64x128xf32>
    %cst_86 = arith.constant -0.284496725 : f32
    %184 = vector.broadcast %cst_86 : f32 to vector<64x128xf32>
    %185 = arith.addf %183, %184 : vector<64x128xf32>
    %186 = arith.mulf %185, %175 : vector<64x128xf32>
    %cst_87 = arith.constant 0.254829586 : f32
    %187 = vector.broadcast %cst_87 : f32 to vector<64x128xf32>
    %188 = arith.addf %186, %187 : vector<64x128xf32>
    %189 = arith.mulf %188, %175 : vector<64x128xf32>
    %cst_88 = arith.constant 0.000000e+00 : f32
    %190 = vector.broadcast %cst_88 : f32 to vector<64x128xf32>
    %191 = arith.subf %190, %169 : vector<64x128xf32>
    %192 = arith.mulf %191, %169 : vector<64x128xf32>
    %193 = math.exp %192 : vector<64x128xf32>
    %194 = arith.mulf %189, %193 : vector<64x128xf32>
    %cst_89 = arith.constant 1.000000e+00 : f32
    %195 = vector.broadcast %cst_89 : f32 to vector<64x128xf32>
    %196 = arith.subf %195, %194 : vector<64x128xf32>
    %197 = arith.mulf %168, %196 : vector<64x128xf32>
    %cst_90 = arith.constant 5.000000e-01 : f32
    %198 = vector.broadcast %cst_90 : f32 to vector<64x128xf32>
    %199 = arith.mulf %198, %161 : vector<64x128xf32>
    %cst_91 = arith.constant 1.000000e+00 : f32
    %200 = vector.broadcast %cst_91 : f32 to vector<64x128xf32>
    %201 = arith.addf %200, %197 : vector<64x128xf32>
    %202 = arith.mulf %199, %201 : vector<64x128xf32>
    %203 = arith.truncf %202 : vector<64x128xf32> to vector<64x128xbf16>
    %cst_92 = arith.constant dense<0.000000e+00> : vector<64x32xf32>
    %204 = tpu.matmul %203, %55, %cst_92 {dimension_numbers = #tpu.dot_dimension_numbers<[1], [0], [0], [1], [0, 0, 1, 1], [], []>} : vector<64x128xbf16>, vector<128x32xbf16>, vector<64x32xf32> -> vector<64x32xf32>
    %205 = vector.broadcast %57 : vector<1x32xf32> to vector<64x32xf32>
    %206 = arith.addf %204, %205 : vector<64x32xf32>
    %207 = arith.addf %135, %206 : vector<64x32xf32>
    %c1 = arith.constant 1 : index
    %c0_93 = arith.constant 0 : index
    %c0_94 = arith.constant 0 : index
    %208 = vector.load %arg6[%c1, %c0_93, %c0_94] : memref<2x1x32xf32, #tpu.memory_space<vmem>>, vector<1x1x32xf32>
    %209 = vector.shape_cast %208 : vector<1x1x32xf32> to vector<1x32xf32>
    %c1_95 = arith.constant 1 : index
    %c0_96 = arith.constant 0 : index
    %c0_97 = arith.constant 0 : index
    %210 = vector.load %arg7[%c1_95, %c0_96, %c0_97] : memref<2x1x32xf32, #tpu.memory_space<vmem>>, vector<1x1x32xf32>
    %211 = vector.shape_cast %210 : vector<1x1x32xf32> to vector<1x32xf32>
    %c1_98 = arith.constant 1 : index
    %c0_99 = arith.constant 0 : index
    %c0_100 = arith.constant 0 : index
    %212 = vector.load %arg8[%c1_98, %c0_99, %c0_100] : memref<2x32x96xbf16, #tpu.memory_space<vmem>>, vector<1x32x96xbf16>
    %213 = vector.shape_cast %212 : vector<1x32x96xbf16> to vector<32x96xbf16>
    %c1_101 = arith.constant 1 : index
    %c0_102 = arith.constant 0 : index
    %c0_103 = arith.constant 0 : index
    %214 = vector.load %arg9[%c1_101, %c0_102, %c0_103] : memref<2x1x96xf32, #tpu.memory_space<vmem>>, vector<1x1x96xf32>
    %215 = vector.shape_cast %214 : vector<1x1x96xf32> to vector<1x96xf32>
    %c1_104 = arith.constant 1 : index
    %c0_105 = arith.constant 0 : index
    %c0_106 = arith.constant 0 : index
    %c0_107 = arith.constant 0 : index
    %216 = vector.load %arg10[%c1_104, %c0_105, %c0_106, %c0_107] : memref<2x2x64x64xbf16, #tpu.memory_space<vmem>>, vector<1x2x64x64xbf16>
    %217 = vector.shape_cast %216 : vector<1x2x64x64xbf16> to vector<2x64x64xbf16>
    %c1_108 = arith.constant 1 : index
    %c0_109 = arith.constant 0 : index
    %c0_110 = arith.constant 0 : index
    %218 = vector.load %arg11[%c1_108, %c0_109, %c0_110] : memref<2x32x32xbf16, #tpu.memory_space<vmem>>, vector<1x32x32xbf16>
    %219 = vector.shape_cast %218 : vector<1x32x32xbf16> to vector<32x32xbf16>
    %c1_111 = arith.constant 1 : index
    %c0_112 = arith.constant 0 : index
    %c0_113 = arith.constant 0 : index
    %220 = vector.load %arg12[%c1_111, %c0_112, %c0_113] : memref<2x1x32xf32, #tpu.memory_space<vmem>>, vector<1x1x32xf32>
    %221 = vector.shape_cast %220 : vector<1x1x32xf32> to vector<1x32xf32>
    %c1_114 = arith.constant 1 : index
    %c0_115 = arith.constant 0 : index
    %c0_116 = arith.constant 0 : index
    %222 = vector.load %arg13[%c1_114, %c0_115, %c0_116] : memref<2x1x32xf32, #tpu.memory_space<vmem>>, vector<1x1x32xf32>
    %223 = vector.shape_cast %222 : vector<1x1x32xf32> to vector<1x32xf32>
    %c1_117 = arith.constant 1 : index
    %c0_118 = arith.constant 0 : index
    %c0_119 = arith.constant 0 : index
    %224 = vector.load %arg14[%c1_117, %c0_118, %c0_119] : memref<2x1x32xf32, #tpu.memory_space<vmem>>, vector<1x1x32xf32>
    %225 = vector.shape_cast %224 : vector<1x1x32xf32> to vector<1x32xf32>
    %c1_120 = arith.constant 1 : index
    %c0_121 = arith.constant 0 : index
    %c0_122 = arith.constant 0 : index
    %226 = vector.load %arg15[%c1_120, %c0_121, %c0_122] : memref<2x32x128xbf16, #tpu.memory_space<vmem>>, vector<1x32x128xbf16>
    %227 = vector.shape_cast %226 : vector<1x32x128xbf16> to vector<32x128xbf16>
    %c1_123 = arith.constant 1 : index
    %c0_124 = arith.constant 0 : index
    %c0_125 = arith.constant 0 : index
    %228 = vector.load %arg16[%c1_123, %c0_124, %c0_125] : memref<2x1x128xf32, #tpu.memory_space<vmem>>, vector<1x1x128xf32>
    %229 = vector.shape_cast %228 : vector<1x1x128xf32> to vector<1x128xf32>
    %c1_126 = arith.constant 1 : index
    %c0_127 = arith.constant 0 : index
    %c0_128 = arith.constant 0 : index
    %230 = vector.load %arg17[%c1_126, %c0_127, %c0_128] : memref<2x128x32xbf16, #tpu.memory_space<vmem>>, vector<1x128x32xbf16>
    %231 = vector.shape_cast %230 : vector<1x128x32xbf16> to vector<128x32xbf16>
    %c1_129 = arith.constant 1 : index
    %c0_130 = arith.constant 0 : index
    %c0_131 = arith.constant 0 : index
    %232 = vector.load %arg18[%c1_129, %c0_130, %c0_131] : memref<2x1x32xf32, #tpu.memory_space<vmem>>, vector<1x1x32xf32>
    %233 = vector.shape_cast %232 : vector<1x1x32xf32> to vector<1x32xf32>
    %cst_132 = arith.constant dense<0.000000e+00> : vector<64xf32>
    %234 = vector.multi_reduction <add>, %207, %cst_132 [1] : vector<64x32xf32> to vector<64xf32>
    %235 = vector.shape_cast %234 : vector<64xf32> to vector<64x1xf32>
    %cst_133 = arith.constant 3.200000e+01 : f32
    %236 = vector.broadcast %cst_133 : f32 to vector<64x1xf32>
    %237 = arith.divf %235, %236 : vector<64x1xf32>
    %238 = vector.broadcast %237 : vector<64x1xf32> to vector<64x32xf32>
    %239 = arith.subf %207, %238 : vector<64x32xf32>
    %240 = arith.mulf %239, %239 : vector<64x32xf32>
    %cst_134 = arith.constant dense<0.000000e+00> : vector<64xf32>
    %241 = vector.multi_reduction <add>, %240, %cst_134 [1] : vector<64x32xf32> to vector<64xf32>
    %242 = vector.shape_cast %241 : vector<64xf32> to vector<64x1xf32>
    %cst_135 = arith.constant 3.200000e+01 : f32
    %243 = vector.broadcast %cst_135 : f32 to vector<64x1xf32>
    %244 = arith.divf %242, %243 : vector<64x1xf32>
    %245 = vector.broadcast %237 : vector<64x1xf32> to vector<64x32xf32>
    %246 = arith.subf %207, %245 : vector<64x32xf32>
    %cst_136 = arith.constant 9.99999974E-6 : f32
    %247 = vector.broadcast %cst_136 : f32 to vector<64x1xf32>
    %248 = arith.addf %244, %247 : vector<64x1xf32>
    %249 = math.rsqrt %248 : vector<64x1xf32>
    %250 = vector.broadcast %249 : vector<64x1xf32> to vector<64x32xf32>
    %251 = arith.mulf %246, %250 : vector<64x32xf32>
    %252 = vector.broadcast %209 : vector<1x32xf32> to vector<64x32xf32>
    %253 = arith.mulf %251, %252 : vector<64x32xf32>
    %254 = vector.broadcast %211 : vector<1x32xf32> to vector<64x32xf32>
    %255 = arith.addf %253, %254 : vector<64x32xf32>
    %256 = arith.truncf %255 : vector<64x32xf32> to vector<64x32xbf16>
    %cst_137 = arith.constant dense<0.000000e+00> : vector<64x96xf32>
    %257 = tpu.matmul %256, %213, %cst_137 {dimension_numbers = #tpu.dot_dimension_numbers<[1], [0], [0], [1], [0, 0, 1, 1], [], []>} : vector<64x32xbf16>, vector<32x96xbf16>, vector<64x96xf32> -> vector<64x96xf32>
    %258 = vector.broadcast %215 : vector<1x96xf32> to vector<64x96xf32>
    %259 = arith.addf %257, %258 : vector<64x96xf32>
    %260 = vector.extract_strided_slice %259 {offsets = [0, 0], sizes = [64, 16], strides = [1, 1]} : vector<64x96xf32> to vector<64x16xf32>
    %261 = arith.truncf %260 : vector<64x16xf32> to vector<64x16xbf16>
    %262 = vector.extract_strided_slice %259 {offsets = [0, 32], sizes = [64, 16], strides = [1, 1]} : vector<64x96xf32> to vector<64x16xf32>
    %263 = arith.truncf %262 : vector<64x16xf32> to vector<64x16xbf16>
    %264 = vector.extract_strided_slice %259 {offsets = [0, 64], sizes = [64, 16], strides = [1, 1]} : vector<64x96xf32> to vector<64x16xf32>
    %265 = arith.truncf %264 : vector<64x16xf32> to vector<64x16xbf16>
    %cst_138 = arith.constant dense<0.000000e+00> : vector<64x64xf32>
    %266 = tpu.matmul %261, %263, %cst_138 {dimension_numbers = #tpu.dot_dimension_numbers<[1], [1], [0], [0], [0, 0, 1, 0], [], []>} : vector<64x16xbf16>, vector<64x16xbf16>, vector<64x64xf32> -> vector<64x64xf32>
    %267 = vector.extract_strided_slice %217 {offsets = [0, 0, 0], sizes = [1, 64, 64], strides = [1, 1, 1]} : vector<2x64x64xbf16> to vector<1x64x64xbf16>
    %268 = vector.shape_cast %267 : vector<1x64x64xbf16> to vector<64x64xbf16>
    %269 = arith.extf %268 : vector<64x64xbf16> to vector<64x64xf32>
    %270 = arith.addf %266, %269 : vector<64x64xf32>
    %cst_139 = arith.constant dense<0xFF800000> : vector<64xf32>
    %271 = vector.multi_reduction <maximumf>, %270, %cst_139 [1] : vector<64x64xf32> to vector<64xf32>
    %272 = vector.shape_cast %271 : vector<64xf32> to vector<64x1xf32>
    %273 = vector.broadcast %272 : vector<64x1xf32> to vector<64x64xf32>
    %274 = arith.subf %270, %273 : vector<64x64xf32>
    %275 = math.exp %274 : vector<64x64xf32>
    %cst_140 = arith.constant dense<0.000000e+00> : vector<64xf32>
    %276 = vector.multi_reduction <add>, %275, %cst_140 [1] : vector<64x64xf32> to vector<64xf32>
    %277 = vector.shape_cast %276 : vector<64xf32> to vector<64x1xf32>
    %278 = tpu.reciprocal %277 {approx = true} : vector<64x1xf32> -> vector<64x1xf32>
    %279 = vector.broadcast %278 : vector<64x1xf32> to vector<64x64xf32>
    %280 = arith.mulf %275, %279 : vector<64x64xf32>
    %281 = arith.truncf %280 : vector<64x64xf32> to vector<64x64xbf16>
    %cst_141 = arith.constant dense<0.000000e+00> : vector<64x16xf32>
    %282 = tpu.matmul %281, %265, %cst_141 {dimension_numbers = #tpu.dot_dimension_numbers<[1], [0], [0], [1], [0, 0, 1, 1], [], []>} : vector<64x64xbf16>, vector<64x16xbf16>, vector<64x16xf32> -> vector<64x16xf32>
    %283 = vector.extract_strided_slice %259 {offsets = [0, 16], sizes = [64, 16], strides = [1, 1]} : vector<64x96xf32> to vector<64x16xf32>
    %284 = arith.truncf %283 : vector<64x16xf32> to vector<64x16xbf16>
    %285 = vector.extract_strided_slice %259 {offsets = [0, 48], sizes = [64, 16], strides = [1, 1]} : vector<64x96xf32> to vector<64x16xf32>
    %286 = arith.truncf %285 : vector<64x16xf32> to vector<64x16xbf16>
    %287 = vector.extract_strided_slice %259 {offsets = [0, 80], sizes = [64, 16], strides = [1, 1]} : vector<64x96xf32> to vector<64x16xf32>
    %288 = arith.truncf %287 : vector<64x16xf32> to vector<64x16xbf16>
    %cst_142 = arith.constant dense<0.000000e+00> : vector<64x64xf32>
    %289 = tpu.matmul %284, %286, %cst_142 {dimension_numbers = #tpu.dot_dimension_numbers<[1], [1], [0], [0], [0, 0, 1, 0], [], []>} : vector<64x16xbf16>, vector<64x16xbf16>, vector<64x64xf32> -> vector<64x64xf32>
    %290 = vector.extract_strided_slice %217 {offsets = [1, 0, 0], sizes = [1, 64, 64], strides = [1, 1, 1]} : vector<2x64x64xbf16> to vector<1x64x64xbf16>
    %291 = vector.shape_cast %290 : vector<1x64x64xbf16> to vector<64x64xbf16>
    %292 = arith.extf %291 : vector<64x64xbf16> to vector<64x64xf32>
    %293 = arith.addf %289, %292 : vector<64x64xf32>
    %cst_143 = arith.constant dense<0xFF800000> : vector<64xf32>
    %294 = vector.multi_reduction <maximumf>, %293, %cst_143 [1] : vector<64x64xf32> to vector<64xf32>
    %295 = vector.shape_cast %294 : vector<64xf32> to vector<64x1xf32>
    %296 = vector.broadcast %295 : vector<64x1xf32> to vector<64x64xf32>
    %297 = arith.subf %293, %296 : vector<64x64xf32>
    %298 = math.exp %297 : vector<64x64xf32>
    %cst_144 = arith.constant dense<0.000000e+00> : vector<64xf32>
    %299 = vector.multi_reduction <add>, %298, %cst_144 [1] : vector<64x64xf32> to vector<64xf32>
    %300 = vector.shape_cast %299 : vector<64xf32> to vector<64x1xf32>
    %301 = tpu.reciprocal %300 {approx = true} : vector<64x1xf32> -> vector<64x1xf32>
    %302 = vector.broadcast %301 : vector<64x1xf32> to vector<64x64xf32>
    %303 = arith.mulf %298, %302 : vector<64x64xf32>
    %304 = arith.truncf %303 : vector<64x64xf32> to vector<64x64xbf16>
    %cst_145 = arith.constant dense<0.000000e+00> : vector<64x16xf32>
    %305 = tpu.matmul %304, %288, %cst_145 {dimension_numbers = #tpu.dot_dimension_numbers<[1], [0], [0], [1], [0, 0, 1, 1], [], []>} : vector<64x64xbf16>, vector<64x16xbf16>, vector<64x16xf32> -> vector<64x16xf32>
    %306 = tpu.concatenate %282, %305 in 1 : vector<64x16xf32>, vector<64x16xf32> -> vector<64x32xf32>
    %307 = arith.truncf %306 : vector<64x32xf32> to vector<64x32xbf16>
    %cst_146 = arith.constant dense<0.000000e+00> : vector<64x32xf32>
    %308 = tpu.matmul %307, %219, %cst_146 {dimension_numbers = #tpu.dot_dimension_numbers<[1], [0], [0], [1], [0, 0, 1, 1], [], []>} : vector<64x32xbf16>, vector<32x32xbf16>, vector<64x32xf32> -> vector<64x32xf32>
    %309 = arith.addf %207, %308 : vector<64x32xf32>
    %310 = vector.broadcast %221 : vector<1x32xf32> to vector<64x32xf32>
    %311 = arith.addf %309, %310 : vector<64x32xf32>
    %cst_147 = arith.constant dense<0.000000e+00> : vector<64xf32>
    %312 = vector.multi_reduction <add>, %311, %cst_147 [1] : vector<64x32xf32> to vector<64xf32>
    %313 = vector.shape_cast %312 : vector<64xf32> to vector<64x1xf32>
    %cst_148 = arith.constant 3.200000e+01 : f32
    %314 = vector.broadcast %cst_148 : f32 to vector<64x1xf32>
    %315 = arith.divf %313, %314 : vector<64x1xf32>
    %316 = vector.broadcast %315 : vector<64x1xf32> to vector<64x32xf32>
    %317 = arith.subf %311, %316 : vector<64x32xf32>
    %318 = arith.mulf %317, %317 : vector<64x32xf32>
    %cst_149 = arith.constant dense<0.000000e+00> : vector<64xf32>
    %319 = vector.multi_reduction <add>, %318, %cst_149 [1] : vector<64x32xf32> to vector<64xf32>
    %320 = vector.shape_cast %319 : vector<64xf32> to vector<64x1xf32>
    %cst_150 = arith.constant 3.200000e+01 : f32
    %321 = vector.broadcast %cst_150 : f32 to vector<64x1xf32>
    %322 = arith.divf %320, %321 : vector<64x1xf32>
    %323 = vector.broadcast %315 : vector<64x1xf32> to vector<64x32xf32>
    %324 = arith.subf %311, %323 : vector<64x32xf32>
    %cst_151 = arith.constant 9.99999974E-6 : f32
    %325 = vector.broadcast %cst_151 : f32 to vector<64x1xf32>
    %326 = arith.addf %322, %325 : vector<64x1xf32>
    %327 = math.rsqrt %326 : vector<64x1xf32>
    %328 = vector.broadcast %327 : vector<64x1xf32> to vector<64x32xf32>
    %329 = arith.mulf %324, %328 : vector<64x32xf32>
    %330 = vector.broadcast %223 : vector<1x32xf32> to vector<64x32xf32>
    %331 = arith.mulf %329, %330 : vector<64x32xf32>
    %332 = vector.broadcast %225 : vector<1x32xf32> to vector<64x32xf32>
    %333 = arith.addf %331, %332 : vector<64x32xf32>
    %334 = arith.truncf %333 : vector<64x32xf32> to vector<64x32xbf16>
    %cst_152 = arith.constant dense<0.000000e+00> : vector<64x128xf32>
    %335 = tpu.matmul %334, %227, %cst_152 {dimension_numbers = #tpu.dot_dimension_numbers<[1], [0], [0], [1], [0, 0, 1, 1], [], []>} : vector<64x32xbf16>, vector<32x128xbf16>, vector<64x128xf32> -> vector<64x128xf32>
    %336 = vector.broadcast %229 : vector<1x128xf32> to vector<64x128xf32>
    %337 = arith.addf %335, %336 : vector<64x128xf32>
    %cst_153 = arith.constant 0.707106769 : f32
    %338 = vector.broadcast %cst_153 : f32 to vector<64x128xf32>
    %339 = arith.mulf %337, %338 : vector<64x128xf32>
    %cst_154 = arith.constant 0.000000e+00 : f32
    %340 = vector.broadcast %cst_154 : f32 to vector<64x128xf32>
    %341 = arith.cmpf oge, %339, %340 : vector<64x128xf32>
    %cst_155 = arith.constant 1.000000e+00 : f32
    %cst_156 = arith.constant -1.000000e+00 : f32
    %342 = vector.broadcast %cst_155 : f32 to vector<64x128xf32>
    %343 = vector.broadcast %cst_156 : f32 to vector<64x128xf32>
    %344 = arith.select %341, %342, %343 : vector<64x128xi1>, vector<64x128xf32>
    %345 = math.absf %339 : vector<64x128xf32>
    %cst_157 = arith.constant 0.327591091 : f32
    %346 = vector.broadcast %cst_157 : f32 to vector<64x128xf32>
    %347 = arith.mulf %346, %345 : vector<64x128xf32>
    %cst_158 = arith.constant 1.000000e+00 : f32
    %348 = vector.broadcast %cst_158 : f32 to vector<64x128xf32>
    %349 = arith.addf %348, %347 : vector<64x128xf32>
    %cst_159 = arith.constant 1.000000e+00 : f32
    %350 = vector.broadcast %cst_159 : f32 to vector<64x128xf32>
    %351 = arith.divf %350, %349 : vector<64x128xf32>
    %cst_160 = arith.constant 1.06140542 : f32
    %352 = vector.broadcast %cst_160 : f32 to vector<64x128xf32>
    %353 = arith.mulf %352, %351 : vector<64x128xf32>
    %cst_161 = arith.constant -1.45315206 : f32
    %354 = vector.broadcast %cst_161 : f32 to vector<64x128xf32>
    %355 = arith.addf %353, %354 : vector<64x128xf32>
    %356 = arith.mulf %355, %351 : vector<64x128xf32>
    %cst_162 = arith.constant 1.42141378 : f32
    %357 = vector.broadcast %cst_162 : f32 to vector<64x128xf32>
    %358 = arith.addf %356, %357 : vector<64x128xf32>
    %359 = arith.mulf %358, %351 : vector<64x128xf32>
    %cst_163 = arith.constant -0.284496725 : f32
    %360 = vector.broadcast %cst_163 : f32 to vector<64x128xf32>
    %361 = arith.addf %359, %360 : vector<64x128xf32>
    %362 = arith.mulf %361, %351 : vector<64x128xf32>
    %cst_164 = arith.constant 0.254829586 : f32
    %363 = vector.broadcast %cst_164 : f32 to vector<64x128xf32>
    %364 = arith.addf %362, %363 : vector<64x128xf32>
    %365 = arith.mulf %364, %351 : vector<64x128xf32>
    %cst_165 = arith.constant 0.000000e+00 : f32
    %366 = vector.broadcast %cst_165 : f32 to vector<64x128xf32>
    %367 = arith.subf %366, %345 : vector<64x128xf32>
    %368 = arith.mulf %367, %345 : vector<64x128xf32>
    %369 = math.exp %368 : vector<64x128xf32>
    %370 = arith.mulf %365, %369 : vector<64x128xf32>
    %cst_166 = arith.constant 1.000000e+00 : f32
    %371 = vector.broadcast %cst_166 : f32 to vector<64x128xf32>
    %372 = arith.subf %371, %370 : vector<64x128xf32>
    %373 = arith.mulf %344, %372 : vector<64x128xf32>
    %cst_167 = arith.constant 5.000000e-01 : f32
    %374 = vector.broadcast %cst_167 : f32 to vector<64x128xf32>
    %375 = arith.mulf %374, %337 : vector<64x128xf32>
    %cst_168 = arith.constant 1.000000e+00 : f32
    %376 = vector.broadcast %cst_168 : f32 to vector<64x128xf32>
    %377 = arith.addf %376, %373 : vector<64x128xf32>
    %378 = arith.mulf %375, %377 : vector<64x128xf32>
    %379 = arith.truncf %378 : vector<64x128xf32> to vector<64x128xbf16>
    %cst_169 = arith.constant dense<0.000000e+00> : vector<64x32xf32>
    %380 = tpu.matmul %379, %231, %cst_169 {dimension_numbers = #tpu.dot_dimension_numbers<[1], [0], [0], [1], [0, 0, 1, 1], [], []>} : vector<64x128xbf16>, vector<128x32xbf16>, vector<64x32xf32> -> vector<64x32xf32>
    %381 = vector.broadcast %233 : vector<1x32xf32> to vector<64x32xf32>
    %382 = arith.addf %380, %381 : vector<64x32xf32>
    %383 = arith.addf %311, %382 : vector<64x32xf32>
    %c0_170 = arith.constant 0 : index
    %c0_171 = arith.constant 0 : index
    %c0_172 = arith.constant 0 : index
    %384 = vector.load %arg36[%c0_170, %c0_171, %c0_172] : memref<1x64x32xf32, #tpu.memory_space<vmem>>, vector<1x64x32xf32>
    %385 = vector.shape_cast %384 : vector<1x64x32xf32> to vector<64x32xf32>
    %386 = vector.shape_cast %383 : vector<64x32xf32> to vector<1x64x32xf32>
    tpu.vector_store %arg36[%c0_170, %c0_171, %c0_172], %386 {strides = array<i32>} : memref<1x64x32xf32, #tpu.memory_space<vmem>>, vector<1x64x32xf32>,
    %387 = arith.truncf %383 : vector<64x32xf32> to vector<64x32xbf16>
    %c0_173 = arith.constant 0 : index
    %c0_174 = arith.constant 0 : index
    %c0_175 = arith.constant 0 : index
    %388 = vector.load %arg19[%c0_173, %c0_174, %c0_175] : memref<4x16x64xbf16, #tpu.memory_space<vmem>>, vector<1x16x64xbf16>
    %389 = vector.shape_cast %388 : vector<1x16x64xbf16> to vector<16x64xbf16>
    %cst_176 = arith.constant dense<0.000000e+00> : vector<16x32xf32>
    %390 = tpu.matmul %389, %387, %cst_176 {dimension_numbers = #tpu.dot_dimension_numbers<[1], [0], [0], [1], [0, 0, 1, 1], [], []>} : vector<16x64xbf16>, vector<64x32xbf16>, vector<16x32xf32> -> vector<16x32xf32>
    %c1_177 = arith.constant 1 : index
    %c0_178 = arith.constant 0 : index
    %c0_179 = arith.constant 0 : index
    %391 = vector.load %arg19[%c1_177, %c0_178, %c0_179] : memref<4x16x64xbf16, #tpu.memory_space<vmem>>, vector<1x16x64xbf16>
    %392 = vector.shape_cast %391 : vector<1x16x64xbf16> to vector<16x64xbf16>
    %cst_180 = arith.constant dense<0.000000e+00> : vector<16x32xf32>
    %393 = tpu.matmul %392, %387, %cst_180 {dimension_numbers = #tpu.dot_dimension_numbers<[1], [0], [0], [1], [0, 0, 1, 1], [], []>} : vector<16x64xbf16>, vector<64x32xbf16>, vector<16x32xf32> -> vector<16x32xf32>
    %c2 = arith.constant 2 : index
    %c0_181 = arith.constant 0 : index
    %c0_182 = arith.constant 0 : index
    %394 = vector.load %arg19[%c2, %c0_181, %c0_182] : memref<4x16x64xbf16, #tpu.memory_space<vmem>>, vector<1x16x64xbf16>
    %395 = vector.shape_cast %394 : vector<1x16x64xbf16> to vector<16x64xbf16>
    %cst_183 = arith.constant dense<0.000000e+00> : vector<16x32xf32>
    %396 = tpu.matmul %395, %387, %cst_183 {dimension_numbers = #tpu.dot_dimension_numbers<[1], [0], [0], [1], [0, 0, 1, 1], [], []>} : vector<16x64xbf16>, vector<64x32xbf16>, vector<16x32xf32> -> vector<16x32xf32>
    %c3 = arith.constant 3 : index
    %c0_184 = arith.constant 0 : index
    %c0_185 = arith.constant 0 : index
    %397 = vector.load %arg19[%c3, %c0_184, %c0_185] : memref<4x16x64xbf16, #tpu.memory_space<vmem>>, vector<1x16x64xbf16>
    %398 = vector.shape_cast %397 : vector<1x16x64xbf16> to vector<16x64xbf16>
    %cst_186 = arith.constant dense<0.000000e+00> : vector<16x32xf32>
    %399 = tpu.matmul %398, %387, %cst_186 {dimension_numbers = #tpu.dot_dimension_numbers<[1], [0], [0], [1], [0, 0, 1, 1], [], []>} : vector<16x64xbf16>, vector<64x32xbf16>, vector<16x32xf32> -> vector<16x32xf32>
    %400 = tpu.concatenate %390, %393, %396, %399 in 1 : vector<16x32xf32>, vector<16x32xf32>, vector<16x32xf32>, vector<16x32xf32> -> vector<16x128xf32>
    %c0_187 = arith.constant 0 : index
    %c0_188 = arith.constant 0 : index
    %401 = vector.load %arg20[%c0_187, %c0_188] : memref<1x128xf32, #tpu.memory_space<vmem>>, vector<1x128xf32>
    %c0_189 = arith.constant 0 : index
    %c0_190 = arith.constant 0 : index
    %402 = vector.load %arg21[%c0_189, %c0_190] : memref<1x128xf32, #tpu.memory_space<vmem>>, vector<1x128xf32>
    %cst_191 = arith.constant dense<0.000000e+00> : vector<16xf32>
    %403 = vector.multi_reduction <add>, %400, %cst_191 [1] : vector<16x128xf32> to vector<16xf32>
    %404 = vector.shape_cast %403 : vector<16xf32> to vector<16x1xf32>
    %cst_192 = arith.constant 1.280000e+02 : f32
    %405 = vector.broadcast %cst_192 : f32 to vector<16x1xf32>
    %406 = arith.divf %404, %405 : vector<16x1xf32>
    %407 = vector.broadcast %406 : vector<16x1xf32> to vector<16x128xf32>
    %408 = arith.subf %400, %407 : vector<16x128xf32>
    %409 = arith.mulf %408, %408 : vector<16x128xf32>
    %cst_193 = arith.constant dense<0.000000e+00> : vector<16xf32>
    %410 = vector.multi_reduction <add>, %409, %cst_193 [1] : vector<16x128xf32> to vector<16xf32>
    %411 = vector.shape_cast %410 : vector<16xf32> to vector<16x1xf32>
    %cst_194 = arith.constant 1.280000e+02 : f32
    %412 = vector.broadcast %cst_194 : f32 to vector<16x1xf32>
    %413 = arith.divf %411, %412 : vector<16x1xf32>
    %414 = vector.broadcast %406 : vector<16x1xf32> to vector<16x128xf32>
    %415 = arith.subf %400, %414 : vector<16x128xf32>
    %cst_195 = arith.constant 9.99999974E-6 : f32
    %416 = vector.broadcast %cst_195 : f32 to vector<16x1xf32>
    %417 = arith.addf %413, %416 : vector<16x1xf32>
    %418 = math.rsqrt %417 : vector<16x1xf32>
    %419 = vector.broadcast %418 : vector<16x1xf32> to vector<16x128xf32>
    %420 = arith.mulf %415, %419 : vector<16x128xf32>
    %421 = vector.broadcast %401 : vector<1x128xf32> to vector<16x128xf32>
    %422 = arith.mulf %420, %421 : vector<16x128xf32>
    %423 = vector.broadcast %402 : vector<1x128xf32> to vector<16x128xf32>
    %424 = arith.addf %422, %423 : vector<16x128xf32>
    %425 = arith.truncf %424 : vector<16x128xf32> to vector<16x128xbf16>
    %c0_196 = arith.constant 0 : index
    %c0_197 = arith.constant 0 : index
    %426 = vector.load %arg22[%c0_196, %c0_197] : memref<128x64xbf16, #tpu.memory_space<vmem>>, vector<128x64xbf16>
    %cst_198 = arith.constant dense<0.000000e+00> : vector<16x64xf32>
    %427 = tpu.matmul %425, %426, %cst_198 {dimension_numbers = #tpu.dot_dimension_numbers<[1], [0], [0], [1], [0, 0, 1, 1], [], []>} : vector<16x128xbf16>, vector<128x64xbf16>, vector<16x64xf32> -> vector<16x64xf32>
    %c0_199 = arith.constant 0 : index
    %c0_200 = arith.constant 0 : index
    %c0_201 = arith.constant 0 : index
    %428 = vector.load %arg23[%c0_199, %c0_200, %c0_201] : memref<2x1x64xf32, #tpu.memory_space<vmem>>, vector<1x1x64xf32>
    %429 = vector.shape_cast %428 : vector<1x1x64xf32> to vector<1x64xf32>
    %c0_202 = arith.constant 0 : index
    %c0_203 = arith.constant 0 : index
    %c0_204 = arith.constant 0 : index
    %430 = vector.load %arg24[%c0_202, %c0_203, %c0_204] : memref<2x1x64xf32, #tpu.memory_space<vmem>>, vector<1x1x64xf32>
    %431 = vector.shape_cast %430 : vector<1x1x64xf32> to vector<1x64xf32>
    %c0_205 = arith.constant 0 : index
    %c0_206 = arith.constant 0 : index
    %c0_207 = arith.constant 0 : index
    %432 = vector.load %arg25[%c0_205, %c0_206, %c0_207] : memref<2x64x192xbf16, #tpu.memory_space<vmem>>, vector<1x64x192xbf16>
    %433 = vector.shape_cast %432 : vector<1x64x192xbf16> to vector<64x192xbf16>
    %c0_208 = arith.constant 0 : index
    %c0_209 = arith.constant 0 : index
    %c0_210 = arith.constant 0 : index
    %434 = vector.load %arg26[%c0_208, %c0_209, %c0_210] : memref<2x1x192xf32, #tpu.memory_space<vmem>>, vector<1x1x192xf32>
    %435 = vector.shape_cast %434 : vector<1x1x192xf32> to vector<1x192xf32>
    %c0_211 = arith.constant 0 : index
    %c0_212 = arith.constant 0 : index
    %c0_213 = arith.constant 0 : index
    %c0_214 = arith.constant 0 : index
    %436 = vector.load %arg27[%c0_211, %c0_212, %c0_213, %c0_214] : memref<2x4x16x16xbf16, #tpu.memory_space<vmem>>, vector<1x4x16x16xbf16>
    %437 = vector.shape_cast %436 : vector<1x4x16x16xbf16> to vector<4x16x16xbf16>
    %c0_215 = arith.constant 0 : index
    %c0_216 = arith.constant 0 : index
    %c0_217 = arith.constant 0 : index
    %438 = vector.load %arg28[%c0_215, %c0_216, %c0_217] : memref<2x64x64xbf16, #tpu.memory_space<vmem>>, vector<1x64x64xbf16>
    %439 = vector.shape_cast %438 : vector<1x64x64xbf16> to vector<64x64xbf16>
    %c0_218 = arith.constant 0 : index
    %c0_219 = arith.constant 0 : index
    %c0_220 = arith.constant 0 : index
    %440 = vector.load %arg29[%c0_218, %c0_219, %c0_220] : memref<2x1x64xf32, #tpu.memory_space<vmem>>, vector<1x1x64xf32>
    %441 = vector.shape_cast %440 : vector<1x1x64xf32> to vector<1x64xf32>
    %c0_221 = arith.constant 0 : index
    %c0_222 = arith.constant 0 : index
    %c0_223 = arith.constant 0 : index
    %442 = vector.load %arg30[%c0_221, %c0_222, %c0_223] : memref<2x1x64xf32, #tpu.memory_space<vmem>>, vector<1x1x64xf32>
    %443 = vector.shape_cast %442 : vector<1x1x64xf32> to vector<1x64xf32>
    %c0_224 = arith.constant 0 : index
    %c0_225 = arith.constant 0 : index
    %c0_226 = arith.constant 0 : index
    %444 = vector.load %arg31[%c0_224, %c0_225, %c0_226] : memref<2x1x64xf32, #tpu.memory_space<vmem>>, vector<1x1x64xf32>
    %445 = vector.shape_cast %444 : vector<1x1x64xf32> to vector<1x64xf32>
    %c0_227 = arith.constant 0 : index
    %c0_228 = arith.constant 0 : index
    %c0_229 = arith.constant 0 : index
    %446 = vector.load %arg32[%c0_227, %c0_228, %c0_229] : memref<2x64x256xbf16, #tpu.memory_space<vmem>>, vector<1x64x256xbf16>
    %447 = vector.shape_cast %446 : vector<1x64x256xbf16> to vector<64x256xbf16>
    %c0_230 = arith.constant 0 : index
    %c0_231 = arith.constant 0 : index
    %c0_232 = arith.constant 0 : index
    %448 = vector.load %arg33[%c0_230, %c0_231, %c0_232] : memref<2x1x256xf32, #tpu.memory_space<vmem>>, vector<1x1x256xf32>
    %449 = vector.shape_cast %448 : vector<1x1x256xf32> to vector<1x256xf32>
    %c0_233 = arith.constant 0 : index
    %c0_234 = arith.constant 0 : index
    %c0_235 = arith.constant 0 : index
    %450 = vector.load %arg34[%c0_233, %c0_234, %c0_235] : memref<2x256x64xbf16, #tpu.memory_space<vmem>>, vector<1x256x64xbf16>
    %451 = vector.shape_cast %450 : vector<1x256x64xbf16> to vector<256x64xbf16>
    %c0_236 = arith.constant 0 : index
    %c0_237 = arith.constant 0 : index
    %c0_238 = arith.constant 0 : index
    %452 = vector.load %arg35[%c0_236, %c0_237, %c0_238] : memref<2x1x64xf32, #tpu.memory_space<vmem>>, vector<1x1x64xf32>
    %453 = vector.shape_cast %452 : vector<1x1x64xf32> to vector<1x64xf32>
    %cst_239 = arith.constant dense<0.000000e+00> : vector<16xf32>
    %454 = vector.multi_reduction <add>, %427, %cst_239 [1] : vector<16x64xf32> to vector<16xf32>
    %455 = vector.shape_cast %454 : vector<16xf32> to vector<16x1xf32>
    %cst_240 = arith.constant 6.400000e+01 : f32
    %456 = vector.broadcast %cst_240 : f32 to vector<16x1xf32>
    %457 = arith.divf %455, %456 : vector<16x1xf32>
    %458 = vector.broadcast %457 : vector<16x1xf32> to vector<16x64xf32>
    %459 = arith.subf %427, %458 : vector<16x64xf32>
    %460 = arith.mulf %459, %459 : vector<16x64xf32>
    %cst_241 = arith.constant dense<0.000000e+00> : vector<16xf32>
    %461 = vector.multi_reduction <add>, %460, %cst_241 [1] : vector<16x64xf32> to vector<16xf32>
    %462 = vector.shape_cast %461 : vector<16xf32> to vector<16x1xf32>
    %cst_242 = arith.constant 6.400000e+01 : f32
    %463 = vector.broadcast %cst_242 : f32 to vector<16x1xf32>
    %464 = arith.divf %462, %463 : vector<16x1xf32>
    %465 = vector.broadcast %457 : vector<16x1xf32> to vector<16x64xf32>
    %466 = arith.subf %427, %465 : vector<16x64xf32>
    %cst_243 = arith.constant 9.99999974E-6 : f32
    %467 = vector.broadcast %cst_243 : f32 to vector<16x1xf32>
    %468 = arith.addf %464, %467 : vector<16x1xf32>
    %469 = math.rsqrt %468 : vector<16x1xf32>
    %470 = vector.broadcast %469 : vector<16x1xf32> to vector<16x64xf32>
    %471 = arith.mulf %466, %470 : vector<16x64xf32>
    %472 = vector.broadcast %429 : vector<1x64xf32> to vector<16x64xf32>
    %473 = arith.mulf %471, %472 : vector<16x64xf32>
    %474 = vector.broadcast %431 : vector<1x64xf32> to vector<16x64xf32>
    %475 = arith.addf %473, %474 : vector<16x64xf32>
    %476 = arith.truncf %475 : vector<16x64xf32> to vector<16x64xbf16>
    %cst_244 = arith.constant dense<0.000000e+00> : vector<16x192xf32>
    %477 = tpu.matmul %476, %433, %cst_244 {dimension_numbers = #tpu.dot_dimension_numbers<[1], [0], [0], [1], [0, 0, 1, 1], [], []>} : vector<16x64xbf16>, vector<64x192xbf16>, vector<16x192xf32> -> vector<16x192xf32>
    %478 = vector.broadcast %435 : vector<1x192xf32> to vector<16x192xf32>
    %479 = arith.addf %477, %478 : vector<16x192xf32>
    %480 = vector.extract_strided_slice %479 {offsets = [0, 0], sizes = [16, 16], strides = [1, 1]} : vector<16x192xf32> to vector<16x16xf32>
    %481 = arith.truncf %480 : vector<16x16xf32> to vector<16x16xbf16>
    %482 = vector.extract_strided_slice %479 {offsets = [0, 64], sizes = [16, 16], strides = [1, 1]} : vector<16x192xf32> to vector<16x16xf32>
    %483 = arith.truncf %482 : vector<16x16xf32> to vector<16x16xbf16>
    %484 = vector.extract_strided_slice %479 {offsets = [0, 128], sizes = [16, 16], strides = [1, 1]} : vector<16x192xf32> to vector<16x16xf32>
    %485 = arith.truncf %484 : vector<16x16xf32> to vector<16x16xbf16>
    %cst_245 = arith.constant dense<0.000000e+00> : vector<16x16xf32>
    %486 = tpu.matmul %481, %483, %cst_245 {dimension_numbers = #tpu.dot_dimension_numbers<[1], [1], [0], [0], [0, 0, 1, 0], [], []>} : vector<16x16xbf16>, vector<16x16xbf16>, vector<16x16xf32> -> vector<16x16xf32>
    %487 = vector.extract_strided_slice %437 {offsets = [0, 0, 0], sizes = [1, 16, 16], strides = [1, 1, 1]} : vector<4x16x16xbf16> to vector<1x16x16xbf16>
    %488 = vector.shape_cast %487 : vector<1x16x16xbf16> to vector<16x16xbf16>
    %489 = arith.extf %488 : vector<16x16xbf16> to vector<16x16xf32>
    %490 = arith.addf %486, %489 : vector<16x16xf32>
    %cst_246 = arith.constant dense<0xFF800000> : vector<16xf32>
    %491 = vector.multi_reduction <maximumf>, %490, %cst_246 [1] : vector<16x16xf32> to vector<16xf32>
    %492 = vector.shape_cast %491 : vector<16xf32> to vector<16x1xf32>
    %493 = vector.broadcast %492 : vector<16x1xf32> to vector<16x16xf32>
    %494 = arith.subf %490, %493 : vector<16x16xf32>
    %495 = math.exp %494 : vector<16x16xf32>
    %cst_247 = arith.constant dense<0.000000e+00> : vector<16xf32>
    %496 = vector.multi_reduction <add>, %495, %cst_247 [1] : vector<16x16xf32> to vector<16xf32>
    %497 = vector.shape_cast %496 : vector<16xf32> to vector<16x1xf32>
    %498 = tpu.reciprocal %497 {approx = true} : vector<16x1xf32> -> vector<16x1xf32>
    %499 = vector.broadcast %498 : vector<16x1xf32> to vector<16x16xf32>
    %500 = arith.mulf %495, %499 : vector<16x16xf32>
    %501 = arith.truncf %500 : vector<16x16xf32> to vector<16x16xbf16>
    %cst_248 = arith.constant dense<0.000000e+00> : vector<16x16xf32>
    %502 = tpu.matmul %501, %485, %cst_248 {dimension_numbers = #tpu.dot_dimension_numbers<[1], [0], [0], [1], [0, 0, 1, 1], [], []>} : vector<16x16xbf16>, vector<16x16xbf16>, vector<16x16xf32> -> vector<16x16xf32>
    %503 = vector.extract_strided_slice %479 {offsets = [0, 16], sizes = [16, 16], strides = [1, 1]} : vector<16x192xf32> to vector<16x16xf32>
    %504 = arith.truncf %503 : vector<16x16xf32> to vector<16x16xbf16>
    %505 = vector.extract_strided_slice %479 {offsets = [0, 80], sizes = [16, 16], strides = [1, 1]} : vector<16x192xf32> to vector<16x16xf32>
    %506 = arith.truncf %505 : vector<16x16xf32> to vector<16x16xbf16>
    %507 = vector.extract_strided_slice %479 {offsets = [0, 144], sizes = [16, 16], strides = [1, 1]} : vector<16x192xf32> to vector<16x16xf32>
    %508 = arith.truncf %507 : vector<16x16xf32> to vector<16x16xbf16>
    %cst_249 = arith.constant dense<0.000000e+00> : vector<16x16xf32>
    %509 = tpu.matmul %504, %506, %cst_249 {dimension_numbers = #tpu.dot_dimension_numbers<[1], [1], [0], [0], [0, 0, 1, 0], [], []>} : vector<16x16xbf16>, vector<16x16xbf16>, vector<16x16xf32> -> vector<16x16xf32>
    %510 = vector.extract_strided_slice %437 {offsets = [1, 0, 0], sizes = [1, 16, 16], strides = [1, 1, 1]} : vector<4x16x16xbf16> to vector<1x16x16xbf16>
    %511 = vector.shape_cast %510 : vector<1x16x16xbf16> to vector<16x16xbf16>
    %512 = arith.extf %511 : vector<16x16xbf16> to vector<16x16xf32>
    %513 = arith.addf %509, %512 : vector<16x16xf32>
    %cst_250 = arith.constant dense<0xFF800000> : vector<16xf32>
    %514 = vector.multi_reduction <maximumf>, %513, %cst_250 [1] : vector<16x16xf32> to vector<16xf32>
    %515 = vector.shape_cast %514 : vector<16xf32> to vector<16x1xf32>
    %516 = vector.broadcast %515 : vector<16x1xf32> to vector<16x16xf32>
    %517 = arith.subf %513, %516 : vector<16x16xf32>
    %518 = math.exp %517 : vector<16x16xf32>
    %cst_251 = arith.constant dense<0.000000e+00> : vector<16xf32>
    %519 = vector.multi_reduction <add>, %518, %cst_251 [1] : vector<16x16xf32> to vector<16xf32>
    %520 = vector.shape_cast %519 : vector<16xf32> to vector<16x1xf32>
    %521 = tpu.reciprocal %520 {approx = true} : vector<16x1xf32> -> vector<16x1xf32>
    %522 = vector.broadcast %521 : vector<16x1xf32> to vector<16x16xf32>
    %523 = arith.mulf %518, %522 : vector<16x16xf32>
    %524 = arith.truncf %523 : vector<16x16xf32> to vector<16x16xbf16>
    %cst_252 = arith.constant dense<0.000000e+00> : vector<16x16xf32>
    %525 = tpu.matmul %524, %508, %cst_252 {dimension_numbers = #tpu.dot_dimension_numbers<[1], [0], [0], [1], [0, 0, 1, 1], [], []>} : vector<16x16xbf16>, vector<16x16xbf16>, vector<16x16xf32> -> vector<16x16xf32>
    %526 = vector.extract_strided_slice %479 {offsets = [0, 32], sizes = [16, 16], strides = [1, 1]} : vector<16x192xf32> to vector<16x16xf32>
    %527 = arith.truncf %526 : vector<16x16xf32> to vector<16x16xbf16>
    %528 = vector.extract_strided_slice %479 {offsets = [0, 96], sizes = [16, 16], strides = [1, 1]} : vector<16x192xf32> to vector<16x16xf32>
    %529 = arith.truncf %528 : vector<16x16xf32> to vector<16x16xbf16>
    %530 = vector.extract_strided_slice %479 {offsets = [0, 160], sizes = [16, 16], strides = [1, 1]} : vector<16x192xf32> to vector<16x16xf32>
    %531 = arith.truncf %530 : vector<16x16xf32> to vector<16x16xbf16>
    %cst_253 = arith.constant dense<0.000000e+00> : vector<16x16xf32>
    %532 = tpu.matmul %527, %529, %cst_253 {dimension_numbers = #tpu.dot_dimension_numbers<[1], [1], [0], [0], [0, 0, 1, 0], [], []>} : vector<16x16xbf16>, vector<16x16xbf16>, vector<16x16xf32> -> vector<16x16xf32>
    %533 = vector.extract_strided_slice %437 {offsets = [2, 0, 0], sizes = [1, 16, 16], strides = [1, 1, 1]} : vector<4x16x16xbf16> to vector<1x16x16xbf16>
    %534 = vector.shape_cast %533 : vector<1x16x16xbf16> to vector<16x16xbf16>
    %535 = arith.extf %534 : vector<16x16xbf16> to vector<16x16xf32>
    %536 = arith.addf %532, %535 : vector<16x16xf32>
    %cst_254 = arith.constant dense<0xFF800000> : vector<16xf32>
    %537 = vector.multi_reduction <maximumf>, %536, %cst_254 [1] : vector<16x16xf32> to vector<16xf32>
    %538 = vector.shape_cast %537 : vector<16xf32> to vector<16x1xf32>
    %539 = vector.broadcast %538 : vector<16x1xf32> to vector<16x16xf32>
    %540 = arith.subf %536, %539 : vector<16x16xf32>
    %541 = math.exp %540 : vector<16x16xf32>
    %cst_255 = arith.constant dense<0.000000e+00> : vector<16xf32>
    %542 = vector.multi_reduction <add>, %541, %cst_255 [1] : vector<16x16xf32> to vector<16xf32>
    %543 = vector.shape_cast %542 : vector<16xf32> to vector<16x1xf32>
    %544 = tpu.reciprocal %543 {approx = true} : vector<16x1xf32> -> vector<16x1xf32>
    %545 = vector.broadcast %544 : vector<16x1xf32> to vector<16x16xf32>
    %546 = arith.mulf %541, %545 : vector<16x16xf32>
    %547 = arith.truncf %546 : vector<16x16xf32> to vector<16x16xbf16>
    %cst_256 = arith.constant dense<0.000000e+00> : vector<16x16xf32>
    %548 = tpu.matmul %547, %531, %cst_256 {dimension_numbers = #tpu.dot_dimension_numbers<[1], [0], [0], [1], [0, 0, 1, 1], [], []>} : vector<16x16xbf16>, vector<16x16xbf16>, vector<16x16xf32> -> vector<16x16xf32>
    %549 = vector.extract_strided_slice %479 {offsets = [0, 48], sizes = [16, 16], strides = [1, 1]} : vector<16x192xf32> to vector<16x16xf32>
    %550 = arith.truncf %549 : vector<16x16xf32> to vector<16x16xbf16>
    %551 = vector.extract_strided_slice %479 {offsets = [0, 112], sizes = [16, 16], strides = [1, 1]} : vector<16x192xf32> to vector<16x16xf32>
    %552 = arith.truncf %551 : vector<16x16xf32> to vector<16x16xbf16>
    %553 = vector.extract_strided_slice %479 {offsets = [0, 176], sizes = [16, 16], strides = [1, 1]} : vector<16x192xf32> to vector<16x16xf32>
    %554 = arith.truncf %553 : vector<16x16xf32> to vector<16x16xbf16>
    %cst_257 = arith.constant dense<0.000000e+00> : vector<16x16xf32>
    %555 = tpu.matmul %550, %552, %cst_257 {dimension_numbers = #tpu.dot_dimension_numbers<[1], [1], [0], [0], [0, 0, 1, 0], [], []>} : vector<16x16xbf16>, vector<16x16xbf16>, vector<16x16xf32> -> vector<16x16xf32>
    %556 = vector.extract_strided_slice %437 {offsets = [3, 0, 0], sizes = [1, 16, 16], strides = [1, 1, 1]} : vector<4x16x16xbf16> to vector<1x16x16xbf16>
    %557 = vector.shape_cast %556 : vector<1x16x16xbf16> to vector<16x16xbf16>
    %558 = arith.extf %557 : vector<16x16xbf16> to vector<16x16xf32>
    %559 = arith.addf %555, %558 : vector<16x16xf32>
    %cst_258 = arith.constant dense<0xFF800000> : vector<16xf32>
    %560 = vector.multi_reduction <maximumf>, %559, %cst_258 [1] : vector<16x16xf32> to vector<16xf32>
    %561 = vector.shape_cast %560 : vector<16xf32> to vector<16x1xf32>
    %562 = vector.broadcast %561 : vector<16x1xf32> to vector<16x16xf32>
    %563 = arith.subf %559, %562 : vector<16x16xf32>
    %564 = math.exp %563 : vector<16x16xf32>
    %cst_259 = arith.constant dense<0.000000e+00> : vector<16xf32>
    %565 = vector.multi_reduction <add>, %564, %cst_259 [1] : vector<16x16xf32> to vector<16xf32>
    %566 = vector.shape_cast %565 : vector<16xf32> to vector<16x1xf32>
    %567 = tpu.reciprocal %566 {approx = true} : vector<16x1xf32> -> vector<16x1xf32>
    %568 = vector.broadcast %567 : vector<16x1xf32> to vector<16x16xf32>
    %569 = arith.mulf %564, %568 : vector<16x16xf32>
    %570 = arith.truncf %569 : vector<16x16xf32> to vector<16x16xbf16>
    %cst_260 = arith.constant dense<0.000000e+00> : vector<16x16xf32>
    %571 = tpu.matmul %570, %554, %cst_260 {dimension_numbers = #tpu.dot_dimension_numbers<[1], [0], [0], [1], [0, 0, 1, 1], [], []>} : vector<16x16xbf16>, vector<16x16xbf16>, vector<16x16xf32> -> vector<16x16xf32>
    %572 = tpu.concatenate %502, %525, %548, %571 in 1 : vector<16x16xf32>, vector<16x16xf32>, vector<16x16xf32>, vector<16x16xf32> -> vector<16x64xf32>
    %573 = arith.truncf %572 : vector<16x64xf32> to vector<16x64xbf16>
    %cst_261 = arith.constant dense<0.000000e+00> : vector<16x64xf32>
    %574 = tpu.matmul %573, %439, %cst_261 {dimension_numbers = #tpu.dot_dimension_numbers<[1], [0], [0], [1], [0, 0, 1, 1], [], []>} : vector<16x64xbf16>, vector<64x64xbf16>, vector<16x64xf32> -> vector<16x64xf32>
    %575 = arith.addf %427, %574 : vector<16x64xf32>
    %576 = vector.broadcast %441 : vector<1x64xf32> to vector<16x64xf32>
    %577 = arith.addf %575, %576 : vector<16x64xf32>
    %cst_262 = arith.constant dense<0.000000e+00> : vector<16xf32>
    %578 = vector.multi_reduction <add>, %577, %cst_262 [1] : vector<16x64xf32> to vector<16xf32>
    %579 = vector.shape_cast %578 : vector<16xf32> to vector<16x1xf32>
    %cst_263 = arith.constant 6.400000e+01 : f32
    %580 = vector.broadcast %cst_263 : f32 to vector<16x1xf32>
    %581 = arith.divf %579, %580 : vector<16x1xf32>
    %582 = vector.broadcast %581 : vector<16x1xf32> to vector<16x64xf32>
    %583 = arith.subf %577, %582 : vector<16x64xf32>
    %584 = arith.mulf %583, %583 : vector<16x64xf32>
    %cst_264 = arith.constant dense<0.000000e+00> : vector<16xf32>
    %585 = vector.multi_reduction <add>, %584, %cst_264 [1] : vector<16x64xf32> to vector<16xf32>
    %586 = vector.shape_cast %585 : vector<16xf32> to vector<16x1xf32>
    %cst_265 = arith.constant 6.400000e+01 : f32
    %587 = vector.broadcast %cst_265 : f32 to vector<16x1xf32>
    %588 = arith.divf %586, %587 : vector<16x1xf32>
    %589 = vector.broadcast %581 : vector<16x1xf32> to vector<16x64xf32>
    %590 = arith.subf %577, %589 : vector<16x64xf32>
    %cst_266 = arith.constant 9.99999974E-6 : f32
    %591 = vector.broadcast %cst_266 : f32 to vector<16x1xf32>
    %592 = arith.addf %588, %591 : vector<16x1xf32>
    %593 = math.rsqrt %592 : vector<16x1xf32>
    %594 = vector.broadcast %593 : vector<16x1xf32> to vector<16x64xf32>
    %595 = arith.mulf %590, %594 : vector<16x64xf32>
    %596 = vector.broadcast %443 : vector<1x64xf32> to vector<16x64xf32>
    %597 = arith.mulf %595, %596 : vector<16x64xf32>
    %598 = vector.broadcast %445 : vector<1x64xf32> to vector<16x64xf32>
    %599 = arith.addf %597, %598 : vector<16x64xf32>
    %600 = arith.truncf %599 : vector<16x64xf32> to vector<16x64xbf16>
    %cst_267 = arith.constant dense<0.000000e+00> : vector<16x256xf32>
    %601 = tpu.matmul %600, %447, %cst_267 {dimension_numbers = #tpu.dot_dimension_numbers<[1], [0], [0], [1], [0, 0, 1, 1], [], []>} : vector<16x64xbf16>, vector<64x256xbf16>, vector<16x256xf32> -> vector<16x256xf32>
    %602 = vector.broadcast %449 : vector<1x256xf32> to vector<16x256xf32>
    %603 = arith.addf %601, %602 : vector<16x256xf32>
    %cst_268 = arith.constant 0.707106769 : f32
    %604 = vector.broadcast %cst_268 : f32 to vector<16x256xf32>
    %605 = arith.mulf %603, %604 : vector<16x256xf32>
    %cst_269 = arith.constant 0.000000e+00 : f32
    %606 = vector.broadcast %cst_269 : f32 to vector<16x256xf32>
    %607 = arith.cmpf oge, %605, %606 : vector<16x256xf32>
    %cst_270 = arith.constant 1.000000e+00 : f32
    %cst_271 = arith.constant -1.000000e+00 : f32
    %608 = vector.broadcast %cst_270 : f32 to vector<16x256xf32>
    %609 = vector.broadcast %cst_271 : f32 to vector<16x256xf32>
    %610 = arith.select %607, %608, %609 : vector<16x256xi1>, vector<16x256xf32>
    %611 = math.absf %605 : vector<16x256xf32>
    %cst_272 = arith.constant 0.327591091 : f32
    %612 = vector.broadcast %cst_272 : f32 to vector<16x256xf32>
    %613 = arith.mulf %612, %611 : vector<16x256xf32>
    %cst_273 = arith.constant 1.000000e+00 : f32
    %614 = vector.broadcast %cst_273 : f32 to vector<16x256xf32>
    %615 = arith.addf %614, %613 : vector<16x256xf32>
    %cst_274 = arith.constant 1.000000e+00 : f32
    %616 = vector.broadcast %cst_274 : f32 to vector<16x256xf32>
    %617 = arith.divf %616, %615 : vector<16x256xf32>
    %cst_275 = arith.constant 1.06140542 : f32
    %618 = vector.broadcast %cst_275 : f32 to vector<16x256xf32>
    %619 = arith.mulf %618, %617 : vector<16x256xf32>
    %cst_276 = arith.constant -1.45315206 : f32
    %620 = vector.broadcast %cst_276 : f32 to vector<16x256xf32>
    %621 = arith.addf %619, %620 : vector<16x256xf32>
    %622 = arith.mulf %621, %617 : vector<16x256xf32>
    %cst_277 = arith.constant 1.42141378 : f32
    %623 = vector.broadcast %cst_277 : f32 to vector<16x256xf32>
    %624 = arith.addf %622, %623 : vector<16x256xf32>
    %625 = arith.mulf %624, %617 : vector<16x256xf32>
    %cst_278 = arith.constant -0.284496725 : f32
    %626 = vector.broadcast %cst_278 : f32 to vector<16x256xf32>
    %627 = arith.addf %625, %626 : vector<16x256xf32>
    %628 = arith.mulf %627, %617 : vector<16x256xf32>
    %cst_279 = arith.constant 0.254829586 : f32
    %629 = vector.broadcast %cst_279 : f32 to vector<16x256xf32>
    %630 = arith.addf %628, %629 : vector<16x256xf32>
    %631 = arith.mulf %630, %617 : vector<16x256xf32>
    %cst_280 = arith.constant 0.000000e+00 : f32
    %632 = vector.broadcast %cst_280 : f32 to vector<16x256xf32>
    %633 = arith.subf %632, %611 : vector<16x256xf32>
    %634 = arith.mulf %633, %611 : vector<16x256xf32>
    %635 = math.exp %634 : vector<16x256xf32>
    %636 = arith.mulf %631, %635 : vector<16x256xf32>
    %cst_281 = arith.constant 1.000000e+00 : f32
    %637 = vector.broadcast %cst_281 : f32 to vector<16x256xf32>
    %638 = arith.subf %637, %636 : vector<16x256xf32>
    %639 = arith.mulf %610, %638 : vector<16x256xf32>
    %cst_282 = arith.constant 5.000000e-01 : f32
    %640 = vector.broadcast %cst_282 : f32 to vector<16x256xf32>
    %641 = arith.mulf %640, %603 : vector<16x256xf32>
    %cst_283 = arith.constant 1.000000e+00 : f32
    %642 = vector.broadcast %cst_283 : f32 to vector<16x256xf32>
    %643 = arith.addf %642, %639 : vector<16x256xf32>
    %644 = arith.mulf %641, %643 : vector<16x256xf32>
    %645 = arith.truncf %644 : vector<16x256xf32> to vector<16x256xbf16>
    %cst_284 = arith.constant dense<0.000000e+00> : vector<16x64xf32>
    %646 = tpu.matmul %645, %451, %cst_284 {dimension_numbers = #tpu.dot_dimension_numbers<[1], [0], [0], [1], [0, 0, 1, 1], [], []>} : vector<16x256xbf16>, vector<256x64xbf16>, vector<16x64xf32> -> vector<16x64xf32>
    %647 = vector.broadcast %453 : vector<1x64xf32> to vector<16x64xf32>
    %648 = arith.addf %646, %647 : vector<16x64xf32>
    %649 = arith.addf %577, %648 : vector<16x64xf32>
    %c1_285 = arith.constant 1 : index
    %c0_286 = arith.constant 0 : index
    %c0_287 = arith.constant 0 : index
    %650 = vector.load %arg23[%c1_285, %c0_286, %c0_287] : memref<2x1x64xf32, #tpu.memory_space<vmem>>, vector<1x1x64xf32>
    %651 = vector.shape_cast %650 : vector<1x1x64xf32> to vector<1x64xf32>
    %c1_288 = arith.constant 1 : index
    %c0_289 = arith.constant 0 : index
    %c0_290 = arith.constant 0 : index
    %652 = vector.load %arg24[%c1_288, %c0_289, %c0_290] : memref<2x1x64xf32, #tpu.memory_space<vmem>>, vector<1x1x64xf32>
    %653 = vector.shape_cast %652 : vector<1x1x64xf32> to vector<1x64xf32>
    %c1_291 = arith.constant 1 : index
    %c0_292 = arith.constant 0 : index
    %c0_293 = arith.constant 0 : index
    %654 = vector.load %arg25[%c1_291, %c0_292, %c0_293] : memref<2x64x192xbf16, #tpu.memory_space<vmem>>, vector<1x64x192xbf16>
    %655 = vector.shape_cast %654 : vector<1x64x192xbf16> to vector<64x192xbf16>
    %c1_294 = arith.constant 1 : index
    %c0_295 = arith.constant 0 : index
    %c0_296 = arith.constant 0 : index
    %656 = vector.load %arg26[%c1_294, %c0_295, %c0_296] : memref<2x1x192xf32, #tpu.memory_space<vmem>>, vector<1x1x192xf32>
    %657 = vector.shape_cast %656 : vector<1x1x192xf32> to vector<1x192xf32>
    %c1_297 = arith.constant 1 : index
    %c0_298 = arith.constant 0 : index
    %c0_299 = arith.constant 0 : index
    %c0_300 = arith.constant 0 : index
    %658 = vector.load %arg27[%c1_297, %c0_298, %c0_299, %c0_300] : memref<2x4x16x16xbf16, #tpu.memory_space<vmem>>, vector<1x4x16x16xbf16>
    %659 = vector.shape_cast %658 : vector<1x4x16x16xbf16> to vector<4x16x16xbf16>
    %c1_301 = arith.constant 1 : index
    %c0_302 = arith.constant 0 : index
    %c0_303 = arith.constant 0 : index
    %660 = vector.load %arg28[%c1_301, %c0_302, %c0_303] : memref<2x64x64xbf16, #tpu.memory_space<vmem>>, vector<1x64x64xbf16>
    %661 = vector.shape_cast %660 : vector<1x64x64xbf16> to vector<64x64xbf16>
    %c1_304 = arith.constant 1 : index
    %c0_305 = arith.constant 0 : index
    %c0_306 = arith.constant 0 : index
    %662 = vector.load %arg29[%c1_304, %c0_305, %c0_306] : memref<2x1x64xf32, #tpu.memory_space<vmem>>, vector<1x1x64xf32>
    %663 = vector.shape_cast %662 : vector<1x1x64xf32> to vector<1x64xf32>
    %c1_307 = arith.constant 1 : index
    %c0_308 = arith.constant 0 : index
    %c0_309 = arith.constant 0 : index
    %664 = vector.load %arg30[%c1_307, %c0_308, %c0_309] : memref<2x1x64xf32, #tpu.memory_space<vmem>>, vector<1x1x64xf32>
    %665 = vector.shape_cast %664 : vector<1x1x64xf32> to vector<1x64xf32>
    %c1_310 = arith.constant 1 : index
    %c0_311 = arith.constant 0 : index
    %c0_312 = arith.constant 0 : index
    %666 = vector.load %arg31[%c1_310, %c0_311, %c0_312] : memref<2x1x64xf32, #tpu.memory_space<vmem>>, vector<1x1x64xf32>
    %667 = vector.shape_cast %666 : vector<1x1x64xf32> to vector<1x64xf32>
    %c1_313 = arith.constant 1 : index
    %c0_314 = arith.constant 0 : index
    %c0_315 = arith.constant 0 : index
    %668 = vector.load %arg32[%c1_313, %c0_314, %c0_315] : memref<2x64x256xbf16, #tpu.memory_space<vmem>>, vector<1x64x256xbf16>
    %669 = vector.shape_cast %668 : vector<1x64x256xbf16> to vector<64x256xbf16>
    %c1_316 = arith.constant 1 : index
    %c0_317 = arith.constant 0 : index
    %c0_318 = arith.constant 0 : index
    %670 = vector.load %arg33[%c1_316, %c0_317, %c0_318] : memref<2x1x256xf32, #tpu.memory_space<vmem>>, vector<1x1x256xf32>
    %671 = vector.shape_cast %670 : vector<1x1x256xf32> to vector<1x256xf32>
    %c1_319 = arith.constant 1 : index
    %c0_320 = arith.constant 0 : index
    %c0_321 = arith.constant 0 : index
    %672 = vector.load %arg34[%c1_319, %c0_320, %c0_321] : memref<2x256x64xbf16, #tpu.memory_space<vmem>>, vector<1x256x64xbf16>
    %673 = vector.shape_cast %672 : vector<1x256x64xbf16> to vector<256x64xbf16>
    %c1_322 = arith.constant 1 : index
    %c0_323 = arith.constant 0 : index
    %c0_324 = arith.constant 0 : index
    %674 = vector.load %arg35[%c1_322, %c0_323, %c0_324] : memref<2x1x64xf32, #tpu.memory_space<vmem>>, vector<1x1x64xf32>
    %675 = vector.shape_cast %674 : vector<1x1x64xf32> to vector<1x64xf32>
    %cst_325 = arith.constant dense<0.000000e+00> : vector<16xf32>
    %676 = vector.multi_reduction <add>, %649, %cst_325 [1] : vector<16x64xf32> to vector<16xf32>
    %677 = vector.shape_cast %676 : vector<16xf32> to vector<16x1xf32>
    %cst_326 = arith.constant 6.400000e+01 : f32
    %678 = vector.broadcast %cst_326 : f32 to vector<16x1xf32>
    %679 = arith.divf %677, %678 : vector<16x1xf32>
    %680 = vector.broadcast %679 : vector<16x1xf32> to vector<16x64xf32>
    %681 = arith.subf %649, %680 : vector<16x64xf32>
    %682 = arith.mulf %681, %681 : vector<16x64xf32>
    %cst_327 = arith.constant dense<0.000000e+00> : vector<16xf32>
    %683 = vector.multi_reduction <add>, %682, %cst_327 [1] : vector<16x64xf32> to vector<16xf32>
    %684 = vector.shape_cast %683 : vector<16xf32> to vector<16x1xf32>
    %cst_328 = arith.constant 6.400000e+01 : f32
    %685 = vector.broadcast %cst_328 : f32 to vector<16x1xf32>
    %686 = arith.divf %684, %685 : vector<16x1xf32>
    %687 = vector.broadcast %679 : vector<16x1xf32> to vector<16x64xf32>
    %688 = arith.subf %649, %687 : vector<16x64xf32>
    %cst_329 = arith.constant 9.99999974E-6 : f32
    %689 = vector.broadcast %cst_329 : f32 to vector<16x1xf32>
    %690 = arith.addf %686, %689 : vector<16x1xf32>
    %691 = math.rsqrt %690 : vector<16x1xf32>
    %692 = vector.broadcast %691 : vector<16x1xf32> to vector<16x64xf32>
    %693 = arith.mulf %688, %692 : vector<16x64xf32>
    %694 = vector.broadcast %651 : vector<1x64xf32> to vector<16x64xf32>
    %695 = arith.mulf %693, %694 : vector<16x64xf32>
    %696 = vector.broadcast %653 : vector<1x64xf32> to vector<16x64xf32>
    %697 = arith.addf %695, %696 : vector<16x64xf32>
    %698 = arith.truncf %697 : vector<16x64xf32> to vector<16x64xbf16>
    %cst_330 = arith.constant dense<0.000000e+00> : vector<16x192xf32>
    %699 = tpu.matmul %698, %655, %cst_330 {dimension_numbers = #tpu.dot_dimension_numbers<[1], [0], [0], [1], [0, 0, 1, 1], [], []>} : vector<16x64xbf16>, vector<64x192xbf16>, vector<16x192xf32> -> vector<16x192xf32>
    %700 = vector.broadcast %657 : vector<1x192xf32> to vector<16x192xf32>
    %701 = arith.addf %699, %700 : vector<16x192xf32>
    %702 = vector.extract_strided_slice %701 {offsets = [0, 0], sizes = [16, 16], strides = [1, 1]} : vector<16x192xf32> to vector<16x16xf32>
    %703 = arith.truncf %702 : vector<16x16xf32> to vector<16x16xbf16>
    %704 = vector.extract_strided_slice %701 {offsets = [0, 64], sizes = [16, 16], strides = [1, 1]} : vector<16x192xf32> to vector<16x16xf32>
    %705 = arith.truncf %704 : vector<16x16xf32> to vector<16x16xbf16>
    %706 = vector.extract_strided_slice %701 {offsets = [0, 128], sizes = [16, 16], strides = [1, 1]} : vector<16x192xf32> to vector<16x16xf32>
    %707 = arith.truncf %706 : vector<16x16xf32> to vector<16x16xbf16>
    %cst_331 = arith.constant dense<0.000000e+00> : vector<16x16xf32>
    %708 = tpu.matmul %703, %705, %cst_331 {dimension_numbers = #tpu.dot_dimension_numbers<[1], [1], [0], [0], [0, 0, 1, 0], [], []>} : vector<16x16xbf16>, vector<16x16xbf16>, vector<16x16xf32> -> vector<16x16xf32>
    %709 = vector.extract_strided_slice %659 {offsets = [0, 0, 0], sizes = [1, 16, 16], strides = [1, 1, 1]} : vector<4x16x16xbf16> to vector<1x16x16xbf16>
    %710 = vector.shape_cast %709 : vector<1x16x16xbf16> to vector<16x16xbf16>
    %711 = arith.extf %710 : vector<16x16xbf16> to vector<16x16xf32>
    %712 = arith.addf %708, %711 : vector<16x16xf32>
    %cst_332 = arith.constant dense<0xFF800000> : vector<16xf32>
    %713 = vector.multi_reduction <maximumf>, %712, %cst_332 [1] : vector<16x16xf32> to vector<16xf32>
    %714 = vector.shape_cast %713 : vector<16xf32> to vector<16x1xf32>
    %715 = vector.broadcast %714 : vector<16x1xf32> to vector<16x16xf32>
    %716 = arith.subf %712, %715 : vector<16x16xf32>
    %717 = math.exp %716 : vector<16x16xf32>
    %cst_333 = arith.constant dense<0.000000e+00> : vector<16xf32>
    %718 = vector.multi_reduction <add>, %717, %cst_333 [1] : vector<16x16xf32> to vector<16xf32>
    %719 = vector.shape_cast %718 : vector<16xf32> to vector<16x1xf32>
    %720 = tpu.reciprocal %719 {approx = true} : vector<16x1xf32> -> vector<16x1xf32>
    %721 = vector.broadcast %720 : vector<16x1xf32> to vector<16x16xf32>
    %722 = arith.mulf %717, %721 : vector<16x16xf32>
    %723 = arith.truncf %722 : vector<16x16xf32> to vector<16x16xbf16>
    %cst_334 = arith.constant dense<0.000000e+00> : vector<16x16xf32>
    %724 = tpu.matmul %723, %707, %cst_334 {dimension_numbers = #tpu.dot_dimension_numbers<[1], [0], [0], [1], [0, 0, 1, 1], [], []>} : vector<16x16xbf16>, vector<16x16xbf16>, vector<16x16xf32> -> vector<16x16xf32>
    %725 = vector.extract_strided_slice %701 {offsets = [0, 16], sizes = [16, 16], strides = [1, 1]} : vector<16x192xf32> to vector<16x16xf32>
    %726 = arith.truncf %725 : vector<16x16xf32> to vector<16x16xbf16>
    %727 = vector.extract_strided_slice %701 {offsets = [0, 80], sizes = [16, 16], strides = [1, 1]} : vector<16x192xf32> to vector<16x16xf32>
    %728 = arith.truncf %727 : vector<16x16xf32> to vector<16x16xbf16>
    %729 = vector.extract_strided_slice %701 {offsets = [0, 144], sizes = [16, 16], strides = [1, 1]} : vector<16x192xf32> to vector<16x16xf32>
    %730 = arith.truncf %729 : vector<16x16xf32> to vector<16x16xbf16>
    %cst_335 = arith.constant dense<0.000000e+00> : vector<16x16xf32>
    %731 = tpu.matmul %726, %728, %cst_335 {dimension_numbers = #tpu.dot_dimension_numbers<[1], [1], [0], [0], [0, 0, 1, 0], [], []>} : vector<16x16xbf16>, vector<16x16xbf16>, vector<16x16xf32> -> vector<16x16xf32>
    %732 = vector.extract_strided_slice %659 {offsets = [1, 0, 0], sizes = [1, 16, 16], strides = [1, 1, 1]} : vector<4x16x16xbf16> to vector<1x16x16xbf16>
    %733 = vector.shape_cast %732 : vector<1x16x16xbf16> to vector<16x16xbf16>
    %734 = arith.extf %733 : vector<16x16xbf16> to vector<16x16xf32>
    %735 = arith.addf %731, %734 : vector<16x16xf32>
    %cst_336 = arith.constant dense<0xFF800000> : vector<16xf32>
    %736 = vector.multi_reduction <maximumf>, %735, %cst_336 [1] : vector<16x16xf32> to vector<16xf32>
    %737 = vector.shape_cast %736 : vector<16xf32> to vector<16x1xf32>
    %738 = vector.broadcast %737 : vector<16x1xf32> to vector<16x16xf32>
    %739 = arith.subf %735, %738 : vector<16x16xf32>
    %740 = math.exp %739 : vector<16x16xf32>
    %cst_337 = arith.constant dense<0.000000e+00> : vector<16xf32>
    %741 = vector.multi_reduction <add>, %740, %cst_337 [1] : vector<16x16xf32> to vector<16xf32>
    %742 = vector.shape_cast %741 : vector<16xf32> to vector<16x1xf32>
    %743 = tpu.reciprocal %742 {approx = true} : vector<16x1xf32> -> vector<16x1xf32>
    %744 = vector.broadcast %743 : vector<16x1xf32> to vector<16x16xf32>
    %745 = arith.mulf %740, %744 : vector<16x16xf32>
    %746 = arith.truncf %745 : vector<16x16xf32> to vector<16x16xbf16>
    %cst_338 = arith.constant dense<0.000000e+00> : vector<16x16xf32>
    %747 = tpu.matmul %746, %730, %cst_338 {dimension_numbers = #tpu.dot_dimension_numbers<[1], [0], [0], [1], [0, 0, 1, 1], [], []>} : vector<16x16xbf16>, vector<16x16xbf16>, vector<16x16xf32> -> vector<16x16xf32>
    %748 = vector.extract_strided_slice %701 {offsets = [0, 32], sizes = [16, 16], strides = [1, 1]} : vector<16x192xf32> to vector<16x16xf32>
    %749 = arith.truncf %748 : vector<16x16xf32> to vector<16x16xbf16>
    %750 = vector.extract_strided_slice %701 {offsets = [0, 96], sizes = [16, 16], strides = [1, 1]} : vector<16x192xf32> to vector<16x16xf32>
    %751 = arith.truncf %750 : vector<16x16xf32> to vector<16x16xbf16>
    %752 = vector.extract_strided_slice %701 {offsets = [0, 160], sizes = [16, 16], strides = [1, 1]} : vector<16x192xf32> to vector<16x16xf32>
    %753 = arith.truncf %752 : vector<16x16xf32> to vector<16x16xbf16>
    %cst_339 = arith.constant dense<0.000000e+00> : vector<16x16xf32>
    %754 = tpu.matmul %749, %751, %cst_339 {dimension_numbers = #tpu.dot_dimension_numbers<[1], [1], [0], [0], [0, 0, 1, 0], [], []>} : vector<16x16xbf16>, vector<16x16xbf16>, vector<16x16xf32> -> vector<16x16xf32>
    %755 = vector.extract_strided_slice %659 {offsets = [2, 0, 0], sizes = [1, 16, 16], strides = [1, 1, 1]} : vector<4x16x16xbf16> to vector<1x16x16xbf16>
    %756 = vector.shape_cast %755 : vector<1x16x16xbf16> to vector<16x16xbf16>
    %757 = arith.extf %756 : vector<16x16xbf16> to vector<16x16xf32>
    %758 = arith.addf %754, %757 : vector<16x16xf32>
    %cst_340 = arith.constant dense<0xFF800000> : vector<16xf32>
    %759 = vector.multi_reduction <maximumf>, %758, %cst_340 [1] : vector<16x16xf32> to vector<16xf32>
    %760 = vector.shape_cast %759 : vector<16xf32> to vector<16x1xf32>
    %761 = vector.broadcast %760 : vector<16x1xf32> to vector<16x16xf32>
    %762 = arith.subf %758, %761 : vector<16x16xf32>
    %763 = math.exp %762 : vector<16x16xf32>
    %cst_341 = arith.constant dense<0.000000e+00> : vector<16xf32>
    %764 = vector.multi_reduction <add>, %763, %cst_341 [1] : vector<16x16xf32> to vector<16xf32>
    %765 = vector.shape_cast %764 : vector<16xf32> to vector<16x1xf32>
    %766 = tpu.reciprocal %765 {approx = true} : vector<16x1xf32> -> vector<16x1xf32>
    %767 = vector.broadcast %766 : vector<16x1xf32> to vector<16x16xf32>
    %768 = arith.mulf %763, %767 : vector<16x16xf32>
    %769 = arith.truncf %768 : vector<16x16xf32> to vector<16x16xbf16>
    %cst_342 = arith.constant dense<0.000000e+00> : vector<16x16xf32>
    %770 = tpu.matmul %769, %753, %cst_342 {dimension_numbers = #tpu.dot_dimension_numbers<[1], [0], [0], [1], [0, 0, 1, 1], [], []>} : vector<16x16xbf16>, vector<16x16xbf16>, vector<16x16xf32> -> vector<16x16xf32>
    %771 = vector.extract_strided_slice %701 {offsets = [0, 48], sizes = [16, 16], strides = [1, 1]} : vector<16x192xf32> to vector<16x16xf32>
    %772 = arith.truncf %771 : vector<16x16xf32> to vector<16x16xbf16>
    %773 = vector.extract_strided_slice %701 {offsets = [0, 112], sizes = [16, 16], strides = [1, 1]} : vector<16x192xf32> to vector<16x16xf32>
    %774 = arith.truncf %773 : vector<16x16xf32> to vector<16x16xbf16>
    %775 = vector.extract_strided_slice %701 {offsets = [0, 176], sizes = [16, 16], strides = [1, 1]} : vector<16x192xf32> to vector<16x16xf32>
    %776 = arith.truncf %775 : vector<16x16xf32> to vector<16x16xbf16>
    %cst_343 = arith.constant dense<0.000000e+00> : vector<16x16xf32>
    %777 = tpu.matmul %772, %774, %cst_343 {dimension_numbers = #tpu.dot_dimension_numbers<[1], [1], [0], [0], [0, 0, 1, 0], [], []>} : vector<16x16xbf16>, vector<16x16xbf16>, vector<16x16xf32> -> vector<16x16xf32>
    %778 = vector.extract_strided_slice %659 {offsets = [3, 0, 0], sizes = [1, 16, 16], strides = [1, 1, 1]} : vector<4x16x16xbf16> to vector<1x16x16xbf16>
    %779 = vector.shape_cast %778 : vector<1x16x16xbf16> to vector<16x16xbf16>
    %780 = arith.extf %779 : vector<16x16xbf16> to vector<16x16xf32>
    %781 = arith.addf %777, %780 : vector<16x16xf32>
    %cst_344 = arith.constant dense<0xFF800000> : vector<16xf32>
    %782 = vector.multi_reduction <maximumf>, %781, %cst_344 [1] : vector<16x16xf32> to vector<16xf32>
    %783 = vector.shape_cast %782 : vector<16xf32> to vector<16x1xf32>
    %784 = vector.broadcast %783 : vector<16x1xf32> to vector<16x16xf32>
    %785 = arith.subf %781, %784 : vector<16x16xf32>
    %786 = math.exp %785 : vector<16x16xf32>
    %cst_345 = arith.constant dense<0.000000e+00> : vector<16xf32>
    %787 = vector.multi_reduction <add>, %786, %cst_345 [1] : vector<16x16xf32> to vector<16xf32>
    %788 = vector.shape_cast %787 : vector<16xf32> to vector<16x1xf32>
    %789 = tpu.reciprocal %788 {approx = true} : vector<16x1xf32> -> vector<16x1xf32>
    %790 = vector.broadcast %789 : vector<16x1xf32> to vector<16x16xf32>
    %791 = arith.mulf %786, %790 : vector<16x16xf32>
    %792 = arith.truncf %791 : vector<16x16xf32> to vector<16x16xbf16>
    %cst_346 = arith.constant dense<0.000000e+00> : vector<16x16xf32>
    %793 = tpu.matmul %792, %776, %cst_346 {dimension_numbers = #tpu.dot_dimension_numbers<[1], [0], [0], [1], [0, 0, 1, 1], [], []>} : vector<16x16xbf16>, vector<16x16xbf16>, vector<16x16xf32> -> vector<16x16xf32>
    %794 = tpu.concatenate %724, %747, %770, %793 in 1 : vector<16x16xf32>, vector<16x16xf32>, vector<16x16xf32>, vector<16x16xf32> -> vector<16x64xf32>
    %795 = arith.truncf %794 : vector<16x64xf32> to vector<16x64xbf16>
    %cst_347 = arith.constant dense<0.000000e+00> : vector<16x64xf32>
    %796 = tpu.matmul %795, %661, %cst_347 {dimension_numbers = #tpu.dot_dimension_numbers<[1], [0], [0], [1], [0, 0, 1, 1], [], []>} : vector<16x64xbf16>, vector<64x64xbf16>, vector<16x64xf32> -> vector<16x64xf32>
    %797 = arith.addf %649, %796 : vector<16x64xf32>
    %798 = vector.broadcast %663 : vector<1x64xf32> to vector<16x64xf32>
    %799 = arith.addf %797, %798 : vector<16x64xf32>
    %cst_348 = arith.constant dense<0.000000e+00> : vector<16xf32>
    %800 = vector.multi_reduction <add>, %799, %cst_348 [1] : vector<16x64xf32> to vector<16xf32>
    %801 = vector.shape_cast %800 : vector<16xf32> to vector<16x1xf32>
    %cst_349 = arith.constant 6.400000e+01 : f32
    %802 = vector.broadcast %cst_349 : f32 to vector<16x1xf32>
    %803 = arith.divf %801, %802 : vector<16x1xf32>
    %804 = vector.broadcast %803 : vector<16x1xf32> to vector<16x64xf32>
    %805 = arith.subf %799, %804 : vector<16x64xf32>
    %806 = arith.mulf %805, %805 : vector<16x64xf32>
    %cst_350 = arith.constant dense<0.000000e+00> : vector<16xf32>
    %807 = vector.multi_reduction <add>, %806, %cst_350 [1] : vector<16x64xf32> to vector<16xf32>
    %808 = vector.shape_cast %807 : vector<16xf32> to vector<16x1xf32>
    %cst_351 = arith.constant 6.400000e+01 : f32
    %809 = vector.broadcast %cst_351 : f32 to vector<16x1xf32>
    %810 = arith.divf %808, %809 : vector<16x1xf32>
    %811 = vector.broadcast %803 : vector<16x1xf32> to vector<16x64xf32>
    %812 = arith.subf %799, %811 : vector<16x64xf32>
    %cst_352 = arith.constant 9.99999974E-6 : f32
    %813 = vector.broadcast %cst_352 : f32 to vector<16x1xf32>
    %814 = arith.addf %810, %813 : vector<16x1xf32>
    %815 = math.rsqrt %814 : vector<16x1xf32>
    %816 = vector.broadcast %815 : vector<16x1xf32> to vector<16x64xf32>
    %817 = arith.mulf %812, %816 : vector<16x64xf32>
    %818 = vector.broadcast %665 : vector<1x64xf32> to vector<16x64xf32>
    %819 = arith.mulf %817, %818 : vector<16x64xf32>
    %820 = vector.broadcast %667 : vector<1x64xf32> to vector<16x64xf32>
    %821 = arith.addf %819, %820 : vector<16x64xf32>
    %822 = arith.truncf %821 : vector<16x64xf32> to vector<16x64xbf16>
    %cst_353 = arith.constant dense<0.000000e+00> : vector<16x256xf32>
    %823 = tpu.matmul %822, %669, %cst_353 {dimension_numbers = #tpu.dot_dimension_numbers<[1], [0], [0], [1], [0, 0, 1, 1], [], []>} : vector<16x64xbf16>, vector<64x256xbf16>, vector<16x256xf32> -> vector<16x256xf32>
    %824 = vector.broadcast %671 : vector<1x256xf32> to vector<16x256xf32>
    %825 = arith.addf %823, %824 : vector<16x256xf32>
    %cst_354 = arith.constant 0.707106769 : f32
    %826 = vector.broadcast %cst_354 : f32 to vector<16x256xf32>
    %827 = arith.mulf %825, %826 : vector<16x256xf32>
    %cst_355 = arith.constant 0.000000e+00 : f32
    %828 = vector.broadcast %cst_355 : f32 to vector<16x256xf32>
    %829 = arith.cmpf oge, %827, %828 : vector<16x256xf32>
    %cst_356 = arith.constant 1.000000e+00 : f32
    %cst_357 = arith.constant -1.000000e+00 : f32
    %830 = vector.broadcast %cst_356 : f32 to vector<16x256xf32>
    %831 = vector.broadcast %cst_357 : f32 to vector<16x256xf32>
    %832 = arith.select %829, %830, %831 : vector<16x256xi1>, vector<16x256xf32>
    %833 = math.absf %827 : vector<16x256xf32>
    %cst_358 = arith.constant 0.327591091 : f32
    %834 = vector.broadcast %cst_358 : f32 to vector<16x256xf32>
    %835 = arith.mulf %834, %833 : vector<16x256xf32>
    %cst_359 = arith.constant 1.000000e+00 : f32
    %836 = vector.broadcast %cst_359 : f32 to vector<16x256xf32>
    %837 = arith.addf %836, %835 : vector<16x256xf32>
    %cst_360 = arith.constant 1.000000e+00 : f32
    %838 = vector.broadcast %cst_360 : f32 to vector<16x256xf32>
    %839 = arith.divf %838, %837 : vector<16x256xf32>
    %cst_361 = arith.constant 1.06140542 : f32
    %840 = vector.broadcast %cst_361 : f32 to vector<16x256xf32>
    %841 = arith.mulf %840, %839 : vector<16x256xf32>
    %cst_362 = arith.constant -1.45315206 : f32
    %842 = vector.broadcast %cst_362 : f32 to vector<16x256xf32>
    %843 = arith.addf %841, %842 : vector<16x256xf32>
    %844 = arith.mulf %843, %839 : vector<16x256xf32>
    %cst_363 = arith.constant 1.42141378 : f32
    %845 = vector.broadcast %cst_363 : f32 to vector<16x256xf32>
    %846 = arith.addf %844, %845 : vector<16x256xf32>
    %847 = arith.mulf %846, %839 : vector<16x256xf32>
    %cst_364 = arith.constant -0.284496725 : f32
    %848 = vector.broadcast %cst_364 : f32 to vector<16x256xf32>
    %849 = arith.addf %847, %848 : vector<16x256xf32>
    %850 = arith.mulf %849, %839 : vector<16x256xf32>
    %cst_365 = arith.constant 0.254829586 : f32
    %851 = vector.broadcast %cst_365 : f32 to vector<16x256xf32>
    %852 = arith.addf %850, %851 : vector<16x256xf32>
    %853 = arith.mulf %852, %839 : vector<16x256xf32>
    %cst_366 = arith.constant 0.000000e+00 : f32
    %854 = vector.broadcast %cst_366 : f32 to vector<16x256xf32>
    %855 = arith.subf %854, %833 : vector<16x256xf32>
    %856 = arith.mulf %855, %833 : vector<16x256xf32>
    %857 = math.exp %856 : vector<16x256xf32>
    %858 = arith.mulf %853, %857 : vector<16x256xf32>
    %cst_367 = arith.constant 1.000000e+00 : f32
    %859 = vector.broadcast %cst_367 : f32 to vector<16x256xf32>
    %860 = arith.subf %859, %858 : vector<16x256xf32>
    %861 = arith.mulf %832, %860 : vector<16x256xf32>
    %cst_368 = arith.constant 5.000000e-01 : f32
    %862 = vector.broadcast %cst_368 : f32 to vector<16x256xf32>
    %863 = arith.mulf %862, %825 : vector<16x256xf32>
    %cst_369 = arith.constant 1.000000e+00 : f32
    %864 = vector.broadcast %cst_369 : f32 to vector<16x256xf32>
    %865 = arith.addf %864, %861 : vector<16x256xf32>
    %866 = arith.mulf %863, %865 : vector<16x256xf32>
    %867 = arith.truncf %866 : vector<16x256xf32> to vector<16x256xbf16>
    %cst_370 = arith.constant dense<0.000000e+00> : vector<16x64xf32>
    %868 = tpu.matmul %867, %673, %cst_370 {dimension_numbers = #tpu.dot_dimension_numbers<[1], [0], [0], [1], [0, 0, 1, 1], [], []>} : vector<16x256xbf16>, vector<256x64xbf16>, vector<16x64xf32> -> vector<16x64xf32>
    %869 = vector.broadcast %675 : vector<1x64xf32> to vector<16x64xf32>
    %870 = arith.addf %868, %869 : vector<16x64xf32>
    %871 = arith.addf %799, %870 : vector<16x64xf32>
    %c0_371 = arith.constant 0 : index
    %c0_372 = arith.constant 0 : index
    %c0_373 = arith.constant 0 : index
    %872 = vector.load %arg37[%c0_371, %c0_372, %c0_373] : memref<1x16x64xf32, #tpu.memory_space<vmem>>, vector<1x16x64xf32>
    %873 = vector.shape_cast %872 : vector<1x16x64xf32> to vector<16x64xf32>
    %874 = vector.shape_cast %871 : vector<16x64xf32> to vector<1x16x64xf32>
    tpu.vector_store %arg37[%c0_371, %c0_372, %c0_373], %874 {strides = array<i32>} : memref<1x16x64xf32, #tpu.memory_space<vmem>>, vector<1x16x64xf32>,
    return
  }
  func.func @transform_0(%arg0: i32) -> (i32, i32, i32) {
    %c0_i32 = arith.constant 0 : i32
    %c0_i32_0 = arith.constant 0 : i32
    %c0_i32_1 = arith.constant 0 : i32
    return %arg0, %c0_i32, %c0_i32_0 : i32, i32, i32
  }
  func.func @transform_1(%arg0: i32) -> (i32, i32) {
    %c0_i32 = arith.constant 0 : i32
    %c0_i32_0 = arith.constant 0 : i32
    %c0_i32_1 = arith.constant 0 : i32
    return %c0_i32, %c0_i32_0 : i32, i32
  }
  func.func @transform_2(%arg0: i32) -> (i32, i32) {
    %c0_i32 = arith.constant 0 : i32
    %c0_i32_0 = arith.constant 0 : i32
    %c0_i32_1 = arith.constant 0 : i32
    return %c0_i32, %c0_i32_0 : i32, i32
  }
  func.func @transform_3(%arg0: i32) -> (i32, i32) {
    %c0_i32 = arith.constant 0 : i32
    %c0_i32_0 = arith.constant 0 : i32
    %c0_i32_1 = arith.constant 0 : i32
    return %c0_i32, %c0_i32_0 : i32, i32
  }
  func.func @transform_4(%arg0: i32) -> (i32, i32) {
    %c0_i32 = arith.constant 0 : i32
    %c0_i32_0 = arith.constant 0 : i32
    %c0_i32_1 = arith.constant 0 : i32
    return %c0_i32, %c0_i32_0 : i32, i32
  }
  func.func @transform_5(%arg0: i32) -> (i32, i32, i32) {
    %c0_i32 = arith.constant 0 : i32
    %c0_i32_0 = arith.constant 0 : i32
    %c0_i32_1 = arith.constant 0 : i32
    %c0_i32_2 = arith.constant 0 : i32
    return %c0_i32, %c0_i32_0, %c0_i32_1 : i32, i32, i32
  }
  func.func @transform_6(%arg0: i32) -> (i32, i32, i32) {
    %c0_i32 = arith.constant 0 : i32
    %c0_i32_0 = arith.constant 0 : i32
    %c0_i32_1 = arith.constant 0 : i32
    %c0_i32_2 = arith.constant 0 : i32
    return %c0_i32, %c0_i32_0, %c0_i32_1 : i32, i32, i32
  }
  func.func @transform_7(%arg0: i32) -> (i32, i32, i32) {
    %c0_i32 = arith.constant 0 : i32
    %c0_i32_0 = arith.constant 0 : i32
    %c0_i32_1 = arith.constant 0 : i32
    %c0_i32_2 = arith.constant 0 : i32
    return %c0_i32, %c0_i32_0, %c0_i32_1 : i32, i32, i32
  }
  func.func @transform_8(%arg0: i32) -> (i32, i32, i32) {
    %c0_i32 = arith.constant 0 : i32
    %c0_i32_0 = arith.constant 0 : i32
    %c0_i32_1 = arith.constant 0 : i32
    %c0_i32_2 = arith.constant 0 : i32
    return %c0_i32, %c0_i32_0, %c0_i32_1 : i32, i32, i32
  }
  func.func @transform_9(%arg0: i32) -> (i32, i32, i32, i32) {
    %c0_i32 = arith.constant 0 : i32
    %c0_i32_0 = arith.constant 0 : i32
    %c0_i32_1 = arith.constant 0 : i32
    %c0_i32_2 = arith.constant 0 : i32
    %c0_i32_3 = arith.constant 0 : i32
    return %c0_i32, %c0_i32_0, %c0_i32_1, %c0_i32_2 : i32, i32, i32, i32
  }
  func.func @transform_10(%arg0: i32) -> (i32, i32, i32) {
    %c0_i32 = arith.constant 0 : i32
    %c0_i32_0 = arith.constant 0 : i32
    %c0_i32_1 = arith.constant 0 : i32
    %c0_i32_2 = arith.constant 0 : i32
    return %c0_i32, %c0_i32_0, %c0_i32_1 : i32, i32, i32
  }
  func.func @transform_11(%arg0: i32) -> (i32, i32, i32) {
    %c0_i32 = arith.constant 0 : i32
    %c0_i32_0 = arith.constant 0 : i32
    %c0_i32_1 = arith.constant 0 : i32
    %c0_i32_2 = arith.constant 0 : i32
    return %c0_i32, %c0_i32_0, %c0_i32_1 : i32, i32, i32
  }
  func.func @transform_12(%arg0: i32) -> (i32, i32, i32) {
    %c0_i32 = arith.constant 0 : i32
    %c0_i32_0 = arith.constant 0 : i32
    %c0_i32_1 = arith.constant 0 : i32
    %c0_i32_2 = arith.constant 0 : i32
    return %c0_i32, %c0_i32_0, %c0_i32_1 : i32, i32, i32
  }
  func.func @transform_13(%arg0: i32) -> (i32, i32, i32) {
    %c0_i32 = arith.constant 0 : i32
    %c0_i32_0 = arith.constant 0 : i32
    %c0_i32_1 = arith.constant 0 : i32
    %c0_i32_2 = arith.constant 0 : i32
    return %c0_i32, %c0_i32_0, %c0_i32_1 : i32, i32, i32
  }
  func.func @transform_14(%arg0: i32) -> (i32, i32, i32) {
    %c0_i32 = arith.constant 0 : i32
    %c0_i32_0 = arith.constant 0 : i32
    %c0_i32_1 = arith.constant 0 : i32
    %c0_i32_2 = arith.constant 0 : i32
    return %c0_i32, %c0_i32_0, %c0_i32_1 : i32, i32, i32
  }
  func.func @transform_15(%arg0: i32) -> (i32, i32, i32) {
    %c0_i32 = arith.constant 0 : i32
    %c0_i32_0 = arith.constant 0 : i32
    %c0_i32_1 = arith.constant 0 : i32
    %c0_i32_2 = arith.constant 0 : i32
    return %c0_i32, %c0_i32_0, %c0_i32_1 : i32, i32, i32
  }
  func.func @transform_16(%arg0: i32) -> (i32, i32, i32) {
    %c0_i32 = arith.constant 0 : i32
    %c0_i32_0 = arith.constant 0 : i32
    %c0_i32_1 = arith.constant 0 : i32
    %c0_i32_2 = arith.constant 0 : i32
    return %c0_i32, %c0_i32_0, %c0_i32_1 : i32, i32, i32
  }
  func.func @transform_17(%arg0: i32) -> (i32, i32, i32) {
    %c0_i32 = arith.constant 0 : i32
    %c0_i32_0 = arith.constant 0 : i32
    %c0_i32_1 = arith.constant 0 : i32
    %c0_i32_2 = arith.constant 0 : i32
    return %c0_i32, %c0_i32_0, %c0_i32_1 : i32, i32, i32
  }
  func.func @transform_18(%arg0: i32) -> (i32, i32, i32) {
    %c0_i32 = arith.constant 0 : i32
    %c0_i32_0 = arith.constant 0 : i32
    %c0_i32_1 = arith.constant 0 : i32
    %c0_i32_2 = arith.constant 0 : i32
    return %c0_i32, %c0_i32_0, %c0_i32_1 : i32, i32, i32
  }
  func.func @transform_19(%arg0: i32) -> (i32, i32) {
    %c0_i32 = arith.constant 0 : i32
    %c0_i32_0 = arith.constant 0 : i32
    %c0_i32_1 = arith.constant 0 : i32
    return %c0_i32, %c0_i32_0 : i32, i32
  }
  func.func @transform_20(%arg0: i32) -> (i32, i32) {
    %c0_i32 = arith.constant 0 : i32
    %c0_i32_0 = arith.constant 0 : i32
    %c0_i32_1 = arith.constant 0 : i32
    return %c0_i32, %c0_i32_0 : i32, i32
  }
  func.func @transform_21(%arg0: i32) -> (i32, i32) {
    %c0_i32 = arith.constant 0 : i32
    %c0_i32_0 = arith.constant 0 : i32
    %c0_i32_1 = arith.constant 0 : i32
    return %c0_i32, %c0_i32_0 : i32, i32
  }
  func.func @transform_22(%arg0: i32) -> (i32, i32, i32) {
    %c0_i32 = arith.constant 0 : i32
    %c0_i32_0 = arith.constant 0 : i32
    %c0_i32_1 = arith.constant 0 : i32
    %c0_i32_2 = arith.constant 0 : i32
    return %c0_i32, %c0_i32_0, %c0_i32_1 : i32, i32, i32
  }
  func.func @transform_23(%arg0: i32) -> (i32, i32, i32) {
    %c0_i32 = arith.constant 0 : i32
    %c0_i32_0 = arith.constant 0 : i32
    %c0_i32_1 = arith.constant 0 : i32
    %c0_i32_2 = arith.constant 0 : i32
    return %c0_i32, %c0_i32_0, %c0_i32_1 : i32, i32, i32
  }
  func.func @transform_24(%arg0: i32) -> (i32, i32, i32) {
    %c0_i32 = arith.constant 0 : i32
    %c0_i32_0 = arith.constant 0 : i32
    %c0_i32_1 = arith.constant 0 : i32
    %c0_i32_2 = arith.constant 0 : i32
    return %c0_i32, %c0_i32_0, %c0_i32_1 : i32, i32, i32
  }
  func.func @transform_25(%arg0: i32) -> (i32, i32, i32) {
    %c0_i32 = arith.constant 0 : i32
    %c0_i32_0 = arith.constant 0 : i32
    %c0_i32_1 = arith.constant 0 : i32
    %c0_i32_2 = arith.constant 0 : i32
    return %c0_i32, %c0_i32_0, %c0_i32_1 : i32, i32, i32
  }
  func.func @transform_26(%arg0: i32) -> (i32, i32, i32, i32) {
    %c0_i32 = arith.constant 0 : i32
    %c0_i32_0 = arith.constant 0 : i32
    %c0_i32_1 = arith.constant 0 : i32
    %c0_i32_2 = arith.constant 0 : i32
    %c0_i32_3 = arith.constant 0 : i32
    return %c0_i32, %c0_i32_0, %c0_i32_1, %c0_i32_2 : i32, i32, i32, i32
  }
  func.func @transform_27(%arg0: i32) -> (i32, i32, i32) {
    %c0_i32 = arith.constant 0 : i32
    %c0_i32_0 = arith.constant 0 : i32
    %c0_i32_1 = arith.constant 0 : i32
    %c0_i32_2 = arith.constant 0 : i32
    return %c0_i32, %c0_i32_0, %c0_i32_1 : i32, i32, i32
  }
  func.func @transform_28(%arg0: i32) -> (i32, i32, i32) {
    %c0_i32 = arith.constant 0 : i32
    %c0_i32_0 = arith.constant 0 : i32
    %c0_i32_1 = arith.constant 0 : i32
    %c0_i32_2 = arith.constant 0 : i32
    return %c0_i32, %c0_i32_0, %c0_i32_1 : i32, i32, i32
  }
  func.func @transform_29(%arg0: i32) -> (i32, i32, i32) {
    %c0_i32 = arith.constant 0 : i32
    %c0_i32_0 = arith.constant 0 : i32
    %c0_i32_1 = arith.constant 0 : i32
    %c0_i32_2 = arith.constant 0 : i32
    return %c0_i32, %c0_i32_0, %c0_i32_1 : i32, i32, i32
  }
  func.func @transform_30(%arg0: i32) -> (i32, i32, i32) {
    %c0_i32 = arith.constant 0 : i32
    %c0_i32_0 = arith.constant 0 : i32
    %c0_i32_1 = arith.constant 0 : i32
    %c0_i32_2 = arith.constant 0 : i32
    return %c0_i32, %c0_i32_0, %c0_i32_1 : i32, i32, i32
  }
  func.func @transform_31(%arg0: i32) -> (i32, i32, i32) {
    %c0_i32 = arith.constant 0 : i32
    %c0_i32_0 = arith.constant 0 : i32
    %c0_i32_1 = arith.constant 0 : i32
    %c0_i32_2 = arith.constant 0 : i32
    return %c0_i32, %c0_i32_0, %c0_i32_1 : i32, i32, i32
  }
  func.func @transform_32(%arg0: i32) -> (i32, i32, i32) {
    %c0_i32 = arith.constant 0 : i32
    %c0_i32_0 = arith.constant 0 : i32
    %c0_i32_1 = arith.constant 0 : i32
    %c0_i32_2 = arith.constant 0 : i32
    return %c0_i32, %c0_i32_0, %c0_i32_1 : i32, i32, i32
  }
  func.func @transform_33(%arg0: i32) -> (i32, i32, i32) {
    %c0_i32 = arith.constant 0 : i32
    %c0_i32_0 = arith.constant 0 : i32
    %c0_i32_1 = arith.constant 0 : i32
    %c0_i32_2 = arith.constant 0 : i32
    return %c0_i32, %c0_i32_0, %c0_i32_1 : i32, i32, i32
  }
  func.func @transform_34(%arg0: i32) -> (i32, i32, i32) {
    %c0_i32 = arith.constant 0 : i32
    %c0_i32_0 = arith.constant 0 : i32
    %c0_i32_1 = arith.constant 0 : i32
    %c0_i32_2 = arith.constant 0 : i32
    return %c0_i32, %c0_i32_0, %c0_i32_1 : i32, i32, i32
  }
  func.func @transform_35(%arg0: i32) -> (i32, i32, i32) {
    %c0_i32 = arith.constant 0 : i32
    %c0_i32_0 = arith.constant 0 : i32
    %c0_i32_1 = arith.constant 0 : i32
    return %arg0, %c0_i32, %c0_i32_0 : i32, i32, i32
  }
  func.func @transform_36(%arg0: i32) -> (i32, i32, i32) {
    %c0_i32 = arith.constant 0 : i32
    %c0_i32_0 = arith.constant 0 : i32
    %c0_i32_1 = arith.constant 0 : i32
    return %arg0, %c0_i32, %c0_i32_0 : i32, i32, i32
  }
}

</mosaic_0001>

<bundles_post_ra>
// kernel: _lambda_.1
= control target key start
LH: loop header
LB: loop body
LE: loop exit
PB: predicated region body
PF: predicated region fallthrough
CT: control target
= control target key end

     0   :  { %s8482_s6 = smov 1   ;;  %s8483_s10 = smov 2   ;;  %s10841_s0 = inlined_call_operand.smem [shape: u32[37], index: -1, kind: input, shape index: {}] }
   0x1   :  { %s8539_s5 = sld [smem:[%s10841_s0]]   ;;  %s8484_s14 = smov 3  }
   0x2   :  { %s8544_s9 = sld [smem:[%s10841_s0 + %s8482_s6]]   ;;  %s8485_s18 = smov 4  }
   0x3   :  { %s8549_s13 = sld [smem:[%s10841_s0 + %s8483_s10]]   ;;  %s8486_s22 = smov 5  }
   0x4   :  { %s8554_s17 = sld [smem:[%s10841_s0 + %s8484_s14]]   ;;  %s8487_s26 = smov 6  }
   0x5   :  { %s8559_s21 = sld [smem:[%s10841_s0 + %s8485_s18]]   ;;  %s8488_s30 = smov 7  }
   0x6   :  { %s8564_s25 = sld [smem:[%s10841_s0 + %s8486_s22]]   ;;  %s8489_s4 = smov 8  }
   0x7   :  { %10891 = sst [smem:[#allocation5_spill]] %s8539_s5  ;;  %s8490_s10 = smov 9  }
   0x8   :  { %10892 = sst [smem:[#allocation6_spill]] %s8544_s9  ;;  %s8491_s15 = smov 10  }
   0x9   :  { %10893 = sst [smem:[#allocation7_spill]] %s8549_s13  ;;  %s8492_s20 = smov 11  }
   0xa   :  { %10894 = sst [smem:[#allocation8_spill]] %s8554_s17  ;;  %s8494_s1 = smov 13  }
   0xb   :  { %10895 = sst [smem:[#allocation9_spill]] %s8559_s21  ;;  %s8495_s7 = smov 14  }
   0xc   :  { %10896 = sst [smem:[#allocation10_spill]] %s8564_s25  ;;  %s8497_s22 = smov 16  }
   0xd   :  { %s8569_s29 = sld [smem:[%s10841_s0 + %s8487_s26]]   ;;  %s8493_s26 = smov 12  }
   0xe   :  { %s8574_s3 = sld [smem:[%s10841_s0 + %s8488_s30]]   ;;  %s8498_s28 = smov 17  }
   0xf   :  { %s8579_s8 = sld [smem:[%s10841_s0 + %s8489_s4]]  }
  0x10   :  { %s8584_s14 = sld [smem:[%s10841_s0 + %s8490_s10]]  }
  0x11   :  { %s8589_s19 = sld [smem:[%s10841_s0 + %s8491_s15]]   ;;  %s8496_s15 = smov 15  }
  0x12   :  { %s8594_s24 = sld [smem:[%s10841_s0 + %s8492_s20]]  }
  0x13   :  { %10897 = sst [smem:[#allocation11_spill]] %s8569_s29 }
  0x14   :  { %10898 = sst [smem:[#allocation12_spill]] %s8574_s3 }
  0x15   :  { %10899 = sst [smem:[#allocation13_spill]] %s8579_s8 }
  0x16   :  { %10900 = sst [smem:[#allocation14_spill]] %s8584_s14 }
  0x17   :  { %10901 = sst [smem:[#allocation15_spill]] %s8589_s19 }
  0x18   :  { %10902 = sst [smem:[#allocation16_spill]] %s8594_s24 }
  0x19   :  { %s8599_s30 = sld [smem:[%s10841_s0 + %s8493_s26]]  }
  0x1a   :  { %s8604_s6 = sld [smem:[%s10841_s0 + %s8494_s1]]  }
  0x1b   :  { %s8609_s12 = sld [smem:[%s10841_s0 + %s8495_s7]]   ;;  %s8499_s7 = smov 18  }
  0x1c   :  { %s8614_s20 = sld [smem:[%s10841_s0 + %s8496_s15]]   ;;  %s8500_s15 = smov 19  }
  0x1d   :  { %s8619_s27 = sld [smem:[%s10841_s0 + %s8497_s22]]   ;;  %s8501_s22 = smov 20  }
  0x1e   :  { %s8624_s4 = sld [smem:[%s10841_s0 + %s8498_s28]]   ;;  %s8502_s28 = smov 21  }
  0x20   :  { %10903 = sst [smem:[#allocation17_spill]] %s8604_s6 }
  0x21   :  { %10904 = sst [smem:[#allocation18_spill]] %s8609_s12 }
  0x22   :  { %10905 = sst [smem:[#allocation19_spill]] %s8614_s20 }
  0x23   :  { %10906 = sst [smem:[#allocation20_spill]] %s8619_s27 }
  0x24   :  { %10907 = sst [smem:[#allocation21_spill]] %s8624_s4 }
  0x25   :  { %s8629_s6 = sld [smem:[%s10841_s0 + %s8499_s7]]   ;;  %s8503_s7 = smov 22  }
  0x26   :  { %s8634_s20 = sld [smem:[%s10841_s0 + %s8500_s15]]   ;;  %s8504_s15 = smov 23  }
  0x27   :  { %s8639_s27 = sld [smem:[%s10841_s0 + %s8501_s22]]   ;;  %s8505_s22 = smov 24  }
  0x28   :  { %s8644_s4 = sld [smem:[%s10841_s0 + %s8502_s28]]   ;;  %s8506_s28 = smov 25  }
  0x2b   :  { %10908 = sst [smem:[#allocation22_spill]] %s8629_s6 }
  0x2c   :  { %10909 = sst [smem:[#allocation23_spill]] %s8634_s20 }
  0x2d   :  { %10910 = sst [smem:[#allocation24_spill]] %s8639_s27 }
  0x2e   :  { %10911 = sst [smem:[#allocation25_spill]] %s8644_s4 }
  0x2f   :  { %s8649_s6 = sld [smem:[%s10841_s0 + %s8503_s7]]   ;;  %s8507_s7 = smov 26  }
  0x30   :  { %s8654_s20 = sld [smem:[%s10841_s0 + %s8504_s15]]   ;;  %s8508_s15 = smov 27  }
  0x31   :  { %s8659_s27 = sld [smem:[%s10841_s0 + %s8505_s22]]   ;;  %s8509_s22 = smov 28  }
  0x32   :  { %s8664_s4 = sld [smem:[%s10841_s0 + %s8506_s28]]   ;;  %s8510_s28 = smov 29  }
  0x35   :  { %10912 = sst [smem:[#allocation26_spill]] %s8649_s6 }
  0x36   :  { %10913 = sst [smem:[#allocation27_spill]] %s8654_s20 }
  0x37   :  { %10914 = sst [smem:[#allocation28_spill]] %s8659_s27 }
  0x38   :  { %10915 = sst [smem:[#allocation29_spill]] %s8664_s4 }
  0x39   :  { %s8669_s6 = sld [smem:[%s10841_s0 + %s8507_s7]]   ;;  %s8511_s7 = smov 30  }
  0x3a   :  { %s8674_s20 = sld [smem:[%s10841_s0 + %s8508_s15]]   ;;  %s8512_s15 = smov 31  }
  0x3b   :  { %s8679_s27 = sld [smem:[%s10841_s0 + %s8509_s22]]   ;;  %s8513_s22 = smov 32  }
  0x3c   :  { %s8684_s4 = sld [smem:[%s10841_s0 + %s8510_s28]]   ;;  %s8514_s28 = smov 33  }
  0x3f   :  { %10916 = sst [smem:[#allocation30_spill]] %s8669_s6 }
  0x40   :  { %10917 = sst [smem:[#allocation31_spill]] %s8674_s20 }
  0x41   :  { %10918 = sst [smem:[#allocation32_spill]] %s8679_s27 }
  0x42   :  { %10919 = sst [smem:[#allocation33_spill]] %s8684_s4 }
  0x43   :  { %s8689_s6 = sld [smem:[%s10841_s0 + %s8511_s7]]   ;;  %s8515_s7 = smov 34  }
  0x44   :  { %s8694_s20 = sld [smem:[%s10841_s0 + %s8512_s15]]   ;;  %s8516_s15 = smov 35  }
  0x45   :  { %s8699_s27 = sld [smem:[%s10841_s0 + %s8513_s22]]   ;;  %s8517_s22 = smov 36  }
  0x46   :  { %s8704_s4 = sld [smem:[%s10841_s0 + %s8514_s28]]  }
  0x49   :  { %10920 = sst [smem:[#allocation34_spill]] %s8689_s6 }
  0x4a   :  { %10921 = sst [smem:[#allocation35_spill]] %s8694_s20 }
  0x4b   :  { %10922 = sst [smem:[#allocation36_spill]] %s8699_s27 }
  0x4c   :  { %10923 = sst [smem:[#allocation37_spill]] %s8704_s4 }
  0x4d   :  { %s8709_s6 = sld [smem:[%s10841_s0 + %s8515_s7]]  }
  0x4e   :  { %s8714_s20 = sld [smem:[%s10841_s0 + %s8516_s15]]  }
  0x4f   :  { %s8719_s27 = sld [smem:[%s10841_s0 + %s8517_s22]]  }
  0x54   :  { %10924 = sst [smem:[#allocation38_spill]] %s8714_s20 }
  0x55   :  { %79 = vsyncpa [#allocation3], 0 }
  0x56   :  { %81 = vsyncpa [#allocation3 + $0x1], 0  ;;  %s8721_s28 = smov 0   ;;  %s8723_s1 = smov 0  }
  0x57   :  { %s8725_s2 = smov 0   ;;  %s8727_s7 = smov 0  }
  0x58 LB: > { %s10925_s4 = sld [smem:[#allocation37_spill]]  ;;  %s8742_s0 = sadd.s32 4294967295, %s8480_s7   ;;  %s8472_s1 = sphi %s8723_s1, %s10970_s1   ;;  %s8468_s28 = sphi %s8721_s28, %s10969_s28   ;;  %s8480_s7 = sphi %s8727_s7, %s10972_s7   ;;  %s8476_s2 = sphi %s8725_s2, %s10971_s2  }
  0x59   : > { %s10926_s29 = sld [smem:[#allocation11_spill]]  ;;  %s6903_s10 = sadd.s32 4294967294, %s8480_s7  }
  0x5a   : > { %s10927_s25 = sld [smem:[#allocation10_spill]]  ;;  %s8746_s11 = sadd.s32 1, %s8480_s7  }
  0x5b   : > { %s10928_s24 = sld [smem:[#allocation16_spill]]  ;;  %s860_s15 = sadd.s32 1, %s8476_s2 }
  0x5c   : > { %s10929_s19 = sld [smem:[#allocation15_spill]]  ;;  %s857_s16 = ssub.s32 %s8480_s7, %s8746_s11 }
  0x5d   : > { %s10930_s14 = sld [smem:[#allocation14_spill]]  ;;  %p870_p0 = scmp.ne.s32.totalorder %s8476_s2, %s8472_s1 }
  0x5e   : > { %s10931_s12 = sld [smem:[#allocation18_spill]]  ;;  %p858_p1 = scmp.eq.s32.totalorder %s857_s16, 0 }
  0x5f   : > { %s10932_s8 = sld [smem:[#allocation13_spill]]  ;;  %p871_p2 = scmp.eq.s32.totalorder %s8742_s0, 1 }
  0x60   : > { %s10933_s3 = sld [smem:[#allocation12_spill]]  ;;  %p876_p3 = scmp.ne.s32.totalorder %s8472_s1, %s8468_s28 }
  0x61   : > { %s10934_s9 = sld [smem:[#allocation6_spill]]  ;;  %p877_p4 = scmp.eq.s32.totalorder %s6903_s10, 1 }
  0x62   : > { %s8757_s18 = scalar_select %p858_p1, %s8476_s2, %s860_s15  }
  0x63   : > { %p8759_p5 = por %p871_p2, %p870_p0  ;;  %p8763_p6 = por %p877_p4, %p876_p3 }
  0x64   : > { %p6906_p7 = scmp.ge.s32.totalorder %s8480_s7, 1  ;;  %p1005_p8 = scmp.lt.s32.totalorder %s8480_s7, 3 }
  0x66   : > { %p1006_p9 = pnand %p6906_p7, %p1005_p8 }
  0x67   : > { %s10937_s5 = sld [smem:[#allocation5_spill]] (!%p1006_p9)  ;;  %p1100_p10 = scmp.lt.s32.totalorder (!%p1006_p9), %s8742_s0, 1 }
  0x68   : > { %1009 = sbr.rel (%p1006_p9) target bundleno = 9428 (0x24d4), region = 160  ;;  %s10938_s13 = sld [smem:[#allocation7_spill]] (!%p1006_p9) }
  0x69   : > { %s10939_s17 = sld [smem:[#allocation8_spill]] (!%p1006_p9)  ;;  %s10873_s16 = smov (!%p1006_p9), 80  }
  0x6a   : > { %s10940_s21 = sld [smem:[#allocation9_spill]] (!%p1006_p9) }
  0x6b   : > { %s10950_s20 = sld [smem:[#allocation38_spill]] (!%p1006_p9) }
  0x6d   : > { %v7601_v0 = vld [vmem:[%s10934_s9 + $0x10] sm:$0xff]  ;;  %v7600_v1 = vld [vmem:[%s10934_s9 + $0x8] sm:$0xff]  ;;  %s8773_s26 = scalar_select %p1100_p10, %s8742_s0, 1  ;;  %v7599_v2 = vld [vmem:[%s10934_s9] sm:$0xff]  ;;  %vm1151_vm0 = vcmask 392192   ;;  %vm1195_vm1 = vcmask 261120  }
  0x6e   : > { %1169 = vmatpush.bf16.msra.mxu0 %v7601_v0  ;;  %v7991_v15 = vld [vmem:[%s10938_s13] ss:$0 sm:$0xff]  ;;  %v8518_v37 = vmov 32.0   ;;  %s10861_s9 = smov 64   ;;  %s10947_s13 = smov 48  }
  0x6f   : > { %s10859_s10 = sshll.u32 %s8773_s26, 6  ;;  %8024 = vrcp.f32 %v8518_v37 }
  0x70   : > { %s1104_s15 = scalar_lea.vmem %s10937_s5, %s10859_s10  ;;  %s10865_s10 = smov 48  }
  0x71   : > { %v1111_v3 = vld [vmem:[%s1104_s15] sm:$0xff]  ;;  %v1112_v4 = vld [vmem:[%s1104_s15 + $0x8] sm:$0xff]  ;;  %v1113_v6 = vld [vmem:[%s1104_s15 + $0x10] sm:$0xff]  ;;  %s10869_s5 = smov 112  }
  0x72   : > { %1170 = vmatpush.bf16.msra.mxu0 %v7600_v1  ;;  %v1119_v5 = vpack.c.bf16 %v1112_v4, %v1111_v3  ;;  %v1114_v7 = vld [vmem:[%s1104_s15 + $0x18] sm:$0xff]  ;;  %v1115_v9 = vld [vmem:[%s1104_s15 + $0x20] sm:$0xff]  ;;  %v1116_v10 = vld [vmem:[%s1104_s15 + $0x28] sm:$0xff] }
  0x73   : > { %v1120_v8 = vpack.c.bf16 %v1114_v7, %v1113_v6  ;;  %v1121_v11 = vpack.c.bf16 %v1116_v10, %v1115_v9  ;;  %v1117_v12 = vld [vmem:[%s1104_s15 + $0x30] sm:$0xff]  ;;  %v1118_v13 = vld [vmem:[%s1104_s15 + $0x38] sm:$0xff]  ;;  %s10867_s15 = smov 96  }
  0x74   : > { %v1122_v14 = vpack.c.bf16 %v1118_v13, %v1117_v12 }
  0x75   : > { %v8025_v38 = vpop.eup %8024 }
  0x76   : > { %1171 = vmatpush.bf16.msra.mxu0 %v7599_v2  ;;  %v1221_v39 = vmul.f32 32.0, %v8025_v38  ;;  %vm1225_vm2 = vweird.f32 %v8025_v38 }
  0x78   : > { %v1222_v40 = vsub.f32 1.0, %v1221_v39 }
  0x79   : > { %6924 = vmatmul.msk.bf16.vlgmr.msra.gmra.mxu0 %vm1151_vm0, %v1119_v5 }
  0x7a   : > { %v1223_v41 = vmul.f32 %v8025_v38, %v1222_v40  ;;  %v8847_v40 = vld [vmem:[%s10939_s17] ss:$0 sm:$0xff]  ;;  %s10948_s17 = smov 64  }
  0x7c   : > { %v1224_v42 = vadd.f32 %v8025_v38, %v1223_v41 }
  0x7e   : > { %v8792_v43 = vsel %vm1225_vm2, %v8025_v38, %v1224_v42 }
  0x89   : > { %6925 = vmatmul.msk.bf16.gmra.mxu0 %vm1151_vm0, %v1120_v8 }
  0x99   : > { %6926 = vmatmul.msk.bf16.gmra.mxu0 %vm1151_vm0, %v1121_v11 }
  0xa9   : > { %6927 = vmatmul.msk.bf16.gmra.mxu0 %vm1151_vm0, %v1122_v14 }
  0xf6   : > { %v1173_v16 = vpop.f32.mrf.mxu0 }
  0xf7   : > { %v1174_v17 = vadd.f32 %v7991_v15, %v1173_v16 }
  0xf9   : > { %v1196_v18 = vsel %vm1195_vm1, %v1174_v17, 0.0 }
  0xfa   : > { %1197 = vadd.xlane.f32.xlu0 %v1196_v18 }
  0xfe   : > { %v1175_v19 = vpop.f32.mrf.mxu0 }
  0xff   : > { %v1176_v20 = vadd.f32 %v7991_v15, %v1175_v19 }
 0x101   : > { %v1199_v21 = vsel %vm1195_vm1, %v1176_v20, 0.0 }
 0x102   : > { %1200 = vadd.xlane.f32.xlu0 %v1199_v21 }
 0x106   : > { %v1178_v22 = vpop.f32.mrf.mxu0 }
 0x107   : > { %v1179_v23 = vadd.f32 %v7991_v15, %v1178_v22 }
 0x109   : > { %v1202_v24 = vsel %vm1195_vm1, %v1179_v23, 0.0 }
 0x10a   : > { %1203 = vadd.xlane.f32.xlu1 %v1202_v24 }
 0x10e   : > { %v1180_v25 = vpop.f32.mrf.mxu0 }
 0x10f   : > { %v1181_v26 = vadd.f32 %v7991_v15, %v1180_v25 }
 0x111   : > { %v1205_v27 = vsel %vm1195_vm1, %v1181_v26, 0.0 }
 0x112   : > { %1206 = vadd.xlane.f32.xlu1 %v1205_v27 }
 0x116   : > { %v1183_v28 = vpop.f32.mrf.mxu0 }
 0x117   : > { %v1184_v29 = vadd.f32 %v7991_v15, %v1183_v28 }
 0x119   : > { %v1208_v30 = vsel %vm1195_vm1, %v1184_v29, 0.0 }
 0x11a   : > { %1209 = vadd.xlane.f32.xlu2 %v1208_v30 }
 0x11e   : > { %v1185_v31 = vpop.f32.mrf.mxu0 }
 0x11f   : > { %v1186_v32 = vadd.f32 %v7991_v15, %v1185_v31 }
 0x121   : > { %v1211_v33 = vsel %vm1195_vm1, %v1186_v32, 0.0 }
 0x122   : > { %1212 = vadd.xlane.f32.xlu2 %v1211_v33 }
 0x126   : > { %v1188_v34 = vpop.f32.mrf.mxu0 }
 0x127   : > { %v1189_v35 = vadd.f32 %v7991_v15, %v1188_v34 }
 0x129   : > { %v1214_v36 = vsel %vm1195_vm1, %v1189_v35, 0.0 }
 0x12a   : > { %1215 = vadd.xlane.f32.xlu2 %v1214_v36 }
 0x12e   : > { %v1190_v49 = vpop.f32.mrf.mxu0 }
 0x12f   : > { %v1191_v52 = vadd.f32 %v7991_v15, %v1190_v49 }
 0x131   : > { %v1217_v55 = vsel %vm1195_vm1, %v1191_v52, 0.0 }
 0x16d   : > { %v1198_v44 = vpop.xlane.xlu0 %1197 }
 0x16e   : > { %v1227_v45 = vmul.f32 %v8792_v43, %v1198_v44 }
 0x170   : > { %v8795_v46 = vsub.f32 %v1174_v17, %v1227_v45  ;;  %v8851_v45 = vld [vmem:[%s10940_s21] ss:$0 sm:$0xff]  ;;  %s10965_s21 = sld [smem:[#allocation35_spill]] }
 0x172   : > { %v1243_v47 = vmul.f32 %v8795_v46, %v8795_v46 }
 0x174   : > { %v1251_v48 = vsel %vm1195_vm1, %v1243_v47, 0.0 }
 0x175   : > { %1252 = vadd.xlane.f32.xlu0 %v1251_v48  ;;  %v1201_v50 = vpop.xlane.xlu0 %1200 }
 0x176   : > { %v1228_v51 = vmul.f32 %v8792_v43, %v1201_v50 }
 0x178   : > { %v8801_v53 = vsub.f32 %v1176_v20, %v1228_v51 }
 0x17a   : > { %v1244_v54 = vmul.f32 %v8801_v53, %v8801_v53 }
 0x17c   : > { %v1254_v56 = vsel %vm1195_vm1, %v1244_v54, 0.0 }
 0x17d   : > { %v1204_v57 = vpop.xlane.xlu1 %1203  ;;  %1218 = vadd.xlane.f32.xlu0 %v1217_v55  ;;  %1255 = vadd.xlane.f32.xlu1 %v1254_v56 }
 0x17e   : > { %v1229_v58 = vmul.f32 %v8792_v43, %v1204_v57 }
 0x180   : > { %v8808_v59 = vsub.f32 %v1179_v23, %v1229_v58 }
 0x182   : > { %v1245_v60 = vmul.f32 %v8808_v59, %v8808_v59 }
 0x184   : > { %v1257_v61 = vsel %vm1195_vm1, %v1245_v60, 0.0 }
 0x185   : > { %v1207_v62 = vpop.xlane.xlu1 %1206  ;;  %1258 = vadd.xlane.f32.xlu1 %v1257_v61 }
 0x186   : > { %v1230_v63 = vmul.f32 %v8792_v43, %v1207_v62 }
 0x188   : > { %v8814_v0 = vsub.f32 %v1181_v26, %v1230_v63 }
 0x18a   : > { %v1246_v1 = vmul.f32 %v8814_v0, %v8814_v0 }
 0x18c   : > { %v1260_v2 = vsel %vm1195_vm1, %v1246_v1, 0.0 }
 0x18d   : > { %v1210_v3 = vpop.xlane.xlu2 %1209  ;;  %1261 = vadd.xlane.f32.xlu2 %v1260_v2 }
 0x18e   : > { %v1231_v4 = vmul.f32 %v8792_v43, %v1210_v3 }
 0x190   : > { %v8820_v5 = vsub.f32 %v1184_v29, %v1231_v4 }
 0x192   : > { %v1247_v6 = vmul.f32 %v8820_v5, %v8820_v5 }
 0x194   : > { %v1263_v7 = vsel %vm1195_vm1, %v1247_v6, 0.0 }
 0x195   : > { %v1213_v8 = vpop.xlane.xlu2 %1212  ;;  %1264 = vadd.xlane.f32.xlu0 %v1263_v7 }
 0x196   : > { %v1232_v9 = vmul.f32 %v8792_v43, %v1213_v8 }
 0x198   : > { %v8826_v10 = vsub.f32 %v1186_v32, %v1232_v9 }
 0x19a   : > { %v1248_v11 = vmul.f32 %v8826_v10, %v8826_v10 }
 0x19c   : > { %v1266_v12 = vsel %vm1195_vm1, %v1248_v11, 0.0 }
 0x19d   : > { %v1216_v13 = vpop.xlane.xlu2 %1215  ;;  %1267 = vadd.xlane.f32.xlu1 %v1266_v12 }
 0x19e   : > { %v1233_v14 = vmul.f32 %v8792_v43, %v1216_v13 }
 0x1a0   : > { %v8832_v15 = vsub.f32 %v1189_v35, %v1233_v14 }
 0x1a2   : > { %v1249_v16 = vmul.f32 %v8832_v15, %v8832_v15 }
 0x1a4   : > { %v1269_v17 = vsel %vm1195_vm1, %v1249_v16, 0.0 }
 0x1a5   : > { %1270 = vadd.xlane.f32.xlu2 %v1269_v17 }
 0x1e8   : > { %v1253_v18 = vpop.xlane.xlu0 %1252 }
 0x1e9   : > { %v1275_v19 = vmul.f32 %v1253_v18, %v8792_v43 }
 0x1eb   : > { %v1283_v20 = vadd.f32 1e-05, %v1275_v19 }
 0x1ed   : > { %8026 = vrsqrt.f32 %v1283_v20  ;;  %vm1297_vm4 = vweird.f32 %v1283_v20 }
 0x1f0   : > { %v1256_v21 = vpop.xlane.xlu1 %1255  ;;  %v1219_v22 = vpop.xlane.xlu0 %1218 }
 0x1f1   : > { %v1276_v23 = vmul.f32 %v1256_v21, %v8792_v43  ;;  %v1234_v24 = vmul.f32 %v8792_v43, %v1219_v22 }
 0x1f3   : > { %v8027_v25 = vpop.eup %8026  ;;  %v1284_v26 = vadd.f32 1e-05, %v1276_v23  ;;  %v8840_v27 = vsub.f32 %v1191_v52, %v1234_v24 }
 0x1f4   : > { %v1292_v28 = vmul.f32 %v8027_v25, %v1283_v20  ;;  %vm1298_vm3 = vweird.f32 %v8027_v25 }
 0x1f5   : > { %8028 = vrsqrt.f32 %v1284_v26  ;;  %v1250_v29 = vmul.f32 %v8840_v27, %v8840_v27  ;;  %vm1299_vm5 = vmor %vm1297_vm4, %vm1298_vm3  ;;  %vm1307_vm7 = vweird.f32 %v1284_v26 }
 0x1f6   : > { %v1293_v30 = vmul.f32 %v8027_v25, %v1292_v28 }
 0x1f7   : > { %v1272_v31 = vsel %vm1195_vm1, %v1250_v29, 0.0 }
 0x1f8   : > { %v1294_v32 = vmul.f32 0.5, %v1293_v30  ;;  %v1259_v33 = vpop.xlane.xlu1 %1258  ;;  %1273 = vadd.xlane.f32.xlu0 %v1272_v31 }
 0x1f9   : > { %v1277_v34 = vmul.f32 %v1259_v33, %v8792_v43 }
 0x1fa   : > { %v1295_v35 = vsub.f32 1.5, %v1294_v32 }
 0x1fb   : > { %v8029_v36 = vpop.eup %8028  ;;  %v1285_v37 = vadd.f32 1e-05, %v1277_v34 }
 0x1fc   : > { %v1296_v38 = vmul.f32 %v8027_v25, %v1295_v35  ;;  %v1302_v39 = vmul.f32 %v8029_v36, %v1284_v26  ;;  %vm1308_vm6 = vweird.f32 %v8029_v36 }
 0x1fd   : > { %8030 = vrsqrt.f32 %v1285_v37  ;;  %vm1309_vm8 = vmor %vm1307_vm7, %vm1308_vm6  ;;  %vm1317_vm10 = vweird.f32 %v1285_v37 }
 0x1fe   : > { %v1303_v41 = vmul.f32 %v8029_v36, %v1302_v39  ;;  %v1300_v42 = vsel %vm1299_vm5, %v8027_v25, %v1296_v38 }
 0x1ff   : > { %v1371_v44 = vmul.f32 %v1300_v42, %v8795_v46 }
 0x200   : > { %v1304_v47 = vmul.f32 0.5, %v1303_v41  ;;  %v1262_v48 = vpop.xlane.xlu2 %1261 }
 0x201   : > { %v1278_v49 = vmul.f32 %v1262_v48, %v8792_v43  ;;  %v1382_v50 = vmul.f32 %v8847_v40, %v1371_v44 }
 0x202   : > { %v1305_v51 = vsub.f32 1.5, %v1304_v47 }
 0x203   : > { %v8031_v52 = vpop.eup %8030  ;;  %v1286_v54 = vadd.f32 1e-05, %v1278_v49  ;;  %v8856_v55 = vadd.f32 %v8851_v45, %v1382_v50 }
 0x204   : > { %v1306_v56 = vmul.f32 %v8029_v36, %v1305_v51  ;;  %v1312_v57 = vmul.f32 %v8031_v52, %v1285_v37  ;;  %vm1318_vm9 = vweird.f32 %v8031_v52 }
 0x205   : > { %8032 = vrsqrt.f32 %v1286_v54  ;;  %v1453_v46 = vsel %vm1195_vm1, %v8856_v55, 0.0  ;;  %vm1319_vm11 = vmor %vm1317_vm10, %vm1318_vm9  ;;  %vm1327_vm13 = vweird.f32 %v1286_v54 }
 0x206   : > { %v1313_v58 = vmul.f32 %v8031_v52, %v1312_v57  ;;  %1454 = vadd.xlane.f32.xlu1 %v1453_v46  ;;  %v1310_v60 = vsel %vm1309_vm8, %v8029_v36, %v1306_v56 }
 0x207   : > { %v1372_v61 = vmul.f32 %v1310_v60, %v8801_v53 }
 0x208   : > { %v1314_v62 = vmul.f32 0.5, %v1313_v58  ;;  %v1265_v63 = vpop.xlane.xlu0 %1264 }
 0x209   : > { %v1279_v1 = vmul.f32 %v1265_v63, %v8792_v43  ;;  %v1383_v2 = vmul.f32 %v8847_v40, %v1372_v61 }
 0x20a   : > { %v1315_v3 = vsub.f32 1.5, %v1314_v62 }
 0x20b   : > { %v8033_v4 = vpop.eup %8032  ;;  %v1287_v6 = vadd.f32 1e-05, %v1279_v1  ;;  %v8864_v7 = vadd.f32 %v8851_v45, %v1383_v2 }
 0x20c   : > { %v1316_v8 = vmul.f32 %v8031_v52, %v1315_v3  ;;  %v1322_v9 = vmul.f32 %v8033_v4, %v1286_v54  ;;  %vm1328_vm12 = vweird.f32 %v8033_v4 }
 0x20d   : > { %8034 = vrsqrt.f32 %v1287_v6  ;;  %v1456_v53 = vsel %vm1195_vm1, %v8864_v7, 0.0  ;;  %vm1329_vm14 = vmor %vm1327_vm13, %vm1328_vm12  ;;  %vm1337_vm2 = vweird.f32 %v1287_v6 }
 0x20e   : > { %v1323_v11 = vmul.f32 %v8033_v4, %v1322_v9  ;;  %1457 = vadd.xlane.f32.xlu2 %v1456_v53  ;;  %v1320_v12 = vsel %vm1319_vm11, %v8031_v52, %v1316_v8 }
 0x20f   : > { %v1373_v13 = vmul.f32 %v1320_v12, %v8808_v59 }
 0x210   : > { %v1324_v14 = vmul.f32 0.5, %v1323_v11  ;;  %v1268_v16 = vpop.xlane.xlu1 %1267 }
 0x211   : > { %v1280_v17 = vmul.f32 %v1268_v16, %v8792_v43  ;;  %v1384_v18 = vmul.f32 %v8847_v40, %v1373_v13 }
 0x212   : > { %v1325_v19 = vsub.f32 1.5, %v1324_v14 }
 0x213   : > { %v8035_v20 = vpop.eup %8034  ;;  %v1288_v21 = vadd.f32 1e-05, %v1280_v17  ;;  %v8872_v22 = vadd.f32 %v8851_v45, %v1384_v18 }
 0x214   : > { %v1326_v23 = vmul.f32 %v8033_v4, %v1325_v19  ;;  %v1332_v24 = vmul.f32 %v8035_v20, %v1287_v6  ;;  %vm1338_vm15 = vweird.f32 %v8035_v20 }
 0x215   : > { %8036 = vrsqrt.f32 %v1288_v21  ;;  %v1459_v59 = vsel %vm1195_vm1, %v8872_v22, 0.0  ;;  %vm1339_vm3 = vmor %vm1337_vm2, %vm1338_vm15  ;;  %vm1347_vm5 = vweird.f32 %v1288_v21 }
 0x216   : > { %v1333_v25 = vmul.f32 %v8035_v20, %v1332_v24  ;;  %1460 = vadd.xlane.f32.xlu0 %v1459_v59  ;;  %v1330_v26 = vsel %vm1329_vm14, %v8033_v4, %v1326_v23 }
 0x217   : > { %v1374_v28 = vmul.f32 %v1330_v26, %v8814_v0 }
 0x218   : > { %v1334_v29 = vmul.f32 0.5, %v1333_v25  ;;  %v1271_v30 = vpop.xlane.xlu2 %1270 }
 0x219   : > { %v1281_v31 = vmul.f32 %v1271_v30, %v8792_v43  ;;  %v1385_v32 = vmul.f32 %v8847_v40, %v1374_v28 }
 0x21a   : > { %v1335_v33 = vsub.f32 1.5, %v1334_v29 }
 0x21b   : > { %v8037_v34 = vpop.eup %8036  ;;  %v1289_v35 = vadd.f32 1e-05, %v1281_v31  ;;  %v8880_v36 = vadd.f32 %v8851_v45, %v1385_v32 }
 0x21c   : > { %v1336_v37 = vmul.f32 %v8035_v20, %v1335_v33  ;;  %v1342_v38 = vmul.f32 %v8037_v34, %v1288_v21  ;;  %vm1348_vm4 = vweird.f32 %v8037_v34 }
 0x21d   : > { %8038 = vrsqrt.f32 %v1289_v35  ;;  %v1462_v0 = vsel %vm1195_vm1, %v8880_v36, 0.0  ;;  %vm1349_vm6 = vmor %vm1347_vm5, %vm1348_vm4  ;;  %vm1357_vm8 = vweird.f32 %v1289_v35 }
 0x21e   : > { %v1343_v39 = vmul.f32 %v8037_v34, %v1342_v38  ;;  %1463 = vadd.xlane.f32.xlu1 %v1462_v0  ;;  %v1340_v41 = vsel %vm1339_vm3, %v8035_v20, %v1336_v37 }
 0x21f   : > { %v1375_v42 = vmul.f32 %v1340_v41, %v8820_v5 }
 0x220   : > { %v1344_v44 = vmul.f32 0.5, %v1343_v39 }
 0x221   : > { %v1386_v47 = vmul.f32 %v8847_v40, %v1375_v42 }
 0x222   : > { %v1345_v48 = vsub.f32 1.5, %v1344_v44 }
 0x223   : > { %v8039_v49 = vpop.eup %8038  ;;  %v8887_v50 = vadd.f32 %v8851_v45, %v1386_v47 }
 0x224   : > { %v1346_v51 = vmul.f32 %v8037_v34, %v1345_v48  ;;  %v1352_v52 = vmul.f32 %v8039_v49, %v1289_v35  ;;  %vm1358_vm7 = vweird.f32 %v8039_v49 }
 0x225   : > { %v1465_v54 = vsel %vm1195_vm1, %v8887_v50, 0.0  ;;  %vm1359_vm9 = vmor %vm1357_vm8, %vm1358_vm7 }
 0x226   : > { %v1353_v56 = vmul.f32 %v8039_v49, %v1352_v52  ;;  %1466 = vadd.xlane.f32.xlu2 %v1465_v54  ;;  %v1350_v57 = vsel %vm1349_vm6, %v8037_v34, %v1346_v51 }
 0x227   : > { %v1376_v5 = vmul.f32 %v1350_v57, %v8826_v10 }
 0x228   : > { %v1354_v46 = vmul.f32 0.5, %v1353_v56 }
 0x229   : > { %v1387_v58 = vmul.f32 %v8847_v40, %v1376_v5 }
 0x22a   : > { %v1355_v60 = vsub.f32 1.5, %v1354_v46 }
 0x22b   : > { %v8894_v61 = vadd.f32 %v8851_v45, %v1387_v58 }
 0x22c   : > { %v1356_v62 = vmul.f32 %v8039_v49, %v1355_v60  ;;  %v7603_v60 = vld [vmem:[%s10933_s3 + $0x8] sm:$0xff] }
 0x22d   : > { %v1468_v63 = vsel %vm1195_vm1, %v8894_v61, 0.0  ;;  %1688 = vmatpush.bf16.msra.mxu1 %v7603_v60 }
 0x22e   : > { %1469 = vadd.xlane.f32.xlu0 %v1468_v63  ;;  %v1360_v1 = vsel %vm1359_vm9, %v8039_v49, %v1356_v62 }
 0x22f   : > { %v1377_v2 = vmul.f32 %v1360_v1, %v8832_v15  ;;  %v7602_v1 = vld [vmem:[%s10933_s3] sm:$0xff] }
 0x231   : > { %v1388_v10 = vmul.f32 %v8847_v40, %v1377_v2  ;;  %1689 = vmatpush.bf16.msra.mxu1 %v7602_v1 }
 0x233   : > { %v8901_v3 = vadd.f32 %v8851_v45, %v1388_v10 }
 0x235   : > { %v1471_v4 = vsel %vm1195_vm1, %v8901_v3, 0.0 }
 0x236   : > { %1472 = vadd.xlane.f32.xlu0 %v1471_v4 }
 0x26b   : > { %v1274_v6 = vpop.xlane.xlu0 %1273 }
 0x26c   : > { %v1282_v8 = vmul.f32 %v1274_v6, %v8792_v43 }
 0x26e   : > { %v1290_v9 = vadd.f32 1e-05, %v1282_v8 }
 0x270   : > { %8040 = vrsqrt.f32 %v1290_v9  ;;  %vm1367_vm11 = vweird.f32 %v1290_v9 }
 0x276   : > { %v8041_v53 = vpop.eup %8040 }
 0x277   : > { %v1362_v11 = vmul.f32 %v8041_v53, %v1290_v9  ;;  %vm1368_vm10 = vweird.f32 %v8041_v53 }
 0x278   : > { %vm1369_vm12 = vmor %vm1367_vm11, %vm1368_vm10 }
 0x279   : > { %v1363_v12 = vmul.f32 %v8041_v53, %v1362_v11  ;;  %v1455_v13 = vpop.xlane.xlu1 %1454 }
 0x27a   : > { %v1477_v15 = vmul.f32 %v1455_v13, %v8792_v43 }
 0x27b   : > { %v1364_v14 = vmul.f32 0.5, %v1363_v12 }
 0x27c   : > { %v8908_v16 = vsub.f32 %v8856_v55, %v1477_v15 }
 0x27d   : > { %v1365_v17 = vsub.f32 1.5, %v1364_v14 }
 0x27e   : > { %v1493_v18 = vmul.f32 %v8908_v16, %v8908_v16 }
 0x27f   : > { %v1366_v19 = vmul.f32 %v8041_v53, %v1365_v17 }
 0x280   : > { %v1501_v20 = vsel %vm1195_vm1, %v1493_v18, 0.0 }
 0x281   : > { %v1458_v21 = vpop.xlane.xlu2 %1457  ;;  %1502 = vadd.xlane.f32.xlu1 %v1501_v20  ;;  %v1370_v23 = vsel %vm1369_vm12, %v8041_v53, %v1366_v19 }
 0x282   : > { %v1478_v24 = vmul.f32 %v1458_v21, %v8792_v43  ;;  %v1378_v59 = vmul.f32 %v1370_v23, %v8840_v27 }
 0x284   : > { %v8916_v25 = vsub.f32 %v8864_v7, %v1478_v24  ;;  %v1389_v26 = vmul.f32 %v8847_v40, %v1378_v59 }
 0x286   : > { %v1494_v28 = vmul.f32 %v8916_v25, %v8916_v25  ;;  %v8922_v29 = vadd.f32 %v8851_v45, %v1389_v26 }
 0x288   : > { %v1504_v30 = vsel %vm1195_vm1, %v1494_v28, 0.0  ;;  %v1474_v31 = vsel %vm1195_vm1, %v8922_v29, 0.0 }
 0x289   : > { %1505 = vadd.xlane.f32.xlu2 %v1504_v30  ;;  %1475 = vadd.xlane.f32.xlu1 %v1474_v31  ;;  %v1461_v32 = vpop.xlane.xlu0 %1460 }
 0x28a   : > { %v1479_v27 = vmul.f32 %v1461_v32, %v8792_v43 }
 0x28c   : > { %v8929_v33 = vsub.f32 %v8872_v22, %v1479_v27 }
 0x28e   : > { %v1495_v40 = vmul.f32 %v8929_v33, %v8929_v33 }
 0x290   : > { %v1507_v34 = vsel %vm1195_vm1, %v1495_v40, 0.0 }
 0x291   : > { %v1464_v45 = vpop.xlane.xlu1 %1463  ;;  %1508 = vadd.xlane.f32.xlu2 %v1507_v34 }
 0x292   : > { %v1480_v35 = vmul.f32 %v1464_v45, %v8792_v43 }
 0x294   : > { %v8936_v37 = vsub.f32 %v8880_v36, %v1480_v35  ;;  %v8977_v35 = vld [vmem:[%s10927_s25] ss:$0 sm:$0xff] }
 0x296   : > { %v1496_v38 = vmul.f32 %v8936_v37, %v8936_v37 }
 0x298   : > { %v1510_v0 = vsel %vm1195_vm1, %v1496_v38, 0.0 }
 0x299   : > { %1511 = vadd.xlane.f32.xlu0 %v1510_v0  ;;  %v1467_v39 = vpop.xlane.xlu2 %1466 }
 0x29a   : > { %v1481_v41 = vmul.f32 %v1467_v39, %v8792_v43 }
 0x29c   : > { %v8943_v42 = vsub.f32 %v8887_v50, %v1481_v41 }
 0x29e   : > { %v1497_v44 = vmul.f32 %v8943_v42, %v8943_v42 }
 0x2a0   : > { %v1513_v47 = vsel %vm1195_vm1, %v1497_v44, 0.0 }
 0x2a1   : > { %1514 = vadd.xlane.f32.xlu1 %v1513_v47  ;;  %v1470_v48 = vpop.xlane.xlu0 %1469 }
 0x2a2   : > { %v1482_v49 = vmul.f32 %v1470_v48, %v8792_v43  ;;  %v8982_v48 = vld [vmem:[%s10926_s29] ss:$0 sm:$0xff] }
 0x2a4   : > { %v8950_v51 = vsub.f32 %v8894_v61, %v1482_v49 }
 0x2a6   : > { %v1498_v52 = vmul.f32 %v8950_v51, %v8950_v51 }
 0x2a8   : > { %v1516_v54 = vsel %vm1195_vm1, %v1498_v52, 0.0 }
 0x2a9   : > { %1517 = vadd.xlane.f32.xlu2 %v1516_v54  ;;  %v1473_v56 = vpop.xlane.xlu0 %1472 }
 0x2aa   : > { %v1483_v57 = vmul.f32 %v1473_v56, %v8792_v43 }
 0x2ac   : > { %v8957_v5 = vsub.f32 %v8901_v3, %v1483_v57 }
 0x2ae   : > { %v1499_v46 = vmul.f32 %v8957_v5, %v8957_v5 }
 0x2b0   : > { %v1519_v58 = vsel %vm1195_vm1, %v1499_v46, 0.0 }
 0x2b1   : > { %1520 = vadd.xlane.f32.xlu0 %v1519_v58 }
 0x2f4   : > { %v1503_v62 = vpop.xlane.xlu1 %1502 }
 0x2f5   : > { %v1525_v63 = vmul.f32 %v1503_v62, %v8792_v43 }
 0x2f7   : > { %v1533_v2 = vadd.f32 1e-05, %v1525_v63 }
 0x2f9   : > { %8042 = vrsqrt.f32 %v1533_v2  ;;  %vm1547_vm14 = vweird.f32 %v1533_v2 }
 0x2fc   : > { %v1506_v10 = vpop.xlane.xlu2 %1505  ;;  %v1476_v4 = vpop.xlane.xlu1 %1475 }
 0x2fd   : > { %v1526_v6 = vmul.f32 %v1506_v10, %v8792_v43  ;;  %v1484_v8 = vmul.f32 %v1476_v4, %v8792_v43 }
 0x2ff   : > { %v8043_v9 = vpop.eup %8042  ;;  %v1534_v53 = vadd.f32 1e-05, %v1526_v6  ;;  %v8968_v11 = vsub.f32 %v8922_v29, %v1484_v8 }
 0x300   : > { %v1542_v12 = vmul.f32 %v8043_v9, %v1533_v2  ;;  %vm1548_vm13 = vweird.f32 %v8043_v9 }
 0x301   : > { %8044 = vrsqrt.f32 %v1534_v53  ;;  %v1500_v13 = vmul.f32 %v8968_v11, %v8968_v11  ;;  %vm1549_vm15 = vmor %vm1547_vm14, %vm1548_vm13  ;;  %vm1557_vm3 = vweird.f32 %v1534_v53 }
 0x302   : > { %v1543_v15 = vmul.f32 %v8043_v9, %v1542_v12 }
 0x303   : > { %v1522_v14 = vsel %vm1195_vm1, %v1500_v13, 0.0 }
 0x304   : > { %v1544_v17 = vmul.f32 0.5, %v1543_v15  ;;  %1523 = vadd.xlane.f32.xlu1 %v1522_v14  ;;  %v1509_v18 = vpop.xlane.xlu2 %1508 }
 0x305   : > { %v1527_v19 = vmul.f32 %v1509_v18, %v8792_v43 }
 0x306   : > { %v1545_v20 = vsub.f32 1.5, %v1544_v17 }
 0x307   : > { %v8045_v21 = vpop.eup %8044  ;;  %v1535_v23 = vadd.f32 1e-05, %v1527_v19 }
 0x308   : > { %v1546_v24 = vmul.f32 %v8043_v9, %v1545_v20  ;;  %v1552_v59 = vmul.f32 %v8045_v21, %v1534_v53  ;;  %vm1558_vm2 = vweird.f32 %v8045_v21 }
 0x309   : > { %8046 = vrsqrt.f32 %v1535_v23  ;;  %vm1559_vm4 = vmor %vm1557_vm3, %vm1558_vm2  ;;  %vm1567_vm6 = vweird.f32 %v1535_v23 }
 0x30a   : > { %v1553_v26 = vmul.f32 %v8045_v21, %v1552_v59  ;;  %v1550_v28 = vsel %vm1549_vm15, %v8043_v9, %v1546_v24 }
 0x30b   : > { %v1621_v45 = vmul.f32 %v1550_v28, %v8908_v16 }
 0x30c   : > { %v1554_v30 = vmul.f32 0.5, %v1553_v26  ;;  %v1512_v31 = vpop.xlane.xlu0 %1511 }
 0x30d   : > { %v1528_v32 = vmul.f32 %v1512_v31, %v8792_v43  ;;  %v1632_v47 = vmul.f32 %v8977_v35, %v1621_v45 }
 0x30e   : > { %v1555_v27 = vsub.f32 1.5, %v1554_v30 }
 0x30f   : > { %v8047_v40 = vpop.eup %8046  ;;  %v1536_v34 = vadd.f32 1e-05, %v1528_v32  ;;  %v1643_v58 = vadd.f32 %v8982_v48, %v1632_v47 }
 0x310   : > { %v1556_v38 = vmul.f32 %v8045_v21, %v1555_v27  ;;  %v1562_v0 = vmul.f32 %v8047_v40, %v1535_v23  ;;  %vm1568_vm5 = vweird.f32 %v8047_v40 }
 0x311   : > { %8048 = vrsqrt.f32 %v1536_v34  ;;  %vm1569_vm7 = vmor %vm1567_vm6, %vm1568_vm5  ;;  %vm1577_vm9 = vweird.f32 %v1536_v34 }
 0x312   : > { %v1560_v39 = vsel %vm1559_vm4, %v8045_v21, %v1556_v38  ;;  %v1563_v41 = vmul.f32 %v8047_v40, %v1562_v0 }
 0x313   : > { %v1622_v44 = vmul.f32 %v1560_v39, %v8916_v25 }
 0x314   : > { %v1564_v49 = vmul.f32 0.5, %v1563_v41  ;;  %v1515_v52 = vpop.xlane.xlu1 %1514 }
 0x315   : > { %v1529_v54 = vmul.f32 %v1515_v52, %v8792_v43  ;;  %v1633_v16 = vmul.f32 %v8977_v35, %v1622_v44 }
 0x316   : > { %v1565_v56 = vsub.f32 1.5, %v1564_v49 }
 0x317   : > { %v8049_v57 = vpop.eup %8048  ;;  %v1537_v46 = vadd.f32 1e-05, %v1529_v54  ;;  %v1644_v60 = vadd.f32 %v8982_v48, %v1633_v16 }
 0x318   : > { %v1566_v62 = vmul.f32 %v8047_v40, %v1565_v56  ;;  %v1572_v25 = vmul.f32 %v8049_v57, %v1536_v34  ;;  %vm1578_vm8 = vweird.f32 %v8049_v57 }
 0x319   : > { %8050 = vrsqrt.f32 %v1537_v46  ;;  %v1651_v63 = vpack.c.bf16 %v1644_v60, %v1643_v58  ;;  %vm1579_vm10 = vmor %vm1577_vm9, %vm1578_vm8  ;;  %vm1587_vm12 = vweird.f32 %v1537_v46  ;;  %vm1735_vm9 = vcmask 130048  }
 0x31a   : > { %v1573_v1 = vmul.f32 %v8049_v57, %v1572_v25  ;;  %v1570_v2 = vsel %vm1569_vm7, %v8047_v40, %v1566_v62 }
 0x31b   : > { %6936 = vmatmul.msk.bf16.vlgmr.msra.gmra.mxu1 %vm1195_vm1, %v1651_v63  ;;  %v1623_v12 = vmul.f32 %v1570_v2, %v8929_v33 }
 0x31c   : > { %v1574_v10 = vmul.f32 0.5, %v1573_v1  ;;  %v1518_v4 = vpop.xlane.xlu2 %1517 }
 0x31d   : > { %v1530_v6 = vmul.f32 %v1518_v4, %v8792_v43  ;;  %v1634_v19 = vmul.f32 %v8977_v35, %v1623_v12 }
 0x31e   : > { %v1575_v8 = vsub.f32 1.5, %v1574_v10 }
 0x31f   : > { %v8051_v9 = vpop.eup %8050  ;;  %v1538_v53 = vadd.f32 1e-05, %v1530_v6  ;;  %v1645_v59 = vadd.f32 %v8982_v48, %v1634_v19 }
 0x320   : > { %v1576_v13 = vmul.f32 %v8049_v57, %v1575_v8  ;;  %v1582_v15 = vmul.f32 %v8051_v9, %v1537_v46  ;;  %vm1588_vm11 = vweird.f32 %v8051_v9 }
 0x321   : > { %8052 = vrsqrt.f32 %v1538_v53  ;;  %vm1589_vm13 = vmor %vm1587_vm12, %vm1588_vm11  ;;  %vm1597_vm15 = vweird.f32 %v1538_v53 }
 0x322   : > { %v1580_v14 = vsel %vm1579_vm10, %v8049_v57, %v1576_v13  ;;  %v1583_v17 = vmul.f32 %v8051_v9, %v1582_v15  ;;  %vm1789_vm10 = vcmask 523264  }
 0x323   : > { %v1624_v18 = vmul.f32 %v1580_v14, %v8936_v37 }
 0x324   : > { %v1584_v20 = vmul.f32 0.5, %v1583_v17  ;;  %v1521_v49 = vpop.xlane.xlu0 %1520 }
 0x325   : > { %v1635_v21 = vmul.f32 %v8977_v35, %v1624_v18 }
 0x326   : > { %v1585_v23 = vsub.f32 1.5, %v1584_v20  ;;  %v7996_v20 = vld [vmem:[%s10932_s8] ss:$0 sm:$0xff] }
 0x327   : > { %v8053_v24 = vpop.eup %8052  ;;  %v1646_v33 = vadd.f32 %v8982_v48, %v1635_v21 }
 0x328   : > { %v1586_v26 = vmul.f32 %v8051_v9, %v1585_v23  ;;  %v1592_v28 = vmul.f32 %v8053_v24, %v1538_v53  ;;  %vm1598_vm14 = vweird.f32 %v8053_v24 }
 0x329   : > { %v1652_v30 = vpack.c.bf16 %v1646_v33, %v1645_v59  ;;  %vm1599_vm2 = vmor %vm1597_vm15, %vm1598_vm14 }
 0x32a   : > { %v1593_v31 = vmul.f32 %v8053_v24, %v1592_v28  ;;  %v1590_v37 = vsel %vm1589_vm13, %v8051_v9, %v1586_v26 }
 0x32b   : > { %6937 = vmatmul.msk.bf16.gmra.mxu1 %vm1195_vm1, %v1652_v30  ;;  %v1625_v40 = vmul.f32 %v1590_v37, %v8943_v42  ;;  %v1531_v42 = vmul.f32 %v1521_v49, %v8792_v43 }
 0x32c   : > { %v1594_v32 = vmul.f32 0.5, %v1593_v31 }
 0x32d   : > { %v1636_v0 = vmul.f32 %v8977_v35, %v1625_v40  ;;  %v1539_v52 = vadd.f32 1e-05, %v1531_v42 }
 0x32e   : > { %v1595_v27 = vsub.f32 1.5, %v1594_v32 }
 0x32f   : > { %v1647_v41 = vadd.f32 %v8982_v48, %v1636_v0  ;;  %8054 = vrsqrt.f32 %v1539_v52  ;;  %vm1607_vm4 = vweird.f32 %v1539_v52 }
 0x330   : > { %v1596_v34 = vmul.f32 %v8053_v24, %v1595_v27 }
 0x332   : > { %v1600_v45 = vsel %vm1599_vm2, %v8053_v24, %v1596_v34 }
 0x333   : > { %v1626_v38 = vmul.f32 %v1600_v45, %v8950_v51 }
 0x335   : > { %v1637_v39 = vmul.f32 %v8977_v35, %v1626_v38  ;;  %v8055_v54 = vpop.eup %8054 }
 0x336   : > { %v1602_v16 = vmul.f32 %v8055_v54, %v1539_v52  ;;  %vm1608_vm3 = vweird.f32 %v8055_v54 }
 0x337   : > { %v1648_v44 = vadd.f32 %v8982_v48, %v1637_v39  ;;  %vm1609_vm5 = vmor %vm1607_vm4, %vm1608_vm3 }
 0x338   : > { %v1603_v56 = vmul.f32 %v8055_v54, %v1602_v16 }
 0x339   : > { %v1653_v47 = vpack.c.bf16 %v1648_v44, %v1647_v41 }
 0x33a   : > { %v1604_v58 = vmul.f32 0.5, %v1603_v56 }
 0x33b   : > { %6938 = vmatmul.msk.bf16.gmra.mxu1 %vm1195_vm1, %v1653_v47 }
 0x33c   : > { %v1605_v60 = vsub.f32 1.5, %v1604_v58 }
 0x33e   : > { %v1606_v25 = vmul.f32 %v8055_v54, %v1605_v60 }
 0x340   : > { %v1610_v2 = vsel %vm1609_vm5, %v8055_v54, %v1606_v25 }
 0x341   : > { %v1627_v6 = vmul.f32 %v1610_v2, %v8957_v5 }
 0x343   : > { %v1638_v12 = vmul.f32 %v8977_v35, %v1627_v6  ;;  %v7814_v6 = vld [vmem:[%s10930_s14 + $0x20] sm:$0xff]  }
 0x345   : > { %v1649_v15 = vadd.f32 %v8982_v48, %v1638_v12 }
 0x377   : > { %v1524_v51 = vpop.xlane.xlu1 %1523 }
 0x378   : > { %v1532_v57 = vmul.f32 %v1524_v51, %v8792_v43 }
 0x37a   : > { %v1540_v46 = vadd.f32 1e-05, %v1532_v57 }
 0x37c   : > { %8056 = vrsqrt.f32 %v1540_v46  ;;  %vm1617_vm7 = vweird.f32 %v1540_v46 }
 0x382   : > { %v8057_v62 = vpop.eup %8056 }
 0x383   : > { %v1612_v63 = vmul.f32 %v8057_v62, %v1540_v46  ;;  %vm1618_vm6 = vweird.f32 %v8057_v62 }
 0x384   : > { %vm1619_vm8 = vmor %vm1617_vm7, %vm1618_vm6 }
 0x385   : > { %v1613_v1 = vmul.f32 %v8057_v62, %v1612_v63 }
 0x387   : > { %v1614_v10 = vmul.f32 0.5, %v1613_v1 }
 0x389   : > { %v1615_v4 = vsub.f32 1.5, %v1614_v10 }
 0x38b   : > { %v1616_v8 = vmul.f32 %v8057_v62, %v1615_v4 }
 0x38d   : > { %v1620_v9 = vsel %vm1619_vm8, %v8057_v62, %v1616_v8  ;;  %v7733_v8 = vunpack.c.l.bf16 %v7814_v6 }
 0x38e   : > { %v1628_v53 = vmul.f32 %v1620_v9, %v8968_v11 }
 0x390   : > { %v1639_v13 = vmul.f32 %v8977_v35, %v1628_v53 }
 0x392   : > { %v1650_v14 = vadd.f32 %v8982_v48, %v1639_v13  ;;  %v7734_v13 = vunpack.c.h.bf16 %v7814_v6 }
 0x394   : > { %v1654_v17 = vpack.c.bf16 %v1650_v14, %v1649_v15 }
 0x396   : > { %6939 = vmatmul.msk.bf16.gmra.mxu1 %vm1195_vm1, %v1654_v17  ;;  %v7815_v17 = vld [vmem:[%s10930_s14 + $0x28] sm:$0xff]  }
 0x398   : > { %v1691_v18 = vpop.f32.mrf.mxu1 }
 0x399   : > { %v1692_v30 = vadd.f32 %v7996_v20, %v1691_v18 }
 0x3a0   : > { %v1693_v19 = vpop.f32.mrf.mxu1 }
 0x3a1   : > { %v1694_v28 = vadd.f32 %v7996_v20, %v1693_v19  ;;  %v7737_v19 = vunpack.c.l.bf16 %v7815_v17 }
 0x3a3   : > { %v9024_v31 = vpack.c.bf16 %v1694_v28, %v1692_v30 }
 0x3a8   : > { %v1696_v5 = vpop.f32.mrf.mxu1 }
 0x3a9   : > { %v1697_v23 = vadd.f32 %v7996_v20, %v1696_v5 }
 0x3b0   : > { %v1698_v21 = vpop.f32.mrf.mxu1 }
 0x3b1   : > { %v1699_v24 = vadd.f32 %v7996_v20, %v1698_v21 }
 0x3b3   : > { %v9014_v59 = vpack.c.bf16 %v1699_v24, %v1697_v23  ;;  %v7716_v23 = vld [vmem:[%s10930_s14] sm:$0xff]  }
 0x3b4   : > { %v7717_v24 = vunpack.c.l.bf16 %v7716_v23  ;;  %v7718_v30 = vunpack.c.h.bf16 %v7716_v23 }
 0x3b5   : > { %1953 = vrot.lane.b32.xlu1 %v9014_v59, %s10873_s16 }
 0x3b8   : > { %v1701_v11 = vpop.f32.mrf.mxu1 }
 0x3b9   : > { %v1702_v33 = vadd.f32 %v7996_v20, %v1701_v11 }
 0x3c0   : > { %v1703_v35 = vpop.f32.mrf.mxu1 }
 0x3c1   : > { %v1704_v48 = vadd.f32 %v7996_v20, %v1703_v35 }
 0x3c3   : > { %v9018_v26 = vpack.c.bf16 %v1704_v48, %v1702_v33  ;;  %v7738_v33 = vunpack.c.h.bf16 %v7815_v17 }
 0x3c5   : > { %1955 = vrot.lane.b32.xlu0 %v9018_v26, %s10873_s16  ;;  %1731 = vrot.lane.b32.xlu1 %v9018_v26, %s10867_s15 }
 0x3cd   : > { %1727 = vrot.lane.b32.xlu1 %v9024_v31, %s10867_s15 }
 0x3d5   : > { %2104 = vrot.lane.b32.xlu1 %v9024_v31, %s10865_s10 }
 0x413   : > { %v1706_v37 = vpop.f32.mrf.mxu1 }
 0x414   : > { %v1707_v27 = vadd.f32 %v7996_v20, %v1706_v37 }
 0x41b   : > { %v1708_v32 = vpop.f32.mrf.mxu1 }
 0x41c   : > { %v1709_v40 = vadd.f32 %v7996_v20, %v1708_v32 }
 0x41e   : > { %v1714_v34 = vpack.c.bf16 %v1709_v40, %v1707_v27  ;;  %v7811_v40 = vld [vmem:[%s10930_s14 + $0x8] sm:$0xff]  }
 0x420   : > { %2110 = vrot.lane.b32.xlu1 %v1714_v34, %s10865_s10  ;;  %1733 = vrot.lane.b32.xlu0 %v1714_v34, %s10867_s15 }
 0x421   : > { %1957 = vrot.lane.b32.xlu2 %v1714_v34, %s10873_s16 }
 0x427   : > { %v1954_v45 = vpop.permute.xlu1 %1953 }
 0x428   : > { %1729 = vrot.lane.b32.xlu0 %v9014_v59, %s10867_s15  ;;  %v1975_v52 = vsel %vm1735_vm9, %v1954_v45, 0  ;;  %s10943_s15 = sld [smem:[#allocation20_spill]] }
 0x429   : > { %1951 = vrot.lane.b32.xlu2 %v9024_v31, %s10873_s16 }
 0x430   : > { %1947 = vrot.lane.b32.xlu0 %v9018_v26, %s10869_s5 }
 0x431   : > { %1943 = vrot.lane.b32.xlu2 %v9024_v31, %s10869_s5 }
 0x437   : > { %v1732_v38 = vpop.permute.xlu1 %1731  ;;  %v1956_v44 = vpop.permute.xlu0 %1955 }
 0x438   : > { %2108 = vrot.lane.b32.xlu0 %v9018_v26, %s10865_s10  ;;  %v1978_v47 = vsel %vm1735_vm9, %v1956_v44, 0  ;;  %v1755_v60 = vsel %vm1735_vm9, %v1732_v38, 0  ;;  %v7721_v38 = vunpack.c.l.bf16 %v7811_v40 }
 0x439   : > { %1945 = vrot.lane.b32.xlu2 %v9014_v59, %s10869_s5 }
 0x43f   : > { %v1728_v41 = vpop.permute.xlu1 %1727 }
 0x440   : > { %1888 = vrot.lane.b32.xlu0 %v1714_v34, %s10861_s9  ;;  %v1749_v2 = vsel %vm1735_vm9, %v1728_v41, 0 }
 0x441   : > { %1949 = vrot.lane.b32.xlu2 %v1714_v34, %s10869_s5  ;;  %s10944_s5 = sld [smem:[#allocation21_spill]] }
 0x447   : > { %v2105_v42 = vpop.permute.xlu1 %2104 }
 0x449   : > { %2106 = vrot.lane.b32.xlu2 %v9014_v59, %s10865_s10  ;;  %s10942_s10 = sld [smem:[#allocation19_spill]] }
 0x47b   : > { %v1958_v0 = vpop.permute.xlu2 %1957 }
 0x47c   : > { %v1981_v39 = vsel %vm1735_vm9, %v1958_v0, 0  ;;  %v7816_v0 = vld [vmem:[%s10930_s14 + $0x30] sm:$0xff]  }
 0x47d   : > { %1987 = vmatpush.bf16.xpose.msrb.mxu1 %v1981_v39 }
 0x483   : > { %v1952_v49 = vpop.permute.xlu2 %1951 }
 0x484   : > { %v1972_v57 = vsel %vm1735_vm9, %v1952_v49, 0 }
 0x485   : > { %1988 = vmatpush.bf16.xpose.msrb.mxu1 %v1978_v47  ;;  %v7741_v47 = vunpack.c.l.bf16 %v7816_v0 }
 0x48b   : > { %v1944_v54 = vpop.permute.xlu2 %1943 }
 0x48d   : > { %1989 = vmatpush.bf16.xpose.msrb.mxu1 %v1975_v52 }
 0x492   : > { %v2111_v16 = vpop.permute.xlu1 %2110  ;;  %v1734_v56 = vpop.permute.xlu0 %1733 }
 0x493   : > { %2132 = vmatpush.bf16.msrb.mxu0 %v2111_v16  ;;  %v1758_v51 = vsel %vm1735_vm9, %v1734_v56, 0  ;;  %v1946_v46 = vpop.permute.xlu2 %1945 }
 0x494   : > { %1764 = vmatpush.bf16.xpose.msra.mxu2 %v1758_v51  ;;  %v7812_v51 = vld [vmem:[%s10930_s14 + $0x10] sm:$0xff]  }
 0x495   : > { %1990 = vmatpush.bf16.xpose.msrb.mxu1 %v1972_v57  ;;  %v7742_v57 = vunpack.c.h.bf16 %v7816_v0 }
 0x49a   : > { %v1730_v58 = vpop.permute.xlu0 %1729 }
 0x49b   : > { %v1752_v25 = vsel %vm1735_vm9, %v1730_v58, 0  ;;  %v1950_v63 = vpop.permute.xlu2 %1949 }
 0x49c   : > { %6948 = vmatmul.msk.bf16.vlgmr.msrb.gmra.mxu1 %vm1735_vm9, %v1944_v54  ;;  %1765 = vmatpush.bf16.xpose.msra.mxu2 %v1755_v60  ;;  %v7725_v60 = vunpack.c.l.bf16 %v7812_v51 }
 0x4a2   : > { %v1948_v62 = vpop.permute.xlu0 %1947 }
 0x4a3   : > { %v2107_v10 = vpop.permute.xlu2 %2106 }
 0x4a4   : > { %1766 = vmatpush.bf16.xpose.msra.mxu2 %v1752_v25  ;;  %v7817_v25 = vld [vmem:[%s10930_s14 + $0x38] sm:$0xff]  }
 0x4a5   : > { %v7746_v23 = vunpack.c.h.bf16 %v7817_v25 }
 0x4aa   : > { %v2109_v1 = vpop.permute.xlu0 %2108 }
 0x4ab   : > { %2133 = vmatpush.bf16.msrb.mxu0 %v2109_v1 }
 0x4ac   : > { %6949 = vmatmul.msk.bf16.gmra.mxu1 %vm1735_vm9, %v1946_v46  ;;  %1767 = vmatpush.bf16.xpose.msra.mxu2 %v1749_v2  ;;  %v7745_v2 = vunpack.c.l.bf16 %v7817_v25 }
 0x4af   : > { %2134 = vmatpush.bf16.msrb.mxu0 %v2107_v10 }
 0x4b2   : > { %v1889_v4 = vpop.permute.xlu0 %1888 }
 0x4b3   : > { %6940 = vmatmul.msk.bf16.vlgmr.msra.gmra.mxu2 %vm1735_vm9, %v9024_v31  ;;  %1910 = vmatpush.bf16.msra.mxu3 %v1889_v4 }
 0x4b4   : > { %2135 = vmatpush.bf16.msrb.mxu0 %v2105_v42  ;;  %v7722_v42 = vunpack.c.h.bf16 %v7811_v40 }
 0x4bc   : > { %6950 = vmatmul.msk.bf16.gmra.mxu1 %vm1735_vm9, %v1948_v62 }
 0x4c3   : > { %6941 = vmatmul.msk.bf16.gmra.mxu2 %vm1735_vm9, %v9014_v59 }
 0x4cc   : > { %6951 = vmatmul.msk.bf16.gmra.mxu1 %vm1735_vm9, %v1950_v63 }
 0x4d3   : > { %6942 = vmatmul.msk.bf16.gmra.mxu2 %vm1735_vm9, %v9018_v26 }
 0x4e3   : > { %6943 = vmatmul.msk.bf16.gmra.mxu2 %vm1735_vm9, %v1714_v34 }
 0x519   : > { %v1992_v9 = vpop.f32.mrf.mxu1 }
 0x51a   : > { %v9069_v53 = vadd.f32 %v7733_v8, %v1992_v9  ;;  %v7726_v8 = vunpack.c.h.bf16 %v7812_v51 }
 0x51c   : > { %v2012_v12 = vsel %vm1789_vm10, %v9069_v53, -inf }
 0x51d   : > { %2013 = vmax.xlane.f32.xlu1 %v2012_v12 }
 0x521   : > { %v1994_v15 = vpop.f32.mrf.mxu1 }
 0x522   : > { %v9073_v14 = vadd.f32 %v7734_v13, %v1994_v15  ;;  %v7813_v15 = vld [vmem:[%s10930_s14 + $0x18] sm:$0xff]  }
 0x524   : > { %v2015_v18 = vsel %vm1789_vm10, %v9073_v14, -inf }
 0x525   : > { %2016 = vmax.xlane.f32.xlu0 %v2015_v18 }
 0x529   : > { %v1997_v5 = vpop.f32.mrf.mxu1 }
 0x52a   : > { %v9078_v20 = vadd.f32 %v7737_v19, %v1997_v5  ;;  %v7729_v19 = vunpack.c.l.bf16 %v7813_v15 }
 0x52c   : > { %v2018_v21 = vsel %vm1789_vm10, %v9078_v20, -inf }
 0x52d   : > { %2019 = vmax.xlane.f32.xlu2 %v2018_v21 }
 0x531   : > { %v1999_v28 = vpop.f32.mrf.mxu1 }
 0x532   : > { %v9087_v37 = vadd.f32 %v7738_v33, %v1999_v28  ;;  %v7730_v33 = vunpack.c.h.bf16 %v7813_v15 }
 0x534   : > { %v2021_v45 = vsel %vm1789_vm10, %v9087_v37, -inf }
 0x536   : > { %v1769_v11 = vpop.f32.mrf.mxu2 }
 0x537   : > { %v9083_v35 = vadd.f32 %v7717_v24, %v1769_v11 }
 0x539   : > { %v1790_v48 = vsel %vm1789_vm10, %v9083_v35, -inf  ;;  %v2002_v39 = vpop.f32.mrf.mxu1 }
 0x53a   : > { %1791 = vmax.xlane.f32.xlu1 %v1790_v48  ;;  %v9101_v52 = vadd.f32 %v7741_v47, %v2002_v39 }
 0x53c   : > { %v2024_v58 = vsel %vm1789_vm10, %v9101_v52, -inf }
 0x53e   : > { %v1771_v32 = vpop.f32.mrf.mxu2 }
 0x53f   : > { %v9089_v27 = vadd.f32 %v7718_v30, %v1771_v32 }
 0x541   : > { %v1793_v34 = vsel %vm1789_vm10, %v9089_v27, -inf  ;;  %v2004_v56 = vpop.f32.mrf.mxu1 }
 0x542   : > { %1794 = vmax.xlane.f32.xlu0 %v1793_v34  ;;  %2022 = vmax.xlane.f32.xlu1 %v2021_v45  ;;  %v9110_v62 = vadd.f32 %v7742_v57, %v2004_v56 }
 0x544   : > { %v2027_v10 = vsel %vm1789_vm10, %v9110_v62, -inf }
 0x546   : > { %v1774_v41 = vpop.f32.mrf.mxu2 }
 0x547   : > { %v9097_v44 = vadd.f32 %v7721_v38, %v1774_v41 }
 0x549   : > { %v1796_v49 = vsel %vm1789_vm10, %v9097_v44, -inf  ;;  %v2007_v6 = vpop.f32.mrf.mxu1 }
 0x54a   : > { %1797 = vmax.xlane.f32.xlu0 %v1796_v49  ;;  %v9119_v9 = vadd.f32 %v7745_v2, %v2007_v6 }
 0x54c   : > { %v2030_v18 = vsel %vm1789_vm10, %v9119_v9, -inf }
 0x54e   : > { %v1776_v54 = vpop.f32.mrf.mxu2 }
 0x54f   : > { %v9103_v16 = vadd.f32 %v7722_v42, %v1776_v54 }
 0x551   : > { %v1799_v46 = vsel %vm1789_vm10, %v9103_v16, -inf  ;;  %v2009_v11 = vpop.f32.mrf.mxu1 }
 0x552   : > { %1800 = vmax.xlane.f32.xlu2 %v1799_v46  ;;  %2025 = vmax.xlane.f32.xlu0 %v2024_v58  ;;  %v9132_v48 = vadd.f32 %v7746_v23, %v2009_v11 }
 0x554   : > { %v2033_v32 = vsel %vm1789_vm10, %v9132_v48, -inf }
 0x556   : > { %v1779_v63 = vpop.f32.mrf.mxu2 }
 0x557   : > { %v9113_v1 = vadd.f32 %v7725_v60, %v1779_v63 }
 0x559   : > { %v1802_v4 = vsel %vm1789_vm10, %v9113_v1, -inf }
 0x55a   : > { %2028 = vmax.xlane.f32.xlu2 %v2027_v10  ;;  %1803 = vmax.xlane.f32.xlu0 %v1802_v4 }
 0x55e   : > { %v1781_v12 = vpop.f32.mrf.mxu2 }
 0x55f   : > { %v9121_v13 = vadd.f32 %v7726_v8, %v1781_v12 }
 0x561   : > { %v1805_v17 = vsel %vm1789_vm10, %v9121_v13, -inf }
 0x562   : > { %1806 = vmax.xlane.f32.xlu1 %v1805_v17  ;;  %2031 = vmax.xlane.f32.xlu2 %v2030_v18 }
 0x566   : > { %v1784_v5 = vpop.f32.mrf.mxu2 }
 0x567   : > { %v9128_v21 = vadd.f32 %v7729_v19, %v1784_v5 }
 0x569   : > { %v1808_v24 = vsel %vm1789_vm10, %v9128_v21, -inf }
 0x56a   : > { %1809 = vmax.xlane.f32.xlu1 %v1808_v24 }
 0x56e   : > { %v1786_v28 = vpop.f32.mrf.mxu2 }
 0x56f   : > { %v9134_v30 = vadd.f32 %v7730_v33, %v1786_v28 }
 0x571   : > { %v1811_v40 = vsel %vm1789_vm10, %v9134_v30, -inf }
 0x572   : > { %2034 = vmax.xlane.f32.xlu1 %v2033_v32  ;;  %1812 = vmax.xlane.f32.xlu2 %v1811_v40 }
 0x590   : > { %v2014_v34 = vpop.xlane.xlu1 %2013 }
 0x591   : > { %v2036_v45 = vsub.f32 %v9069_v53, %v2014_v34 }
 0x593   : > { %v2044_v38 = vmul.f32 1.442695, %v2036_v45 }
 0x595   : > { %8058 = vpow2.f32 %v2044_v38 }
 0x598   : > { %v2017_v0 = vpop.xlane.xlu0 %2016 }
 0x599   : > { %v2037_v39 = vsub.f32 %v9073_v14, %v2017_v0 }
 0x59b   : > { %v9142_v41 = vpop.eup %8058  ;;  %v2046_v47 = vmul.f32 1.442695, %v2037_v39 }
 0x59c   : > { %v2060_v49 = vsel %vm1789_vm10, %v9142_v41, 0.0 }
 0x59d   : > { %8060 = vpow2.f32 %v2046_v47  ;;  %2061 = vadd.xlane.f32.xlu0 %v2060_v49 }
 0x5a0   : > { %v2020_v46 = vpop.xlane.xlu2 %2019 }
 0x5a1   : > { %v2038_v10 = vsub.f32 %v9078_v20, %v2020_v46 }
 0x5a3   : > { %v9146_v42 = vpop.eup %8060 }
 0x5a4   : > { %v2063_v54 = vsel %vm1789_vm10, %v9146_v42, 0.0 }
 0x5a5   : > { %2064 = vadd.xlane.f32.xlu2 %v2063_v54 }
 0x5ad   : > { %v1792_v53 = vpop.xlane.xlu1 %1791 }
 0x5ae   : > { %v1814_v56 = vsub.f32 %v9083_v35, %v1792_v53  ;;  %v2048_v35 = vmul.f32 1.442695, %v2038_v10 }
 0x5b0   : > { %v1822_v51 = vmul.f32 1.442695, %v1814_v56 }
 0x5b2   : > { %8062 = vpow2.f32 %v1822_v51 }
 0x5b5   : > { %v2023_v14 = vpop.xlane.xlu1 %2022  ;;  %v1795_v57 = vpop.xlane.xlu0 %1794 }
 0x5b6   : > { %v2039_v58 = vsub.f32 %v9087_v37, %v2023_v14  ;;  %v1815_v60 = vsub.f32 %v9089_v27, %v1795_v57 }
 0x5b8   : > { %v9153_v25 = vpop.eup %8062  ;;  %v2050_v63 = vmul.f32 1.442695, %v2039_v58  ;;  %v1824_v2 = vmul.f32 1.442695, %v1815_v60 }
 0x5b9   : > { %v1838_v4 = vsel %vm1789_vm10, %v9153_v25, 0.0 }
 0x5ba   : > { %8064 = vpow2.f32 %v2050_v63  ;;  %1839 = vadd.xlane.f32.xlu1 %v1838_v4 }
 0x5bb   : > { %8066 = vpow2.f32 %v1824_v2 }
 0x5bc   : > { %8068 = vpow2.f32 %v2048_v35 }
 0x5bd   : > { %v1798_v6 = vpop.xlane.xlu0 %1797 }
 0x5c0   : > { %v9158_v8 = vpop.eup %8064 }
 0x5c1   : > { %v9160_v12 = vpop.eup %8066  ;;  %v2069_v37 = vsel %vm1789_vm10, %v9158_v8, 0.0 }
 0x5c2   : > { %2070 = vadd.xlane.f32.xlu0 %v2069_v37  ;;  %v1841_v20 = vsel %vm1789_vm10, %v9160_v12, 0.0  ;;  %v9167_v18 = vpop.eup %8068 }
 0x5c3   : > { %1842 = vadd.xlane.f32.xlu2 %v1841_v20  ;;  %v2066_v5 = vsel %vm1789_vm10, %v9167_v18, 0.0 }
 0x5c5   : > { %v1801_v27 = vpop.xlane.xlu2 %1800  ;;  %v2026_v15 = vpop.xlane.xlu0 %2025 }
 0x5c6   : > { %v2040_v17 = vsub.f32 %v9101_v52, %v2026_v15  ;;  %v1817_v38 = vsub.f32 %v9103_v16, %v1801_v27 }
 0x5c8   : > { %v2052_v19 = vmul.f32 1.442695, %v2040_v17  ;;  %v1828_v0 = vmul.f32 1.442695, %v1817_v38 }
 0x5ca   : > { %8070 = vpow2.f32 %v2052_v19 }
 0x5cb   : > { %2067 = vadd.xlane.f32.xlu2 %v2066_v5 }
 0x5cd   : > { %v2029_v23 = vpop.xlane.xlu2 %2028  ;;  %v1804_v39 = vpop.xlane.xlu0 %1803 }
 0x5ce   : > { %v2041_v24 = vsub.f32 %v9110_v62, %v2029_v23  ;;  %v1818_v49 = vsub.f32 %v9113_v1, %v1804_v39  ;;  %v1816_v1 = vsub.f32 %v9097_v44, %v1798_v6 }
 0x5d0   : > { %v2054_v11 = vmul.f32 1.442695, %v2041_v24  ;;  %v9172_v33 = vpop.eup %8070  ;;  %v1830_v54 = vmul.f32 1.442695, %v1818_v49  ;;  %v1826_v58 = vmul.f32 1.442695, %v1816_v1 }
 0x5d1   : > { %v2072_v28 = vsel %vm1789_vm10, %v9172_v33, 0.0 }
 0x5d2   : > { %8072 = vpow2.f32 %v2054_v11  ;;  %2073 = vadd.xlane.f32.xlu1 %v2072_v28 }
 0x5d5   : > { %v2032_v40 = vpop.xlane.xlu2 %2031  ;;  %v1807_v62 = vpop.xlane.xlu1 %1806 }
 0x5d6   : > { %1884 = vrot.lane.b32.xlu0 %v9014_v59, %s10861_s9  ;;  %v2042_v34 = vsub.f32 %v9119_v9, %v2032_v40  ;;  %v1819_v46 = vsub.f32 %v9121_v13, %v1807_v62 }
 0x5d8   : > { %v9178_v52 = vpop.eup %8072  ;;  %v2056_v45 = vmul.f32 1.442695, %v2042_v34 }
 0x5d9   : > { %v2075_v32 = vsel %vm1789_vm10, %v9178_v52, 0.0 }
 0x5da   : > { %2076 = vadd.xlane.f32.xlu2 %v2075_v32  ;;  %8074 = vpow2.f32 %v2056_v45 }
 0x5db   : > { %8076 = vpow2.f32 %v1828_v0 }
 0x5dc   : > { %8078 = vpow2.f32 %v1830_v54 }
 0x5dd   : > { %v1810_v59 = vpop.xlane.xlu1 %1809 }
 0x5de   : > { %v1820_v16 = vsub.f32 %v9128_v21, %v1810_v59  ;;  %v1832_v21 = vmul.f32 1.442695, %v1819_v46 }
 0x5e0   : > { %v9188_v47 = vpop.eup %8074  ;;  %v1834_v14 = vmul.f32 1.442695, %v1820_v16 }
 0x5e1   : > { %v9193_v53 = vpop.eup %8076 }
 0x5e2   : > { %v1847_v56 = vsel %vm1789_vm10, %v9193_v53, 0.0  ;;  %v9200_v57 = vpop.eup %8078 }
 0x5e5   : > { %v2035_v9 = vpop.xlane.xlu1 %2034  ;;  %v1813_v60 = vpop.xlane.xlu2 %1812 }
 0x5e6   : > { %v1821_v63 = vsub.f32 %v9134_v30, %v1813_v60 }
 0x5e8   : > { %v1836_v10 = vmul.f32 1.442695, %v1821_v63 }
 0x5eb   : > { %1886 = vrot.lane.b32.xlu1 %v9018_v26, %s10861_s9  ;;  %v2078_v26 = vsel %vm1789_vm10, %v9188_v47, 0.0 }
 0x5f2   : > { %1882 = vrot.lane.b32.xlu2 %v9024_v31, %s10861_s9  ;;  %v2043_v31 = vsub.f32 %v9132_v48, %v2035_v9  ;;  %v1850_v48 = vsel %vm1789_vm10, %v9200_v57, 0.0  ;;  %s10863_s9 = smov 16  }
 0x5f4   : > { %v2058_v51 = vmul.f32 1.442695, %v2043_v31 }
 0x5f6   : > { %8080 = vpow2.f32 %v2058_v51 }
 0x5f7   : > { %8082 = vpow2.f32 %v1834_v14 }
 0x5f8   : > { %8084 = vpow2.f32 %v1826_v58 }
 0x5f9   : > { %8086 = vpow2.f32 %v1832_v21 }
 0x5fc   : > { %v9206_v2 = vpop.eup %8080 }
 0x5fd   : > { %v9208_v44 = vpop.eup %8082  ;;  %v2081_v13 = vsel %vm1789_vm10, %v9206_v2, 0.0 }
 0x5fe   : > { %v9212_v35 = vpop.eup %8084  ;;  %v1856_v6 = vsel %vm1789_vm10, %v9208_v44, 0.0 }
 0x5ff   : > { %v9216_v37 = vpop.eup %8086  ;;  %v1844_v20 = vsel %vm1789_vm10, %v9212_v35, 0.0 }
 0x600   : > { %2079 = vadd.xlane.f32.xlu0 %v2078_v26  ;;  %v1853_v15 = vsel %vm1789_vm10, %v9216_v37, 0.0 }
 0x608   : > { %1848 = vadd.xlane.f32.xlu0 %v1847_v56 }
 0x610   : > { %1851 = vadd.xlane.f32.xlu0 %v1850_v48  ;;  %v2062_v4 = vpop.xlane.xlu0 %2061 }
 0x611   : > { %8088 = vrcp.f32 %v2062_v4 }
 0x612   : > { %8090 = vpow2.f32 %v1836_v10 }
 0x615   : > { %2082 = vadd.xlane.f32.xlu1 %v2081_v13 }
 0x617   : > { %v8089_v27 = vpop.eup %8088 }
 0x618   : > { %v2065_v30 = vpop.xlane.xlu2 %2064  ;;  %1857 = vadd.xlane.f32.xlu0 %v1856_v6  ;;  %v9222_v17 = vpop.eup %8090  ;;  %v2092_v5 = vmul.f32 %v8089_v27, %v9142_v41 }
 0x619   : > { %8092 = vrcp.f32 %v2065_v30  ;;  %v1859_v24 = vsel %vm1789_vm10, %v9222_v17, 0.0 }
 0x61b   : > { %1845 = vadd.xlane.f32.xlu2 %v1844_v20 }
 0x61d   : > { %1854 = vadd.xlane.f32.xlu1 %v1853_v15 }
 0x61f   : > { %v8093_v19 = vpop.eup %8092 }
 0x620   : > { %v2093_v23 = vmul.f32 %v8093_v19, %v9146_v42 }
 0x622   : > { %v2100_v11 = vpack.c.bf16 %v2093_v23, %v2092_v5 }
 0x623   : > { %1860 = vadd.xlane.f32.xlu2 %v1859_v24 }
 0x624   : > { %6952 = vmatmul.msk.bf16.vlgmr.msrb.gmra.mxu0 %vm1789_vm10, %v2100_v11 }
 0x62d   : > { %v1840_v62 = vpop.xlane.xlu1 %1839 }
 0x635   : > { %v2071_v32 = vpop.xlane.xlu0 %2070 }
 0x636   : > { %v1843_v28 = vpop.xlane.xlu2 %1842  ;;  %8094 = vrcp.f32 %v2071_v32 }
 0x63c   : > { %v8095_v34 = vpop.eup %8094 }
 0x63d   : > { %v2095_v41 = vmul.f32 %v8095_v34, %v9158_v8 }
 0x63e   : > { %v2068_v40 = vpop.xlane.xlu2 %2067 }
 0x63f   : > { %8096 = vrcp.f32 %v2068_v40 }
 0x645   : > { %v8097_v45 = vpop.eup %8096  ;;  %v2074_v59 = vpop.xlane.xlu1 %2073 }
 0x646   : > { %v2094_v38 = vmul.f32 %v8097_v45, %v9167_v18  ;;  %8098 = vrcp.f32 %v2074_v59  ;;  %v7604_v59 = vld [vmem:[%s10929_s19] sm:$0xff] }
 0x648   : > { %v2101_v42 = vpack.c.bf16 %v2095_v41, %v2094_v38  ;;  %v1885_v31 = vpop.permute.xlu0 %1884 }
 0x64a   : > { %6953 = vmatmul.msk.bf16.gmra.mxu0 %vm1789_vm10, %v2101_v42  ;;  %v7605_v42 = vld [vmem:[%s10929_s19 + $0x8] sm:$0xff] }
 0x64c   : > { %v8099_v39 = vpop.eup %8098 }
 0x64d   : > { %v2077_v0 = vpop.xlane.xlu2 %2076  ;;  %v2096_v26 = vmul.f32 %v8099_v39, %v9172_v33 }
 0x64e   : > { %8100 = vrcp.f32 %v2077_v0 }
 0x64f   : > { %8102 = vrcp.f32 %v1843_v28 }
 0x650   : > { %8104 = vrcp.f32 %v1840_v62 }
 0x654   : > { %v8101_v49 = vpop.eup %8100 }
 0x655   : > { %v2097_v9 = vmul.f32 %v8101_v49, %v9178_v52  ;;  %v8103_v8 = vpop.eup %8102  ;;  %v1883_v51 = vpop.permute.xlu2 %1882 }
 0x656   : > { %v8105_v16 = vpop.eup %8104  ;;  %v1871_v56 = vmul.f32 %v8103_v8, %v9160_v12 }
 0x657   : > { %v2102_v54 = vpack.c.bf16 %v2097_v9, %v2096_v26  ;;  %v1870_v1 = vmul.f32 %v8105_v16, %v9153_v25 }
 0x659   : > { %v1878_v33 = vpack.c.bf16 %v1871_v56, %v1870_v1 }
 0x65a   : > { %6954 = vmatmul.msk.bf16.gmra.mxu0 %vm1789_vm10, %v2102_v54 }
 0x65d   : > { %v1887_v18 = vpop.permute.xlu1 %1886 }
 0x65e   : > { %1911 = vmatpush.bf16.msra.mxu3 %v1887_v18 }
 0x662   : > { %1912 = vmatpush.bf16.msra.mxu3 %v1885_v31 }
 0x666   : > { %1913 = vmatpush.bf16.msra.mxu3 %v1883_v51 }
 0x669   : > { %6944 = vmatmul.msk.bf16.vlgmr.msra.gmra.mxu3 %vm1789_vm10, %v1878_v33 }
 0x66a   : > { %2231 = vmatpush.bf16.msrb.mxu3 %v7605_v42 }
 0x66e   : > { %2232 = vmatpush.bf16.msrb.mxu3 %v7604_v59 }
 0x673   : > { %v2080_v52 = vpop.xlane.xlu0 %2079 }
 0x674   : > { %8106 = vrcp.f32 %v2080_v52 }
 0x67a   : > { %v8107_v58 = vpop.eup %8106 }
 0x67b   : > { %v1849_v46 = vpop.xlane.xlu0 %1848  ;;  %v2098_v21 = vmul.f32 %v8107_v58, %v9188_v47 }
 0x683   : > { %v1852_v20 = vpop.xlane.xlu0 %1851 }
 0x688   : > { %v2083_v14 = vpop.xlane.xlu1 %2082 }
 0x689   : > { %8108 = vrcp.f32 %v2083_v14 }
 0x68a   : > { %8110 = vrcp.f32 %v1849_v46 }
 0x68e   : > { %v1846_v60 = vpop.xlane.xlu2 %1845 }
 0x68f   : > { %8112 = vrcp.f32 %v1846_v60  ;;  %v8109_v48 = vpop.eup %8108 }
 0x690   : > { %v2099_v12 = vmul.f32 %v8109_v48, %v9206_v2  ;;  %v8111_v63 = vpop.eup %8110  ;;  %v1855_v6 = vpop.xlane.xlu1 %1854 }
 0x691   : > { %v1873_v13 = vmul.f32 %v8111_v63, %v9193_v53  ;;  %8114 = vrcp.f32 %v1855_v6 }
 0x692   : > { %v2103_v25 = vpack.c.bf16 %v2099_v12, %v2098_v21  ;;  %8116 = vrcp.f32 %v1852_v20 }
 0x694   : > { %6955 = vmatmul.msk.bf16.gmra.mxu0 %vm1789_vm10, %v2103_v25 }
 0x695   : > { %v8113_v10 = vpop.eup %8112 }
 0x696   : > { %v1872_v4 = vmul.f32 %v8113_v10, %v9212_v35  ;;  %v1861_v5 = vpop.xlane.xlu2 %1860  ;;  %v1858_v35 = vpop.xlane.xlu0 %1857 }
 0x697   : > { %v8115_v27 = vpop.eup %8114  ;;  %8118 = vrcp.f32 %v1861_v5 }
 0x698   : > { %v1879_v30 = vpack.c.bf16 %v1873_v13, %v1872_v4  ;;  %v8117_v15 = vpop.eup %8116  ;;  %v1875_v2 = vmul.f32 %v8115_v27, %v9216_v37  ;;  %8120 = vrcp.f32 %v1858_v35 }
 0x699   : > { %v1874_v19 = vmul.f32 %v8117_v15, %v9200_v57 }
 0x69a   : > { %6945 = vmatmul.msk.bf16.gmra.mxu3 %vm1789_vm10, %v1879_v30 }
 0x69b   : > { %v1880_v23 = vpack.c.bf16 %v1875_v2, %v1874_v19  ;;  %v7997_v2 = vld [vmem:[%s10928_s24] ss:$0 sm:$0xff] }
 0x69d   : > { %v8119_v53 = vpop.eup %8118 }
 0x69e   : > { %v8121_v28 = vpop.eup %8120  ;;  %v1877_v37 = vmul.f32 %v8119_v53, %v9222_v17 }
 0x69f   : > { %v1876_v57 = vmul.f32 %v8121_v28, %v9208_v44 }
 0x6a1   : > { %v2137_v47 = vpop.f32.mrf.mxu0  ;;  %v1881_v32 = vpack.c.bf16 %v1877_v37, %v1876_v57 }
 0x6a9   : > { %v2139_v24 = vpop.f32.mrf.mxu0 }
 0x6aa   : > { %v7921_v11 = vpack.i.bf16 %v2139_v24, %v2137_v47  ;;  %6946 = vmatmul.msk.bf16.gmra.mxu3 %vm1789_vm10, %v1880_v23 }
 0x6ac   : > { %7922 = vrot.lane.b32.xlu1 %v7921_v11, %s10863_s9 }
 0x6ba   : > { %6947 = vmatmul.msk.bf16.gmra.mxu3 %vm1789_vm10, %v1881_v32 }
 0x6c7   : > { %v2142_v40 = vpop.f32.mrf.mxu0 }
 0x6cf   : > { %v2144_v62 = vpop.f32.mrf.mxu0 }
 0x6d0   : > { %v7926_v34 = vpack.i.bf16 %v2144_v62, %v2142_v40 }
 0x6d2   : > { %7927 = vrot.lane.b32.xlu0 %v7926_v34, %s10863_s9 }
 0x6d7   : > { %v2147_v45 = vpop.f32.mrf.mxu0 }
 0x6df   : > { %v2149_v38 = vpop.f32.mrf.mxu0 }
 0x6e0   : > { %v7931_v41 = vpack.i.bf16 %v2149_v38, %v2147_v45 }
 0x6e2   : > { %7932 = vrot.lane.b32.xlu2 %v7931_v41, %s10863_s9 }
 0x6ec   : > { %v1915_v0 = vpop.f32.mrf.mxu3 }
 0x6f4   : > { %v1917_v54 = vpop.f32.mrf.mxu3 }
 0x711   : > { %v2152_v17 = vpop.f32.mrf.mxu0 }
 0x719   : > { %v2154_v44 = vpop.f32.mrf.mxu0 }
 0x71a   : > { %v7936_v39 = vpack.i.bf16 %v2154_v44, %v2152_v17 }
 0x71c   : > { %7937 = vrot.lane.b32.xlu0 %v7936_v39, %s10863_s9  ;;  %s10941_s9 = sld [smem:[#allocation17_spill]] }
 0x71d   : > { %v1920_v16 = vpop.f32.mrf.mxu3 }
 0x71e   : > { %v7923_v49 = vpop.permute.xlu1 %7922 }
 0x71f   : > { %v7925_v26 = vunpack.i.h.bf16 %v7923_v49  ;;  %v7924_v9 = vunpack.i.l.bf16 %v7923_v49 }
 0x721   : > { %v2189_v18 = vsel %vm1735_vm9, %v1915_v0, %v7924_v9  ;;  %v2190_v8 = vsel %vm1735_vm9, %v1917_v54, %v7925_v26 }
 0x722   : > { %v2197_v31 = vpack.c.bf16 %v2190_v8, %v2189_v18 }
 0x724   : > { %6964 = vmatmul.msk.bf16.vlgmr.msrb.gmra.mxu3 %vm1195_vm1, %v2197_v31 }
 0x725   : > { %v1922_v56 = vpop.f32.mrf.mxu3 }
 0x72d   : > { %v1925_v58 = vpop.f32.mrf.mxu3 }
 0x735   : > { %v1927_v12 = vpop.f32.mrf.mxu3 }
 0x73c   : > { %v7933_v60 = vpop.permute.xlu2 %7932 }
 0x73d   : > { %v7935_v48 = vunpack.i.h.bf16 %v7933_v60  ;;  %v7934_v21 = vunpack.i.l.bf16 %v7933_v60  ;;  %v1930_v4 = vpop.f32.mrf.mxu3 }
 0x73f   : > { %v2193_v63 = vsel %vm1735_vm9, %v1925_v58, %v7934_v21  ;;  %v2194_v25 = vsel %vm1735_vm9, %v1927_v12, %v7935_v48 }
 0x740   : > { %v2199_v10 = vpack.c.bf16 %v2194_v25, %v2193_v63 }
 0x744   : > { %v7928_v51 = vpop.permute.xlu0 %7927 }
 0x745   : > { %v7930_v1 = vunpack.i.h.bf16 %v7928_v51  ;;  %v7929_v33 = vunpack.i.l.bf16 %v7928_v51  ;;  %v1932_v20 = vpop.f32.mrf.mxu3 }
 0x747   : > { %v2191_v52 = vsel %vm1735_vm9, %v1920_v16, %v7929_v33  ;;  %v2192_v14 = vsel %vm1735_vm9, %v1922_v56, %v7930_v1 }
 0x748   : > { %v2198_v46 = vpack.c.bf16 %v2192_v14, %v2191_v52 }
 0x74a   : > { %6965 = vmatmul.msk.bf16.gmra.mxu3 %vm1195_vm1, %v2198_v46 }
 0x75a   : > { %6966 = vmatmul.msk.bf16.gmra.mxu3 %vm1195_vm1, %v2199_v10 }
 0x78e   : > { %v7938_v13 = vpop.permute.xlu0 %7937 }
 0x78f   : > { %v7940_v6 = vunpack.i.h.bf16 %v7938_v13  ;;  %v7939_v30 = vunpack.i.l.bf16 %v7938_v13 }
 0x791   : > { %v2195_v27 = vsel %vm1735_vm9, %v1930_v4, %v7939_v30  ;;  %v2196_v47 = vsel %vm1735_vm9, %v1932_v20, %v7940_v6 }
 0x792   : > { %v2200_v15 = vpack.c.bf16 %v2196_v47, %v2195_v27 }
 0x794   : > { %6967 = vmatmul.msk.bf16.gmra.mxu3 %vm1195_vm1, %v2200_v15 }
 0x7a7   : > { %v2234_v19 = vpop.f32.mrf.mxu3 }
 0x7a8   : > { %v2254_v5 = vadd.f32 %v2234_v19, %v8856_v55 }
 0x7aa   : > { %v9270_v23 = vadd.f32 %v7997_v2, %v2254_v5 }
 0x7ac   : > { %v2273_v24 = vsel %vm1195_vm1, %v9270_v23, 0.0 }
 0x7ad   : > { %2274 = vadd.xlane.f32.xlu1 %v2273_v24 }
 0x7af   : > { %v2236_v35 = vpop.f32.mrf.mxu3 }
 0x7b0   : > { %v2255_v11 = vadd.f32 %v2236_v35, %v8864_v7 }
 0x7b2   : > { %v9275_v53 = vadd.f32 %v7997_v2, %v2255_v11  ;;  %v7607_v11 = vld [vmem:[%s10931_s12 + $0x8] sm:$0xff] }
 0x7b3   : > { %2508 = vmatpush.bf16.msrb.mxu2 %v7607_v11 }
 0x7b4   : > { %v2276_v28 = vsel %vm1195_vm1, %v9275_v53, 0.0 }
 0x7b5   : > { %2277 = vadd.xlane.f32.xlu2 %v2276_v28 }
 0x7cd   : > { %v2239_v37 = vpop.f32.mrf.mxu3 }
 0x7ce   : > { %v2256_v57 = vadd.f32 %v2239_v37, %v8872_v22  ;;  %v7606_v37 = vld [vmem:[%s10931_s12] sm:$0xff] }
 0x7cf   : > { %2509 = vmatpush.bf16.msrb.mxu2 %v7606_v37 }
 0x7d0   : > { %v9280_v32 = vadd.f32 %v7997_v2, %v2256_v57 }
 0x7d2   : > { %v2279_v55 = vsel %vm1195_vm1, %v9280_v32, 0.0 }
 0x7d3   : > { %2280 = vadd.xlane.f32.xlu0 %v2279_v55 }
 0x7d5   : > { %v2241_v40 = vpop.f32.mrf.mxu3 }
 0x7d6   : > { %v2257_v62 = vadd.f32 %v2241_v40, %v8880_v36 }
 0x7d8   : > { %v9285_v34 = vadd.f32 %v7997_v2, %v2257_v62 }
 0x7da   : > { %v2282_v7 = vsel %vm1195_vm1, %v9285_v34, 0.0 }
 0x7db   : > { %2283 = vadd.xlane.f32.xlu1 %v2282_v7 }
 0x7dd   : > { %v2244_v45 = vpop.f32.mrf.mxu3 }
 0x7de   : > { %v2258_v38 = vadd.f32 %v2244_v45, %v8887_v50 }
 0x7e0   : > { %v9290_v41 = vadd.f32 %v7997_v2, %v2258_v38 }
 0x7e2   : > { %v2285_v22 = vsel %vm1195_vm1, %v9290_v41, 0.0 }
 0x7e3   : > { %2286 = vadd.xlane.f32.xlu2 %v2285_v22 }
 0x7e5   : > { %v2246_v42 = vpop.f32.mrf.mxu3 }
 0x7e6   : > { %v2259_v59 = vadd.f32 %v2246_v42, %v8894_v61 }
 0x7e8   : > { %v9295_v17 = vadd.f32 %v7997_v2, %v2259_v59 }
 0x7ea   : > { %v2288_v36 = vsel %vm1195_vm1, %v9295_v17, 0.0 }
 0x7eb   : > { %2289 = vadd.xlane.f32.xlu0 %v2288_v36 }
 0x817   : > { %v2249_v0 = vpop.f32.mrf.mxu3 }
 0x818   : > { %v2260_v44 = vadd.f32 %v2249_v0, %v8901_v3 }
 0x81a   : > { %v9300_v39 = vadd.f32 %v7997_v2, %v2260_v44 }
 0x81c   : > { %v2291_v50 = vsel %vm1195_vm1, %v9300_v39, 0.0 }
 0x81d   : > { %2292 = vadd.xlane.f32.xlu0 %v2291_v50 }
 0x81f   : > { %v2251_v9 = vpop.f32.mrf.mxu3 }
 0x820   : > { %v2275_v49 = vpop.xlane.xlu1 %2274  ;;  %v2261_v18 = vadd.f32 %v2251_v9, %v8922_v29 }
 0x821   : > { %v2297_v26 = vmul.f32 %v2275_v49, %v8792_v43 }
 0x822   : > { %v9313_v16 = vadd.f32 %v7997_v2, %v2261_v18 }
 0x823   : > { %v9306_v61 = vsub.f32 %v9270_v23, %v2297_v26 }
 0x824   : > { %v2294_v33 = vsel %vm1195_vm1, %v9313_v16, 0.0 }
 0x825   : > { %v2313_v54 = vmul.f32 %v9306_v61, %v9306_v61 }
 0x827   : > { %v2321_v3 = vsel %vm1195_vm1, %v2313_v54, 0.0 }
 0x828   : > { %v2278_v8 = vpop.xlane.xlu2 %2277  ;;  %2322 = vadd.xlane.f32.xlu1 %v2321_v3 }
 0x829   : > { %v2298_v31 = vmul.f32 %v2278_v8, %v8792_v43 }
 0x82b   : > { %v9316_v56 = vsub.f32 %v9275_v53, %v2298_v31 }
 0x82d   : > { %v2314_v51 = vmul.f32 %v9316_v56, %v9316_v56 }
 0x82f   : > { %v2324_v1 = vsel %vm1195_vm1, %v2314_v51, 0.0 }
 0x830   : > { %2325 = vadd.xlane.f32.xlu2 %v2324_v1  ;;  %2295 = vadd.xlane.f32.xlu1 %v2294_v33  ;;  %v9371_v1 = vld [vmem:[%s8599_s30] ss:$0 sm:$0xff] }
 0x846   : > { %v2281_v29 = vpop.xlane.xlu0 %2280 }
 0x847   : > { %v2299_v52 = vmul.f32 %v2281_v29, %v8792_v43 }
 0x849   : > { %v9325_v14 = vsub.f32 %v9280_v32, %v2299_v52 }
 0x84b   : > { %v2315_v46 = vmul.f32 %v9325_v14, %v9325_v14 }
 0x84d   : > { %v2327_v58 = vsel %vm1195_vm1, %v2315_v46, 0.0 }
 0x84e   : > { %v2284_v60 = vpop.xlane.xlu1 %2283  ;;  %2328 = vadd.xlane.f32.xlu2 %v2327_v58  ;;  %v9376_v58 = vld [vmem:[%s10941_s9] ss:$0 sm:$0xff] }
 0x84f   : > { %v2300_v48 = vmul.f32 %v2284_v60, %v8792_v43 }
 0x851   : > { %v9332_v21 = vsub.f32 %v9285_v34, %v2300_v48 }
 0x853   : > { %v2316_v12 = vmul.f32 %v9332_v21, %v9332_v21 }
 0x855   : > { %v2330_v63 = vsel %vm1195_vm1, %v2316_v12, 0.0 }
 0x856   : > { %v2287_v25 = vpop.xlane.xlu2 %2286  ;;  %2331 = vadd.xlane.f32.xlu0 %v2330_v63 }
 0x857   : > { %v2301_v10 = vmul.f32 %v2287_v25, %v8792_v43 }
 0x859   : > { %v9339_v4 = vsub.f32 %v9290_v41, %v2301_v10 }
 0x85b   : > { %v2317_v13 = vmul.f32 %v9339_v4, %v9339_v4 }
 0x85d   : > { %v2333_v6 = vsel %vm1195_vm1, %v2317_v13, 0.0 }
 0x85e   : > { %v2290_v30 = vpop.xlane.xlu0 %2289  ;;  %2334 = vadd.xlane.f32.xlu1 %v2333_v6 }
 0x85f   : > { %v2302_v20 = vmul.f32 %v2290_v30, %v8792_v43 }
 0x861   : > { %v9346_v27 = vsub.f32 %v9295_v17, %v2302_v20 }
 0x863   : > { %v2318_v47 = vmul.f32 %v9346_v27, %v9346_v27 }
 0x865   : > { %v2336_v15 = vsel %vm1195_vm1, %v2318_v47, 0.0 }
 0x866   : > { %2337 = vadd.xlane.f32.xlu2 %v2336_v15 }
 0x890   : > { %v2293_v2 = vpop.xlane.xlu0 %2292 }
 0x891   : > { %v2303_v19 = vmul.f32 %v2293_v2, %v8792_v43 }
 0x893   : > { %v9353_v5 = vsub.f32 %v9300_v39, %v2303_v19 }
 0x895   : > { %v2319_v24 = vmul.f32 %v9353_v5, %v9353_v5 }
 0x897   : > { %v2339_v35 = vsel %vm1195_vm1, %v2319_v24, 0.0 }
 0x898   : > { %2340 = vadd.xlane.f32.xlu0 %v2339_v35 }
 0x89b   : > { %v2323_v28 = vpop.xlane.xlu1 %2322 }
 0x89c   : > { %v2345_v57 = vmul.f32 %v2323_v28, %v8792_v43 }
 0x89e   : > { %v2353_v55 = vadd.f32 1e-05, %v2345_v57 }
 0x8a0   : > { %8122 = vrsqrt.f32 %v2353_v55  ;;  %vm2367_vm12 = vweird.f32 %v2353_v55 }
 0x8a3   : > { %v2326_v40 = vpop.xlane.xlu2 %2325  ;;  %v2296_v62 = vpop.xlane.xlu1 %2295 }
 0x8a4   : > { %v2346_v7 = vmul.f32 %v2326_v40, %v8792_v43  ;;  %v2304_v45 = vmul.f32 %v2296_v62, %v8792_v43 }
 0x8a6   : > { %v8123_v38 = vpop.eup %8122  ;;  %v2354_v22 = vadd.f32 1e-05, %v2346_v7  ;;  %v9364_v42 = vsub.f32 %v9313_v16, %v2304_v45 }
 0x8a7   : > { %v2362_v59 = vmul.f32 %v8123_v38, %v2353_v55  ;;  %vm2368_vm11 = vweird.f32 %v8123_v38 }
 0x8a8   : > { %8124 = vrsqrt.f32 %v2354_v22  ;;  %v2320_v36 = vmul.f32 %v9364_v42, %v9364_v42  ;;  %vm2369_vm13 = vmor %vm2367_vm12, %vm2368_vm11  ;;  %vm2377_vm15 = vweird.f32 %v2354_v22 }
 0x8a9   : > { %v2363_v0 = vmul.f32 %v8123_v38, %v2362_v59 }
 0x8aa   : > { %v2342_v44 = vsel %vm1195_vm1, %v2320_v36, 0.0 }
 0x8ab   : > { %v2364_v50 = vmul.f32 0.5, %v2363_v0  ;;  %2343 = vadd.xlane.f32.xlu1 %v2342_v44 }
 0x8ad   : > { %v2365_v49 = vsub.f32 1.5, %v2364_v50 }
 0x8ae   : > { %v8125_v26 = vpop.eup %8124 }
 0x8af   : > { %v2366_v9 = vmul.f32 %v8123_v38, %v2365_v49  ;;  %v2372_v54 = vmul.f32 %v8125_v26, %v2354_v22  ;;  %vm2378_vm14 = vweird.f32 %v8125_v26 }
 0x8b0   : > { %vm2379_vm2 = vmor %vm2377_vm15, %vm2378_vm14 }
 0x8b1   : > { %v2373_v18 = vmul.f32 %v8125_v26, %v2372_v54  ;;  %v2370_v3 = vsel %vm2369_vm13, %v8123_v38, %v2366_v9 }
 0x8b2   : > { %v2441_v51 = vmul.f32 %v2370_v3, %v9306_v61 }
 0x8b3   : > { %v2374_v8 = vmul.f32 0.5, %v2373_v18 }
 0x8b4   : > { %v2452_v46 = vmul.f32 %v9371_v1, %v2441_v51 }
 0x8b5   : > { %v2375_v31 = vsub.f32 1.5, %v2374_v8 }
 0x8b6   : > { %v2463_v48 = vadd.f32 %v9376_v58, %v2452_v46 }
 0x8b7   : > { %v2376_v33 = vmul.f32 %v8125_v26, %v2375_v31 }
 0x8b9   : > { %v2380_v29 = vsel %vm2379_vm2, %v8125_v26, %v2376_v33 }
 0x8ba   : > { %v2442_v52 = vmul.f32 %v2380_v29, %v9316_v56 }
 0x8bc   : > { %v2453_v60 = vmul.f32 %v9371_v1, %v2442_v52 }
 0x8be   : > { %v2464_v12 = vadd.f32 %v9376_v58, %v2453_v60 }
 0x8c0   : > { %v2471_v63 = vpack.c.bf16 %v2464_v12, %v2463_v48 }
 0x8c1   : > { %v2329_v61 = vpop.xlane.xlu2 %2328 }
 0x8c2   : > { %v2347_v25 = vmul.f32 %v2329_v61, %v8792_v43  ;;  %6976 = vmatmul.msk.bf16.vlgmr.msrb.gmra.mxu2 %vm1195_vm1, %v2471_v63 }
 0x8c4   : > { %v2355_v10 = vadd.f32 1e-05, %v2347_v25 }
 0x8c6   : > { %8126 = vrsqrt.f32 %v2355_v10  ;;  %vm2387_vm4 = vweird.f32 %v2355_v10 }
 0x8c9   : > { %v2332_v13 = vpop.xlane.xlu0 %2331 }
 0x8ca   : > { %v2348_v56 = vmul.f32 %v2332_v13, %v8792_v43 }
 0x8cc   : > { %v8127_v6 = vpop.eup %8126  ;;  %v2356_v30 = vadd.f32 1e-05, %v2348_v56 }
 0x8cd   : > { %v2382_v20 = vmul.f32 %v8127_v6, %v2355_v10  ;;  %vm2388_vm3 = vweird.f32 %v8127_v6 }
 0x8ce   : > { %8128 = vrsqrt.f32 %v2356_v30  ;;  %vm2389_vm5 = vmor %vm2387_vm4, %vm2388_vm3  ;;  %vm2397_vm7 = vweird.f32 %v2356_v30 }
 0x8cf   : > { %v2383_v47 = vmul.f32 %v8127_v6, %v2382_v20 }
 0x8d1   : > { %v2384_v15 = vmul.f32 0.5, %v2383_v47  ;;  %v2335_v2 = vpop.xlane.xlu1 %2334 }
 0x8d2   : > { %v2349_v19 = vmul.f32 %v2335_v2, %v8792_v43 }
 0x8d3   : > { %v2385_v24 = vsub.f32 1.5, %v2384_v15 }
 0x8d4   : > { %v8129_v35 = vpop.eup %8128  ;;  %v2357_v11 = vadd.f32 1e-05, %v2349_v19 }
 0x8d5   : > { %v2386_v28 = vmul.f32 %v8127_v6, %v2385_v24  ;;  %v2392_v37 = vmul.f32 %v8129_v35, %v2356_v30  ;;  %vm2398_vm6 = vweird.f32 %v8129_v35 }
 0x8d6   : > { %8130 = vrsqrt.f32 %v2357_v11  ;;  %vm2399_vm8 = vmor %vm2397_vm7, %vm2398_vm6  ;;  %vm2407_vm12 = vweird.f32 %v2357_v11 }
 0x8d7   : > { %v2393_v57 = vmul.f32 %v8129_v35, %v2392_v37  ;;  %v2390_v55 = vsel %vm2389_vm5, %v8127_v6, %v2386_v28 }
 0x8d8   : > { %v2443_v59 = vmul.f32 %v2390_v55, %v9325_v14 }
 0x8d9   : > { %v2394_v40 = vmul.f32 0.5, %v2393_v57  ;;  %v2338_v62 = vpop.xlane.xlu2 %2337 }
 0x8da   : > { %v2350_v7 = vmul.f32 %v2338_v62, %v8792_v43  ;;  %v2454_v26 = vmul.f32 %v9371_v1, %v2443_v59 }
 0x8db   : > { %v2395_v45 = vsub.f32 1.5, %v2394_v40 }
 0x8dc   : > { %v8131_v38 = vpop.eup %8130  ;;  %v2358_v22 = vadd.f32 1e-05, %v2350_v7  ;;  %v2465_v8 = vadd.f32 %v9376_v58, %v2454_v26 }
 0x8dd   : > { %v2396_v36 = vmul.f32 %v8129_v35, %v2395_v45  ;;  %v2402_v0 = vmul.f32 %v8131_v38, %v2357_v11  ;;  %vm2408_vm11 = vweird.f32 %v8131_v38 }
 0x8de   : > { %8132 = vrsqrt.f32 %v2358_v22  ;;  %vm2409_vm13 = vmor %vm2407_vm12, %vm2408_vm11  ;;  %vm2417_vm15 = vweird.f32 %v2358_v22 }
 0x8df   : > { %v2400_v44 = vsel %vm2399_vm8, %v8129_v35, %v2396_v36  ;;  %v2403_v50 = vmul.f32 %v8131_v38, %v2402_v0 }
 0x8e0   : > { %v2444_v49 = vmul.f32 %v2400_v44, %v9332_v21 }
 0x8e1   : > { %v2404_v9 = vmul.f32 0.5, %v2403_v50 }
 0x8e2   : > { %v2455_v54 = vmul.f32 %v9371_v1, %v2444_v49 }
 0x8e3   : > { %v2405_v18 = vsub.f32 1.5, %v2404_v9  ;;  %v7615_v9 = vld [vmem:[%s10943_s15 + $0x38] sm:$0xff] }
 0x8e4   : > { %v8133_v3 = vpop.eup %8132  ;;  %v2466_v14 = vadd.f32 %v9376_v58, %v2455_v54  ;;  %2906 = vmatpush.bf16.msra.mxu1 %v7615_v9 }
 0x8e5   : > { %v2406_v31 = vmul.f32 %v8131_v38, %v2405_v18  ;;  %v2412_v51 = vmul.f32 %v8133_v3, %v2358_v22  ;;  %vm2418_vm14 = vweird.f32 %v8133_v3 }
 0x8e6   : > { %v2472_v33 = vpack.c.bf16 %v2466_v14, %v2465_v8  ;;  %vm2419_vm2 = vmor %vm2417_vm15, %vm2418_vm14  ;;  %v7613_v14 = vld [vmem:[%s10943_s15 + $0x28] sm:$0xff] }
 0x8e7   : > { %v2413_v29 = vmul.f32 %v8133_v3, %v2412_v51  ;;  %v2410_v21 = vsel %vm2409_vm13, %v8131_v38, %v2406_v31 }
 0x8e8   : > { %6977 = vmatmul.msk.bf16.gmra.mxu2 %vm1195_vm1, %v2472_v33  ;;  %v2445_v60 = vmul.f32 %v2410_v21, %v9339_v4  ;;  %v7612_v33 = vld [vmem:[%s10943_s15 + $0x20] sm:$0xff] }
 0x8e9   : > { %v2414_v52 = vmul.f32 0.5, %v2413_v29 }
 0x8ea   : > { %v2456_v61 = vmul.f32 %v9371_v1, %v2445_v60  ;;  %v7611_v60 = vld [vmem:[%s10943_s15 + $0x18] sm:$0xff] }
 0x8eb   : > { %v2415_v46 = vsub.f32 1.5, %v2414_v52 }
 0x8ec   : > { %v2467_v10 = vadd.f32 %v9376_v58, %v2456_v61 }
 0x8ed   : > { %v2416_v48 = vmul.f32 %v8133_v3, %v2415_v46 }
 0x8ef   : > { %v2420_v12 = vsel %vm2419_vm2, %v8133_v3, %v2416_v48 }
 0x8f0   : > { %v2446_v63 = vmul.f32 %v2420_v12, %v9346_v27 }
 0x8f2   : > { %v2457_v25 = vmul.f32 %v9371_v1, %v2446_v63 }
 0x8f4   : > { %v2468_v13 = vadd.f32 %v9376_v58, %v2457_v25  ;;  %v7610_v25 = vld [vmem:[%s10943_s15 + $0x10] sm:$0xff] }
 0x8f6   : > { %v2473_v56 = vpack.c.bf16 %v2468_v13, %v2467_v10 }
 0x8f8   : > { %6978 = vmatmul.msk.bf16.gmra.mxu2 %vm1195_vm1, %v2473_v56 }
 0x90b   : > { %v2341_v6 = vpop.xlane.xlu0 %2340 }
 0x90c   : > { %v2351_v4 = vmul.f32 %v2341_v6, %v8792_v43 }
 0x90e   : > { %v2359_v30 = vadd.f32 1e-05, %v2351_v4 }
 0x910   : > { %8134 = vrsqrt.f32 %v2359_v30  ;;  %vm2427_vm4 = vweird.f32 %v2359_v30 }
 0x916   : > { %v8135_v20 = vpop.eup %8134 }
 0x917   : > { %v2422_v47 = vmul.f32 %v8135_v20, %v2359_v30  ;;  %vm2428_vm3 = vweird.f32 %v8135_v20 }
 0x918   : > { %vm2429_vm5 = vmor %vm2427_vm4, %vm2428_vm3 }
 0x919   : > { %v2423_v15 = vmul.f32 %v8135_v20, %v2422_v47 }
 0x91b   : > { %v2424_v24 = vmul.f32 0.5, %v2423_v15 }
 0x91d   : > { %v2425_v35 = vsub.f32 1.5, %v2424_v24 }
 0x91e   : > { %v2344_v27 = vpop.xlane.xlu1 %2343 }
 0x91f   : > { %v2352_v2 = vmul.f32 %v2344_v27, %v8792_v43  ;;  %v2426_v28 = vmul.f32 %v8135_v20, %v2425_v35 }
 0x921   : > { %v2360_v19 = vadd.f32 1e-05, %v2352_v2  ;;  %v2430_v55 = vsel %vm2429_vm5, %v8135_v20, %v2426_v28  ;;  %v7609_v20 = vld [vmem:[%s10943_s15 + $0x8] sm:$0xff] }
 0x922   : > { %v2447_v7 = vmul.f32 %v2430_v55, %v9353_v5  ;;  %v9410_v5 = vld [vmem:[%s10942_s10] ss:$0 sm:$0xff] }
 0x923   : > { %8136 = vrsqrt.f32 %v2360_v19  ;;  %vm2437_vm7 = vweird.f32 %v2360_v19 }
 0x924   : > { %v2458_v59 = vmul.f32 %v9371_v1, %v2447_v7 }
 0x926   : > { %v2469_v0 = vadd.f32 %v9376_v58, %v2458_v59 }
 0x929   : > { %v8137_v11 = vpop.eup %8136 }
 0x92a   : > { %v2432_v37 = vmul.f32 %v8137_v11, %v2360_v19  ;;  %vm2438_vm6 = vweird.f32 %v8137_v11 }
 0x92b   : > { %vm2439_vm8 = vmor %vm2437_vm7, %vm2438_vm6 }
 0x92c   : > { %v2433_v57 = vmul.f32 %v8137_v11, %v2432_v37 }
 0x92e   : > { %v2434_v40 = vmul.f32 0.5, %v2433_v57 }
 0x930   : > { %v2435_v62 = vsub.f32 1.5, %v2434_v40 }
 0x932   : > { %v2436_v45 = vmul.f32 %v8137_v11, %v2435_v62 }
 0x934   : > { %v2440_v38 = vsel %vm2439_vm8, %v8137_v11, %v2436_v45  ;;  %v7608_v11 = vld [vmem:[%s10943_s15] sm:$0xff] }
 0x935   : > { %v2448_v22 = vmul.f32 %v2440_v38, %v9364_v42 }
 0x937   : > { %v2459_v36 = vmul.f32 %v9371_v1, %v2448_v22 }
 0x939   : > { %v2470_v44 = vadd.f32 %v9376_v58, %v2459_v36  ;;  %v7614_v58 = vld [vmem:[%s10943_s15 + $0x30] sm:$0xff] }
 0x93a   : > { %2907 = vmatpush.bf16.msra.mxu1 %v7614_v58 }
 0x93b   : > { %v2474_v50 = vpack.c.bf16 %v2470_v44, %v2469_v0 }
 0x93d   : > { %6979 = vmatmul.msk.bf16.gmra.mxu2 %vm1195_vm1, %v2474_v50 }
 0x93e   : > { %2908 = vmatpush.bf16.msra.mxu1 %v7613_v14 }
 0x942   : > { %2909 = vmatpush.bf16.msra.mxu1 %v7612_v33 }
 0x945   : > { %v2511_v49 = vpop.f32.mrf.mxu2 }
 0x946   : > { %v9413_v26 = vadd.f32 %v9410_v5, %v2511_v49  ;;  %2910 = vmatpush.bf16.msra.mxu1 %v7611_v60 }
 0x948   : > { %v9416_v42 = vmul.f32 0.70710677, %v9413_v26 }
 0x94a   : > { %v2555_v1 = vand.u32 2147483647, %v9416_v42  ;;  %2911 = vmatpush.bf16.msra.mxu1 %v7610_v25  ;;  %vm2539_vm5 = vcmp.ge.f32.partialorder %v9416_v42, 0.0 }
 0x94c   : > { %v2563_v54 = vmul.f32 0.3275911, %v2555_v1  ;;  %v2771_v15 = vsub.f32 0.0, %v2555_v1 }
 0x94d   : > { %v2513_v18 = vpop.f32.mrf.mxu2 }
 0x94e   : > { %v2571_v3 = vadd.f32 1.0, %v2563_v54  ;;  %v9422_v8 = vadd.f32 %v9410_v5, %v2513_v18  ;;  %2912 = vmatpush.bf16.msra.mxu1 %v7609_v20  ;;  %v2779_v37 = vmul.f32 %v2771_v15, %v2555_v1 }
 0x950   : > { %8138 = vrcp.f32 %v2571_v3  ;;  %v9426_v31 = vmul.f32 0.70710677, %v9422_v8  ;;  %v2590_v12 = vand.u32 2147483648, %v2571_v3  ;;  %v2588_v61 = vand.u32 2147483647, %v2571_v3 }
 0x951   : > { %vm2584_vm12 = vweird.f32 %v2571_v3  ;;  %v2787_v22 = vmul.f32 1.442695, %v2779_v37 }
 0x952   : > { %v2556_v51 = vand.u32 2147483647, %v9426_v31  ;;  %v2591_v13 = vor.u32 1.1754944e-38, %v2590_v12  ;;  %vm2589_vm14 = vcmp.eq.f32.partialorder %v2588_v61, 8.507059e+37  ;;  %2913 = vmatpush.bf16.msra.mxu1 %v7608_v11  ;;  %vm2540_vm6 = vcmp.ge.f32.partialorder %v9426_v31, 0.0 }
 0x954   : > { %v2564_v29 = vmul.f32 0.3275911, %v2556_v51  ;;  %v2772_v38 = vsub.f32 0.0, %v2556_v51 }
 0x956   : > { %v8139_v21 = vpop.eup %8138  ;;  %v2572_v46 = vadd.f32 1.0, %v2564_v29  ;;  %v2780_v9 = vmul.f32 %v2772_v38, %v2556_v51 }
 0x957   : > { %v2580_v52 = vmul.f32 %v8139_v21, %v2571_v3  ;;  %vm2585_vm11 = vweird.f32 %v8139_v21 }
 0x958   : > { %8140 = vrcp.f32 %v2572_v46  ;;  %vm2586_vm13 = vmor %vm2584_vm12, %vm2585_vm11  ;;  %v2605_v19 = vand.u32 2147483648, %v2572_v46  ;;  %v2603_v35 = vand.u32 2147483647, %v2572_v46  ;;  %vm2599_vm2 = vweird.f32 %v2572_v46 }
 0x959   : > { %v2581_v48 = vsub.f32 1.0, %v2580_v52  ;;  %8142 = vpow2.f32 %v2787_v22  ;;  %v2789_v33 = vmul.f32 1.442695, %v2780_v9 }
 0x95a   : > { %v2606_v40 = vor.u32 1.1754944e-38, %v2605_v19  ;;  %vm2604_vm4 = vcmp.eq.f32.partialorder %v2603_v35, 8.507059e+37 }
 0x95b   : > { %v2582_v63 = vmul.f32 %v8139_v21, %v2581_v48  ;;  %8144 = vpow2.f32 %v2789_v33 }
 0x95d   : > { %v2583_v10 = vadd.f32 %v8139_v21, %v2582_v63 }
 0x95e   : > { %v8141_v56 = vpop.eup %8140 }
 0x95f   : > { %v2587_v6 = vsel %vm2586_vm13, %v8139_v21, %v2583_v10  ;;  %v2595_v30 = vmul.f32 %v8141_v56, %v2572_v46  ;;  %vm2600_vm15 = vweird.f32 %v8141_v56  ;;  %v8143_v46 = vpop.eup %8142 }
 0x960   : > { %v2592_v4 = vsel %vm2589_vm14, %v2591_v13, %v2587_v6  ;;  %vm2601_vm3 = vmor %vm2599_vm2, %vm2600_vm15 }
 0x961   : > { %v2699_v47 = vmul.f32 1.0614054, %v2592_v4  ;;  %v2596_v27 = vsub.f32 1.0, %v2595_v30  ;;  %v8145_v6 = vpop.eup %8144 }
 0x963   : > { %v2707_v2 = vadd.f32 -1.4531521, %v2699_v47  ;;  %v2597_v24 = vmul.f32 %v8141_v56, %v2596_v27  ;;  %v8525_v47 = vmov -1.0  }
 0x964   : > { %v2547_v15 = vsel %vm2539_vm5, 1.0, %v8525_v47 }
 0x965   : > { %v2715_v28 = vmul.f32 %v2707_v2, %v2592_v4  ;;  %v2598_v57 = vadd.f32 %v8141_v56, %v2597_v24 }
 0x967   : > { %v2723_v55 = vadd.f32 1.4214138, %v2715_v28  ;;  %v2602_v62 = vsel %vm2601_vm3, %v8141_v56, %v2598_v57  ;;  %v2548_v28 = vsel %vm2540_vm6, 1.0, %v8525_v47 }
 0x968   : > { %v2607_v45 = vsel %vm2604_vm4, %v2606_v40, %v2602_v62 }
 0x969   : > { %v2731_v7 = vmul.f32 %v2723_v55, %v2592_v4  ;;  %v2700_v59 = vmul.f32 1.0614054, %v2607_v45 }
 0x96b   : > { %v2739_v36 = vadd.f32 -0.28449672, %v2731_v7  ;;  %v2516_v0 = vpop.f32.mrf.mxu2  ;;  %v2708_v44 = vadd.f32 -1.4531521, %v2700_v59  ;;  %v2828_v7 = vmul.f32 0.5, %v9422_v8  ;;  %v2827_v59 = vmul.f32 0.5, %v9413_v26 }
 0x96c   : > { %v9435_v50 = vadd.f32 %v9410_v5, %v2516_v0 }
 0x96d   : > { %v2747_v49 = vmul.f32 %v2739_v36, %v2592_v4  ;;  %v2716_v1 = vmul.f32 %v2708_v44, %v2607_v45 }
 0x96e   : > { %v9438_v54 = vmul.f32 0.70710677, %v9435_v50 }
 0x96f   : > { %v2755_v58 = vadd.f32 0.2548296, %v2747_v49  ;;  %v2724_v18 = vadd.f32 1.4214138, %v2716_v1 }
 0x970   : > { %v9441_v3 = vand.u32 2147483647, %v9438_v54 }
 0x971   : > { %v2763_v14 = vmul.f32 %v2755_v58, %v2592_v4  ;;  %v2732_v29 = vmul.f32 %v2724_v18, %v2607_v45 }
 0x972   : > { %v2565_v21 = vmul.f32 0.3275911, %v9441_v3  ;;  %v2773_v18 = vsub.f32 0.0, %v9441_v3 }
 0x973   : > { %v2518_v52 = vpop.f32.mrf.mxu2  ;;  %v2740_v60 = vadd.f32 -0.28449672, %v2732_v29  ;;  %v2803_v12 = vmul.f32 %v8143_v46, %v2763_v14 }
 0x974   : > { %v2573_v48 = vadd.f32 1.0, %v2565_v21  ;;  %v9445_v51 = vadd.f32 %v9410_v5, %v2518_v52 }
 0x975   : > { %v2748_v63 = vmul.f32 %v2740_v60, %v2607_v45  ;;  %v2811_v10 = vsub.f32 1.0, %v2803_v12  ;;  %v2781_v60 = vmul.f32 %v2773_v18, %v9441_v3 }
 0x976   : > { %8146 = vrcp.f32 %v2573_v48  ;;  %v9448_v61 = vmul.f32 0.70710677, %v9445_v51  ;;  %v2620_v62 = vand.u32 2147483648, %v2573_v48  ;;  %v2618_v22 = vand.u32 2147483647, %v2573_v48 }
 0x977   : > { %v2756_v25 = vadd.f32 0.2548296, %v2748_v63  ;;  %v2819_v42 = vmul.f32 %v2811_v10, %v2547_v15  ;;  %vm2614_vm8 = vweird.f32 %v2573_v48  ;;  %v2791_v3 = vmul.f32 1.442695, %v2781_v60 }
 0x978   : > { %v9452_v13 = vand.u32 2147483647, %v9448_v61  ;;  %v2621_v14 = vor.u32 1.1754944e-38, %v2620_v62  ;;  %vm2619_vm12 = vcmp.eq.f32.partialorder %v2618_v22, 8.507059e+37 }
 0x979   : > { %v2764_v56 = vmul.f32 %v2756_v25, %v2607_v45  ;;  %v2835_v31 = vadd.f32 1.0, %v2819_v42 }
 0x97a   : > { %v2566_v4 = vmul.f32 0.3275911, %v9452_v13 }
 0x97b   : > { %v2521_v30 = vpop.f32.mrf.mxu2  ;;  %v2804_v27 = vmul.f32 %v8145_v6, %v2764_v56  ;;  %v2843_v58 = vmul.f32 %v2835_v31, %v2827_v59 }
 0x97c   : > { %v8147_v20 = vpop.eup %8146  ;;  %v9458_v2 = vadd.f32 %v9410_v5, %v2521_v30  ;;  %v2574_v24 = vadd.f32 1.0, %v2566_v4 }
 0x97d   : > { %v2610_v19 = vmul.f32 %v8147_v20, %v2573_v48  ;;  %v2812_v35 = vsub.f32 1.0, %v2804_v27  ;;  %vm2615_vm7 = vweird.f32 %v8147_v20 }
 0x97e   : > { %v9461_v11 = vmul.f32 0.70710677, %v9458_v2  ;;  %8148 = vrcp.f32 %v2574_v24  ;;  %vm2616_vm11 = vmor %vm2614_vm8, %vm2615_vm7  ;;  %v2635_v12 = vand.u32 2147483648, %v2574_v24  ;;  %v2633_v25 = vand.u32 2147483647, %v2574_v24 }
 0x97f   : > { %v2611_v37 = vsub.f32 1.0, %v2610_v19  ;;  %v2820_v57 = vmul.f32 %v2812_v35, %v2548_v28  ;;  %vm2629_vm14 = vweird.f32 %v2574_v24  ;;  %v2774_v35 = vsub.f32 0.0, %v9452_v13 }
 0x980   : > { %v9465_v55 = vand.u32 2147483647, %v9461_v11  ;;  %v2636_v27 = vor.u32 1.1754944e-38, %v2635_v12  ;;  %vm2634_vm2 = vcmp.eq.f32.partialorder %v2633_v25, 8.507059e+37 }
 0x981   : > { %v2612_v40 = vmul.f32 %v8147_v20, %v2611_v37  ;;  %v2836_v45 = vadd.f32 1.0, %v2820_v57 }
 0x982   : > { %v2567_v38 = vmul.f32 0.3275911, %v9465_v55 }
 0x983   : > { %v2523_v36 = vpop.f32.mrf.mxu2  ;;  %v2613_v0 = vadd.f32 %v8147_v20, %v2612_v40  ;;  %v2844_v44 = vmul.f32 %v2836_v45, %v2828_v7 }
 0x984   : > { %v2575_v49 = vadd.f32 1.0, %v2567_v38  ;;  %v9471_v9 = vadd.f32 %v9410_v5, %v2523_v36  ;;  %v8149_v1 = vpop.eup %8148  ;;  %v2782_v38 = vmul.f32 %v2774_v35, %v9452_v13 }
 0x985   : > { %v2617_v8 = vsel %vm2616_vm11, %v8147_v20, %v2613_v0  ;;  %v2625_v33 = vmul.f32 %v8149_v1, %v2574_v24  ;;  %v2851_v29 = vpack.c.bf16 %v2844_v44, %v2843_v58  ;;  %vm2630_vm13 = vweird.f32 %v8149_v1 }
 0x986   : > { %8150 = vrcp.f32 %v2575_v49  ;;  %v9475_v26 = vmul.f32 0.70710677, %v9471_v9  ;;  %v2622_v21 = vsel %vm2619_vm12, %v2621_v14, %v2617_v8  ;;  %vm2631_vm15 = vmor %vm2629_vm14, %vm2630_vm13  ;;  %v2650_v40 = vand.u32 2147483648, %v2575_v49 }
 0x987   : > { %v2626_v52 = vsub.f32 1.0, %v2625_v33  ;;  %v2701_v46 = vmul.f32 1.0614054, %v2622_v21  ;;  %2914 = vmatmul.bf16.vlgmr.msra.gmra.mxu1 %v2851_v29  ;;  %v2648_v24 = vand.u32 2147483647, %v2575_v49  ;;  %vm2644_vm4 = vweird.f32 %v2575_v49 }
 0x988   : > { %v9479_v48 = vand.u32 2147483647, %v9475_v26  ;;  %v2651_v0 = vor.u32 1.1754944e-38, %v2650_v40  ;;  %v2793_v33 = vmul.f32 1.442695, %v2782_v38  ;;  %v2775_v29 = vsub.f32 0.0, %v9465_v55 }
 0x989   : > { %v2627_v63 = vmul.f32 %v8149_v1, %v2626_v52  ;;  %v2709_v10 = vadd.f32 -1.4531521, %v2701_v46  ;;  %vm2649_vm6 = vcmp.eq.f32.partialorder %v2648_v24, 8.507059e+37  ;;  %vm2541_vm11 = vcmp.ge.f32.partialorder %v9438_v54, 0.0 }
 0x98a   : > { %v2568_v56 = vmul.f32 0.3275911, %v9479_v48  ;;  %vm2542_vm14 = vcmp.ge.f32.partialorder %v9448_v61, 0.0  ;;  %v2830_v61 = vmul.f32 0.5, %v9445_v51 }
 0x98b   : > { %v2628_v4 = vadd.f32 %v8149_v1, %v2627_v63  ;;  %v2717_v30 = vmul.f32 %v2709_v10, %v2622_v21 }
 0x98c   : > { %v8151_v6 = vpop.eup %8150  ;;  %v2576_v15 = vadd.f32 1.0, %v2568_v56 }
 0x98d   : > { %v2640_v20 = vmul.f32 %v8151_v6, %v2575_v49  ;;  %v2632_v42 = vsel %vm2631_vm15, %v8149_v1, %v2628_v4  ;;  %v2725_v19 = vadd.f32 1.4214138, %v2717_v30  ;;  %vm2645_vm3 = vweird.f32 %v8151_v6 }
 0x98e   : > { %8152 = vrcp.f32 %v2576_v15  ;;  %v2637_v37 = vsel %vm2634_vm2, %v2636_v27, %v2632_v42  ;;  %vm2646_vm5 = vmor %vm2644_vm4, %vm2645_vm3  ;;  %v2663_v12 = vand.u32 2147483647, %v2576_v15  ;;  %v2665_v63 = vand.u32 2147483648, %v2576_v15 }
 0x98f   : > { %v2641_v28 = vsub.f32 1.0, %v2640_v20  ;;  %v2702_v57 = vmul.f32 1.0614054, %v2637_v37  ;;  %v2733_v31 = vmul.f32 %v2725_v19, %v2622_v21  ;;  %8154 = vpow2.f32 %v2791_v3 }
 0x990   : > { %8156 = vpow2.f32 %v2793_v33  ;;  %vm2659_vm8 = vweird.f32 %v2576_v15  ;;  %v2666_v3 = vor.u32 1.1754944e-38, %v2665_v63  ;;  %vm2664_vm13 = vcmp.eq.f32.partialorder %v2663_v12, 8.507059e+37 }
 0x991   : > { %v2642_v62 = vmul.f32 %v8151_v6, %v2641_v28  ;;  %v2710_v7 = vadd.f32 -1.4531521, %v2702_v57  ;;  %v2741_v45 = vadd.f32 -0.28449672, %v2733_v31  ;;  %v2776_v57 = vsub.f32 0.0, %v9479_v48 }
 0x992   : > { %vm2543_vm15 = vcmp.ge.f32.partialorder %v9461_v11, 0.0  ;;  %vm2544_vm2 = vcmp.ge.f32.partialorder %v9475_v26, 0.0  ;;  %v2832_v11 = vmul.f32 0.5, %v9471_v9 }
 0x993   : > { %v2643_v22 = vadd.f32 %v8151_v6, %v2642_v62  ;;  %v2718_v59 = vmul.f32 %v2710_v7, %v2637_v37  ;;  %v2749_v36 = vmul.f32 %v2741_v45, %v2622_v21  ;;  %v2549_v7 = vsel %vm2541_vm11, 1.0, %v8525_v47 }
 0x994   : > { %v8153_v44 = vpop.eup %8152 }
 0x995   : > { %v2647_v1 = vsel %vm2646_vm5, %v8151_v6, %v2643_v22  ;;  %v2655_v58 = vmul.f32 %v8153_v44, %v2576_v15  ;;  %v2726_v18 = vadd.f32 1.4214138, %v2718_v59  ;;  %v2757_v8 = vadd.f32 0.2548296, %v2749_v36  ;;  %v8155_v49 = vpop.eup %8154 }
 0x996   : > { %v2652_v14 = vsel %vm2649_vm6, %v2651_v0, %v2647_v1  ;;  %vm2660_vm7 = vweird.f32 %v8153_v44  ;;  %v2783_v6 = vmul.f32 %v2775_v29, %v9465_v55  ;;  %v8157_v24 = vpop.eup %8156  ;;  %v2784_v22 = vmul.f32 %v2776_v57, %v9479_v48 }
 0x997   : > { %v2703_v52 = vmul.f32 1.0614054, %v2652_v14  ;;  %v2656_v46 = vsub.f32 1.0, %v2655_v58  ;;  %v2734_v60 = vmul.f32 %v2726_v18, %v2637_v37  ;;  %v2765_v13 = vmul.f32 %v2757_v8, %v2622_v21  ;;  %vm2661_vm12 = vmor %vm2659_vm8, %vm2660_vm7 }
 0x998   : > { %v2795_v28 = vmul.f32 1.442695, %v2783_v6  ;;  %v2797_v8 = vmul.f32 1.442695, %v2784_v22  ;;  %v2829_v29 = vmul.f32 0.5, %v9435_v50  ;;  %v2551_v50 = vsel %vm2543_vm15, 1.0, %v8525_v47 }
 0x999   : > { %v2711_v25 = vadd.f32 -1.4531521, %v2703_v52  ;;  %v2742_v10 = vadd.f32 -0.28449672, %v2734_v60  ;;  %v2805_v56 = vmul.f32 %v8155_v49, %v2765_v13  ;;  %v2657_v4 = vmul.f32 %v8153_v44, %v2656_v46 }
 0x99a   : > { %8158 = vpow2.f32 %v2795_v28 }
 0x99b   : > { %v2719_v30 = vmul.f32 %v2711_v25, %v2652_v14  ;;  %v2750_v20 = vmul.f32 %v2742_v10, %v2637_v37  ;;  %v2658_v27 = vadd.f32 %v8153_v44, %v2657_v4  ;;  %v2813_v19 = vsub.f32 1.0, %v2805_v56 }
 0x99c   : > { %8160 = vpow2.f32 %v2797_v8 }
 0x99d   : > { %v2727_v21 = vadd.f32 1.4214138, %v2719_v30  ;;  %v2758_v42 = vadd.f32 0.2548296, %v2750_v20  ;;  %v2662_v35 = vsel %vm2661_vm12, %v8153_v44, %v2658_v27  ;;  %v2821_v45 = vmul.f32 %v2813_v19, %v2549_v7 }
 0x99e   : > { %v2667_v31 = vsel %vm2664_vm13, %v2666_v3, %v2662_v35  ;;  %v2550_v44 = vsel %vm2542_vm14, 1.0, %v8525_v47  ;;  %v2552_v20 = vsel %vm2544_vm2, 1.0, %v8525_v47 }
 0x99f   : > { %v2735_v40 = vmul.f32 %v2727_v21, %v2652_v14  ;;  %v2766_v62 = vmul.f32 %v2758_v42, %v2637_v37  ;;  %v2704_v55 = vmul.f32 1.0614054, %v2667_v31  ;;  %v2837_v58 = vadd.f32 1.0, %v2821_v45 }
 0x9a0   : > { %v8159_v60 = vpop.eup %8158  ;;  %v2831_v21 = vmul.f32 0.5, %v9458_v2 }
 0x9a1   : > { %v2743_v15 = vadd.f32 -0.28449672, %v2735_v40  ;;  %v2806_v54 = vmul.f32 %v8157_v24, %v2766_v62  ;;  %v2712_v38 = vadd.f32 -1.4531521, %v2704_v55  ;;  %v2845_v13 = vmul.f32 %v2837_v58, %v2829_v29 }
 0x9a2   : > { %v8161_v4 = vpop.eup %8160 }
 0x9a3   : > { %v2751_v59 = vmul.f32 %v2743_v15, %v2652_v14  ;;  %v2814_v36 = vsub.f32 1.0, %v2806_v54  ;;  %v2720_v0 = vmul.f32 %v2712_v38, %v2667_v31 }
 0x9a5   : > { %v2759_v1 = vadd.f32 0.2548296, %v2751_v59  ;;  %v2822_v37 = vmul.f32 %v2814_v36, %v2550_v44  ;;  %v2728_v18 = vadd.f32 1.4214138, %v2720_v0 }
 0x9a7   : > { %v2767_v33 = vmul.f32 %v2759_v1, %v2652_v14  ;;  %v2838_v52 = vadd.f32 1.0, %v2822_v37  ;;  %v2736_v46 = vmul.f32 %v2728_v18, %v2667_v31 }
 0x9a9   : > { %v2846_v48 = vmul.f32 %v2838_v52, %v2830_v61  ;;  %v2744_v49 = vadd.f32 -0.28449672, %v2736_v46  ;;  %v2807_v12 = vmul.f32 %v8159_v60, %v2767_v33 }
 0x9ab   : > { %v2852_v63 = vpack.c.bf16 %v2846_v48, %v2845_v13  ;;  %v2752_v25 = vmul.f32 %v2744_v49, %v2667_v31  ;;  %v2815_v56 = vsub.f32 1.0, %v2807_v12 }
 0x9ad   : > { %2919 = vmatmul.bf16.gmra.mxu1 %v2852_v63  ;;  %v2760_v10 = vadd.f32 0.2548296, %v2752_v25  ;;  %v2823_v6 = vmul.f32 %v2815_v56, %v2551_v50 }
 0x9af   : > { %v2768_v14 = vmul.f32 %v2760_v10, %v2667_v31  ;;  %v2839_v3 = vadd.f32 1.0, %v2823_v6 }
 0x9b1   : > { %v2808_v51 = vmul.f32 %v8161_v4, %v2768_v14  ;;  %v2847_v19 = vmul.f32 %v2839_v3, %v2831_v21 }
 0x9b3   : > { %v2816_v30 = vsub.f32 1.0, %v2808_v51 }
 0x9b5   : > { %v2824_v27 = vmul.f32 %v2816_v30, %v2552_v20 }
 0x9b7   : > { %v2840_v42 = vadd.f32 1.0, %v2824_v27 }
 0x9b9   : > { %v2848_v35 = vmul.f32 %v2840_v42, %v2832_v11 }
 0x9bb   : > { %v2853_v28 = vpack.c.bf16 %v2848_v35, %v2847_v19 }
 0x9bd   : > { %2924 = vmatmul.bf16.gmra.mxu1 %v2853_v28 }
 0x9c0   : > { %v2526_v57 = vpop.f32.mrf.mxu2 }
 0x9c1   : > { %v9501_v31 = vadd.f32 %v9410_v5, %v2526_v57 }
 0x9c3   : > { %v9504_v26 = vmul.f32 0.70710677, %v9501_v31 }
 0x9c5   : > { %v2561_v40 = vand.u32 2147483647, %v9504_v26  ;;  %vm2545_vm13 = vcmp.ge.f32.partialorder %v9504_v26, 0.0 }
 0x9c7   : > { %v2569_v62 = vmul.f32 0.3275911, %v2561_v40  ;;  %v2777_v18 = vsub.f32 0.0, %v2561_v40 }
 0x9c8   : > { %v2528_v55 = vpop.f32.mrf.mxu2 }
 0x9c9   : > { %v2577_v24 = vadd.f32 1.0, %v2569_v62  ;;  %v9508_v2 = vadd.f32 %v9410_v5, %v2528_v55  ;;  %v2785_v13 = vmul.f32 %v2777_v18, %v2561_v40 }
 0x9cb   : > { %8162 = vrcp.f32 %v2577_v24  ;;  %v9511_v9 = vmul.f32 0.70710677, %v9508_v2  ;;  %v2680_v59 = vand.u32 2147483648, %v2577_v24  ;;  %v2678_v0 = vand.u32 2147483647, %v2577_v24 }
 0x9cc   : > { %vm2674_vm4 = vweird.f32 %v2577_v24  ;;  %v2799_v10 = vmul.f32 1.442695, %v2785_v13  ;;  %v2834_v26 = vmul.f32 0.5, %v9508_v2 }
 0x9cd   : > { %v2562_v7 = vand.u32 2147483647, %v9511_v9  ;;  %v2681_v1 = vor.u32 1.1754944e-38, %v2680_v59  ;;  %vm2679_vm6 = vcmp.eq.f32.partialorder %v2678_v0, 8.507059e+37  ;;  %vm2546_vm14 = vcmp.ge.f32.partialorder %v9511_v9, 0.0 }
 0x9ce   : > { %v2833_v0 = vmul.f32 0.5, %v9501_v31 }
 0x9cf   : > { %v2570_v15 = vmul.f32 0.3275911, %v2562_v7  ;;  %v2778_v56 = vsub.f32 0.0, %v2562_v7 }
 0x9d1   : > { %v8163_v54 = vpop.eup %8162  ;;  %v2578_v45 = vadd.f32 1.0, %v2570_v15  ;;  %v2786_v30 = vmul.f32 %v2778_v56, %v2562_v7  ;;  %v2553_v7 = vsel %vm2545_vm13, 1.0, %v8525_v47 }
 0x9d2   : > { %v2670_v38 = vmul.f32 %v8163_v54, %v2577_v24  ;;  %vm2675_vm3 = vweird.f32 %v8163_v54 }
 0x9d3   : > { %8164 = vrcp.f32 %v2578_v45  ;;  %vm2676_vm5 = vmor %vm2674_vm4, %vm2675_vm3  ;;  %v2695_v61 = vand.u32 2147483648, %v2578_v45  ;;  %v2693_v46 = vand.u32 2147483647, %v2578_v45  ;;  %vm2689_vm8 = vweird.f32 %v2578_v45 }
 0x9d4   : > { %v2671_v22 = vsub.f32 1.0, %v2670_v38  ;;  %8166 = vpow2.f32 %v2799_v10  ;;  %v2801_v11 = vmul.f32 1.442695, %v2786_v30 }
 0x9d5   : > { %v2696_v12 = vor.u32 1.1754944e-38, %v2695_v61  ;;  %vm2694_vm12 = vcmp.eq.f32.partialorder %v2693_v46, 8.507059e+37 }
 0x9d6   : > { %v2672_v36 = vmul.f32 %v8163_v54, %v2671_v22  ;;  %8168 = vpow2.f32 %v2801_v11  ;;  %v2554_v22 = vsel %vm2546_vm14, 1.0, %v8525_v47 }
 0x9d8   : > { %v2673_v44 = vadd.f32 %v8163_v54, %v2672_v36 }
 0x9d9   : > { %v8165_v5 = vpop.eup %8164 }
 0x9da   : > { %v2685_v37 = vmul.f32 %v8165_v5, %v2578_v45  ;;  %v2677_v58 = vsel %vm2676_vm5, %v8163_v54, %v2673_v44  ;;  %vm2690_vm7 = vweird.f32 %v8165_v5  ;;  %v8167_v35 = vpop.eup %8166 }
 0x9db   : > { %v2682_v8 = vsel %vm2679_vm6, %v2681_v1, %v2677_v58  ;;  %vm2691_vm11 = vmor %vm2689_vm8, %vm2690_vm7  ;;  %v8001_v58 = vld [vmem:[%s10944_s5] ss:$0 sm:$0xff] }
 0x9dc   : > { %v2686_v33 = vsub.f32 1.0, %v2685_v37  ;;  %v2705_v29 = vmul.f32 1.0614054, %v2682_v8  ;;  %v8169_v15 = vpop.eup %8168 }
 0x9de   : > { %v2687_v52 = vmul.f32 %v8165_v5, %v2686_v33  ;;  %v2713_v60 = vadd.f32 -1.4531521, %v2705_v29 }
 0x9e0   : > { %v2688_v48 = vadd.f32 %v8165_v5, %v2687_v52  ;;  %v2721_v49 = vmul.f32 %v2713_v60, %v2682_v8 }
 0x9e2   : > { %v2692_v63 = vsel %vm2691_vm11, %v8165_v5, %v2688_v48  ;;  %v2729_v25 = vadd.f32 1.4214138, %v2721_v49 }
 0x9e3   : > { %v2697_v14 = vsel %vm2694_vm12, %v2696_v12, %v2692_v63 }
 0x9e4   : > { %v2706_v4 = vmul.f32 1.0614054, %v2697_v14  ;;  %v2737_v50 = vmul.f32 %v2729_v25, %v2682_v8 }
 0x9e6   : > { %v2714_v51 = vadd.f32 -1.4531521, %v2706_v4  ;;  %v2745_v6 = vadd.f32 -0.28449672, %v2737_v50 }
 0x9e8   : > { %v2722_v20 = vmul.f32 %v2714_v51, %v2697_v14  ;;  %v2753_v27 = vmul.f32 %v2745_v6, %v2682_v8 }
 0x9ea   : > { %v2730_v3 = vadd.f32 1.4214138, %v2722_v20  ;;  %v2761_v21 = vadd.f32 0.2548296, %v2753_v27 }
 0x9ec   : > { %v2738_v42 = vmul.f32 %v2730_v3, %v2697_v14  ;;  %v2769_v19 = vmul.f32 %v2761_v21, %v2682_v8 }
 0x9ee   : > { %v2746_v28 = vadd.f32 -0.28449672, %v2738_v42  ;;  %v2809_v57 = vmul.f32 %v8167_v35, %v2769_v19 }
 0x9f0   : > { %v2754_v40 = vmul.f32 %v2746_v28, %v2697_v14  ;;  %v2817_v55 = vsub.f32 1.0, %v2809_v57 }
 0x9f2   : > { %v2762_v62 = vadd.f32 0.2548296, %v2754_v40  ;;  %v2825_v45 = vmul.f32 %v2817_v55, %v2553_v7 }
 0x9f4   : > { %v2770_v24 = vmul.f32 %v2762_v62, %v2697_v14  ;;  %v2841_v36 = vadd.f32 1.0, %v2825_v45 }
 0x9f6   : > { %v2810_v54 = vmul.f32 %v8169_v15, %v2770_v24  ;;  %v2849_v5 = vmul.f32 %v2841_v36, %v2833_v0 }
 0x9f8   : > { %v2818_v38 = vsub.f32 1.0, %v2810_v54 }
 0x9fa   : > { %v2826_v59 = vmul.f32 %v2818_v38, %v2554_v22 }
 0x9fc   : > { %v2842_v44 = vadd.f32 1.0, %v2826_v59 }
 0x9fe   : > { %v2850_v1 = vmul.f32 %v2842_v44, %v2834_v26 }
 0xa00   : > { %v2854_v37 = vpack.c.bf16 %v2850_v1, %v2849_v5 }
 0xa02   : > { %2929 = vmatmul.bf16.gmra.mxu1 %v2854_v37 }
 0xa04   : > { %v2915_v18 = vpop.f32.mrf.mxu1 }
 0xa05   : > { %v2916_v8 = vadd.f32 %v8001_v58, %v2915_v18 }
 0xa07   : > { %v9522_v9 = vadd.f32 %v2916_v8, %v9270_v23 }
 0xa09   : > { %v3008_v33 = vsel %vm1195_vm1, %v9522_v9, 0.0 }
 0xa0a   : > { %3009 = vadd.xlane.f32.xlu2 %v3008_v33  ;;  %v7617_v33 = vld [vmem:[%s10933_s3 + $0x18] sm:$0xff] }
 0xa0b   : > { %3243 = vmatpush.bf16.msra.mxu0 %v7617_v33 }
 0xa0c   : > { %v2917_v29 = vpop.f32.mrf.mxu1 }
 0xa0d   : > { %v2918_v61 = vadd.f32 %v8001_v58, %v2917_v29 }
 0xa0f   : > { %v9527_v31 = vadd.f32 %v2918_v61, %v9275_v53 }
 0xa11   : > { %v3011_v2 = vsel %vm1195_vm1, %v9527_v31, 0.0 }
 0xa12   : > { %3012 = vadd.xlane.f32.xlu0 %v3011_v2 }
 0xa2a   : > { %v2920_v52 = vpop.f32.mrf.mxu1 }
 0xa2b   : > { %v2921_v46 = vadd.f32 %v8001_v58, %v2920_v52  ;;  %v7616_v52 = vld [vmem:[%s10933_s3 + $0x10] sm:$0xff]  ;;  %s10945_s3 = smov 112  }
 0xa2c   : > { %3244 = vmatpush.bf16.msra.mxu0 %v7616_v52 }
 0xa2d   : > { %v9532_v60 = vadd.f32 %v2921_v46, %v9280_v32 }
 0xa2f   : > { %v3014_v23 = vsel %vm1195_vm1, %v9532_v60, 0.0 }
 0xa30   : > { %3015 = vadd.xlane.f32.xlu1 %v3014_v23 }
 0xa32   : > { %v2922_v13 = vpop.f32.mrf.mxu1 }
 0xa33   : > { %v2923_v48 = vadd.f32 %v8001_v58, %v2922_v13 }
 0xa35   : > { %v9537_v49 = vadd.f32 %v2923_v48, %v9285_v34 }
 0xa37   : > { %v3017_v53 = vsel %vm1195_vm1, %v9537_v49, 0.0 }
 0xa38   : > { %3018 = vadd.xlane.f32.xlu2 %v3017_v53 }
 0xa3a   : > { %v2925_v12 = vpop.f32.mrf.mxu1 }
 0xa3b   : > { %v2926_v63 = vadd.f32 %v8001_v58, %v2925_v12 }
 0xa3d   : > { %v9542_v25 = vadd.f32 %v2926_v63, %v9290_v41 }
 0xa3f   : > { %v3020_v32 = vsel %vm1195_vm1, %v9542_v25, 0.0 }
 0xa40   : > { %3021 = vadd.xlane.f32.xlu0 %v3020_v32 }
 0xa42   : > { %v2927_v10 = vpop.f32.mrf.mxu1 }
 0xa43   : > { %v2928_v56 = vadd.f32 %v8001_v58, %v2927_v10 }
 0xa45   : > { %v9547_v14 = vadd.f32 %v2928_v56, %v9295_v17 }
 0xa47   : > { %v3023_v34 = vsel %vm1195_vm1, %v9547_v14, 0.0 }
 0xa48   : > { %3024 = vadd.xlane.f32.xlu1 %v3023_v34 }
 0xa7d   : > { %v3010_v4 = vpop.xlane.xlu2 %3009 }
 0xa7e   : > { %v3032_v51 = vmul.f32 %v3010_v4, %v8792_v43 }
 0xa7f   : > { %v2930_v50 = vpop.f32.mrf.mxu1 }
 0xa80   : > { %v2931_v6 = vadd.f32 %v8001_v58, %v2930_v50  ;;  %v9553_v41 = vsub.f32 %v9522_v9, %v3032_v51 }
 0xa82   : > { %v9556_v30 = vadd.f32 %v2931_v6, %v9300_v39  ;;  %v3048_v20 = vmul.f32 %v9553_v41, %v9553_v41 }
 0xa84   : > { %v3026_v17 = vsel %vm1195_vm1, %v9556_v30, 0.0  ;;  %v3056_v27 = vsel %vm1195_vm1, %v3048_v20, 0.0 }
 0xa85   : > { %3027 = vadd.xlane.f32.xlu1 %v3026_v17  ;;  %3057 = vadd.xlane.f32.xlu2 %v3056_v27  ;;  %v3013_v3 = vpop.xlane.xlu0 %3012 }
 0xa86   : > { %v3033_v11 = vmul.f32 %v3013_v3, %v8792_v43 }
 0xa87   : > { %v2932_v21 = vpop.f32.mrf.mxu1 }
 0xa88   : > { %v2933_v42 = vadd.f32 %v8001_v58, %v2932_v21  ;;  %v9565_v19 = vsub.f32 %v9527_v31, %v3033_v11 }
 0xa8a   : > { %v9568_v39 = vadd.f32 %v2933_v42, %v9313_v16  ;;  %v3049_v35 = vmul.f32 %v9565_v19, %v9565_v19 }
 0xa8c   : > { %v3029_v28 = vsel %vm1195_vm1, %v9568_v39, 0.0  ;;  %v3059_v57 = vsel %vm1195_vm1, %v3049_v35, 0.0 }
 0xa8d   : > { %3060 = vadd.xlane.f32.xlu0 %v3059_v57  ;;  %3030 = vadd.xlane.f32.xlu2 %v3029_v28  ;;  %v9622_v28 = vld [vmem:[%s10927_s25 + $0x1] ss:$0 sm:$0xff]  ;;  %s10967_s25 = sld [smem:[#allocation34_spill]] }
 0xaa3   : > { %v3016_v40 = vpop.xlane.xlu1 %3015 }
 0xaa4   : > { %v3034_v62 = vmul.f32 %v3016_v40, %v8792_v43 }
 0xaa6   : > { %v9577_v55 = vsub.f32 %v9532_v60, %v3034_v62 }
 0xaa8   : > { %v3050_v16 = vmul.f32 %v9577_v55, %v9577_v55 }
 0xaaa   : > { %v3062_v24 = vsel %vm1195_vm1, %v3050_v16, 0.0 }
 0xaab   : > { %v3019_v15 = vpop.xlane.xlu2 %3018  ;;  %3063 = vadd.xlane.f32.xlu0 %v3062_v24 }
 0xaac   : > { %v3035_v7 = vmul.f32 %v3019_v15, %v8792_v43  ;;  %v9628_v15 = vld [vmem:[%s10926_s29 + $0x1] ss:$0 sm:$0xff]  ;;  %s10968_s29 = sld [smem:[#allocation36_spill]] }
 0xaae   : > { %v9584_v54 = vsub.f32 %v9537_v49, %v3035_v7 }
 0xab0   : > { %v3051_v45 = vmul.f32 %v9584_v54, %v9584_v54 }
 0xab2   : > { %v3065_v38 = vsel %vm1195_vm1, %v3051_v45, 0.0 }
 0xab3   : > { %v3022_v22 = vpop.xlane.xlu0 %3021  ;;  %3066 = vadd.xlane.f32.xlu1 %v3065_v38 }
 0xab4   : > { %v3036_v59 = vmul.f32 %v3022_v22, %v8792_v43 }
 0xab6   : > { %v9591_v36 = vsub.f32 %v9542_v25, %v3036_v59 }
 0xab8   : > { %v3052_v0 = vmul.f32 %v9591_v36, %v9591_v36 }
 0xaba   : > { %v3068_v26 = vsel %vm1195_vm1, %v3052_v0, 0.0 }
 0xabb   : > { %3069 = vadd.xlane.f32.xlu2 %v3068_v26  ;;  %v3025_v44 = vpop.xlane.xlu1 %3024 }
 0xabc   : > { %v3037_v5 = vmul.f32 %v3025_v44, %v8792_v43 }
 0xabe   : > { %v9598_v1 = vsub.f32 %v9547_v14, %v3037_v5 }
 0xac0   : > { %v3053_v37 = vmul.f32 %v9598_v1, %v9598_v1 }
 0xac2   : > { %v3071_v58 = vsel %vm1195_vm1, %v3053_v37, 0.0 }
 0xac3   : > { %3072 = vadd.xlane.f32.xlu0 %v3071_v58 }
 0xaf8   : > { %v3028_v18 = vpop.xlane.xlu1 %3027  ;;  %v3058_v29 = vpop.xlane.xlu2 %3057 }
 0xaf9   : > { %v3038_v8 = vmul.f32 %v3028_v18, %v8792_v43  ;;  %v3080_v61 = vmul.f32 %v3058_v29, %v8792_v43 }
 0xafb   : > { %v9607_v2 = vsub.f32 %v9556_v30, %v3038_v8  ;;  %v3088_v46 = vadd.f32 1e-05, %v3080_v61 }
 0xafd   : > { %v3054_v23 = vmul.f32 %v9607_v2, %v9607_v2  ;;  %8170 = vrsqrt.f32 %v3088_v46  ;;  %vm3102_vm2 = vweird.f32 %v3088_v46 }
 0xaff   : > { %v3074_v13 = vsel %vm1195_vm1, %v3054_v23, 0.0 }
 0xb00   : > { %3075 = vadd.xlane.f32.xlu1 %v3074_v13  ;;  %v3061_v48 = vpop.xlane.xlu0 %3060  ;;  %v3031_v53 = vpop.xlane.xlu2 %3030 }
 0xb01   : > { %v3081_v12 = vmul.f32 %v3061_v48, %v8792_v43  ;;  %v3039_v63 = vmul.f32 %v3031_v53, %v8792_v43 }
 0xb03   : > { %v8171_v32 = vpop.eup %8170  ;;  %v3089_v10 = vadd.f32 1e-05, %v3081_v12  ;;  %v9616_v56 = vsub.f32 %v9568_v39, %v3039_v63 }
 0xb04   : > { %v3097_v34 = vmul.f32 %v8171_v32, %v3088_v46  ;;  %vm3103_vm15 = vweird.f32 %v8171_v32 }
 0xb05   : > { %8172 = vrsqrt.f32 %v3089_v10  ;;  %v3055_v4 = vmul.f32 %v9616_v56, %v9616_v56  ;;  %vm3104_vm3 = vmor %vm3102_vm2, %vm3103_vm15  ;;  %vm3112_vm5 = vweird.f32 %v3089_v10 }
 0xb06   : > { %v3098_v50 = vmul.f32 %v8171_v32, %v3097_v34 }
 0xb07   : > { %v3077_v51 = vsel %vm1195_vm1, %v3055_v4, 0.0 }
 0xb08   : > { %v3099_v6 = vmul.f32 0.5, %v3098_v50  ;;  %3078 = vadd.xlane.f32.xlu2 %v3077_v51 }
 0xb0a   : > { %v3100_v20 = vsub.f32 1.5, %v3099_v6 }
 0xb0b   : > { %v8173_v17 = vpop.eup %8172 }
 0xb0c   : > { %v3101_v27 = vmul.f32 %v8171_v32, %v3100_v20  ;;  %v3107_v3 = vmul.f32 %v8173_v17, %v3089_v10  ;;  %vm3113_vm4 = vweird.f32 %v8173_v17 }
 0xb0d   : > { %vm3114_vm6 = vmor %vm3112_vm5, %vm3113_vm4 }
 0xb0e   : > { %v3108_v21 = vmul.f32 %v8173_v17, %v3107_v3  ;;  %v3105_v11 = vsel %vm3104_vm3, %v8171_v32, %v3101_v27 }
 0xb0f   : > { %v3176_v57 = vmul.f32 %v3105_v11, %v9553_v41 }
 0xb10   : > { %v3109_v42 = vmul.f32 0.5, %v3108_v21 }
 0xb11   : > { %v3187_v16 = vmul.f32 %v9622_v28, %v3176_v57 }
 0xb12   : > { %v3110_v35 = vsub.f32 1.5, %v3109_v42 }
 0xb13   : > { %v3198_v45 = vadd.f32 %v9628_v15, %v3187_v16 }
 0xb14   : > { %v3111_v40 = vmul.f32 %v8173_v17, %v3110_v35 }
 0xb16   : > { %v3115_v62 = vsel %vm3114_vm6, %v8173_v17, %v3111_v40 }
 0xb17   : > { %v3177_v24 = vmul.f32 %v3115_v62, %v9565_v19 }
 0xb19   : > { %v3188_v7 = vmul.f32 %v9622_v28, %v3177_v24 }
 0xb1b   : > { %v3199_v38 = vadd.f32 %v9628_v15, %v3188_v7 }
 0xb1d   : > { %v3206_v59 = vpack.c.bf16 %v3199_v38, %v3198_v45 }
 0xb1e   : > { %v3064_v22 = vpop.xlane.xlu0 %3063 }
 0xb1f   : > { %v3082_v41 = vmul.f32 %v3064_v22, %v8792_v43  ;;  %7072 = vmatmul.msk.bf16.vlgmr.msra.gmra.mxu0 %vm1195_vm1, %v3206_v59 }
 0xb21   : > { %v3090_v0 = vadd.f32 1e-05, %v3082_v41 }
 0xb23   : > { %8174 = vrsqrt.f32 %v3090_v0  ;;  %vm3122_vm8 = vweird.f32 %v3090_v0 }
 0xb26   : > { %v3067_v26 = vpop.xlane.xlu1 %3066 }
 0xb27   : > { %v3083_v44 = vmul.f32 %v3067_v26, %v8792_v43 }
 0xb29   : > { %v8175_v19 = vpop.eup %8174  ;;  %v3091_v5 = vadd.f32 1e-05, %v3083_v44 }
 0xb2a   : > { %v3117_v37 = vmul.f32 %v8175_v19, %v3090_v0  ;;  %vm3123_vm7 = vweird.f32 %v8175_v19 }
 0xb2b   : > { %8176 = vrsqrt.f32 %v3091_v5  ;;  %vm3124_vm11 = vmor %vm3122_vm8, %vm3123_vm7  ;;  %vm3132_vm13 = vweird.f32 %v3091_v5 }
 0xb2c   : > { %v3118_v58 = vmul.f32 %v8175_v19, %v3117_v37 }
 0xb2e   : > { %v3119_v18 = vmul.f32 0.5, %v3118_v58  ;;  %v3070_v8 = vpop.xlane.xlu2 %3069 }
 0xb2f   : > { %v3084_v33 = vmul.f32 %v3070_v8, %v8792_v43 }
 0xb30   : > { %v3120_v29 = vsub.f32 1.5, %v3119_v18 }
 0xb31   : > { %v8177_v61 = vpop.eup %8176  ;;  %v3092_v52 = vadd.f32 1e-05, %v3084_v33 }
 0xb32   : > { %v3121_v46 = vmul.f32 %v8175_v19, %v3120_v29  ;;  %v3127_v23 = vmul.f32 %v8177_v61, %v3091_v5  ;;  %vm3133_vm12 = vweird.f32 %v8177_v61 }
 0xb33   : > { %8178 = vrsqrt.f32 %v3092_v52  ;;  %vm3134_vm14 = vmor %vm3132_vm13, %vm3133_vm12  ;;  %vm3142_vm2 = vweird.f32 %v3092_v52 }
 0xb34   : > { %v3128_v13 = vmul.f32 %v8177_v61, %v3127_v23  ;;  %v3125_v48 = vsel %vm3124_vm11, %v8175_v19, %v3121_v46 }
 0xb35   : > { %v3178_v4 = vmul.f32 %v3125_v48, %v9577_v55 }
 0xb36   : > { %v3129_v53 = vmul.f32 0.5, %v3128_v13  ;;  %v3073_v12 = vpop.xlane.xlu0 %3072 }
 0xb37   : > { %v3085_v63 = vmul.f32 %v3073_v12, %v8792_v43  ;;  %v3189_v27 = vmul.f32 %v9622_v28, %v3178_v4 }
 0xb38   : > { %v3130_v32 = vsub.f32 1.5, %v3129_v53 }
 0xb39   : > { %v8179_v10 = vpop.eup %8178  ;;  %v3093_v34 = vadd.f32 1e-05, %v3085_v63  ;;  %v3200_v35 = vadd.f32 %v9628_v15, %v3189_v27 }
 0xb3a   : > { %v3131_v50 = vmul.f32 %v8177_v61, %v3130_v32  ;;  %v3137_v51 = vmul.f32 %v8179_v10, %v3092_v52  ;;  %vm3143_vm15 = vweird.f32 %v8179_v10 }
 0xb3b   : > { %8180 = vrsqrt.f32 %v3093_v34  ;;  %vm3144_vm3 = vmor %vm3142_vm2, %vm3143_vm15  ;;  %vm3152_vm5 = vweird.f32 %v3093_v34 }
 0xb3c   : > { %v3135_v6 = vsel %vm3134_vm14, %v8177_v61, %v3131_v50  ;;  %v3138_v20 = vmul.f32 %v8179_v10, %v3137_v51 }
 0xb3d   : > { %v3179_v17 = vmul.f32 %v3135_v6, %v9584_v54 }
 0xb3e   : > { %v3139_v3 = vmul.f32 0.5, %v3138_v20 }
 0xb3f   : > { %v3190_v21 = vmul.f32 %v9622_v28, %v3179_v17 }
 0xb40   : > { %v3140_v11 = vsub.f32 1.5, %v3139_v3 }
 0xb41   : > { %v8181_v42 = vpop.eup %8180  ;;  %v3201_v55 = vadd.f32 %v9628_v15, %v3190_v21  ;;  %v8004_v21 = vld [vmem:[%s10932_s8 + $0x1] ss:$0 sm:$0xff]  ;;  %s10946_s8 = smov 96  }
 0xb42   : > { %v3141_v57 = vmul.f32 %v8179_v10, %v3140_v11  ;;  %v3147_v40 = vmul.f32 %v8181_v42, %v3093_v34  ;;  %vm3153_vm4 = vweird.f32 %v8181_v42 }
 0xb43   : > { %v3207_v62 = vpack.c.bf16 %v3201_v55, %v3200_v35  ;;  %vm3154_vm6 = vmor %vm3152_vm5, %vm3153_vm4 }
 0xb44   : > { %v3148_v16 = vmul.f32 %v8181_v42, %v3147_v40  ;;  %v3145_v54 = vsel %vm3144_vm3, %v8179_v10, %v3141_v57 }
 0xb45   : > { %7073 = vmatmul.msk.bf16.gmra.mxu0 %vm1195_vm1, %v3207_v62  ;;  %v3180_v45 = vmul.f32 %v3145_v54, %v9591_v36 }
 0xb46   : > { %v3149_v24 = vmul.f32 0.5, %v3148_v16 }
 0xb47   : > { %v3191_v41 = vmul.f32 %v9622_v28, %v3180_v45 }
 0xb48   : > { %v3150_v7 = vsub.f32 1.5, %v3149_v24 }
 0xb49   : > { %v3202_v26 = vadd.f32 %v9628_v15, %v3191_v41 }
 0xb4a   : > { %v3151_v38 = vmul.f32 %v8181_v42, %v3150_v7 }
 0xb4c   : > { %v3155_v22 = vsel %vm3154_vm6, %v8181_v42, %v3151_v38 }
 0xb4d   : > { %v3181_v59 = vmul.f32 %v3155_v22, %v9598_v1 }
 0xb4f   : > { %v3192_v0 = vmul.f32 %v9622_v28, %v3181_v59 }
 0xb51   : > { %v3203_v44 = vadd.f32 %v9628_v15, %v3192_v0 }
 0xb53   : > { %v3208_v19 = vpack.c.bf16 %v3203_v44, %v3202_v26 }
 0xb55   : > { %7074 = vmatmul.msk.bf16.gmra.mxu0 %vm1195_vm1, %v3208_v19 }
 0xb73   : > { %v3076_v5 = vpop.xlane.xlu1 %3075 }
 0xb74   : > { %v3086_v36 = vmul.f32 %v3076_v5, %v8792_v43 }
 0xb76   : > { %v3094_v37 = vadd.f32 1e-05, %v3086_v36 }
 0xb78   : > { %8182 = vrsqrt.f32 %v3094_v37  ;;  %vm3162_vm8 = vweird.f32 %v3094_v37 }
 0xb7b   : > { %v3079_v58 = vpop.xlane.xlu2 %3078 }
 0xb7c   : > { %v3087_v1 = vmul.f32 %v3079_v58, %v8792_v43 }
 0xb7e   : > { %v8183_v18 = vpop.eup %8182  ;;  %v3095_v33 = vadd.f32 1e-05, %v3087_v1 }
 0xb7f   : > { %v3157_v8 = vmul.f32 %v8183_v18, %v3094_v37  ;;  %vm3163_vm7 = vweird.f32 %v8183_v18 }
 0xb80   : > { %8184 = vrsqrt.f32 %v3095_v33  ;;  %vm3164_vm11 = vmor %vm3162_vm8, %vm3163_vm7  ;;  %vm3172_vm13 = vweird.f32 %v3095_v33 }
 0xb81   : > { %v3158_v29 = vmul.f32 %v8183_v18, %v3157_v8 }
 0xb83   : > { %v3159_v61 = vmul.f32 0.5, %v3158_v29 }
 0xb85   : > { %v3160_v52 = vsub.f32 1.5, %v3159_v61 }
 0xb86   : > { %v8185_v46 = vpop.eup %8184 }
 0xb87   : > { %v3161_v23 = vmul.f32 %v8183_v18, %v3160_v52  ;;  %v3167_v13 = vmul.f32 %v8185_v46, %v3095_v33  ;;  %vm3173_vm12 = vweird.f32 %v8185_v46 }
 0xb88   : > { %vm3174_vm14 = vmor %vm3172_vm13, %vm3173_vm12 }
 0xb89   : > { %v3168_v48 = vmul.f32 %v8185_v46, %v3167_v13  ;;  %v3165_v53 = vsel %vm3164_vm11, %v8183_v18, %v3161_v23 }
 0xb8a   : > { %v3182_v32 = vmul.f32 %v3165_v53, %v9607_v2 }
 0xb8b   : > { %v3169_v12 = vmul.f32 0.5, %v3168_v48 }
 0xb8c   : > { %v3193_v50 = vmul.f32 %v9622_v28, %v3182_v32 }
 0xb8d   : > { %v3170_v63 = vsub.f32 1.5, %v3169_v12 }
 0xb8e   : > { %v3204_v6 = vadd.f32 %v9628_v15, %v3193_v50 }
 0xb8f   : > { %v3171_v10 = vmul.f32 %v8185_v46, %v3170_v63 }
 0xb91   : > { %v3175_v34 = vsel %vm3174_vm14, %v8185_v46, %v3171_v10  ;;  %v7822_v10 = vld [vmem:[%s10930_s14 + $0x60] sm:$0xff]  }
 0xb92   : > { %v3183_v4 = vmul.f32 %v3175_v34, %v9616_v56  ;;  %v7765_v34 = vunpack.c.l.bf16 %v7822_v10 }
 0xb94   : > { %v3194_v51 = vmul.f32 %v9622_v28, %v3183_v4 }
 0xb96   : > { %v3205_v20 = vadd.f32 %v9628_v15, %v3194_v51 }
 0xb98   : > { %v3209_v17 = vpack.c.bf16 %v3205_v20, %v3204_v6  ;;  %v7766_v6 = vunpack.c.h.bf16 %v7822_v10 }
 0xb9a   : > { %7075 = vmatmul.msk.bf16.gmra.mxu0 %vm1195_vm1, %v3209_v17 }
 0xb9c   : > { %v3246_v27 = vpop.f32.mrf.mxu0 }
 0xb9d   : > { %v3247_v57 = vadd.f32 %v8004_v21, %v3246_v27 }
 0xba4   : > { %v3248_v3 = vpop.f32.mrf.mxu0 }
 0xba5   : > { %v3249_v56 = vadd.f32 %v8004_v21, %v3248_v3 }
 0xba7   : > { %v9666_v40 = vpack.c.bf16 %v3249_v56, %v3247_v57 }
 0xbc2   : > { %v3251_v2 = vpop.f32.mrf.mxu0 }
 0xbc3   : > { %v3252_v42 = vadd.f32 %v8004_v21, %v3251_v2  ;;  %v7818_v2 = vld [vmem:[%s10930_s14 + $0x40] sm:$0xff]  }
 0xbca   : > { %v3253_v11 = vpop.f32.mrf.mxu0 }
 0xbcb   : > { %v3254_v35 = vadd.f32 %v8004_v21, %v3253_v11 }
 0xbcd   : > { %v9662_v55 = vpack.c.bf16 %v3254_v35, %v3252_v42  ;;  %v7823_v35 = vld [vmem:[%s10930_s14 + $0x68] sm:$0xff]  }
 0xbcf   : > { %3506 = vrot.lane.b32.xlu2 %v9662_v55, %s10873_s16 }
 0xbd2   : > { %v3256_v28 = vpop.f32.mrf.mxu0 }
 0xbd3   : > { %v3257_v62 = vadd.f32 %v8004_v21, %v3256_v28  ;;  %v7770_v28 = vunpack.c.h.bf16 %v7823_v35 }
 0xbd7   : > { %3496 = vrot.lane.b32.xlu2 %v9666_v40, %s10945_s3 }
 0xbda   : > { %v3258_v15 = vpop.f32.mrf.mxu0 }
 0xbdb   : > { %v3259_v16 = vadd.f32 %v8004_v21, %v3258_v15  ;;  %v7750_v15 = vunpack.c.h.bf16 %v7818_v2 }
 0xbdd   : > { %v9670_v54 = vpack.c.bf16 %v3259_v16, %v3257_v62 }
 0xbdf   : > { %3508 = vrot.lane.b32.xlu1 %v9670_v54, %s10873_s16  ;;  %3498 = vrot.lane.b32.xlu2 %v9662_v55, %s10945_s3 }
 0xbe7   : > { %3286 = vrot.lane.b32.xlu1 %v9670_v54, %s10946_s8 }
 0xbef   : > { %3282 = vrot.lane.b32.xlu1 %v9666_v40, %s10946_s8 }
 0xbf7   : > { %3657 = vrot.lane.b32.xlu1 %v9666_v40, %s10947_s13 }
 0xc17   : > { %v3261_v24 = vpop.f32.mrf.mxu0 }
 0xc18   : > { %v3262_v45 = vadd.f32 %v8004_v21, %v3261_v24 }
 0xc1f   : > { %v3263_v7 = vpop.f32.mrf.mxu0 }
 0xc20   : > { %v3264_v38 = vadd.f32 %v8004_v21, %v3263_v7  ;;  %v7749_v21 = vunpack.c.l.bf16 %v7818_v2 }
 0xc22   : > { %v3269_v22 = vpack.c.bf16 %v3264_v38, %v3262_v45  ;;  %v7769_v45 = vunpack.c.l.bf16 %v7823_v35  ;;  %v7821_v35 = vld [vmem:[%s10930_s14 + $0x58] sm:$0xff]  }
 0xc24   : > { %3663 = vrot.lane.b32.xlu1 %v3269_v22, %s10947_s13  ;;  %3502 = vrot.lane.b32.xlu2 %v3269_v22, %s10945_s3 }
 0xc25   : > { %3510 = vrot.lane.b32.xlu0 %v3269_v22, %s10873_s16 }
 0xc29   : > { %v3507_v41 = vpop.permute.xlu2 %3506 }
 0xc2a   : > { %v3528_v46 = vsel %vm1735_vm9, %v3507_v41, 0  ;;  %v7819_v41 = vld [vmem:[%s10930_s14 + $0x48] sm:$0xff]  }
 0xc2c   : > { %3441 = vrot.lane.b32.xlu1 %v3269_v22, %s10948_s17  ;;  %3661 = vrot.lane.b32.xlu2 %v9670_v54, %s10947_s13 }
 0xc2d   : > { %3504 = vrot.lane.b32.xlu0 %v9666_v40, %s10873_s16  ;;  %s10949_s16 = smov 16  }
 0xc31   : > { %v3497_v26 = vpop.permute.xlu2 %3496 }
 0xc35   : > { %3288 = vrot.lane.b32.xlu0 %v3269_v22, %s10946_s8 }
 0xc39   : > { %v3499_v19 = vpop.permute.xlu2 %3498 }
 0xc3d   : > { %3284 = vrot.lane.b32.xlu0 %v9662_v55, %s10946_s8 }
 0xc45   : > { %3500 = vrot.lane.b32.xlu0 %v9670_v54, %s10945_s3 }
 0xc4d   : > { %3659 = vrot.lane.b32.xlu0 %v9662_v55, %s10947_s13 }
 0xc51   : > { %v3509_v59 = vpop.permute.xlu1 %3508 }
 0xc52   : > { %v3531_v29 = vsel %vm1735_vm9, %v3509_v59, 0 }
 0xc59   : > { %v3287_v0 = vpop.permute.xlu1 %3286 }
 0xc5a   : > { %v3309_v13 = vsel %vm1735_vm9, %v3287_v0, 0 }
 0xc61   : > { %v3283_v44 = vpop.permute.xlu1 %3282 }
 0xc62   : > { %v3303_v32 = vsel %vm1735_vm9, %v3283_v44, 0  ;;  %v7753_v44 = vunpack.c.l.bf16 %v7819_v41 }
 0xc69   : > { %v3658_v5 = vpop.permute.xlu1 %3657 }
 0xc7e   : > { %v3503_v36 = vpop.permute.xlu2 %3502 }
 0xc86   : > { %v3662_v1 = vpop.permute.xlu2 %3661 }
 0xc96   : > { %v3664_v37 = vpop.permute.xlu1 %3663 }
 0xc97   : > { %v3511_v58 = vpop.permute.xlu0 %3510  ;;  %3685 = vmatpush.bf16.msrb.mxu0 %v3664_v37  ;;  %v7824_v37 = vld [vmem:[%s10930_s14 + $0x70] sm:$0xff]  }
 0xc98   : > { %v3534_v18 = vsel %vm1735_vm9, %v3511_v58, 0 }
 0xc99   : > { %3540 = vmatpush.bf16.xpose.msrb.mxu1 %v3534_v18 }
 0xc9b   : > { %3686 = vmatpush.bf16.msrb.mxu0 %v3662_v1  ;;  %v7820_v1 = vld [vmem:[%s10930_s14 + $0x50] sm:$0xff]  }
 0xc9e   : > { %v3442_v8 = vpop.permute.xlu1 %3441 }
 0xc9f   : > { %v3505_v33 = vpop.permute.xlu0 %3504  ;;  %3463 = vmatpush.bf16.msra.mxu2 %v3442_v8  ;;  %v7773_v8 = vunpack.c.l.bf16 %v7824_v37 }
 0xca0   : > { %v3525_v48 = vsel %vm1735_vm9, %v3505_v33, 0  ;;  %v7774_v33 = vunpack.c.h.bf16 %v7824_v37 }
 0xca1   : > { %3541 = vmatpush.bf16.xpose.msrb.mxu1 %v3531_v29 }
 0xca7   : > { %v3289_v61 = vpop.permute.xlu0 %3288 }
 0xca8   : > { %v3312_v52 = vsel %vm1735_vm9, %v3289_v61, 0 }
 0xca9   : > { %3318 = vmatpush.bf16.xpose.msra.mxu3 %v3312_v52  ;;  %3542 = vmatpush.bf16.xpose.msrb.mxu1 %v3528_v46  ;;  %v7757_v46 = vunpack.c.l.bf16 %v7820_v1 }
 0xcaf   : > { %v3285_v23 = vpop.permute.xlu0 %3284 }
 0xcb0   : > { %v3306_v12 = vsel %vm1735_vm9, %v3285_v23, 0 }
 0xcb1   : > { %3319 = vmatpush.bf16.xpose.msra.mxu3 %v3309_v13  ;;  %3543 = vmatpush.bf16.xpose.msrb.mxu1 %v3525_v48 }
 0xcb7   : > { %v3501_v53 = vpop.permute.xlu0 %3500 }
 0xcb8   : > { %7084 = vmatmul.msk.bf16.vlgmr.msrb.gmra.mxu1 %vm1735_vm9, %v3497_v26 }
 0xcb9   : > { %3320 = vmatpush.bf16.xpose.msra.mxu3 %v3306_v12  ;;  %v7825_v12 = vld [vmem:[%s10930_s14 + $0x78] sm:$0xff]   ;;  %s10961_s14 = smov 80  }
 0xcbf   : > { %v3660_v63 = vpop.permute.xlu0 %3659 }
 0xcc0   : > { %3687 = vmatpush.bf16.msrb.mxu0 %v3660_v63 }
 0xcc1   : > { %3321 = vmatpush.bf16.xpose.msra.mxu3 %v3303_v32 }
 0xcc4   : > { %3688 = vmatpush.bf16.msrb.mxu0 %v3658_v5  ;;  %v7754_v5 = vunpack.c.h.bf16 %v7819_v41 }
 0xcc8   : > { %7076 = vmatmul.msk.bf16.vlgmr.msra.gmra.mxu3 %vm1735_vm9, %v9666_v40  ;;  %7085 = vmatmul.msk.bf16.gmra.mxu1 %vm1735_vm9, %v3499_v19 }
 0xcd8   : > { %7077 = vmatmul.msk.bf16.gmra.mxu3 %vm1735_vm9, %v9662_v55  ;;  %7086 = vmatmul.msk.bf16.gmra.mxu1 %vm1735_vm9, %v3501_v53 }
 0xce8   : > { %7078 = vmatmul.msk.bf16.gmra.mxu3 %vm1735_vm9, %v9670_v54  ;;  %7087 = vmatmul.msk.bf16.gmra.mxu1 %vm1735_vm9, %v3503_v36 }
 0xcf8   : > { %7079 = vmatmul.msk.bf16.gmra.mxu3 %vm1735_vm9, %v3269_v22 }
 0xd35   : > { %v3545_v4 = vpop.f32.mrf.mxu1 }
 0xd36   : > { %v9717_v50 = vadd.f32 %v7765_v34, %v3545_v4  ;;  %v7778_v34 = vunpack.c.h.bf16 %v7825_v12 }
 0xd38   : > { %v3565_v51 = vsel %vm1789_vm10, %v9717_v50, -inf }
 0xd39   : > { %3566 = vmax.xlane.f32.xlu1 %v3565_v51  ;;  %v7758_v51 = vunpack.c.h.bf16 %v7820_v1 }
 0xd3d   : > { %v3547_v20 = vpop.f32.mrf.mxu1 }
 0xd3e   : > { %v9721_v17 = vadd.f32 %v7766_v6, %v3547_v20 }
 0xd40   : > { %v3568_v27 = vsel %vm1789_vm10, %v9721_v17, -inf }
 0xd41   : > { %3569 = vmax.xlane.f32.xlu0 %v3568_v27 }
 0xd45   : > { %v3550_v3 = vpop.f32.mrf.mxu1 }
 0xd46   : > { %v9739_v59 = vadd.f32 %v7769_v45, %v3550_v3  ;;  %v7777_v3 = vunpack.c.l.bf16 %v7825_v12 }
 0xd48   : > { %v3571_v19 = vsel %vm1789_vm10, %v9739_v59, -inf }
 0xd4b   : > { %v3323_v11 = vpop.f32.mrf.mxu3 }
 0xd4c   : > { %v9726_v42 = vadd.f32 %v7749_v21, %v3323_v11 }
 0xd4d   : > { %v3552_v56 = vpop.f32.mrf.mxu1 }
 0xd4e   : > { %v3343_v57 = vsel %vm1789_vm10, %v9726_v42, -inf  ;;  %v9731_v62 = vadd.f32 %v7770_v28, %v3552_v56  ;;  %v7761_v28 = vunpack.c.l.bf16 %v7821_v35 }
 0xd4f   : > { %3344 = vmax.xlane.f32.xlu1 %v3343_v57 }
 0xd50   : > { %v3574_v22 = vsel %vm1789_vm10, %v9731_v62, -inf }
 0xd53   : > { %v3325_v16 = vpop.f32.mrf.mxu3 }
 0xd54   : > { %v9733_v24 = vadd.f32 %v7750_v15, %v3325_v16  ;;  %v7762_v15 = vunpack.c.h.bf16 %v7821_v35 }
 0xd55   : > { %v3555_v7 = vpop.f32.mrf.mxu1 }
 0xd56   : > { %v3346_v38 = vsel %vm1789_vm10, %v9733_v24, -inf  ;;  %v9754_v23 = vadd.f32 %v7773_v8, %v3555_v7 }
 0xd57   : > { %3347 = vmax.xlane.f32.xlu2 %v3346_v38  ;;  %3575 = vmax.xlane.f32.xlu1 %v3574_v22 }
 0xd58   : > { %v3577_v32 = vsel %vm1789_vm10, %v9754_v23, -inf }
 0xd5b   : > { %v3328_v0 = vpop.f32.mrf.mxu3 }
 0xd5c   : > { %v9744_v36 = vadd.f32 %v7753_v44, %v3328_v0 }
 0xd5d   : > { %v3557_v26 = vpop.f32.mrf.mxu1 }
 0xd5e   : > { %v3349_v52 = vsel %vm1789_vm10, %v9744_v36, -inf  ;;  %v9756_v13 = vadd.f32 %v7774_v33, %v3557_v26 }
 0xd5f   : > { %3572 = vmax.xlane.f32.xlu2 %v3571_v19 }
 0xd60   : > { %v3580_v63 = vsel %vm1789_vm10, %v9756_v13, -inf }
 0xd63   : > { %v3330_v58 = vpop.f32.mrf.mxu3 }
 0xd64   : > { %v9747_v18 = vadd.f32 %v7754_v5, %v3330_v58 }
 0xd65   : > { %v3560_v29 = vpop.f32.mrf.mxu1 }
 0xd66   : > { %v3352_v61 = vsel %vm1789_vm10, %v9747_v18, -inf  ;;  %v9775_v11 = vadd.f32 %v7777_v3, %v3560_v29 }
 0xd67   : > { %3353 = vmax.xlane.f32.xlu0 %v3352_v61  ;;  %3350 = vmax.xlane.f32.xlu2 %v3349_v52 }
 0xd68   : > { %v3583_v57 = vsel %vm1789_vm10, %v9775_v11, -inf }
 0xd6b   : > { %v3333_v48 = vpop.f32.mrf.mxu3 }
 0xd6c   : > { %v9758_v53 = vadd.f32 %v7757_v46, %v3333_v48 }
 0xd6d   : > { %v3562_v4 = vpop.f32.mrf.mxu1 }
 0xd6e   : > { %v3355_v10 = vsel %vm1789_vm10, %v9758_v53, -inf  ;;  %v9767_v6 = vadd.f32 %v7778_v34, %v3562_v4 }
 0xd6f   : > { %3581 = vmax.xlane.f32.xlu0 %v3580_v63  ;;  %3578 = vmax.xlane.f32.xlu2 %v3577_v32 }
 0xd70   : > { %3356 = vmax.xlane.f32.xlu1 %v3355_v10  ;;  %v3586_v21 = vsel %vm1789_vm10, %v9767_v6, -inf }
 0xd73   : > { %v3335_v20 = vpop.f32.mrf.mxu3 }
 0xd74   : > { %v9769_v27 = vadd.f32 %v7758_v51, %v3335_v20 }
 0xd76   : > { %v3358_v2 = vsel %vm1789_vm10, %v9769_v27, -inf }
 0xd77   : > { %3359 = vmax.xlane.f32.xlu0 %v3358_v2 }
 0xd78   : > { %3587 = vmax.xlane.f32.xlu1 %v3586_v21 }
 0xd7b   : > { %v3338_v56 = vpop.f32.mrf.mxu3 }
 0xd7c   : > { %v9780_v16 = vadd.f32 %v7761_v28, %v3338_v56 }
 0xd7e   : > { %v3361_v38 = vsel %vm1789_vm10, %v9780_v16, -inf }
 0xd7f   : > { %3584 = vmax.xlane.f32.xlu0 %v3583_v57 }
 0xd83   : > { %v3340_v7 = vpop.f32.mrf.mxu3 }
 0xd84   : > { %v9782_v45 = vadd.f32 %v7762_v15, %v3340_v7 }
 0xd86   : > { %v3364_v22 = vsel %vm1789_vm10, %v9782_v45, -inf }
 0xd87   : > { %3362 = vmax.xlane.f32.xlu0 %v3361_v38  ;;  %3365 = vmax.xlane.f32.xlu2 %v3364_v22 }
 0xdac   : > { %v3567_v41 = vpop.xlane.xlu1 %3566 }
 0xdad   : > { %v3589_v0 = vsub.f32 %v9717_v50, %v3567_v41 }
 0xdaf   : > { %v3597_v26 = vmul.f32 1.442695, %v3589_v0 }
 0xdb1   : > { %8186 = vpow2.f32 %v3597_v26 }
 0xdb4   : > { %v3570_v5 = vpop.xlane.xlu0 %3569 }
 0xdb5   : > { %v3590_v1 = vsub.f32 %v9721_v17, %v3570_v5 }
 0xdb7   : > { %v9789_v44 = vpop.eup %8186  ;;  %v3599_v33 = vmul.f32 1.442695, %v3590_v1 }
 0xdb8   : > { %v3613_v19 = vsel %vm1789_vm10, %v9789_v44, 0.0 }
 0xdb9   : > { %3614 = vadd.xlane.f32.xlu2 %v3613_v19 }
 0xdc2   : > { %v3345_v37 = vpop.xlane.xlu1 %3344 }
 0xdc3   : > { %v3367_v58 = vsub.f32 %v9726_v42, %v3345_v37 }
 0xdc5   : > { %v3375_v8 = vmul.f32 1.442695, %v3367_v58 }
 0xdc7   : > { %8188 = vpow2.f32 %v3375_v8 }
 0xdc8   : > { %8190 = vpow2.f32 %v3599_v33 }
 0xdca   : > { %v3348_v29 = vpop.xlane.xlu2 %3347  ;;  %v3576_v61 = vpop.xlane.xlu1 %3575 }
 0xdcb   : > { %v3368_v50 = vsub.f32 %v9733_v24, %v3348_v29  ;;  %v3592_v52 = vsub.f32 %v9731_v62, %v3576_v61 }
 0xdcd   : > { %v9797_v46 = vpop.eup %8188  ;;  %v3377_v48 = vmul.f32 1.442695, %v3368_v50  ;;  %v3603_v12 = vmul.f32 1.442695, %v3592_v52 }
 0xdce   : > { %v3391_v63 = vsel %vm1789_vm10, %v9797_v46, 0.0  ;;  %v9801_v42 = vpop.eup %8190 }
 0xdcf   : > { %8192 = vpow2.f32 %v3377_v48  ;;  %3392 = vadd.xlane.f32.xlu0 %v3391_v63  ;;  %v3616_v4 = vsel %vm1789_vm10, %v9801_v42, 0.0 }
 0xdd0   : > { %8194 = vpow2.f32 %v3603_v12 }
 0xdd2   : > { %v3573_v17 = vpop.xlane.xlu2 %3572 }
 0xdd3   : > { %v3591_v32 = vsub.f32 %v9739_v59, %v3573_v17 }
 0xdd5   : > { %v9804_v10 = vpop.eup %8192  ;;  %v3601_v24 = vmul.f32 1.442695, %v3591_v32 }
 0xdd6   : > { %v9806_v62 = vpop.eup %8194  ;;  %v3394_v34 = vsel %vm1789_vm10, %v9804_v10, 0.0 }
 0xdd7   : > { %8196 = vpow2.f32 %v3601_v24  ;;  %3395 = vadd.xlane.f32.xlu2 %v3394_v34  ;;  %3617 = vadd.xlane.f32.xlu0 %v3616_v4  ;;  %v3622_v51 = vsel %vm1789_vm10, %v9806_v62, 0.0 }
 0xdd8   : > { %3623 = vadd.xlane.f32.xlu1 %v3622_v51 }
 0xdda   : > { %v3354_v20 = vpop.xlane.xlu0 %3353  ;;  %v3351_v59 = vpop.xlane.xlu2 %3350 }
 0xddb   : > { %v3370_v5 = vsub.f32 %v9747_v18, %v3354_v20 }
 0xddd   : > { %v9814_v3 = vpop.eup %8196  ;;  %v3381_v37 = vmul.f32 1.442695, %v3370_v5 }
 0xdde   : > { %v3619_v2 = vsel %vm1789_vm10, %v9814_v3, 0.0 }
 0xddf   : > { %3620 = vadd.xlane.f32.xlu2 %v3619_v2 }
 0xde2   : > { %v3582_v21 = vpop.xlane.xlu0 %3581  ;;  %v3579_v35 = vpop.xlane.xlu2 %3578 }
 0xde3   : > { %v3594_v56 = vsub.f32 %v9756_v13, %v3582_v21  ;;  %v3593_v28 = vsub.f32 %v9754_v23, %v3579_v35  ;;  %v3357_v19 = vpop.xlane.xlu1 %3356 }
 0xde5   : > { %v3607_v57 = vmul.f32 1.442695, %v3594_v56  ;;  %v3605_v15 = vmul.f32 1.442695, %v3593_v28 }
 0xde7   : > { %8198 = vpow2.f32 %v3607_v57 }
 0xde8   : > { %8200 = vpow2.f32 %v3605_v15 }
 0xdea   : > { %v3360_v23 = vpop.xlane.xlu0 %3359 }
 0xdeb   : > { %v3588_v1 = vpop.xlane.xlu1 %3587 }
 0xded   : > { %v9820_v7 = vpop.eup %8198 }
 0xdee   : > { %v9822_v38 = vpop.eup %8200  ;;  %v3628_v22 = vsel %vm1789_vm10, %v9820_v7, 0.0 }
 0xdef   : > { %3629 = vadd.xlane.f32.xlu2 %v3628_v22  ;;  %v3625_v41 = vsel %vm1789_vm10, %v9822_v38, 0.0 }
 0xdf0   : > { %3626 = vadd.xlane.f32.xlu0 %v3625_v41 }
 0xdf1   : > { %3435 = vrot.lane.b32.xlu1 %v9666_v40, %s10948_s17  ;;  %v3372_v40 = vsub.f32 %v9769_v27, %v3360_v23  ;;  %v3371_v27 = vsub.f32 %v9758_v53, %v3357_v19 }
 0xdf2   : > { %v3585_v13 = vpop.xlane.xlu0 %3584 }
 0xdf3   : > { %v3595_v0 = vsub.f32 %v9775_v11, %v3585_v13  ;;  %v3385_v8 = vmul.f32 1.442695, %v3372_v40  ;;  %v3369_v11 = vsub.f32 %v9744_v36, %v3351_v59  ;;  %v3383_v48 = vmul.f32 1.442695, %v3371_v27 }
 0xdf5   : > { %v3609_v26 = vmul.f32 1.442695, %v3595_v0  ;;  %v3379_v29 = vmul.f32 1.442695, %v3369_v11 }
 0xdf7   : > { %8202 = vpow2.f32 %v3609_v26 }
 0xdf8   : > { %8204 = vpow2.f32 %v3381_v37 }
 0xdf9   : > { %8206 = vpow2.f32 %v3385_v8 }
 0xdfa   : > { %v3363_v50 = vpop.xlane.xlu0 %3362  ;;  %v3366_v36 = vpop.xlane.xlu2 %3365 }
 0xdfb   : > { %v3373_v52 = vsub.f32 %v9780_v16, %v3363_v50  ;;  %v3374_v53 = vsub.f32 %v9782_v45, %v3366_v36 }
 0xdfd   : > { %v9836_v58 = vpop.eup %8202  ;;  %v3387_v63 = vmul.f32 1.442695, %v3373_v52  ;;  %v3389_v34 = vmul.f32 1.442695, %v3374_v53 }
 0xdfe   : > { %v9843_v33 = vpop.eup %8204 }
 0xdff   : > { %v3400_v61 = vsel %vm1789_vm10, %v9843_v33, 0.0 }
 0xe04   : > { %3439 = vrot.lane.b32.xlu0 %v9670_v54, %s10948_s17  ;;  %v3631_v54 = vsel %vm1789_vm10, %v9836_v58, 0.0 }
 0xe07   : > { %3437 = vrot.lane.b32.xlu2 %v9662_v55, %s10948_s17  ;;  %v3596_v55 = vsub.f32 %v9767_v6, %v3588_v1  ;;  %v9849_v6 = vpop.eup %8206 }
 0xe08   : > { %v3406_v17 = vsel %vm1789_vm10, %v9849_v6, 0.0 }
 0xe09   : > { %v3611_v18 = vmul.f32 1.442695, %v3596_v55 }
 0xe0b   : > { %8208 = vpow2.f32 %v3611_v18 }
 0xe0c   : > { %8210 = vpow2.f32 %v3379_v29 }
 0xe0d   : > { %8212 = vpow2.f32 %v3383_v48 }
 0xe0e   : > { %8214 = vpow2.f32 %v3387_v63 }
 0xe0f   : > { %8216 = vpow2.f32 %v3389_v34 }
 0xe11   : > { %v9851_v12 = vpop.eup %8208 }
 0xe12   : > { %v9855_v32 = vpop.eup %8210  ;;  %v3634_v24 = vsel %vm1789_vm10, %v9851_v12, 0.0 }
 0xe13   : > { %v3397_v16 = vsel %vm1789_vm10, %v9855_v32, 0.0  ;;  %v9862_v4 = vpop.eup %8212 }
 0xe14   : > { %v9864_v51 = vpop.eup %8214  ;;  %v3403_v20 = vsel %vm1789_vm10, %v9862_v4, 0.0 }
 0xe15   : > { %v3409_v45 = vsel %vm1789_vm10, %v9864_v51, 0.0  ;;  %v9870_v59 = vpop.eup %8216 }
 0xe16   : > { %v3412_v2 = vsel %vm1789_vm10, %v9870_v59, 0.0 }
 0xe1b   : > { %3632 = vadd.xlane.f32.xlu1 %v3631_v54 }
 0xe23   : > { %3401 = vadd.xlane.f32.xlu1 %v3400_v61 }
 0xe2b   : > { %3407 = vadd.xlane.f32.xlu1 %v3406_v17 }
 0xe2c   : > { %v3615_v35 = vpop.xlane.xlu2 %3614 }
 0xe2d   : > { %8218 = vrcp.f32 %v3615_v35 }
 0xe2e   : > { %3635 = vadd.xlane.f32.xlu0 %v3634_v24 }
 0xe30   : > { %3398 = vadd.xlane.f32.xlu2 %v3397_v16 }
 0xe33   : > { %v8219_v57 = vpop.eup %8218 }
 0xe34   : > { %v3645_v22 = vmul.f32 %v8219_v57, %v9789_v44 }
 0xe36   : > { %3404 = vadd.xlane.f32.xlu0 %v3403_v20 }
 0xe38   : > { %3410 = vadd.xlane.f32.xlu2 %v3409_v45 }
 0xe3e   : > { %3413 = vadd.xlane.f32.xlu0 %v3412_v2 }
 0xe42   : > { %v3393_v21 = vpop.xlane.xlu0 %3392 }
 0xe4a   : > { %v3618_v56 = vpop.xlane.xlu0 %3617  ;;  %v3396_v28 = vpop.xlane.xlu2 %3395 }
 0xe4b   : > { %8220 = vrcp.f32 %v3618_v56  ;;  %v3624_v0 = vpop.xlane.xlu1 %3623 }
 0xe51   : > { %v8221_v15 = vpop.eup %8220 }
 0xe52   : > { %v3646_v41 = vmul.f32 %v8221_v15, %v9801_v42  ;;  %v3621_v13 = vpop.xlane.xlu2 %3620 }
 0xe53   : > { %8222 = vrcp.f32 %v3621_v13 }
 0xe54   : > { %v3653_v23 = vpack.c.bf16 %v3646_v41, %v3645_v22  ;;  %8224 = vrcp.f32 %v3624_v0 }
 0xe56   : > { %7088 = vmatmul.msk.bf16.vlgmr.msrb.gmra.mxu0 %vm1789_vm10, %v3653_v23 }
 0xe59   : > { %v8223_v26 = vpop.eup %8222 }
 0xe5a   : > { %v8225_v19 = vpop.eup %8224  ;;  %v3647_v5 = vmul.f32 %v8223_v26, %v9814_v3 }
 0xe5b   : > { %v3648_v37 = vmul.f32 %v8225_v19, %v9806_v62 }
 0xe5d   : > { %v3654_v54 = vpack.c.bf16 %v3648_v37, %v3647_v5 }
 0xe62   : > { %v3630_v40 = vpop.xlane.xlu2 %3629 }
 0xe63   : > { %v3627_v1 = vpop.xlane.xlu0 %3626  ;;  %8226 = vrcp.f32 %v3630_v40  ;;  %v3436_v27 = vpop.permute.xlu1 %3435 }
 0xe64   : > { %8228 = vrcp.f32 %v3627_v1 }
 0xe65   : > { %8230 = vrcp.f32 %v3396_v28 }
 0xe66   : > { %7089 = vmatmul.msk.bf16.gmra.mxu0 %vm1789_vm10, %v3654_v54  ;;  %8232 = vrcp.f32 %v3393_v21 }
 0xe69   : > { %v8227_v44 = vpop.eup %8226 }
 0xe6a   : > { %v8229_v42 = vpop.eup %8228  ;;  %v3650_v55 = vmul.f32 %v8227_v44, %v9820_v7  ;;  %v3438_v3 = vpop.permute.xlu2 %3437  ;;  %v7618_v44 = vld [vmem:[%s10929_s19 + $0x10] sm:$0xff] }
 0xe6b   : > { %v3649_v8 = vmul.f32 %v8229_v42, %v9822_v38  ;;  %v8231_v62 = vpop.eup %8230 }
 0xe6c   : > { %v8233_v29 = vpop.eup %8232  ;;  %v3424_v61 = vmul.f32 %v8231_v62, %v9804_v10 }
 0xe6d   : > { %v3655_v11 = vpack.c.bf16 %v3650_v55, %v3649_v8  ;;  %v3423_v50 = vmul.f32 %v8233_v29, %v9797_v46 }
 0xe6f   : > { %v3431_v7 = vpack.c.bf16 %v3424_v61, %v3423_v50 }
 0xe76   : > { %v3440_v18 = vpop.permute.xlu0 %3439  ;;  %7090 = vmatmul.msk.bf16.gmra.mxu0 %vm1789_vm10, %v3655_v11 }
 0xe77   : > { %3464 = vmatpush.bf16.msra.mxu2 %v3440_v18 }
 0xe7b   : > { %3465 = vmatpush.bf16.msra.mxu2 %v3438_v3 }
 0xe7f   : > { %3466 = vmatpush.bf16.msra.mxu2 %v3436_v27 }
 0xe82   : > { %7080 = vmatmul.msk.bf16.vlgmr.msra.gmra.mxu2 %vm1789_vm10, %v3431_v7 }
 0xe8e   : > { %v3633_v38 = vpop.xlane.xlu1 %3632 }
 0xe8f   : > { %8234 = vrcp.f32 %v3633_v38 }
 0xe95   : > { %v8235_v63 = vpop.eup %8234 }
 0xe96   : > { %v3402_v52 = vpop.xlane.xlu1 %3401  ;;  %v3651_v10 = vmul.f32 %v8235_v63, %v9836_v58 }
 0xe97   : > { %8236 = vrcp.f32 %v3402_v52 }
 0xe9d   : > { %v8237_v17 = vpop.eup %8236 }
 0xe9e   : > { %v3426_v20 = vmul.f32 %v8237_v17, %v9843_v33  ;;  %v3408_v21 = vpop.xlane.xlu1 %3407 }
 0xea1   : > { %v3636_v48 = vpop.xlane.xlu0 %3635 }
 0xea2   : > { %8238 = vrcp.f32 %v3636_v48 }
 0xea3   : > { %v3399_v36 = vpop.xlane.xlu2 %3398 }
 0xea4   : > { %8240 = vrcp.f32 %v3399_v36 }
 0xea8   : > { %v8239_v53 = vpop.eup %8238 }
 0xea9   : > { %v3652_v46 = vmul.f32 %v8239_v53, %v9851_v12  ;;  %v3405_v45 = vpop.xlane.xlu0 %3404 }
 0xeaa   : > { %v8241_v24 = vpop.eup %8240  ;;  %8242 = vrcp.f32 %v3405_v45 }
 0xeab   : > { %v3656_v16 = vpack.c.bf16 %v3652_v46, %v3651_v10  ;;  %v3425_v34 = vmul.f32 %v8241_v24, %v9855_v32  ;;  %8244 = vrcp.f32 %v3408_v21  ;;  %v3411_v32 = vpop.xlane.xlu2 %3410 }
 0xead   : > { %7091 = vmatmul.msk.bf16.gmra.mxu0 %vm1789_vm10, %v3656_v16  ;;  %v3432_v2 = vpack.c.bf16 %v3426_v20, %v3425_v34 }
 0xeaf   : > { %7081 = vmatmul.msk.bf16.gmra.mxu2 %vm1789_vm10, %v3432_v2 }
 0xeb0   : > { %v8243_v35 = vpop.eup %8242 }
 0xeb1   : > { %v8245_v56 = vpop.eup %8244  ;;  %v3427_v58 = vmul.f32 %v8243_v35, %v9862_v4  ;;  %v3414_v28 = vpop.xlane.xlu0 %3413 }
 0xeb2   : > { %v3428_v12 = vmul.f32 %v8245_v56, %v9849_v6  ;;  %8246 = vrcp.f32 %v3414_v28  ;;  %v8005_v28 = vld [vmem:[%s10928_s24 + $0x1] ss:$0 sm:$0xff]  ;;  %s10966_s24 = sld [smem:[#allocation33_spill]] }
 0xeb3   : > { %8248 = vrcp.f32 %v3411_v32 }
 0xeb4   : > { %v3433_v57 = vpack.c.bf16 %v3428_v12, %v3427_v58 }
 0xeb8   : > { %v8247_v33 = vpop.eup %8246 }
 0xeb9   : > { %v8249_v15 = vpop.eup %8248  ;;  %v3430_v22 = vmul.f32 %v8247_v33, %v9870_v59 }
 0xeba   : > { %v3429_v41 = vmul.f32 %v8249_v15, %v9864_v51  ;;  %v7619_v51 = vld [vmem:[%s10929_s19 + $0x18] sm:$0xff]  ;;  %s10963_s19 = sld [smem:[#allocation31_spill]] }
 0xebb   : > { %3784 = vmatpush.bf16.msrb.mxu3 %v7619_v51 }
 0xebc   : > { %v3434_v23 = vpack.c.bf16 %v3430_v22, %v3429_v41 }
 0xebf   : > { %7082 = vmatmul.msk.bf16.gmra.mxu2 %vm1789_vm10, %v3433_v57  ;;  %3785 = vmatpush.bf16.msrb.mxu3 %v7618_v44 }
 0xecf   : > { %7083 = vmatmul.msk.bf16.gmra.mxu2 %vm1789_vm10, %v3434_v23 }
 0xed3   : > { %v3690_v4 = vpop.f32.mrf.mxu0 }
 0xedb   : > { %v3692_v13 = vpop.f32.mrf.mxu0 }
 0xedc   : > { %v7941_v6 = vpack.i.bf16 %v3692_v13, %v3690_v4 }
 0xede   : > { %7942 = vrot.lane.b32.xlu1 %v7941_v6, %s10949_s16 }
 0xee3   : > { %v3695_v0 = vpop.f32.mrf.mxu0 }
 0xeeb   : > { %v3697_v26 = vpop.f32.mrf.mxu0 }
 0xeec   : > { %v7946_v19 = vpack.i.bf16 %v3697_v26, %v3695_v0 }
 0xeee   : > { %7947 = vrot.lane.b32.xlu2 %v7946_v19, %s10949_s16 }
 0xef3   : > { %v3700_v5 = vpop.f32.mrf.mxu0 }
 0xefb   : > { %v3702_v37 = vpop.f32.mrf.mxu0 }
 0xefc   : > { %v7951_v59 = vpack.i.bf16 %v3702_v37, %v3700_v5 }
 0xefe   : > { %7952 = vrot.lane.b32.xlu0 %v7951_v59, %s10949_s16 }
 0xf05   : > { %v3468_v42 = vpop.f32.mrf.mxu2 }
 0xf0d   : > { %v3470_v55 = vpop.f32.mrf.mxu2 }
 0xf2a   : > { %v3705_v40 = vpop.f32.mrf.mxu0 }
 0xf32   : > { %v3707_v1 = vpop.f32.mrf.mxu0  ;;  %v3473_v29 = vpop.f32.mrf.mxu2 }
 0xf33   : > { %v7956_v54 = vpack.i.bf16 %v3707_v1, %v3705_v40 }
 0xf35   : > { %7957 = vrot.lane.b32.xlu0 %v7956_v54, %s10949_s16 }
 0xf3a   : > { %v3475_v38 = vpop.f32.mrf.mxu2 }
 0xf42   : > { %v3478_v63 = vpop.f32.mrf.mxu2 }
 0xf48   : > { %v7948_v50 = vpop.permute.xlu2 %7947 }
 0xf49   : > { %v7950_v27 = vunpack.i.h.bf16 %v7948_v50  ;;  %v7949_v7 = vunpack.i.l.bf16 %v7948_v50 }
 0xf4a   : > { %v3480_v46 = vpop.f32.mrf.mxu2 }
 0xf4b   : > { %v3744_v52 = vsel %vm1735_vm9, %v3473_v29, %v7949_v7  ;;  %v3745_v48 = vsel %vm1735_vm9, %v3475_v38, %v7950_v27 }
 0xf4c   : > { %v3751_v36 = vpack.c.bf16 %v3745_v48, %v3744_v52 }
 0xf50   : > { %v7943_v8 = vpop.permute.xlu1 %7942 }
 0xf51   : > { %v7945_v11 = vunpack.i.h.bf16 %v7943_v8  ;;  %v7944_v18 = vunpack.i.l.bf16 %v7943_v8 }
 0xf52   : > { %v3483_v20 = vpop.f32.mrf.mxu2 }
 0xf53   : > { %v3743_v62 = vsel %vm1735_vm9, %v3470_v55, %v7945_v11  ;;  %v3742_v3 = vsel %vm1735_vm9, %v3468_v42, %v7944_v18 }
 0xf54   : > { %v3750_v61 = vpack.c.bf16 %v3743_v62, %v3742_v3 }
 0xf56   : > { %7100 = vmatmul.msk.bf16.vlgmr.msrb.gmra.mxu3 %vm1195_vm1, %v3750_v61 }
 0xf5a   : > { %v3485_v35 = vpop.f32.mrf.mxu2 }
 0xf66   : > { %7101 = vmatmul.msk.bf16.gmra.mxu3 %vm1195_vm1, %v3751_v36 }
 0xf70   : > { %v7953_v17 = vpop.permute.xlu0 %7952 }
 0xf71   : > { %v7955_v53 = vunpack.i.h.bf16 %v7953_v17  ;;  %v7954_v10 = vunpack.i.l.bf16 %v7953_v17 }
 0xf73   : > { %v3746_v24 = vsel %vm1735_vm9, %v3478_v63, %v7954_v10  ;;  %v3747_v16 = vsel %vm1735_vm9, %v3480_v46, %v7955_v53 }
 0xf74   : > { %v3752_v34 = vpack.c.bf16 %v3747_v16, %v3746_v24 }
 0xf76   : > { %7102 = vmatmul.msk.bf16.gmra.mxu3 %vm1195_vm1, %v3752_v34 }
 0xfa7   : > { %v7958_v45 = vpop.permute.xlu0 %7957 }
 0xfa8   : > { %v7960_v2 = vunpack.i.h.bf16 %v7958_v45  ;;  %v7959_v21 = vunpack.i.l.bf16 %v7958_v45 }
 0xfaa   : > { %v3748_v56 = vsel %vm1735_vm9, %v3483_v20, %v7959_v21  ;;  %v3749_v58 = vsel %vm1735_vm9, %v3485_v35, %v7960_v2 }
 0xfab   : > { %v3753_v12 = vpack.c.bf16 %v3749_v58, %v3748_v56 }
 0xfad   : > { %7103 = vmatmul.msk.bf16.gmra.mxu3 %vm1195_vm1, %v3753_v12 }
 0xfd9   : > { %v3787_v57 = vpop.f32.mrf.mxu3 }
 0xfda   : > { %v3807_v32 = vadd.f32 %v3787_v57, %v9522_v9 }
 0xfdc   : > { %v9918_v33 = vadd.f32 %v8005_v28, %v3807_v32 }
 0xfde   : > { %v3826_v15 = vsel %vm1195_vm1, %v9918_v33, 0.0 }
 0xfdf   : > { %3827 = vadd.xlane.f32.xlu1 %v3826_v15 }
 0xfe1   : > { %v3789_v22 = vpop.f32.mrf.mxu3 }
 0xfe2   : > { %v3808_v41 = vadd.f32 %v3789_v22, %v9527_v31 }
 0xfe4   : > { %v9923_v23 = vadd.f32 %v8005_v28, %v3808_v41 }
 0xfe6   : > { %v3829_v4 = vsel %vm1195_vm1, %v9923_v23, 0.0 }
 0xfe7   : > { %3830 = vadd.xlane.f32.xlu2 %v3829_v4  ;;  %v7621_v4 = vld [vmem:[%s10931_s12 + $0x18] sm:$0xff] }
 0xfe8   : > { %4061 = vmatpush.bf16.msrb.mxu2 %v7621_v4 }
 0xfe9   : > { %v3792_v13 = vpop.f32.mrf.mxu3 }
 0xfea   : > { %v3809_v6 = vadd.f32 %v3792_v13, %v9532_v60 }
 0xfec   : > { %v9928_v0 = vadd.f32 %v8005_v28, %v3809_v6 }
 0xfee   : > { %v3832_v9 = vsel %vm1195_vm1, %v9928_v0, 0.0 }
 0xfef   : > { %3833 = vadd.xlane.f32.xlu0 %v3832_v9 }
 0xff1   : > { %v3794_v26 = vpop.f32.mrf.mxu3 }
 0xff2   : > { %v3810_v19 = vadd.f32 %v3794_v26, %v9537_v49  ;;  %v7620_v26 = vld [vmem:[%s10931_s12 + $0x10] sm:$0xff]  ;;  %s10960_s12 = smov 32  }
 0xff3   : > { %4062 = vmatpush.bf16.msrb.mxu2 %v7620_v26 }
 0xff4   : > { %v9933_v5 = vadd.f32 %v8005_v28, %v3810_v19 }
 0xff6   : > { %v3835_v31 = vsel %vm1195_vm1, %v9933_v5, 0.0 }
 0xff7   : > { %3836 = vadd.xlane.f32.xlu1 %v3835_v31 }
 0xff9   : > { %v3797_v37 = vpop.f32.mrf.mxu3 }
 0xffa   : > { %v3811_v59 = vadd.f32 %v3797_v37, %v9542_v25 }
 0xffc   : > { %v9938_v51 = vadd.f32 %v8005_v28, %v3811_v59 }
 0xffe   : > { %v3838_v60 = vsel %vm1195_vm1, %v9938_v51, 0.0 }
 0xfff   : > { %3839 = vadd.xlane.f32.xlu2 %v3838_v60 }
0x1001   : > { %v3799_v40 = vpop.f32.mrf.mxu3 }
0x1002   : > { %v3812_v1 = vadd.f32 %v3799_v40, %v9547_v14 }
0x1004   : > { %v9943_v54 = vadd.f32 %v8005_v28, %v3812_v1 }
0x1006   : > { %v3841_v49 = vsel %vm1195_vm1, %v9943_v54, 0.0 }
0x1007   : > { %3842 = vadd.xlane.f32.xlu0 %v3841_v49 }
0x1030   : > { %v3802_v44 = vpop.f32.mrf.mxu3 }
0x1031   : > { %v3813_v42 = vadd.f32 %v3802_v44, %v9556_v30 }
0x1033   : > { %v9948_v55 = vadd.f32 %v8005_v28, %v3813_v42 }
0x1035   : > { %v3844_v25 = vsel %vm1195_vm1, %v9948_v55, 0.0 }
0x1036   : > { %3845 = vadd.xlane.f32.xlu0 %v3844_v25 }
0x1038   : > { %v3804_v18 = vpop.f32.mrf.mxu3 }
0x1039   : > { %v3814_v3 = vadd.f32 %v3804_v18, %v9568_v39 }
0x103b   : > { %v9961_v50 = vadd.f32 %v8005_v28, %v3814_v3 }
0x103d   : > { %v3847_v52 = vsel %vm1195_vm1, %v9961_v50, 0.0 }
0x1052   : > { %v3828_v8 = vpop.xlane.xlu1 %3827 }
0x1053   : > { %v3850_v11 = vmul.f32 %v3828_v8, %v8792_v43 }
0x1055   : > { %v9954_v14 = vsub.f32 %v9918_v33, %v3850_v11 }
0x1057   : > { %v3866_v62 = vmul.f32 %v9954_v14, %v9954_v14 }
0x1059   : > { %v3874_v30 = vsel %vm1195_vm1, %v3866_v62, 0.0 }
0x105a   : > { %v3831_v29 = vpop.xlane.xlu2 %3830  ;;  %3875 = vadd.xlane.f32.xlu1 %v3874_v30 }
0x105b   : > { %v3851_v61 = vmul.f32 %v3831_v29, %v8792_v43 }
0x105d   : > { %v9964_v27 = vsub.f32 %v9923_v23, %v3851_v61 }
0x105f   : > { %v3867_v7 = vmul.f32 %v9964_v27, %v9964_v27 }
0x1061   : > { %v3877_v38 = vsel %vm1195_vm1, %v3867_v7, 0.0 }
0x1062   : > { %v3834_v39 = vpop.xlane.xlu0 %3833  ;;  %3878 = vadd.xlane.f32.xlu2 %v3877_v38  ;;  %3848 = vadd.xlane.f32.xlu1 %v3847_v52 }
0x1063   : > { %v3852_v48 = vmul.f32 %v3834_v39, %v8792_v43 }
0x1065   : > { %v9973_v36 = vsub.f32 %v9928_v0, %v3852_v48 }
0x1067   : > { %v3868_v63 = vmul.f32 %v9973_v36, %v9973_v36 }
0x1069   : > { %v3880_v17 = vsel %vm1195_vm1, %v3868_v63, 0.0 }
0x106a   : > { %v3837_v53 = vpop.xlane.xlu1 %3836  ;;  %3881 = vadd.xlane.f32.xlu2 %v3880_v17 }
0x106b   : > { %v3853_v10 = vmul.f32 %v3837_v53, %v8792_v43  ;;  %v10020_v53 = vld [vmem:[%s8599_s30 + $0x1] ss:$0 sm:$0xff] }
0x106d   : > { %v9980_v46 = vsub.f32 %v9933_v5, %v3853_v10 }
0x106f   : > { %v3869_v24 = vmul.f32 %v9980_v46, %v9980_v46 }
0x1071   : > { %v3883_v16 = vsel %vm1195_vm1, %v3869_v24, 0.0 }
0x1072   : > { %v3840_v34 = vpop.xlane.xlu2 %3839  ;;  %3884 = vadd.xlane.f32.xlu0 %v3883_v16 }
0x1073   : > { %v3854_v20 = vmul.f32 %v3840_v34, %v8792_v43 }
0x1075   : > { %v9987_v45 = vsub.f32 %v9938_v51, %v3854_v20 }
0x1077   : > { %v3870_v2 = vmul.f32 %v9987_v45, %v9987_v45 }
0x1079   : > { %v3886_v21 = vsel %vm1195_vm1, %v3870_v2, 0.0 }
0x107a   : > { %v3843_v35 = vpop.xlane.xlu0 %3842  ;;  %3887 = vadd.xlane.f32.xlu1 %v3886_v21  ;;  %v10024_v21 = vld [vmem:[%s10941_s9 + $0x1] ss:$0 sm:$0xff]  ;;  %s10951_s9 = sshll.u32 %s8773_s26, 6  ;;  %s10877_s26 = smov 32  }
0x107b   : > { %v3855_v56 = vmul.f32 %v3843_v35, %v8792_v43 }
0x107d   : > { %v9994_v58 = vsub.f32 %v9943_v54, %v3855_v56 }
0x107f   : > { %v3871_v12 = vmul.f32 %v9994_v58, %v9994_v58 }
0x1081   : > { %v3889_v28 = vsel %vm1195_vm1, %v3871_v12, 0.0 }
0x1082   : > { %3890 = vadd.xlane.f32.xlu2 %v3889_v28 }
0x10a9   : > { %v3846_v57 = vpop.xlane.xlu0 %3845 }
0x10aa   : > { %v3856_v32 = vmul.f32 %v3846_v57, %v8792_v43 }
0x10ac   : > { %v10001_v15 = vsub.f32 %v9948_v55, %v3856_v32 }
0x10ae   : > { %v3872_v22 = vmul.f32 %v10001_v15, %v10001_v15 }
0x10b0   : > { %v3892_v41 = vsel %vm1195_vm1, %v3872_v22, 0.0 }
0x10b1   : > { %3893 = vadd.xlane.f32.xlu0 %v3892_v41 }
0x10cd   : > { %v3876_v13 = vpop.xlane.xlu1 %3875 }
0x10ce   : > { %v3898_v6 = vmul.f32 %v3876_v13, %v8792_v43 }
0x10d0   : > { %v3906_v9 = vadd.f32 1e-05, %v3898_v6 }
0x10d2   : > { %8250 = vrsqrt.f32 %v3906_v9  ;;  %vm3920_vm2 = vweird.f32 %v3906_v9 }
0x10d5   : > { %v3879_v19 = vpop.xlane.xlu2 %3878  ;;  %v3849_v31 = vpop.xlane.xlu1 %3848 }
0x10d6   : > { %v3899_v37 = vmul.f32 %v3879_v19, %v8792_v43  ;;  %v3857_v59 = vmul.f32 %v3849_v31, %v8792_v43 }
0x10d8   : > { %v8251_v60 = vpop.eup %8250  ;;  %v3907_v40 = vadd.f32 1e-05, %v3899_v37  ;;  %v10012_v1 = vsub.f32 %v9961_v50, %v3857_v59 }
0x10d9   : > { %v3915_v49 = vmul.f32 %v8251_v60, %v3906_v9  ;;  %vm3921_vm15 = vweird.f32 %v8251_v60 }
0x10da   : > { %8252 = vrsqrt.f32 %v3907_v40  ;;  %v3873_v44 = vmul.f32 %v10012_v1, %v10012_v1  ;;  %vm3922_vm3 = vmor %vm3920_vm2, %vm3921_vm15  ;;  %vm3930_vm5 = vweird.f32 %v3907_v40 }
0x10db   : > { %v3916_v42 = vmul.f32 %v8251_v60, %v3915_v49 }
0x10dc   : > { %v3895_v25 = vsel %vm1195_vm1, %v3873_v44, 0.0 }
0x10dd   : > { %v3917_v8 = vmul.f32 0.5, %v3916_v42  ;;  %v3882_v11 = vpop.xlane.xlu2 %3881  ;;  %3896 = vadd.xlane.f32.xlu1 %v3895_v25 }
0x10de   : > { %v3900_v18 = vmul.f32 %v3882_v11, %v8792_v43 }
0x10df   : > { %v3918_v62 = vsub.f32 1.5, %v3917_v8 }
0x10e0   : > { %v8253_v3 = vpop.eup %8252  ;;  %v3908_v30 = vadd.f32 1e-05, %v3900_v18 }
0x10e1   : > { %v3919_v29 = vmul.f32 %v8251_v60, %v3918_v62  ;;  %v3925_v61 = vmul.f32 %v8253_v3, %v3907_v40  ;;  %vm3931_vm4 = vweird.f32 %v8253_v3 }
0x10e2   : > { %8254 = vrsqrt.f32 %v3908_v30  ;;  %vm3932_vm6 = vmor %vm3930_vm5, %vm3931_vm4  ;;  %vm3940_vm8 = vweird.f32 %v3908_v30 }
0x10e3   : > { %v3926_v7 = vmul.f32 %v8253_v3, %v3925_v61  ;;  %v3923_v38 = vsel %vm3922_vm3, %v8251_v60, %v3919_v29 }
0x10e4   : > { %v3994_v10 = vmul.f32 %v3923_v38, %v9954_v14 }
0x10e5   : > { %v3927_v52 = vmul.f32 0.5, %v3926_v7  ;;  %v3885_v39 = vpop.xlane.xlu0 %3884 }
0x10e6   : > { %v3901_v48 = vmul.f32 %v3885_v39, %v8792_v43  ;;  %v4005_v35 = vmul.f32 %v10020_v53, %v3994_v10 }
0x10e7   : > { %v3928_v63 = vsub.f32 1.5, %v3927_v52 }
0x10e8   : > { %v8255_v17 = vpop.eup %8254  ;;  %v3909_v24 = vadd.f32 1e-05, %v3901_v48  ;;  %v4016_v41 = vadd.f32 %v10024_v21, %v4005_v35 }
0x10e9   : > { %v3929_v16 = vmul.f32 %v8253_v3, %v3928_v63  ;;  %v3935_v34 = vmul.f32 %v8255_v17, %v3908_v30  ;;  %vm3941_vm7 = vweird.f32 %v8255_v17 }
0x10ea   : > { %8256 = vrsqrt.f32 %v3909_v24  ;;  %vm3942_vm11 = vmor %vm3940_vm8, %vm3941_vm7  ;;  %vm3950_vm13 = vweird.f32 %v3909_v24 }
0x10eb   : > { %v3933_v20 = vsel %vm3932_vm6, %v8253_v3, %v3929_v16  ;;  %v3936_v2 = vmul.f32 %v8255_v17, %v3935_v34 }
0x10ec   : > { %v3995_v56 = vmul.f32 %v3933_v20, %v9964_v27 }
0x10ed   : > { %v3937_v12 = vmul.f32 0.5, %v3936_v2  ;;  %v3888_v28 = vpop.xlane.xlu1 %3887 }
0x10ee   : > { %v4006_v57 = vmul.f32 %v10020_v53, %v3995_v56  ;;  %v3902_v14 = vmul.f32 %v3888_v28, %v8792_v43 }
0x10ef   : > { %v3938_v32 = vsub.f32 1.5, %v3937_v12 }
0x10f0   : > { %v8257_v22 = vpop.eup %8256  ;;  %v4017_v4 = vadd.f32 %v10024_v21, %v4006_v57  ;;  %v3910_v13 = vadd.f32 1e-05, %v3902_v14 }
0x10f1   : > { %v3939_v6 = vmul.f32 %v8255_v17, %v3938_v32  ;;  %v3945_v9 = vmul.f32 %v8257_v22, %v3909_v24  ;;  %vm3951_vm12 = vweird.f32 %v8257_v22 }
0x10f2   : > { %v4024_v26 = vpack.c.bf16 %v4017_v4, %v4016_v41  ;;  %8258 = vrsqrt.f32 %v3910_v13  ;;  %vm3952_vm14 = vmor %vm3950_vm13, %vm3951_vm12  ;;  %vm3960_vm2 = vweird.f32 %v3910_v13 }
0x10f3   : > { %v3946_v27 = vmul.f32 %v8257_v22, %v3945_v9  ;;  %v3943_v19 = vsel %vm3942_vm11, %v8255_v17, %v3939_v6 }
0x10f4   : > { %7112 = vmatmul.msk.bf16.vlgmr.msrb.gmra.mxu2 %vm1195_vm1, %v4024_v26  ;;  %v3996_v49 = vmul.f32 %v3943_v19, %v9973_v36 }
0x10f5   : > { %v3947_v31 = vmul.f32 0.5, %v3946_v27  ;;  %v3891_v37 = vpop.xlane.xlu2 %3890 }
0x10f6   : > { %v3903_v59 = vmul.f32 %v3891_v37, %v8792_v43  ;;  %v4007_v62 = vmul.f32 %v10020_v53, %v3996_v49 }
0x10f7   : > { %v3948_v60 = vsub.f32 1.5, %v3947_v31 }
0x10f8   : > { %v8259_v40 = vpop.eup %8258  ;;  %v3911_v44 = vadd.f32 1e-05, %v3903_v59  ;;  %v4018_v7 = vadd.f32 %v10024_v21, %v4007_v62 }
0x10f9   : > { %v3949_v42 = vmul.f32 %v8257_v22, %v3948_v60  ;;  %v3955_v25 = vmul.f32 %v8259_v40, %v3910_v13  ;;  %vm3961_vm15 = vweird.f32 %v8259_v40 }
0x10fa   : > { %8260 = vrsqrt.f32 %v3911_v44  ;;  %vm3962_vm3 = vmor %vm3960_vm2, %vm3961_vm15  ;;  %vm3970_vm5 = vweird.f32 %v3911_v44 }
0x10fb   : > { %v3953_v8 = vsel %vm3952_vm14, %v8257_v22, %v3949_v42  ;;  %v3956_v11 = vmul.f32 %v8259_v40, %v3955_v25 }
0x10fc   : > { %v3997_v18 = vmul.f32 %v3953_v8, %v9980_v46 }
0x10fd   : > { %v3957_v3 = vmul.f32 0.5, %v3956_v11 }
0x10fe   : > { %v4008_v30 = vmul.f32 %v10020_v53, %v3997_v18 }
0x10ff   : > { %v3958_v29 = vsub.f32 1.5, %v3957_v3 }
0x1100   : > { %v8261_v61 = vpop.eup %8260  ;;  %v4019_v36 = vadd.f32 %v10024_v21, %v4008_v30 }
0x1101   : > { %v3959_v38 = vmul.f32 %v8259_v40, %v3958_v29  ;;  %v3965_v52 = vmul.f32 %v8261_v61, %v3911_v44  ;;  %vm3971_vm4 = vweird.f32 %v8261_v61 }
0x1102   : > { %v4025_v39 = vpack.c.bf16 %v4019_v36, %v4018_v7  ;;  %vm3972_vm6 = vmor %vm3970_vm5, %vm3971_vm4  ;;  %v7628_v7 = vld [vmem:[%s10943_s15 + $0x70] sm:$0xff] }
0x1103   : > { %v3966_v48 = vmul.f32 %v8261_v61, %v3965_v52  ;;  %v3963_v46 = vsel %vm3962_vm3, %v8259_v40, %v3959_v38 }
0x1104   : > { %7113 = vmatmul.msk.bf16.gmra.mxu2 %vm1195_vm1, %v4025_v39  ;;  %v3998_v10 = vmul.f32 %v3963_v46, %v9987_v45 }
0x1105   : > { %v3967_v63 = vmul.f32 0.5, %v3966_v48 }
0x1106   : > { %v4009_v20 = vmul.f32 %v10020_v53, %v3998_v10 }
0x1107   : > { %v3968_v17 = vsub.f32 1.5, %v3967_v63 }
0x1108   : > { %v4020_v35 = vadd.f32 %v10024_v21, %v4009_v20 }
0x1109   : > { %v3969_v24 = vmul.f32 %v8261_v61, %v3968_v17 }
0x110b   : > { %v3973_v16 = vsel %vm3972_vm6, %v8261_v61, %v3969_v24  ;;  %v7627_v24 = vld [vmem:[%s10943_s15 + $0x68] sm:$0xff] }
0x110c   : > { %v3999_v34 = vmul.f32 %v3973_v16, %v9994_v58 }
0x110e   : > { %v4010_v2 = vmul.f32 %v10020_v53, %v3999_v34 }
0x1110   : > { %v4021_v56 = vadd.f32 %v10024_v21, %v4010_v2 }
0x1112   : > { %v4026_v12 = vpack.c.bf16 %v4021_v56, %v4020_v35 }
0x1114   : > { %7114 = vmatmul.msk.bf16.gmra.mxu2 %vm1195_vm1, %v4026_v12  ;;  %v7626_v12 = vld [vmem:[%s10943_s15 + $0x60] sm:$0xff] }
0x1124   : > { %v3894_v28 = vpop.xlane.xlu0 %3893 }
0x1125   : > { %v3904_v45 = vmul.f32 %v3894_v28, %v8792_v43 }
0x1127   : > { %v3912_v57 = vadd.f32 1e-05, %v3904_v45 }
0x1129   : > { %8262 = vrsqrt.f32 %v3912_v57  ;;  %vm3980_vm8 = vweird.f32 %v3912_v57 }
0x112f   : > { %v8263_v14 = vpop.eup %8262 }
0x1130   : > { %v3975_v32 = vmul.f32 %v8263_v14, %v3912_v57  ;;  %vm3981_vm7 = vweird.f32 %v8263_v14 }
0x1131   : > { %vm3982_vm11 = vmor %vm3980_vm8, %vm3981_vm7 }
0x1132   : > { %v3976_v22 = vmul.f32 %v8263_v14, %v3975_v32 }
0x1134   : > { %v3977_v13 = vmul.f32 0.5, %v3976_v22 }
0x1136   : > { %v3978_v6 = vsub.f32 1.5, %v3977_v13  ;;  %v7625_v13 = vld [vmem:[%s10943_s15 + $0x58] sm:$0xff] }
0x1138   : > { %v3979_v26 = vmul.f32 %v8263_v14, %v3978_v6 }
0x113a   : > { %v3983_v31 = vsel %vm3982_vm11, %v8263_v14, %v3979_v26 }
0x113b   : > { %v4000_v60 = vmul.f32 %v3983_v31, %v10001_v15  ;;  %v10058_v15 = vld [vmem:[%s10942_s10 + $0x1] ss:$0 sm:$0xff]  ;;  %s10224_s10 = scalar_lea.vmem %s10950_s20, %s10951_s9  ;;  %s10952_s9 = sld [smem:[#allocation22_spill]] }
0x113c   : > { %s10964_s20 = sld [smem:[#allocation32_spill]] }
0x113d   : > { %v4011_v44 = vmul.f32 %v10020_v53, %v4000_v60 }
0x113f   : > { %v4022_v25 = vadd.f32 %v10024_v21, %v4011_v44 }
0x1150   : > { %v3897_v58 = vpop.xlane.xlu1 %3896 }
0x1151   : > { %v3905_v41 = vmul.f32 %v3897_v58, %v8792_v43 }
0x1153   : > { %v3913_v4 = vadd.f32 1e-05, %v3905_v41 }
0x1155   : > { %8264 = vrsqrt.f32 %v3913_v4  ;;  %vm3990_vm13 = vweird.f32 %v3913_v4 }
0x115b   : > { %v8265_v9 = vpop.eup %8264 }
0x115c   : > { %v3985_v27 = vmul.f32 %v8265_v9, %v3913_v4  ;;  %vm3991_vm12 = vweird.f32 %v8265_v9 }
0x115d   : > { %vm3992_vm14 = vmor %vm3990_vm13, %vm3991_vm12 }
0x115e   : > { %v3986_v19 = vmul.f32 %v8265_v9, %v3985_v27 }
0x1160   : > { %v3987_v37 = vmul.f32 0.5, %v3986_v19 }
0x1162   : > { %v3988_v59 = vsub.f32 1.5, %v3987_v37 }
0x1164   : > { %v3989_v40 = vmul.f32 %v8265_v9, %v3988_v59 }
0x1166   : > { %v3993_v43 = vsel %vm3992_vm14, %v8265_v9, %v3989_v40  ;;  %v7624_v40 = vld [vmem:[%s10943_s15 + $0x50] sm:$0xff] }
0x1167   : > { %v4001_v49 = vmul.f32 %v3993_v43, %v10012_v1 }
0x1169   : > { %v4012_v42 = vmul.f32 %v10020_v53, %v4001_v49  ;;  %v7629_v53 = vld [vmem:[%s10943_s15 + $0x78] sm:$0xff] }
0x116a   : > { %4459 = vmatpush.bf16.msra.mxu1 %v7629_v53 }
0x116b   : > { %v4023_v8 = vadd.f32 %v10024_v21, %v4012_v42 }
0x116d   : > { %v4027_v11 = vpack.c.bf16 %v4023_v8, %v4022_v25 }
0x116e   : > { %4460 = vmatpush.bf16.msra.mxu1 %v7628_v7 }
0x116f   : > { %7115 = vmatmul.msk.bf16.gmra.mxu2 %vm1195_vm1, %v4027_v11 }
0x1172   : > { %4461 = vmatpush.bf16.msra.mxu1 %v7627_v24 }
0x1176   : > { %4462 = vmatpush.bf16.msra.mxu1 %v7626_v12 }
0x1177   : > { %v4064_v18 = vpop.f32.mrf.mxu2 }
0x1178   : > { %v10061_v62 = vadd.f32 %v10058_v15, %v4064_v18 }
0x117a   : > { %v10064_v1 = vmul.f32 0.70710677, %v10061_v62  ;;  %4463 = vmatpush.bf16.msra.mxu1 %v7625_v13 }
0x117c   : > { %v4108_v3 = vand.u32 2147483647, %v10064_v1 }
0x117e   : > { %v4116_v30 = vmul.f32 0.3275911, %v4108_v3  ;;  %v4324_v9 = vsub.f32 0.0, %v4108_v3  ;;  %4464 = vmatpush.bf16.msra.mxu1 %v7624_v40 }
0x117f   : > { %v4066_v29 = vpop.f32.mrf.mxu2 }
0x1180   : > { %v4124_v21 = vadd.f32 1.0, %v4116_v30  ;;  %v10069_v61 = vadd.f32 %v10058_v15, %v4066_v29  ;;  %v4332_v49 = vmul.f32 %v4324_v9, %v4108_v3 }
0x1182   : > { %8266 = vrcp.f32 %v4124_v21  ;;  %v10073_v36 = vmul.f32 0.70710677, %v10069_v61  ;;  %v4143_v34 = vand.u32 2147483648, %v4124_v21  ;;  %v4141_v35 = vand.u32 2147483647, %v4124_v21 }
0x1183   : > { %vm4137_vm2 = vweird.f32 %v4124_v21 }
0x1184   : > { %v10076_v38 = vand.u32 2147483647, %v10073_v36  ;;  %v4144_v57 = vor.u32 1.1754944e-38, %v4143_v34  ;;  %vm4142_vm4 = vcmp.eq.f32.partialorder %v4141_v35, 8.507059e+37 }
0x1186   : > { %v4117_v52 = vmul.f32 0.3275911, %v10076_v38  ;;  %v4325_v30 = vsub.f32 0.0, %v10076_v38 }
0x1187   : > { %v4069_v39 = vpop.f32.mrf.mxu2 }
0x1188   : > { %v8267_v48 = vpop.eup %8266  ;;  %v10080_v46 = vadd.f32 %v10058_v15, %v4069_v39  ;;  %v4125_v17 = vadd.f32 1.0, %v4117_v52  ;;  %v7623_v52 = vld [vmem:[%s10943_s15 + $0x48] sm:$0xff]  ;;  %v4333_v12 = vmul.f32 %v4325_v30, %v10076_v38 }
0x1189   : > { %v4133_v63 = vmul.f32 %v8267_v48, %v4124_v21  ;;  %vm4138_vm15 = vweird.f32 %v8267_v48  ;;  %4465 = vmatpush.bf16.msra.mxu1 %v7623_v52 }
0x118a   : > { %v10083_v10 = vmul.f32 0.70710677, %v10080_v46  ;;  %8268 = vrcp.f32 %v4125_v17  ;;  %vm4139_vm3 = vmor %vm4137_vm2, %vm4138_vm15  ;;  %v4158_v31 = vand.u32 2147483648, %v4125_v17  ;;  %v4156_v59 = vand.u32 2147483647, %v4125_v17 }
0x118b   : > { %v4134_v16 = vsub.f32 1.0, %v4133_v63  ;;  %vm4152_vm6 = vweird.f32 %v4125_v17  ;;  %vm4092_vm15 = vcmp.ge.f32.partialorder %v10064_v1, 0.0 }
0x118c   : > { %v10087_v20 = vand.u32 2147483647, %v10083_v10  ;;  %v4159_v53 = vor.u32 1.1754944e-38, %v4158_v31  ;;  %vm4157_vm8 = vcmp.eq.f32.partialorder %v4156_v59, 8.507059e+37 }
0x118d   : > { %v4135_v2 = vmul.f32 %v8267_v48, %v4134_v16 }
0x118e   : > { %v4118_v56 = vmul.f32 0.3275911, %v10087_v20  ;;  %v4326_v38 = vsub.f32 0.0, %v10087_v20 }
0x118f   : > { %v4136_v28 = vadd.f32 %v8267_v48, %v4135_v2  ;;  %v4071_v45 = vpop.f32.mrf.mxu2 }
0x1190   : > { %v10091_v14 = vadd.f32 1.0, %v4118_v56  ;;  %v10094_v32 = vadd.f32 %v10058_v15, %v4071_v45  ;;  %v8269_v22 = vpop.eup %8268 }
0x1191   : > { %v4140_v58 = vsel %vm4139_vm3, %v8267_v48, %v4136_v28  ;;  %v4148_v4 = vmul.f32 %v8269_v22, %v4125_v17  ;;  %vm4153_vm5 = vweird.f32 %v8269_v22  ;;  %v4340_v48 = vmul.f32 1.442695, %v4332_v49 }
0x1192   : > { %v10096_v41 = vsel %vm4142_vm4, %v4144_v57, %v4140_v58  ;;  %8270 = vrcp.f32 %v10091_v14  ;;  %v10102_v27 = vmul.f32 0.70710677, %v10094_v32  ;;  %vm4154_vm7 = vmor %vm4152_vm6, %vm4153_vm5  ;;  %v4173_v16 = vand.u32 2147483648, %v10091_v14 }
0x1193   : > { %v4252_v6 = vmul.f32 1.0614054, %v10096_v41  ;;  %v4149_v26 = vsub.f32 1.0, %v4148_v4  ;;  %v4171_v35 = vand.u32 2147483647, %v10091_v14  ;;  %vm4167_vm12 = vweird.f32 %v10091_v14 }
0x1194   : > { %v10105_v60 = vand.u32 2147483647, %v10102_v27  ;;  %v4174_v4 = vor.u32 1.1754944e-38, %v4173_v16  ;;  %vm4093_vm3 = vcmp.ge.f32.partialorder %v10073_v36, 0.0 }
0x1195   : > { %v4260_v19 = vadd.f32 -1.4531521, %v4252_v6  ;;  %v4150_v37 = vmul.f32 %v8269_v22, %v4149_v26  ;;  %vm4172_vm14 = vcmp.eq.f32.partialorder %v4171_v35, 8.507059e+37 }
0x1196   : > { %v4119_v8 = vmul.f32 0.3275911, %v10105_v60 }
0x1197   : > { %v4268_v43 = vmul.f32 %v4260_v19, %v10096_v41  ;;  %v4074_v44 = vpop.f32.mrf.mxu2  ;;  %v4151_v25 = vadd.f32 %v8269_v22, %v4150_v37  ;;  %v4342_v37 = vmul.f32 1.442695, %v4333_v12 }
0x1198   : > { %v8271_v42 = vpop.eup %8270  ;;  %v10111_v11 = vadd.f32 %v10058_v15, %v4074_v44  ;;  %v10115_v3 = vadd.f32 1.0, %v4119_v8  ;;  %v10146_v44 = vmul.f32 0.5, %v10061_v62 }
0x1199   : > { %v4276_v18 = vadd.f32 1.4214138, %v4268_v43  ;;  %v4163_v29 = vmul.f32 %v8271_v42, %v10091_v14  ;;  %v4155_v21 = vsel %vm4154_vm7, %v8269_v22, %v4151_v25  ;;  %vm4168_vm11 = vweird.f32 %v8271_v42  ;;  %v7622_v22 = vld [vmem:[%s10943_s15 + $0x40] sm:$0xff]  ;;  %s10962_s15 = sld [smem:[#allocation30_spill]] }
0x119a   : > { %v10118_v7 = vmul.f32 0.70710677, %v10111_v11  ;;  %v10122_v63 = vsel %vm4157_vm8, %v4159_v53, %v4155_v21  ;;  %8272 = vrcp.f32 %v10115_v3  ;;  %vm4169_vm13 = vmor %vm4167_vm12, %vm4168_vm11  ;;  %4466 = vmatpush.bf16.msra.mxu1 %v7622_v22  ;;  %v4188_v62 = vand.u32 2147483648, %v10115_v3 }
0x119b   : > { %v4284_v39 = vmul.f32 %v4276_v18, %v10096_v41  ;;  %v4164_v17 = vsub.f32 1.0, %v4163_v29  ;;  %v4253_v24 = vmul.f32 1.0614054, %v10122_v63  ;;  %8274 = vpow2.f32 %v4340_v48 }
0x119c   : > { %v10130_v28 = vand.u32 2147483647, %v10118_v7  ;;  %v4100_v48 = vsel %vm4092_vm15, 1.0, %v8525_v47  ;;  %vm4182_vm4 = vweird.f32 %v10115_v3  ;;  %vm4095_vm15 = vcmp.ge.f32.partialorder %v10102_v27, 0.0 }
0x119d   : > { %v4292_v34 = vadd.f32 -0.28449672, %v4284_v39  ;;  %v4165_v2 = vmul.f32 %v8271_v42, %v4164_v17  ;;  %v4261_v56 = vadd.f32 -1.4531521, %v4253_v24  ;;  %v4186_v39 = vand.u32 2147483647, %v10115_v3 }
0x119e   : > { %v4120_v13 = vmul.f32 0.3275911, %v10130_v28 }
0x119f   : > { %v4300_v45 = vmul.f32 %v4292_v34, %v10096_v41  ;;  %v4166_v57 = vadd.f32 %v8271_v42, %v4165_v2  ;;  %v4269_v58 = vmul.f32 %v4261_v56, %v10122_v63  ;;  %v4076_v26 = vpop.f32.mrf.mxu2  ;;  %v4189_v56 = vor.u32 1.1754944e-38, %v4188_v62 }
0x11a0   : > { %v8273_v19 = vpop.eup %8272  ;;  %v10140_v14 = vadd.f32 1.0, %v4120_v13  ;;  %v10151_v25 = vadd.f32 %v10058_v15, %v4076_v26  ;;  %vm4187_vm6 = vcmp.eq.f32.partialorder %v4186_v39, 8.507059e+37 }
0x11a1   : > { %v4308_v6 = vadd.f32 0.2548296, %v4300_v45  ;;  %v4170_v9 = vsel %vm4169_vm13, %v8271_v42, %v4166_v57  ;;  %v4277_v31 = vadd.f32 1.4214138, %v4269_v58  ;;  %v4178_v49 = vmul.f32 %v8273_v19, %v10115_v3  ;;  %v8275_v8 = vpop.eup %8274 }
0x11a2   : > { %v10138_v59 = vsel %vm4172_vm14, %v4174_v4, %v4170_v9  ;;  %8276 = vrcp.f32 %v10140_v14  ;;  %vm4183_vm2 = vweird.f32 %v8273_v19  ;;  %v4327_v3 = vsub.f32 0.0, %v10105_v60 }
0x11a3   : > { %v4316_v40 = vmul.f32 %v4308_v6, %v10096_v41  ;;  %v4254_v43 = vmul.f32 1.0614054, %v10138_v59  ;;  %v4285_v42 = vmul.f32 %v4277_v31, %v10122_v63  ;;  %v4334_v41 = vmul.f32 %v4326_v38, %v10087_v20  ;;  %vm4184_vm5 = vmor %vm4182_vm4, %vm4183_vm2 }
0x11a4   : > { %v4179_v53 = vsub.f32 1.0, %v4178_v49  ;;  %8278 = vpow2.f32 %v4342_v37  ;;  %v10162_v20 = vmul.f32 0.70710677, %v10151_v25  ;;  %v4201_v6 = vand.u32 2147483647, %v10140_v14 }
0x11a5   : > { %v4262_v18 = vadd.f32 -1.4531521, %v4254_v43  ;;  %v4356_v30 = vmul.f32 %v8275_v8, %v4316_v40  ;;  %v4293_v29 = vadd.f32 -0.28449672, %v4285_v42  ;;  %v4344_v24 = vmul.f32 1.442695, %v4334_v41 }
0x11a6   : > { %v4180_v52 = vmul.f32 %v8273_v19, %v4179_v53  ;;  %v10166_v12 = vand.u32 2147483647, %v10162_v20  ;;  %v4101_v9 = vsel %vm4093_vm3, 1.0, %v8525_v47  ;;  %v4203_v40 = vand.u32 2147483648, %v10140_v14 }
0x11a7   : > { %v4270_v21 = vmul.f32 %v4262_v18, %v10138_v59  ;;  %v4301_v1 = vmul.f32 %v4293_v29, %v10122_v63  ;;  %v4364_v2 = vsub.f32 1.0, %v4356_v30  ;;  %8280 = vpow2.f32 %v4344_v24 }
0x11a8   : > { %v4181_v16 = vadd.f32 %v8273_v19, %v4180_v52  ;;  %v8277_v34 = vpop.eup %8276  ;;  %v4121_v43 = vmul.f32 0.3275911, %v10166_v12  ;;  %v4335_v18 = vmul.f32 %v4327_v3, %v10105_v60  ;;  %vm4197_vm8 = vweird.f32 %v10140_v14 }
0x11a9   : > { %v4278_v17 = vadd.f32 1.4214138, %v4270_v21  ;;  %v4309_v35 = vadd.f32 0.2548296, %v4301_v1  ;;  %v4193_v22 = vmul.f32 %v8277_v34, %v10140_v14  ;;  %v4372_v37 = vmul.f32 %v4364_v2, %v4100_v48 }
0x11aa   : > { %v4185_v57 = vsel %vm4184_vm5, %v8273_v19, %v4181_v16  ;;  %v8279_v58 = vpop.eup %8278  ;;  %vm4198_vm7 = vweird.f32 %v8277_v34  ;;  %v4129_v36 = vadd.f32 1.0, %v4121_v43  ;;  %v4204_v21 = vor.u32 1.1754944e-38, %v4203_v40 }
0x11ab   : > { %v4286_v45 = vmul.f32 %v4278_v17, %v10138_v59  ;;  %v4317_v4 = vmul.f32 %v4309_v35, %v10122_v63  ;;  %v4190_v13 = vsel %vm4187_vm6, %v4189_v56, %v4185_v57  ;;  %v4194_v31 = vsub.f32 1.0, %v4193_v22  ;;  %vm4199_vm11 = vmor %vm4197_vm8, %vm4198_vm7 }
0x11ac   : > { %v4255_v26 = vmul.f32 1.0614054, %v4190_v13  ;;  %v4388_v29 = vadd.f32 1.0, %v4372_v37  ;;  %8282 = vrcp.f32 %v4129_v36  ;;  %vm4202_vm12 = vcmp.eq.f32.partialorder %v4201_v6, 8.507059e+37 }
0x11ad   : > { %v4294_v38 = vadd.f32 -0.28449672, %v4286_v45  ;;  %v4357_v19 = vmul.f32 %v8279_v58, %v4317_v4  ;;  %v4195_v42 = vmul.f32 %v8277_v34, %v4194_v31  ;;  %v4381_v1 = vmul.f32 0.5, %v10069_v61  ;;  %v8281_v35 = vpop.eup %8280 }
0x11ae   : > { %v4263_v49 = vadd.f32 -1.4531521, %v4255_v26  ;;  %v4346_v60 = vmul.f32 1.442695, %v4335_v18  ;;  %v4396_v14 = vmul.f32 %v4388_v29, %v10146_v44  ;;  %vm4094_vm13 = vcmp.ge.f32.partialorder %v10083_v10, 0.0 }
0x11af   : > { %v4302_v63 = vmul.f32 %v4294_v38, %v10138_v59  ;;  %v4365_v8 = vsub.f32 1.0, %v4357_v19  ;;  %v4196_v30 = vadd.f32 %v8277_v34, %v4195_v42  ;;  %v4328_v61 = vsub.f32 0.0, %v10130_v28 }
0x11b0   : > { %v4271_v53 = vmul.f32 %v4263_v49, %v4190_v13  ;;  %8284 = vpow2.f32 %v4346_v60  ;;  %v4216_v44 = vand.u32 2147483647, %v4129_v36  ;;  %v4218_v31 = vand.u32 2147483648, %v4129_v36 }
0x11b1   : > { %v4310_v41 = vadd.f32 0.2548296, %v4302_v63  ;;  %v4373_v62 = vmul.f32 %v4365_v8, %v4101_v9  ;;  %v4200_v48 = vsel %vm4199_vm11, %v8277_v34, %v4196_v30  ;;  %v4102_v63 = vsel %vm4094_vm13, 1.0, %v8525_v47 }
0x11b2   : > { %v4279_v39 = vadd.f32 1.4214138, %v4271_v53  ;;  %v4205_v24 = vsel %vm4202_vm12, %v4204_v21, %v4200_v48  ;;  %v8283_v58 = vpop.eup %8282  ;;  %v4336_v10 = vmul.f32 %v4328_v61, %v10130_v28  ;;  %vm4212_vm2 = vweird.f32 %v4129_v36 }
0x11b3   : > { %v4318_v52 = vmul.f32 %v4310_v41, %v10138_v59  ;;  %v4389_v17 = vadd.f32 1.0, %v4373_v62  ;;  %v4256_v2 = vmul.f32 1.0614054, %v4205_v24  ;;  %v4208_v3 = vmul.f32 %v8283_v58, %v4129_v36 }
0x11b4   : > { %v4287_v16 = vmul.f32 %v4279_v39, %v4190_v13  ;;  %vm4213_vm14 = vweird.f32 %v8283_v58  ;;  %v4219_v41 = vor.u32 1.1754944e-38, %v4218_v31  ;;  %vm4217_vm4 = vcmp.eq.f32.partialorder %v4216_v44, 8.507059e+37 }
0x11b5   : > { %v4397_v56 = vmul.f32 %v4389_v17, %v4381_v1  ;;  %v4358_v45 = vmul.f32 %v8281_v35, %v4318_v52  ;;  %v4264_v22 = vadd.f32 -1.4531521, %v4256_v2  ;;  %v4209_v26 = vsub.f32 1.0, %v4208_v3  ;;  %vm4214_vm3 = vmor %vm4212_vm2, %vm4213_vm14 }
0x11b6   : > { %v4295_v57 = vadd.f32 -0.28449672, %v4287_v16  ;;  %v8285_v43 = vpop.eup %8284  ;;  %v4103_v29 = vsel %vm4095_vm15, 1.0, %v8525_v47  ;;  %v4348_v62 = vmul.f32 1.442695, %v4336_v10  ;;  %v4329_v52 = vsub.f32 0.0, %v10166_v12 }
0x11b7   : > { %v4404_v4 = vpack.c.bf16 %v4397_v56, %v4396_v14  ;;  %v4272_v34 = vmul.f32 %v4264_v22, %v4205_v24  ;;  %v4366_v6 = vsub.f32 1.0, %v4358_v45  ;;  %v4210_v40 = vmul.f32 %v8283_v58, %v4209_v26 }
0x11b8   : > { %v4303_v59 = vmul.f32 %v4295_v57, %v4190_v13  ;;  %v4382_v36 = vmul.f32 0.5, %v10080_v46  ;;  %v4383_v48 = vmul.f32 0.5, %v10094_v32  ;;  %8286 = vpow2.f32 %v4348_v62 }
0x11b9   : > { %4467 = vmatmul.bf16.vlgmr.msra.gmra.mxu1 %v4404_v4  ;;  %v4280_v38 = vadd.f32 1.4214138, %v4272_v34  ;;  %v4374_v49 = vmul.f32 %v4366_v6, %v4102_v63  ;;  %v4211_v18 = vadd.f32 %v8283_v58, %v4210_v40  ;;  %v4337_v16 = vmul.f32 %v4329_v52, %v10166_v12 }
0x11ba   : > { %v4311_v9 = vadd.f32 0.2548296, %v4303_v59  ;;  %vm4096_vm5 = vcmp.ge.f32.partialorder %v10118_v7, 0.0  ;;  %vm4097_vm6 = vcmp.ge.f32.partialorder %v10162_v20, 0.0 }
0x11bb   : > { %v4288_v19 = vmul.f32 %v4280_v38, %v4205_v24  ;;  %v4390_v27 = vadd.f32 1.0, %v4374_v49  ;;  %v4350_v22 = vmul.f32 1.442695, %v4337_v16  ;;  %v4104_v6 = vsel %vm4096_vm5, 1.0, %v8525_v47 }
0x11bc   : > { %v4319_v37 = vmul.f32 %v4311_v9, %v4190_v13  ;;  %v4215_v13 = vsel %vm4214_vm3, %v8283_v58, %v4211_v18  ;;  %v4105_v26 = vsel %vm4097_vm6, 1.0, %v8525_v47  ;;  %vm4635_vm5 = vcmask 785408  }
0x11bd   : > { %v4296_v8 = vadd.f32 -0.28449672, %v4288_v19  ;;  %v4220_v21 = vsel %vm4217_vm4, %v4219_v41, %v4215_v13  ;;  %v4398_v2 = vmul.f32 %v4390_v27, %v4382_v36  ;;  %8288 = vpow2.f32 %v4350_v22 }
0x11be   : > { %v4359_v42 = vmul.f32 %v8285_v43, %v4319_v37  ;;  %v4257_v28 = vmul.f32 1.0614054, %v4220_v21  ;;  %v8287_v4 = vpop.eup %8286  ;;  %v4384_v37 = vmul.f32 0.5, %v10111_v11  ;;  %v4385_v19 = vmul.f32 0.5, %v10151_v25 }
0x11bf   : > { %v4304_v30 = vmul.f32 %v4296_v8, %v4205_v24 }
0x11c0   : > { %v4367_v53 = vsub.f32 1.0, %v4359_v42  ;;  %v4265_v60 = vadd.f32 -1.4531521, %v4257_v28 }
0x11c1   : > { %v4312_v17 = vadd.f32 0.2548296, %v4304_v30 }
0x11c2   : > { %v4375_v39 = vmul.f32 %v4367_v53, %v4103_v29  ;;  %v4273_v14 = vmul.f32 %v4265_v60, %v4220_v21 }
0x11c3   : > { %v4320_v56 = vmul.f32 %v4312_v17, %v4205_v24  ;;  %v8289_v12 = vpop.eup %8288 }
0x11c4   : > { %v4391_v1 = vadd.f32 1.0, %v4375_v39  ;;  %v4281_v45 = vadd.f32 1.4214138, %v4273_v14 }
0x11c5   : > { %v4360_v59 = vmul.f32 %v8287_v4, %v4320_v56 }
0x11c6   : > { %v4399_v35 = vmul.f32 %v4391_v1, %v4383_v48  ;;  %v4289_v58 = vmul.f32 %v4281_v45, %v4220_v21 }
0x11c7   : > { %v4368_v34 = vsub.f32 1.0, %v4360_v59 }
0x11c8   : > { %v4405_v57 = vpack.c.bf16 %v4399_v35, %v4398_v2  ;;  %v4297_v46 = vadd.f32 -0.28449672, %v4289_v58 }
0x11c9   : > { %v4376_v9 = vmul.f32 %v4368_v34, %v4104_v6 }
0x11ca   : > { %4472 = vmatmul.bf16.gmra.mxu1 %v4405_v57  ;;  %v4305_v32 = vmul.f32 %v4297_v46, %v4220_v21 }
0x11cb   : > { %v4392_v44 = vadd.f32 1.0, %v4376_v9 }
0x11cc   : > { %v4313_v3 = vadd.f32 0.2548296, %v4305_v32 }
0x11cd   : > { %v4400_v40 = vmul.f32 %v4392_v44, %v4384_v37 }
0x11ce   : > { %v4321_v61 = vmul.f32 %v4313_v3, %v4220_v21 }
0x11d0   : > { %v4361_v24 = vmul.f32 %v8289_v12, %v4321_v61 }
0x11d2   : > { %v4369_v38 = vsub.f32 1.0, %v4361_v24 }
0x11d4   : > { %v4377_v31 = vmul.f32 %v4369_v38, %v4105_v26 }
0x11d6   : > { %v4393_v7 = vadd.f32 1.0, %v4377_v31 }
0x11d8   : > { %v4401_v43 = vmul.f32 %v4393_v7, %v4385_v19 }
0x11da   : > { %v4406_v63 = vpack.c.bf16 %v4401_v43, %v4400_v40 }
0x11dc   : > { %4477 = vmatmul.bf16.gmra.mxu1 %v4406_v63 }
0x11f2   : > { %v4079_v10 = vpop.f32.mrf.mxu2 }
0x11f3   : > { %v10201_v49 = vadd.f32 %v10058_v15, %v4079_v10 }
0x11f5   : > { %v10204_v20 = vmul.f32 0.70710677, %v10201_v49 }
0x11f7   : > { %v4114_v42 = vand.u32 2147483647, %v10204_v20  ;;  %vm4098_vm3 = vcmp.ge.f32.partialorder %v10204_v20, 0.0  ;;  %v4386_v20 = vmul.f32 0.5, %v10201_v49 }
0x11f9   : > { %v4122_v8 = vmul.f32 0.3275911, %v4114_v42  ;;  %v4330_v16 = vsub.f32 0.0, %v4114_v42 }
0x11fa   : > { %v4081_v18 = vpop.f32.mrf.mxu2 }
0x11fb   : > { %v4130_v41 = vadd.f32 1.0, %v4122_v8  ;;  %v10208_v11 = vadd.f32 %v10058_v15, %v4081_v18  ;;  %v4338_v22 = vmul.f32 %v4330_v16, %v4114_v42 }
0x11fd   : > { %8290 = vrcp.f32 %v4130_v41  ;;  %v10211_v25 = vmul.f32 0.70710677, %v10208_v11  ;;  %v4233_v52 = vand.u32 2147483648, %v4130_v41  ;;  %v4231_v39 = vand.u32 2147483647, %v4130_v41 }
0x11fe   : > { %vm4227_vm8 = vweird.f32 %v4130_v41  ;;  %v4352_v34 = vmul.f32 1.442695, %v4338_v22 }
0x11ff   : > { %v4115_v53 = vand.u32 2147483647, %v10211_v25  ;;  %v4234_v15 = vor.u32 1.1754944e-38, %v4233_v52  ;;  %vm4232_vm12 = vcmp.eq.f32.partialorder %v4231_v39, 8.507059e+37  ;;  %vm4099_vm4 = vcmp.ge.f32.partialorder %v10211_v25, 0.0 }
0x1201   : > { %v4123_v30 = vmul.f32 0.3275911, %v4115_v53  ;;  %v4331_v61 = vsub.f32 0.0, %v4115_v53 }
0x1203   : > { %v8291_v13 = vpop.eup %8290  ;;  %v4131_v62 = vadd.f32 1.0, %v4123_v30  ;;  %v4339_v38 = vmul.f32 %v4331_v61, %v4115_v53  ;;  %v4106_v53 = vsel %vm4098_vm3, 1.0, %v8525_v47 }
0x1204   : > { %v4223_v29 = vmul.f32 %v8291_v13, %v4130_v41  ;;  %vm4228_vm7 = vweird.f32 %v8291_v13 }
0x1205   : > { %8292 = vrcp.f32 %v4131_v62  ;;  %vm4229_vm11 = vmor %vm4227_vm8, %vm4228_vm7  ;;  %v4248_v14 = vand.u32 2147483648, %v4131_v62  ;;  %v4246_v45 = vand.u32 2147483647, %v4131_v62  ;;  %vm4242_vm14 = vweird.f32 %v4131_v62 }
0x1206   : > { %v4224_v21 = vsub.f32 1.0, %v4223_v29  ;;  %8294 = vpow2.f32 %v4352_v34  ;;  %v4354_v19 = vmul.f32 1.442695, %v4339_v38 }
0x1207   : > { %v4249_v59 = vor.u32 1.1754944e-38, %v4248_v14  ;;  %vm4247_vm2 = vcmp.eq.f32.partialorder %v4246_v45, 8.507059e+37 }
0x1208   : > { %v4225_v27 = vmul.f32 %v8291_v13, %v4224_v21  ;;  %8296 = vpow2.f32 %v4354_v19 }
0x120a   : > { %v4226_v28 = vadd.f32 %v8291_v13, %v4225_v27  ;;  %v4387_v27 = vmul.f32 0.5, %v10208_v11 }
0x120b   : > { %v8293_v36 = vpop.eup %8292 }
0x120c   : > { %v4230_v48 = vsel %vm4229_vm11, %v8291_v13, %v4226_v28  ;;  %v4238_v17 = vmul.f32 %v8293_v36, %v4131_v62  ;;  %vm4243_vm13 = vweird.f32 %v8293_v36  ;;  %v8295_v40 = vpop.eup %8294  ;;  %v4107_v62 = vsel %vm4099_vm4, 1.0, %v8525_v47 }
0x120d   : > { %v4235_v1 = vsel %vm4232_vm12, %v4234_v15, %v4230_v48  ;;  %vm4244_vm15 = vmor %vm4242_vm14, %vm4243_vm13  ;;  %v8009_v48 = vld [vmem:[%s10944_s5 + $0x1] ss:$0 sm:$0xff]  ;;  %s10955_s5 = sld [smem:[#allocation24_spill]] }
0x120e   : > { %v4258_v60 = vmul.f32 1.0614054, %v4235_v1  ;;  %v4239_v2 = vsub.f32 1.0, %v4238_v17  ;;  %v8297_v41 = vpop.eup %8296 }
0x1210   : > { %v4266_v35 = vadd.f32 -1.4531521, %v4258_v60  ;;  %v4240_v56 = vmul.f32 %v8293_v36, %v4239_v2 }
0x1212   : > { %v4274_v57 = vmul.f32 %v4266_v35, %v4235_v1  ;;  %v4241_v58 = vadd.f32 %v8293_v36, %v4240_v56 }
0x1214   : > { %v4282_v4 = vadd.f32 1.4214138, %v4274_v57  ;;  %v4245_v46 = vsel %vm4244_vm15, %v8293_v36, %v4241_v58 }
0x1215   : > { %v4250_v3 = vsel %vm4247_vm2, %v4249_v59, %v4245_v46 }
0x1216   : > { %v4290_v32 = vmul.f32 %v4282_v4, %v4235_v1  ;;  %v4259_v12 = vmul.f32 1.0614054, %v4250_v3 }
0x1218   : > { %v4298_v6 = vadd.f32 -0.28449672, %v4290_v32  ;;  %v4267_v9 = vadd.f32 -1.4531521, %v4259_v12 }
0x121a   : > { %v4306_v24 = vmul.f32 %v4298_v6, %v4235_v1  ;;  %v4275_v26 = vmul.f32 %v4267_v9, %v4250_v3  ;;  %v7632_v6 = vld [vmem:[%s10952_s9 + $0x10] sm:$0xff] }
0x121c   : > { %v4314_v44 = vadd.f32 0.2548296, %v4306_v24  ;;  %v4283_v31 = vadd.f32 1.4214138, %v4275_v26 }
0x121e   : > { %v4322_v37 = vmul.f32 %v4314_v44, %v4235_v1  ;;  %v4291_v7 = vmul.f32 %v4283_v31, %v4250_v3 }
0x1220   : > { %v4362_v43 = vmul.f32 %v8295_v40, %v4322_v37  ;;  %v4299_v63 = vadd.f32 -0.28449672, %v4291_v7 }
0x1222   : > { %v4307_v10 = vmul.f32 %v4299_v63, %v4250_v3  ;;  %v4370_v42 = vsub.f32 1.0, %v4362_v43 }
0x1224   : > { %v4315_v8 = vadd.f32 0.2548296, %v4307_v10  ;;  %v4378_v30 = vmul.f32 %v4370_v42, %v4106_v53 }
0x1226   : > { %v4323_v18 = vmul.f32 %v4315_v8, %v4250_v3  ;;  %v4394_v21 = vadd.f32 1.0, %v4378_v30 }
0x1228   : > { %v4363_v13 = vmul.f32 %v8297_v41, %v4323_v18  ;;  %v4402_v28 = vmul.f32 %v4394_v21, %v4386_v20 }
0x122a   : > { %v4371_v29 = vsub.f32 1.0, %v4363_v13 }
0x122c   : > { %v4379_v52 = vmul.f32 %v4371_v29, %v4107_v62  ;;  %v8527_v29 = vmov 128.0  }
0x122d   : > { %8298 = vrcp.f32 %v8527_v29 }
0x122e   : > { %v4395_v39 = vadd.f32 1.0, %v4379_v52 }
0x1230   : > { %v4403_v15 = vmul.f32 %v4395_v39, %v4387_v27 }
0x1232   : > { %v4407_v36 = vpack.c.bf16 %v4403_v15, %v4402_v28 }
0x1233   : > { %v8299_v62 = vpop.eup %8298 }
0x1234   : > { %4482 = vmatmul.bf16.gmra.mxu1 %v4407_v36  ;;  %v4645_v21 = vmul.f32 128.0, %v8299_v62  ;;  %vm4649_vm6 = vweird.f32 %v8299_v62 }
0x1236   : > { %v4468_v1 = vpop.f32.mrf.mxu1  ;;  %v4646_v52 = vsub.f32 1.0, %v4645_v21 }
0x1237   : > { %v4469_v25 = vadd.f32 %v8009_v48, %v4468_v1 }
0x1238   : > { %v4647_v20 = vmul.f32 %v8299_v62, %v4646_v52 }
0x1239   : > { %v4488_v17 = vadd.f32 %v4469_v25, %v9918_v33 }
0x123a   : > { %v4648_v27 = vadd.f32 %v8299_v62, %v4647_v20 }
0x123b   : > { %4496 = vst.msk [vmem:[%s10224_s10] sm:$0xff] %vm1195_vm1, %v4488_v17 }
0x123c   : > { %v4650_v39 = vsel %vm4649_vm6, %v8299_v62, %v4648_v27 }
0x123e   : > { %v4470_v49 = vpop.f32.mrf.mxu1 }
0x123f   : > { %v4471_v11 = vadd.f32 %v8009_v48, %v4470_v49 }
0x1241   : > { %v4489_v60 = vadd.f32 %v4471_v11, %v9923_v23 }
0x1243   : > { %4497 = vst.msk [vmem:[%s10224_s10 + $0x8] sm:$0xff] %vm1195_vm1, %v4489_v60  ;;  %v4504_v16 = vpack.c.bf16 %v4489_v60, %v4488_v17 }
0x1247   : > { %v4473_v2 = vpop.f32.mrf.mxu1 }
0x1248   : > { %v4474_v35 = vadd.f32 %v8009_v48, %v4473_v2 }
0x124a   : > { %v4490_v14 = vadd.f32 %v4474_v35, %v9928_v0 }
0x124c   : > { %4498 = vst.msk [vmem:[%s10224_s10 + $0x10] sm:$0xff] %vm1195_vm1, %v4490_v14 }
0x124f   : > { %v4475_v56 = vpop.f32.mrf.mxu1 }
0x1250   : > { %v4476_v45 = vadd.f32 %v8009_v48, %v4475_v56 }
0x1252   : > { %v4491_v33 = vadd.f32 %v4476_v45, %v9933_v5 }
0x1254   : > { %4499 = vst.msk [vmem:[%s10224_s10 + $0x18] sm:$0xff] %vm1195_vm1, %v4491_v33  ;;  %v4505_v57 = vpack.c.bf16 %v4491_v33, %v4490_v14 }
0x1259   : > { %v4478_v22 = vpop.f32.mrf.mxu1 }
0x125a   : > { %v4479_v23 = vadd.f32 %v8009_v48, %v4478_v22 }
0x125c   : > { %v4492_v58 = vadd.f32 %v4479_v23, %v9938_v51 }
0x125e   : > { %4500 = vst.msk [vmem:[%s10224_s10 + $0x20] sm:$0xff] %vm1195_vm1, %v4492_v58 }
0x1261   : > { %v4480_v4 = vpop.f32.mrf.mxu1 }
0x1262   : > { %v4481_v59 = vadd.f32 %v8009_v48, %v4480_v4 }
0x1264   : > { %v4493_v0 = vadd.f32 %v4481_v59, %v9943_v54  ;;  %v7631_v54 = vld [vmem:[%s10952_s9 + $0x8] sm:$0xff] }
0x1266   : > { %4501 = vst.msk [vmem:[%s10224_s10 + $0x28] sm:$0xff] %vm1195_vm1, %v4493_v0  ;;  %v4506_v46 = vpack.c.bf16 %v4493_v0, %v4492_v58 }
0x12b1   : > { %v4483_v32 = vpop.f32.mrf.mxu1 }
0x12b2   : > { %v4484_v34 = vadd.f32 %v8009_v48, %v4483_v32 }
0x12b4   : > { %v4494_v5 = vadd.f32 %v4484_v34, %v9948_v55  ;;  %v7630_v55 = vld [vmem:[%s10952_s9] sm:$0xff] }
0x12b6   : > { %4502 = vst.msk [vmem:[%s10224_s10 + $0x30] sm:$0xff] %vm1195_vm1, %v4494_v5 }
0x12b9   : > { %v4485_v3 = vpop.f32.mrf.mxu1 }
0x12ba   : > { %v4486_v61 = vadd.f32 %v8009_v48, %v4485_v3 }
0x12bc   : > { %v4495_v51 = vadd.f32 %v4486_v61, %v9961_v50  ;;  %v7633_v50 = vld [vmem:[%s10952_s9 + $0x18] sm:$0xff]  ;;  %s10958_s9 = sld [smem:[#allocation27_spill]] }
0x12be   : > { %4503 = vst.msk [vmem:[%s10224_s10 + $0x38] sm:$0xff] %vm1195_vm1, %v4495_v51  ;;  %v4507_v12 = vpack.c.bf16 %v4495_v51, %v4494_v5  ;;  %s10953_s10 = sld [smem:[#allocation25_spill]] }
0x12c0   : > { %4522 = vmatpush.bf16.msrb.mxu1 %v4507_v12  ;;  %4547 = vmatpush.bf16.msra.mxu3 %v4507_v12 }
0x12c1   : > { %4572 = vmatpush.bf16.msra.mxu0 %v4507_v12 }
0x12c4   : > { %4523 = vmatpush.bf16.msrb.mxu1 %v4506_v46  ;;  %4548 = vmatpush.bf16.msra.mxu3 %v4506_v46  ;;  %v7641_v11 = vld [vmem:[%s10953_s10 + $0x38] sm:$0xff]  ;;  %v7640_v60 = vld [vmem:[%s10953_s10 + $0x30] sm:$0xff]  ;;  %v7638_v2 = vld [vmem:[%s10953_s10 + $0x20] sm:$0xff] }
0x12c5   : > { %4573 = vmatpush.bf16.msra.mxu0 %v4506_v46  ;;  %v7637_v35 = vld [vmem:[%s10953_s10 + $0x18] sm:$0xff]  ;;  %v7636_v45 = vld [vmem:[%s10953_s10 + $0x10] sm:$0xff]  ;;  %v7634_v58 = vld [vmem:[%s10953_s10] sm:$0xff] }
0x12c8   : > { %4524 = vmatpush.bf16.msrb.mxu1 %v4505_v57  ;;  %4549 = vmatpush.bf16.msra.mxu3 %v4505_v57 }
0x12c9   : > { %4574 = vmatpush.bf16.msra.mxu0 %v4505_v57 }
0x12cc   : > { %4525 = vmatpush.bf16.msrb.mxu1 %v4504_v16  ;;  %4550 = vmatpush.bf16.msra.mxu3 %v4504_v16 }
0x12cd   : > { %4575 = vmatpush.bf16.msra.mxu0 %v4504_v16 }
0x12cf   : > { %7159 = vmatmul.msk.bf16.vlgmr.msra.gmra.mxu3 %vm1789_vm10, %v7631_v54  ;;  %7152 = vmatmul.msk.bf16.vlgmr.msrb.gmra.mxu1 %vm1789_vm10, %v7630_v55 }
0x12d0   : > { %4597 = vmatpush.bf16.msrb.mxu3 %v4507_v12  ;;  %7166 = vmatmul.msk.bf16.vlgmr.msra.gmra.mxu0 %vm1789_vm10, %v7632_v6 }
0x12d4   : > { %4598 = vmatpush.bf16.msrb.mxu3 %v4506_v46 }
0x12d8   : > { %4599 = vmatpush.bf16.msrb.mxu3 %v4505_v57  ;;  %v7635_v57 = vld [vmem:[%s10953_s10 + $0x8] sm:$0xff] }
0x12dc   : > { %4600 = vmatpush.bf16.msrb.mxu3 %v4504_v16  ;;  %v7639_v16 = vld [vmem:[%s10953_s10 + $0x28] sm:$0xff]  ;;  %s10959_s10 = sld [smem:[#allocation29_spill]] }
0x12df   : > { %7173 = vmatmul.msk.bf16.vlgmr.msrb.gmra.mxu3 %vm1789_vm10, %v7633_v50 }
0x12e0   : > { %4762 = vmatpush.bf16.msra.mxu3 %v7641_v11 }
0x12e4   : > { %4763 = vmatpush.bf16.msra.mxu3 %v7640_v60 }
0x12e8   : > { %4764 = vmatpush.bf16.msra.mxu3 %v7639_v16 }
0x12ec   : > { %4765 = vmatpush.bf16.msra.mxu3 %v7638_v2 }
0x12f0   : > { %4766 = vmatpush.bf16.msra.mxu3 %v7637_v35 }
0x12f4   : > { %4767 = vmatpush.bf16.msra.mxu3 %v7636_v45 }
0x12f8   : > { %4768 = vmatpush.bf16.msra.mxu3 %v7635_v57 }
0x12fc   : > { %4769 = vmatpush.bf16.msra.mxu3 %v7634_v58 }
0x134c   : > { %v4527_v19 = vpop.f32.mrf.mxu1 }
0x134d   : > { %v4577_v9 = vpop.f32.mrf.mxu0 }
0x134e   : > { %4617 = vrot.lane.b32.xlu1 %v4577_v9, %s10948_s17 }
0x1352   : > { %v4552_v24 = vpop.f32.mrf.mxu3 }
0x1353   : > { %4609 = vrot.lane.b32.xlu2 %v4552_v24, %s10877_s26 }
0x1354   : > { %v4529_v43 = vpop.f32.mrf.mxu1 }
0x1355   : > { %v4579_v38 = vpop.f32.mrf.mxu0 }
0x135a   : > { %v4554_v26 = vpop.f32.mrf.mxu3 }
0x135b   : > { %4611 = vrot.lane.b32.xlu0 %v4554_v26, %s10877_s26  ;;  %4619 = vrot.lane.b32.xlu2 %v4579_v38, %s10948_s17  ;;  %s10954_s26 = sld [smem:[#allocation23_spill]]  ;;  %v8011_v38 = vld [vmem:[%s10955_s5] ss:$0 sm:$0xff] }
0x135c   : > { %s10956_s5 = sld [smem:[#allocation28_spill]] }
0x1361   : > { %v8010_v6 = vld [vmem:[%s10954_s26] ss:$0 sm:$0xff]  ;;  %s10957_s26 = sld [smem:[#allocation26_spill]] }
0x1362   : > { %v4602_v44 = vpop.f32.mrf.mxu3  ;;  %v7224_v2 = vld [vmem:[%s10956_s5 + $0x20] sm:$0xf]  ;;  %v7647_v35 = vld [vmem:[%s10956_s5 + $0x24] sm:$0xf0]  ;;  %v7644_v58 = vld [vmem:[%s10956_s5 + $0x14] sm:$0xf] }
0x1363   : > { %4625 = vrot.lane.b32.xlu0 %v4602_v44, %s10946_s8  ;;  %v7225_v45 = vor.u32 %v7647_v35, %v7224_v2 }
0x136a   : > { %v4604_v31 = vpop.f32.mrf.mxu3 }
0x136b   : > { %4627 = vrot.lane.b32.xlu2 %v4604_v31, %s10946_s8 }
0x13ad   : > { %v4610_v37 = vpop.permute.xlu2 %4609 }
0x13ae   : > { %v4631_v41 = vsel %vm1195_vm1, %v4527_v19, %v4610_v37 }
0x13b5   : > { %v4620_v7 = vpop.permute.xlu2 %4619 }
0x13c0   : > { %v4618_v18 = vpop.permute.xlu1 %4617 }
0x13c1   : > { %v4633_v53 = vsel %vm1789_vm10, %v4631_v41, %v4618_v18 }
0x13c5   : > { %v4628_v10 = vpop.permute.xlu2 %4627 }
0x13cd   : > { %v4612_v40 = vpop.permute.xlu0 %4611 }
0x13ce   : > { %v4632_v63 = vsel %vm1195_vm1, %v4529_v43, %v4612_v40 }
0x13cf   : > { %v4634_v42 = vsel %vm1789_vm10, %v4632_v63, %v4620_v7 }
0x13d0   : > { %v4637_v8 = vsel %vm4635_vm5, %v4634_v42, %v4628_v10  ;;  %v8528_v42 = vmov 64.0  }
0x13d1   : > { %4642 = vadd.xlane.f32.xlu0 %v4637_v8 }
0x13d5   : > { %v4626_v30 = vpop.permute.xlu0 %4625 }
0x13d6   : > { %v4636_v13 = vsel %vm4635_vm5, %v4633_v53, %v4626_v30 }
0x13d7   : > { %4640 = vadd.xlane.f32.xlu1 %v4636_v13 }
0x1444   : > { %v4643_v28 = vpop.xlane.xlu0 %4642 }
0x1445   : > { %v4652_v15 = vmul.f32 %v4650_v39, %v4643_v28 }
0x1447   : > { %v4654_v36 = vsub.f32 %v4637_v8, %v4652_v15 }
0x1449   : > { %v4656_v48 = vmul.f32 %v4654_v36, %v4654_v36 }
0x144a   : > { %v4641_v1 = vpop.xlane.xlu1 %4640 }
0x144b   : > { %v4651_v25 = vmul.f32 %v4650_v39, %v4641_v1  ;;  %4659 = vadd.xlane.f32.xlu1 %v4656_v48  ;;  %v7232_v48 = vld [vmem:[%s10956_s5 + $0x30] sm:$0xf]  ;;  %v7649_v1 = vld [vmem:[%s10956_s5 + $0x34] sm:$0xf0] }
0x144d   : > { %v4653_v17 = vsub.f32 %v4636_v13, %v4651_v25  ;;  %v7648_v25 = vld [vmem:[%s10956_s5 + $0x34] sm:$0xf] }
0x144f   : > { %v4655_v49 = vmul.f32 %v4653_v17, %v4653_v17 }
0x1451   : > { %4657 = vadd.xlane.f32.xlu2 %v4655_v49  ;;  %v7234_v49 = vld [vmem:[%s10956_s5 + $0x38] sm:$0xf0] }
0x1452   : > { %v7237_v60 = vor.u32 %v7648_v25, %v7234_v49 }
0x1454   : > { %4976 = vmatpush.bf16.msra.mxu2 %v7237_v60 }
0x14be   : > { %v4660_v14 = vpop.xlane.xlu1 %4659 }
0x14bf   : > { %v4662_v56 = vmul.f32 %v4660_v14, %v4650_v39  ;;  %v7646_v14 = vld [vmem:[%s10956_s5 + $0x24] sm:$0xf] }
0x14c1   : > { %v4664_v33 = vadd.f32 1e-05, %v4662_v56 }
0x14c3   : > { %8300 = vrsqrt.f32 %v4664_v33  ;;  %vm4681_vm8 = vweird.f32 %v4664_v33 }
0x14c4   : > { %v4658_v22 = vpop.xlane.xlu2 %4657 }
0x14c5   : > { %v4661_v23 = vmul.f32 %v4658_v22, %v4650_v39  ;;  %v7216_v22 = vld [vmem:[%s10956_s5 + $0x10] sm:$0xf] }
0x14c7   : > { %v4663_v4 = vadd.f32 1e-05, %v4661_v23  ;;  %v7645_v23 = vld [vmem:[%s10956_s5 + $0x14] sm:$0xf0] }
0x14c9   : > { %v8301_v59 = vpop.eup %8300  ;;  %8302 = vrsqrt.f32 %v4663_v4  ;;  %vm4671_vm13 = vweird.f32 %v4663_v4 }
0x14ca   : > { %v4676_v0 = vmul.f32 %v8301_v59, %v4664_v33  ;;  %vm4682_vm7 = vweird.f32 %v8301_v59  ;;  %8304 = vrcp.f32 %v8528_v42  ;;  %v7226_v33 = vld [vmem:[%s10956_s5 + $0x28] sm:$0xf0] }
0x14cb   : > { %vm4683_vm11 = vmor %vm4681_vm8, %vm4682_vm7  ;;  %v7229_v57 = vor.u32 %v7646_v14, %v7226_v33 }
0x14cc   : > { %v4677_v46 = vmul.f32 %v8301_v59, %v4676_v0  ;;  %v7208_v0 = vld [vmem:[%s10956_s5] sm:$0xf] }
0x14cd   : > { %4977 = vmatpush.bf16.msra.mxu2 %v7229_v57 }
0x14ce   : > { %v4678_v32 = vmul.f32 0.5, %v4677_v46  ;;  %v7643_v46 = vld [vmem:[%s10956_s5 + $0x4] sm:$0xf0] }
0x14cf   : > { %v8303_v34 = vpop.eup %8302 }
0x14d0   : > { %v4679_v5 = vsub.f32 1.5, %v4678_v32  ;;  %v4666_v3 = vmul.f32 %v8303_v34, %v4663_v4  ;;  %vm4672_vm12 = vweird.f32 %v8303_v34  ;;  %v8305_v8 = vpop.eup %8304  ;;  %v7217_v4 = vor.u32 %v7645_v23, %v7216_v22 }
0x14d1   : > { %vm4673_vm14 = vmor %vm4671_vm13, %vm4672_vm12  ;;  %v4855_v18 = vmul.f32 64.0, %v8305_v8  ;;  %vm4859_vm15 = vweird.f32 %v8305_v8 }
0x14d2   : > { %v4680_v61 = vmul.f32 %v8301_v59, %v4679_v5  ;;  %v4667_v51 = vmul.f32 %v8303_v34, %v4666_v3  ;;  %v7210_v5 = vld [vmem:[%s10956_s5 + $0x8] sm:$0xf0] }
0x14d3   : > { %v4856_v41 = vsub.f32 1.0, %v4855_v18  ;;  %v8013_v18 = vld [vmem:[%s10958_s9] ss:$0 sm:$0xff] }
0x14d4   : > { %v4684_v12 = vsel %vm4683_vm11, %v8301_v59, %v4680_v61  ;;  %v4668_v54 = vmul.f32 0.5, %v4667_v51  ;;  %v7218_v59 = vld [vmem:[%s10956_s5 + $0x18] sm:$0xf0]  ;;  %v7209_v51 = vor.u32 %v7643_v46, %v7208_v0 }
0x14d5   : > { %v4686_v50 = vmul.f32 %v4684_v12, %v4654_v36  ;;  %v4857_v53 = vmul.f32 %v8305_v8, %v4856_v41  ;;  %v7221_v32 = vor.u32 %v7644_v58, %v7218_v59  ;;  %v7780_v58 = vld [vmem:[%s10962_s15] sm:$0xff]  }
0x14d6   : > { %v4669_v55 = vsub.f32 1.5, %v4668_v54 }
0x14d7   : > { %v4691_v26 = vmul.f32 %v8010_v6, %v4686_v50  ;;  %v4858_v30 = vadd.f32 %v8305_v8, %v4857_v53  ;;  %4978 = vmatpush.bf16.msra.mxu2 %v7221_v32  ;;  %v7782_v32 = vunpack.c.h.bf16 %v7780_v58 }
0x14d8   : > { %v4670_v9 = vmul.f32 %v8303_v34, %v4669_v55 }
0x14d9   : > { %v4696_v37 = vadd.f32 %v8011_v38, %v4691_v26  ;;  %v10286_v13 = vsel %vm4859_vm15, %v8305_v8, %v4858_v30 }
0x14da   : > { %v4674_v24 = vsel %vm4673_vm14, %v8303_v34, %v4670_v9  ;;  %v7642_v34 = vld [vmem:[%s10956_s5 + $0x4] sm:$0xf] }
0x14db   : > { %v4685_v44 = vmul.f32 %v4674_v24, %v4653_v17  ;;  %v7233_v17 = vor.u32 %v7649_v1, %v7232_v48  ;;  %v7213_v12 = vor.u32 %v7642_v34, %v7210_v5 }
0x14dd   : > { %v4690_v31 = vmul.f32 %v8010_v6, %v4685_v44  ;;  %4962 = vmatpush.bf16.msrb.mxu0 %v7233_v17  ;;  %4979 = vmatpush.bf16.msra.mxu2 %v7213_v12 }
0x14df   : > { %v4695_v19 = vadd.f32 %v8011_v38, %v4690_v31 }
0x14e1   : > { %v4697_v7 = vpack.c.bf16 %v4696_v37, %v4695_v19  ;;  %4963 = vmatpush.bf16.msrb.mxu0 %v7225_v45 }
0x14e3   : > { %4770 = vmatmul.bf16.vlgmr.msra.gmra.mxu3 %v4697_v7 }
0x14e5   : > { %4964 = vmatpush.bf16.msrb.mxu0 %v7217_v4  ;;  %v7781_v4 = vunpack.c.l.bf16 %v7780_v58 }
0x14e9   : > { %4965 = vmatpush.bf16.msrb.mxu0 %v7209_v51 }
0x1566   : > { %v10278_v40 = vpop.f32.mrf.mxu3 }
0x1567   : > { %v4848_v43 = vsel %vm1789_vm10, %v10278_v40, 0.0 }
0x1568   : > { %4849 = vadd.xlane.f32.xlu0 %v4848_v43  ;;  %v8012_v43 = vld [vmem:[%s10957_s26] ss:$0 sm:$0xff] }
0x156e   : > { %v10282_v63 = vpop.f32.mrf.mxu3 }
0x156f   : > { %v4851_v10 = vsel %vm1789_vm10, %v10282_v63, 0.0 }
0x1570   : > { %4852 = vadd.xlane.f32.xlu2 %v4851_v10 }
0x15db   : > { %v4850_v29 = vpop.xlane.xlu0 %4849 }
0x15dc   : > { %v4861_v62 = vmul.f32 %v10286_v13, %v4850_v29 }
0x15de   : > { %v10290_v21 = vsub.f32 %v10278_v40, %v4861_v62 }
0x15e0   : > { %v4865_v52 = vmul.f32 %v10290_v21, %v10290_v21 }
0x15e2   : > { %v4867_v20 = vsel %vm1789_vm10, %v4865_v52, 0.0 }
0x15e3   : > { %4868 = vadd.xlane.f32.xlu1 %v4867_v20  ;;  %v4853_v27 = vpop.xlane.xlu2 %4852 }
0x15e4   : > { %v4862_v39 = vmul.f32 %v10286_v13, %v4853_v27  ;;  %v4786_v27 = vld [vmem:[%s10959_s10] sm:$0x3] }
0x15e5   : > { %v4912_v1 = vperm.slane %v4786_v27, 1 }
0x15e6   : > { %v10297_v28 = vsub.f32 %v10282_v63, %v4862_v39  ;;  %v4911_v39 = vperm.slane %v4786_v27, 0 }
0x15e8   : > { %v4866_v15 = vmul.f32 %v10297_v28, %v10297_v28 }
0x15ea   : > { %v4870_v36 = vsel %vm1789_vm10, %v4866_v15, 0.0 }
0x15eb   : > { %4871 = vadd.xlane.f32.xlu0 %v4870_v36 }
0x1656   : > { %v4869_v11 = vpop.xlane.xlu1 %4868 }
0x1657   : > { %v4873_v16 = vmul.f32 %v4869_v11, %v10286_v13 }
0x1659   : > { %v4875_v56 = vadd.f32 1e-05, %v4873_v16 }
0x165b   : > { %8306 = vrsqrt.f32 %v4875_v56  ;;  %vm4883_vm3 = vweird.f32 %v4875_v56 }
0x165e   : > { %v4872_v3 = vpop.xlane.xlu0 %4871 }
0x165f   : > { %v4874_v61 = vmul.f32 %v4872_v3, %v10286_v13 }
0x1661   : > { %v8307_v54 = vpop.eup %8306  ;;  %v4876_v55 = vadd.f32 1e-05, %v4874_v61  ;;  %v7827_v61 = vld [vmem:[%s10962_s15 + $0x10] sm:$0xff]  }
0x1662   : > { %v4878_v6 = vmul.f32 %v8307_v54, %v4875_v56  ;;  %vm4884_vm2 = vweird.f32 %v8307_v54  ;;  %v7789_v51 = vunpack.c.l.bf16 %v7827_v61 }
0x1663   : > { %8308 = vrsqrt.f32 %v4876_v55  ;;  %vm4885_vm4 = vmor %vm4883_vm3, %vm4884_vm2  ;;  %vm4893_vm6 = vweird.f32 %v4876_v55 }
0x1664   : > { %v4879_v50 = vmul.f32 %v8307_v54, %v4878_v6 }
0x1666   : > { %v4880_v9 = vmul.f32 0.5, %v4879_v50 }
0x1668   : > { %v4881_v24 = vsub.f32 1.5, %v4880_v9 }
0x1669   : > { %v8309_v38 = vpop.eup %8308 }
0x166a   : > { %v4882_v26 = vmul.f32 %v8307_v54, %v4881_v24  ;;  %v4888_v44 = vmul.f32 %v8309_v38, %v4876_v55  ;;  %vm4894_vm5 = vweird.f32 %v8309_v38 }
0x166b   : > { %vm4895_vm7 = vmor %vm4893_vm6, %vm4894_vm5 }
0x166c   : > { %v4889_v31 = vmul.f32 %v8309_v38, %v4888_v44  ;;  %v4886_v37 = vsel %vm4885_vm4, %v8307_v54, %v4882_v26  ;;  %v7826_v54 = vld [vmem:[%s10962_s15 + $0x8] sm:$0xff]  }
0x166d   : > { %v4897_v10 = vmul.f32 %v4886_v37, %v10290_v21  ;;  %v7785_v50 = vunpack.c.l.bf16 %v7826_v54 }
0x166e   : > { %v4890_v19 = vmul.f32 0.5, %v4889_v31  ;;  %v7786_v31 = vunpack.c.h.bf16 %v7826_v54 }
0x166f   : > { %v4902_v41 = vmul.f32 %v8012_v43, %v4897_v10 }
0x1670   : > { %v4891_v7 = vsub.f32 1.5, %v4890_v19 }
0x1671   : > { %v4907_v29 = vadd.f32 %v8013_v18, %v4902_v41 }
0x1672   : > { %v4892_v42 = vmul.f32 %v8309_v38, %v4891_v7 }
0x1674   : > { %v4896_v8 = vsel %vm4895_vm7, %v8309_v38, %v4892_v42  ;;  %v7790_v38 = vunpack.c.h.bf16 %v7827_v61 }
0x1675   : > { %v4898_v53 = vmul.f32 %v4896_v8, %v10297_v28 }
0x1677   : > { %v4903_v30 = vmul.f32 %v8012_v43, %v4898_v53  ;;  %v7828_v43 = vld [vmem:[%s10962_s15 + $0x18] sm:$0xff]  }
0x1678   : > { %v7793_v8 = vunpack.c.l.bf16 %v7828_v43 }
0x1679   : > { %v4908_v62 = vadd.f32 %v8013_v18, %v4903_v30  ;;  %v7794_v30 = vunpack.c.h.bf16 %v7828_v43 }
0x167b   : > { %v4909_v52 = vpack.c.bf16 %v4908_v62, %v4907_v29 }
0x167d   : > { %7238 = vmatmul.msk.bf16.vlgmr.msrb.gmra.mxu0 %vm1789_vm10, %v4909_v52  ;;  %7239 = vmatmul.msk.bf16.vlgmr.msra.gmra.mxu2 %vm1789_vm10, %v4909_v52 }
0x16fa   : > { %v4967_v20 = vpop.f32.mrf.mxu0 }
0x16fb   : > { %v4968_v36 = vadd.f32 %v4967_v20, %v4911_v39 }
0x1700   : > { %v4981_v21 = vpop.f32.mrf.mxu2 }
0x1701   : > { %v4982_v17 = vadd.f32 %v4981_v21, %v4912_v1 }
0x1702   : > { %v4969_v15 = vpop.f32.mrf.mxu0 }
0x1703   : > { %v4970_v48 = vadd.f32 %v4969_v15, %v4911_v39 }
0x1705   : > { %v4986_v25 = vpack.c.bf16 %v4970_v48, %v4968_v36 }
0x1707   : > { %5055 = vrot.lane.b32.xlu0 %v4986_v25, %s10945_s3  ;;  %5057 = vrot.lane.b32.xlu1 %v4986_v25, %s10947_s13 }
0x1708   : > { %4991 = vrot.lane.b32.xlu2 %v4986_v25, %s10948_s17  ;;  %v4983_v28 = vpop.f32.mrf.mxu2 }
0x1709   : > { %v4984_v49 = vadd.f32 %v4983_v28, %v4912_v1 }
0x170b   : > { %v10330_v11 = vpack.c.bf16 %v4984_v49, %v4982_v17 }
0x170d   : > { %5046 = vmatpush.bf16.msrb.mxu2 %v10330_v11 }
0x170f   : > { %5196 = vrot.lane.b32.xlu0 %v4986_v25, %s10949_s16  ;;  %5125 = vrot.lane.b32.xlu1 %v4986_v25, %s10946_s8 }
0x1710   : > { %5127 = vrot.lane.b32.xlu2 %v4986_v25, %s10960_s12 }
0x1718   : > { %5194 = vrot.lane.b32.xlu2 %v4986_v25, %s10961_s14 }
0x1762   : > { %v4992_v60 = vpop.permute.xlu2 %4991 }
0x1763   : > { %v4997_v16 = vsel %vm1735_vm9, %v4992_v60, 0 }
0x1764   : > { %5006 = vmatpush.bf16.xpose.msra.mxu0 %v4997_v16 }
0x176a   : > { %v5128_v2 = vpop.permute.xlu2 %5127 }
0x176b   : > { %v5133_v35 = vsel %vm1735_vm9, %v5128_v2, 0  ;;  %7240 = vmatmul.msk.bf16.vlgmr.msra.gmra.mxu0 %vm1735_vm9, %v4986_v25 }
0x176c   : > { %5142 = vmatpush.bf16.xpose.msrb.mxu0 %v5133_v35 }
0x1772   : > { %v5195_v23 = vpop.permute.xlu2 %5194 }
0x1779   : > { %v5056_v14 = vpop.permute.xlu0 %5055  ;;  %v5058_v56 = vpop.permute.xlu1 %5057 }
0x177a   : > { %v5063_v45 = vsel %vm1735_vm9, %v5058_v56, 0 }
0x177b   : > { %5072 = vmatpush.bf16.xpose.msrb.mxu3 %v5063_v45 }
0x1781   : > { %v5197_v33 = vpop.permute.xlu0 %5196  ;;  %v5126_v57 = vpop.permute.xlu1 %5125 }
0x1782   : > { %v5202_v22 = vsel %vm1735_vm9, %v5197_v33, 0  ;;  %7242 = vmatmul.msk.bf16.vlgmr.msrb.gmra.mxu3 %vm1735_vm9, %v5056_v14  ;;  %7244 = vmatmul.msk.bf16.vlgmr.msrb.gmra.mxu0 %vm1735_vm9, %v5126_v57 }
0x1783   : > { %5211 = vmatpush.bf16.xpose.msra.mxu3 %v5202_v22 }
0x1792   : > { %7246 = vmatmul.msk.bf16.vlgmr.msra.gmra.mxu3 %vm1735_vm9, %v5195_v23 }
0x17e8   : > { %v5008_v59 = vpop.f32.mrf.mxu0 }
0x17e9   : > { %v5009_v0 = vadd.f32 %v7781_v4, %v5008_v59 }
0x17eb   : > { %v5013_v46 = vsel %vm1735_vm9, %v5009_v0, -inf }
0x17ec   : > { %5014 = vmax.xlane.f32.xlu0 %v5013_v46 }
0x17f0   : > { %v5010_v34 = vpop.f32.mrf.mxu0 }
0x17f1   : > { %v5011_v5 = vadd.f32 %v7782_v32, %v5010_v34 }
0x17f3   : > { %v5016_v3 = vsel %vm1735_vm9, %v5011_v5, -inf }
0x17f4   : > { %5017 = vmax.xlane.f32.xlu1 %v5016_v3 }
0x17ff   : > { %v5144_v12 = vpop.f32.mrf.mxu0 }
0x1800   : > { %v5145_v55 = vadd.f32 %v7789_v51, %v5144_v12 }
0x1802   : > { %v5149_v6 = vsel %vm1735_vm9, %v5145_v55, -inf }
0x1803   : > { %5150 = vmax.xlane.f32.xlu1 %v5149_v6 }
0x1805   : > { %v5074_v9 = vpop.f32.mrf.mxu3 }
0x1806   : > { %v5075_v24 = vadd.f32 %v7785_v50, %v5074_v9 }
0x1807   : > { %v5146_v44 = vpop.f32.mrf.mxu0 }
0x1808   : > { %v5079_v26 = vsel %vm1735_vm9, %v5075_v24, -inf  ;;  %v5147_v37 = vadd.f32 %v7790_v38, %v5146_v44 }
0x1809   : > { %5080 = vmax.xlane.f32.xlu2 %v5079_v26 }
0x180a   : > { %v5152_v42 = vsel %vm1735_vm9, %v5147_v37, -inf }
0x180d   : > { %v5076_v19 = vpop.f32.mrf.mxu3 }
0x180e   : > { %v5077_v7 = vadd.f32 %v7786_v31, %v5076_v19 }
0x1810   : > { %v5082_v10 = vsel %vm1735_vm9, %v5077_v7, -inf }
0x1811   : > { %5083 = vmax.xlane.f32.xlu0 %v5082_v10  ;;  %5153 = vmax.xlane.f32.xlu2 %v5152_v42 }
0x1815   : > { %v5213_v18 = vpop.f32.mrf.mxu3 }
0x1816   : > { %v5214_v41 = vadd.f32 %v7793_v8, %v5213_v18 }
0x1818   : > { %v5218_v53 = vsel %vm1735_vm9, %v5214_v41, -inf }
0x1819   : > { %5219 = vmax.xlane.f32.xlu0 %v5218_v53 }
0x181d   : > { %v5215_v29 = vpop.f32.mrf.mxu3 }
0x181e   : > { %v5216_v62 = vadd.f32 %v7794_v30, %v5215_v29 }
0x1820   : > { %v5221_v52 = vsel %vm1735_vm9, %v5216_v62, -inf }
0x1821   : > { %5222 = vmax.xlane.f32.xlu1 %v5221_v52 }
0x182d   : > { %5103 = vrot.lane.b32.xlu0 %v10330_v11, %s10945_s3 }
0x185f   : > { %v5015_v20 = vpop.xlane.xlu0 %5014 }
0x1860   : > { %v5019_v27 = vsub.f32 %v5009_v0, %v5015_v20 }
0x1862   : > { %v5021_v39 = vmul.f32 1.442695, %v5019_v27 }
0x1864   : > { %8310 = vpow2.f32 %v5021_v39 }
0x1867   : > { %v5018_v21 = vpop.xlane.xlu1 %5017 }
0x1868   : > { %v5020_v15 = vsub.f32 %v5011_v5, %v5018_v21 }
0x186a   : > { %v8311_v36 = vpop.eup %8310  ;;  %v5023_v48 = vmul.f32 1.442695, %v5020_v15 }
0x186b   : > { %v5025_v1 = vsel %vm1735_vm9, %v8311_v36, 0.0 }
0x186c   : > { %8312 = vpow2.f32 %v5023_v48  ;;  %5026 = vadd.xlane.f32.xlu2 %v5025_v1 }
0x1872   : > { %v8313_v25 = vpop.eup %8312 }
0x1873   : > { %v5028_v28 = vsel %vm1735_vm9, %v8313_v25, 0.0 }
0x1874   : > { %5029 = vadd.xlane.f32.xlu0 %v5028_v28 }
0x1876   : > { %v5151_v17 = vpop.xlane.xlu1 %5150 }
0x1877   : > { %v5155_v16 = vsub.f32 %v5145_v55, %v5151_v17 }
0x1879   : > { %v5157_v35 = vmul.f32 1.442695, %v5155_v16 }
0x187c   : > { %v5081_v49 = vpop.xlane.xlu2 %5080 }
0x187d   : > { %v5085_v60 = vsub.f32 %v5075_v24, %v5081_v49 }
0x187f   : > { %v5087_v2 = vmul.f32 1.442695, %v5085_v60 }
0x1881   : > { %8314 = vpow2.f32 %v5087_v2 }
0x1882   : > { %8316 = vpow2.f32 %v5157_v35 }
0x1884   : > { %v5084_v14 = vpop.xlane.xlu0 %5083  ;;  %v5154_v56 = vpop.xlane.xlu2 %5153 }
0x1885   : > { %v5086_v45 = vsub.f32 %v5077_v7, %v5084_v14  ;;  %v5156_v22 = vsub.f32 %v5147_v37, %v5154_v56 }
0x1887   : > { %v8315_v33 = vpop.eup %8314  ;;  %v5089_v57 = vmul.f32 1.442695, %v5086_v45  ;;  %v5159_v58 = vmul.f32 1.442695, %v5156_v22 }
0x1888   : > { %5241 = vrot.lane.b32.xlu0 %v10330_v11, %s10961_s14  ;;  %v5091_v23 = vsel %vm1735_vm9, %v8315_v33, 0.0  ;;  %v10364_v59 = vpop.eup %8316 }
0x1889   : > { %8318 = vpow2.f32 %v5089_v57  ;;  %5092 = vadd.xlane.f32.xlu1 %v5091_v23  ;;  %v5161_v5 = vsel %vm1735_vm9, %v10364_v59, 0.0  ;;  %v7653_v23 = vld [vmem:[%s10963_s19 + $0x18] sm:$0xff] }
0x188a   : > { %8320 = vpow2.f32 %v5159_v58  ;;  %5323 = vmatpush.bf16.msra.mxu0 %v7653_v23  ;;  %v7652_v58 = vld [vmem:[%s10963_s19 + $0x10] sm:$0xff]  ;;  %v7654_v23 = vld [vmem:[%s10965_s21 + $0x4] sm:$0xf] }
0x188c   : > { %v5220_v4 = vpop.xlane.xlu0 %5219 }
0x188d   : > { %v5224_v0 = vsub.f32 %v5214_v41, %v5220_v4  ;;  %v7651_v4 = vld [vmem:[%s10963_s19 + $0x8] sm:$0xff] }
0x188e   : > { %5324 = vmatpush.bf16.msra.mxu0 %v7652_v58  ;;  %v7269_v58 = vld [vmem:[%s10965_s21 + $0x8] sm:$0xf0] }
0x188f   : > { %v8319_v46 = vpop.eup %8318  ;;  %v5226_v32 = vmul.f32 1.442695, %v5224_v0 }
0x1890   : > { %v5094_v34 = vsel %vm1735_vm9, %v8319_v46, 0.0  ;;  %v8321_v61 = vpop.eup %8320 }
0x1891   : > { %8322 = vpow2.f32 %v5226_v32  ;;  %5095 = vadd.xlane.f32.xlu2 %v5094_v34  ;;  %5162 = vadd.xlane.f32.xlu1 %v5161_v5  ;;  %v5164_v6 = vsel %vm1735_vm9, %v8321_v61, 0.0 }
0x1892   : > { %5325 = vmatpush.bf16.msra.mxu0 %v7651_v4 }
0x1894   : > { %v5223_v3 = vpop.xlane.xlu1 %5222 }
0x1895   : > { %v5225_v51 = vsub.f32 %v5216_v62, %v5223_v3 }
0x1897   : > { %v8323_v12 = vpop.eup %8322  ;;  %v5228_v54 = vmul.f32 1.442695, %v5225_v51 }
0x1898   : > { %v5230_v55 = vsel %vm1735_vm9, %v8323_v12, 0.0 }
0x1899   : > { %8324 = vpow2.f32 %v5228_v54  ;;  %5231 = vadd.xlane.f32.xlu1 %v5230_v55  ;;  %5165 = vadd.xlane.f32.xlu2 %v5164_v6 }
0x189f   : > { %v8325_v50 = vpop.eup %8324  ;;  %v5104_v9 = vpop.permute.xlu0 %5103 }
0x18a0   : > { %5116 = vmatpush.bf16.msra.mxu1 %v5104_v9  ;;  %v5233_v24 = vsel %vm1735_vm9, %v8325_v50, 0.0 }
0x18a1   : > { %5234 = vadd.xlane.f32.xlu2 %v5233_v24 }
0x18b2   : > { %5172 = vrot.lane.b32.xlu1 %v10330_v11, %s10946_s8 }
0x18df   : > { %v5027_v38 = vpop.xlane.xlu2 %5026 }
0x18e0   : > { %8326 = vrcp.f32 %v5027_v38 }
0x18e6   : > { %v8327_v44 = vpop.eup %8326 }
0x18e7   : > { %v5030_v26 = vpop.xlane.xlu0 %5029  ;;  %v5033_v37 = vmul.f32 %v8327_v44, %v8311_v36 }
0x18e8   : > { %8328 = vrcp.f32 %v5030_v26  ;;  %v8014_v26 = vld [vmem:[%s10964_s20] ss:$0 sm:$0xff] }
0x18ee   : > { %v8329_v31 = vpop.eup %8328 }
0x18ef   : > { %v5034_v19 = vmul.f32 %v8329_v31, %v8313_v25 }
0x18f1   : > { %v5035_v7 = vpack.c.bf16 %v5034_v19, %v5033_v37 }
0x18f3   : > { %7241 = vmatmul.msk.bf16.vlgmr.msrb.gmra.mxu2 %vm1735_vm9, %v5035_v7 }
0x18fa   : > { %v5242_v43 = vpop.permute.xlu0 %5241 }
0x18fb   : > { %5254 = vmatpush.bf16.msrb.mxu1 %v5242_v43 }
0x18fc   : > { %v5093_v10 = vpop.xlane.xlu1 %5092 }
0x18fd   : > { %8330 = vrcp.f32 %v5093_v10 }
0x1903   : > { %v8331_v18 = vpop.eup %8330 }
0x1904   : > { %v5096_v42 = vpop.xlane.xlu2 %5095  ;;  %v5163_v8 = vpop.xlane.xlu1 %5162  ;;  %v5099_v53 = vmul.f32 %v8331_v18, %v8315_v33 }
0x1905   : > { %8332 = vrcp.f32 %v5096_v42 }
0x190b   : > { %v8333_v11 = vpop.eup %8332 }
0x190c   : > { %v5166_v41 = vpop.xlane.xlu2 %5165  ;;  %v5100_v30 = vmul.f32 %v8333_v11, %v8319_v46  ;;  %v5232_v62 = vpop.xlane.xlu1 %5231 }
0x190d   : > { %8334 = vrcp.f32 %v5232_v62 }
0x190e   : > { %v5101_v29 = vpack.c.bf16 %v5100_v30, %v5099_v53 }
0x1910   : > { %7243 = vmatmul.msk.bf16.vlgmr.msra.gmra.mxu1 %vm1735_vm9, %v5101_v29 }
0x1913   : > { %v8335_v20 = vpop.eup %8334 }
0x1914   : > { %v5235_v52 = vpop.xlane.xlu2 %5234  ;;  %v5238_v39 = vmul.f32 %v8335_v20, %v8323_v12  ;;  %v7661_v20 = vld [vmem:[%s10965_s21 + $0x34] sm:$0xf0] }
0x1915   : > { %8336 = vrcp.f32 %v5235_v52  ;;  %v7291_v52 = vld [vmem:[%s10965_s21 + $0x30] sm:$0xf] }
0x1916   : > { %8338 = vrcp.f32 %v5166_v41 }
0x1917   : > { %8340 = vrcp.f32 %v5163_v8 }
0x191b   : > { %v8337_v27 = vpop.eup %8336 }
0x191c   : > { %v5239_v21 = vmul.f32 %v8337_v27, %v8325_v50  ;;  %v8339_v36 = vpop.eup %8338  ;;  %v7660_v27 = vld [vmem:[%s10965_s21 + $0x34] sm:$0xf] }
0x191d   : > { %v8341_v48 = vpop.eup %8340  ;;  %v5170_v1 = vmul.f32 %v8339_v36, %v8321_v61 }
0x191e   : > { %v5240_v15 = vpack.c.bf16 %v5239_v21, %v5238_v39  ;;  %v5169_v25 = vmul.f32 %v8341_v48, %v10364_v59  ;;  %v7650_v59 = vld [vmem:[%s10963_s19] sm:$0xff]  ;;  %v7292_v39 = vor.u32 %v7661_v20, %v7291_v52  ;;  %v7293_v21 = vld [vmem:[%s10965_s21 + $0x38] sm:$0xf0] }
0x191f   : > { %5326 = vmatpush.bf16.msra.mxu0 %v7650_v59  ;;  %v7296_v36 = vor.u32 %v7660_v27, %v7293_v21 }
0x1920   : > { %7247 = vmatmul.msk.bf16.vlgmr.msrb.gmra.mxu1 %vm1735_vm9, %v5240_v15  ;;  %v5171_v17 = vpack.c.bf16 %v5170_v1, %v5169_v25  ;;  %v7283_v1 = vld [vmem:[%s10965_s21 + $0x20] sm:$0xf]  ;;  %v7659_v25 = vld [vmem:[%s10965_s21 + $0x24] sm:$0xf0] }
0x1921   : > { %5461 = vmatpush.bf16.msrb.mxu3 %v7296_v36 }
0x1924   : > { %v5173_v28 = vpop.permute.xlu1 %5172 }
0x1925   : > { %5185 = vmatpush.bf16.msra.mxu2 %v5173_v28  ;;  %v7658_v28 = vld [vmem:[%s10965_s21 + $0x24] sm:$0xf] }
0x1928   : > { %7245 = vmatmul.msk.bf16.vlgmr.msra.gmra.mxu2 %vm1735_vm9, %v5171_v17 }
0x1929   : > { %5447 = vmatpush.bf16.msrb.mxu2 %v7292_v39 }
0x1976   : > { %v5048_v2 = vpop.f32.mrf.mxu2 }
0x197e   : > { %v5050_v35 = vpop.f32.mrf.mxu2 }
0x198d   : > { %v5118_v49 = vpop.f32.mrf.mxu1 }
0x1995   : > { %v5120_v60 = vpop.f32.mrf.mxu1 }
0x1996   : > { %v7961_v16 = vpack.i.bf16 %v5120_v60, %v5118_v49  ;;  %v7284_v49 = vor.u32 %v7659_v25, %v7283_v1  ;;  %v7285_v60 = vld [vmem:[%s10965_s21 + $0x28] sm:$0xf0] }
0x1998   : > { %7962 = vrot.lane.b32.xlu2 %v7961_v16, %s10949_s16  ;;  %v7288_v16 = vor.u32 %v7658_v28, %v7285_v60  ;;  %5448 = vmatpush.bf16.msrb.mxu2 %v7284_v49  ;;  %v7677_v49 = vld [vmem:[%s10925_s4 + $0x78] sm:$0xff] }
0x1999   : > { %5746 = vmatpush.bf16.msrb.mxu0 %v7677_v49 }
0x199a   : > { %5462 = vmatpush.bf16.msrb.mxu3 %v7288_v16 }
0x199d   : > { %v5256_v56 = vpop.f32.mrf.mxu1 }
0x19a5   : > { %v5258_v57 = vpop.f32.mrf.mxu1 }
0x19a6   : > { %v7971_v22 = vpack.i.bf16 %v5258_v57, %v5256_v56  ;;  %v7655_v57 = vld [vmem:[%s10965_s21 + $0x4] sm:$0xf0] }
0x19ab   : > { %v5187_v14 = vpop.f32.mrf.mxu2 }
0x19b3   : > { %v5189_v45 = vpop.f32.mrf.mxu2 }
0x19b4   : > { %v7966_v33 = vpack.i.bf16 %v5189_v45, %v5187_v14  ;;  %v7656_v14 = vld [vmem:[%s10965_s21 + $0x14] sm:$0xf]  ;;  %v7277_v45 = vld [vmem:[%s10965_s21 + $0x18] sm:$0xf0] }
0x19b6   : > { %7967 = vrot.lane.b32.xlu0 %v7966_v33, %s10960_s12  ;;  %v7267_v33 = vld [vmem:[%s10965_s21] sm:$0xf] }
0x19be   : > { %7972 = vrot.lane.b32.xlu0 %v7971_v22, %s10947_s13  ;;  %v7280_v22 = vor.u32 %v7656_v14, %v7277_v45 }
0x19c0   : > { %5463 = vmatpush.bf16.msrb.mxu3 %v7280_v22 }
0x19f2   : > { %v7963_v46 = vpop.permute.xlu2 %7962 }
0x19f3   : > { %v7965_v32 = vunpack.i.h.bf16 %v7963_v46  ;;  %v7964_v34 = vunpack.i.l.bf16 %v7963_v46  ;;  %v7272_v46 = vor.u32 %v7654_v23, %v7269_v58  ;;  %v7667_v58 = vld [vmem:[%s10925_s4 + $0x28] sm:$0xff] }
0x19f5   : > { %v5286_v51 = vsel %vm1735_vm9, %v5050_v35, %v7965_v32  ;;  %v5285_v12 = vsel %vm1735_vm9, %v5048_v2, %v7964_v34  ;;  %v7275_v2 = vld [vmem:[%s10965_s21 + $0x10] sm:$0xf]  ;;  %v7657_v35 = vld [vmem:[%s10965_s21 + $0x14] sm:$0xf0]  ;;  %5464 = vmatpush.bf16.msrb.mxu3 %v7272_v46 }
0x19f6   : > { %v7276_v56 = vor.u32 %v7657_v35, %v7275_v2  ;;  %v7668_v2 = vld [vmem:[%s10925_s4 + $0x30] sm:$0xff] }
0x19f7   : > { %v7676_v35 = vld [vmem:[%s10925_s4 + $0x70] sm:$0xff] }
0x19f8   : > { %5449 = vmatpush.bf16.msrb.mxu2 %v7276_v56  ;;  %5747 = vmatpush.bf16.msrb.mxu0 %v7676_v35 }
0x1a28   : > { %v7968_v0 = vpop.permute.xlu0 %7967 }
0x1a29   : > { %v7970_v5 = vunpack.i.h.bf16 %v7968_v0  ;;  %v7969_v3 = vunpack.i.l.bf16 %v7968_v0  ;;  %v7268_v0 = vor.u32 %v7655_v57, %v7267_v33 }
0x1a2b   : > { %v5287_v6 = vsel %vm1195_vm1, %v5285_v12, %v7969_v3  ;;  %v5288_v50 = vsel %vm1195_vm1, %v5286_v51, %v7970_v5  ;;  %5450 = vmatpush.bf16.msrb.mxu2 %v7268_v0 }
0x1a30   : > { %v7973_v61 = vpop.permute.xlu0 %7972 }
0x1a31   : > { %v7975_v54 = vunpack.i.h.bf16 %v7973_v61  ;;  %v7974_v55 = vunpack.i.l.bf16 %v7973_v61 }
0x1a33   : > { %v5289_v9 = vsel %vm1151_vm0, %v5287_v6, %v7974_v55  ;;  %v5290_v24 = vsel %vm1151_vm0, %v5288_v50, %v7975_v54 }
0x1a34   : > { %v5291_v38 = vpack.c.bf16 %v5290_v24, %v5289_v9 }
0x1a36   : > { %7264 = vmatmul.msk.bf16.vlgmr.msra.gmra.mxu0 %vm1789_vm10, %v5291_v38  ;;  %v8015_v38 = vld [vmem:[%s10966_s24] ss:$0 sm:$0xff] }
0x1ab3   : > { %v5328_v44 = vpop.f32.mrf.mxu0 }
0x1ab4   : > { %v5333_v31 = vadd.f32 %v5328_v44, %v10278_v40 }
0x1ab6   : > { %v10395_v37 = vadd.f32 %v8014_v26, %v5333_v31 }
0x1ab8   : > { %v5340_v19 = vsel %vm1789_vm10, %v10395_v37, 0.0 }
0x1ab9   : > { %5341 = vadd.xlane.f32.xlu1 %v5340_v19  ;;  %v8016_v19 = vld [vmem:[%s10967_s25] ss:$0 sm:$0xff] }
0x1abb   : > { %v5330_v7 = vpop.f32.mrf.mxu0 }
0x1abc   : > { %v5334_v43 = vadd.f32 %v5330_v7, %v10282_v63 }
0x1abe   : > { %v10400_v10 = vadd.f32 %v8014_v26, %v5334_v43 }
0x1ac0   : > { %v5343_v42 = vsel %vm1789_vm10, %v10400_v10, 0.0 }
0x1ac1   : > { %5344 = vadd.xlane.f32.xlu0 %v5343_v42 }
0x1b2c   : > { %v5342_v8 = vpop.xlane.xlu1 %5341 }
0x1b2d   : > { %v5346_v40 = vmul.f32 %v5342_v8, %v10286_v13 }
0x1b2f   : > { %v10406_v18 = vsub.f32 %v10395_v37, %v5346_v40 }
0x1b31   : > { %v5350_v11 = vmul.f32 %v10406_v18, %v10406_v18 }
0x1b33   : > { %v5352_v63 = vsel %vm1789_vm10, %v5350_v11, 0.0 }
0x1b34   : > { %5353 = vadd.xlane.f32.xlu2 %v5352_v63  ;;  %v5345_v41 = vpop.xlane.xlu0 %5344  ;;  %v4814_v63 = vld [vmem:[%s10968_s29] sm:$0x3] }
0x1b35   : > { %v5347_v53 = vmul.f32 %v5345_v41, %v10286_v13  ;;  %v5396_v41 = vperm.slane %v4814_v63, 0 }
0x1b37   : > { %v10413_v30 = vsub.f32 %v10400_v10, %v5347_v53  ;;  %v5397_v53 = vperm.slane %v4814_v63, 1 }
0x1b39   : > { %v5351_v29 = vmul.f32 %v10413_v30, %v10413_v30 }
0x1b3b   : > { %v5355_v62 = vsel %vm1789_vm10, %v5351_v29, 0.0 }
0x1b3c   : > { %5356 = vadd.xlane.f32.xlu1 %v5355_v62 }
0x1ba7   : > { %v5354_v15 = vpop.xlane.xlu2 %5353 }
0x1ba8   : > { %v5358_v48 = vmul.f32 %v5354_v15, %v10286_v13 }
0x1baa   : > { %v5360_v17 = vadd.f32 1e-05, %v5358_v48 }
0x1bac   : > { %8342 = vrsqrt.f32 %v5360_v17  ;;  %vm5368_vm11 = vweird.f32 %v5360_v17 }
0x1baf   : > { %v5357_v4 = vpop.xlane.xlu1 %5356 }
0x1bb0   : > { %v5359_v59 = vmul.f32 %v5357_v4, %v10286_v13  ;;  %v7675_v4 = vld [vmem:[%s10925_s4 + $0x68] sm:$0xff] }
0x1bb1   : > { %5748 = vmatpush.bf16.msrb.mxu0 %v7675_v4 }
0x1bb2   : > { %v8343_v32 = vpop.eup %8342  ;;  %v5361_v34 = vadd.f32 1e-05, %v5359_v59 }
0x1bb3   : > { %v5363_v5 = vmul.f32 %v8343_v32, %v5360_v17  ;;  %vm5369_vm8 = vweird.f32 %v8343_v32  ;;  %v7669_v17 = vld [vmem:[%s10925_s4 + $0x38] sm:$0xff] }
0x1bb4   : > { %8344 = vrsqrt.f32 %v5361_v34  ;;  %vm5370_vm12 = vmor %vm5368_vm11, %vm5369_vm8  ;;  %vm5378_vm14 = vweird.f32 %v5361_v34  ;;  %5732 = vmatpush.bf16.msra.mxu1 %v7669_v17 }
0x1bb5   : > { %v5364_v3 = vmul.f32 %v8343_v32, %v5363_v5 }
0x1bb7   : > { %v5365_v61 = vmul.f32 0.5, %v5364_v3 }
0x1bb8   : > { %5733 = vmatpush.bf16.msra.mxu1 %v7668_v2 }
0x1bb9   : > { %v5366_v51 = vsub.f32 1.5, %v5365_v61 }
0x1bba   : > { %v8345_v12 = vpop.eup %8344 }
0x1bbb   : > { %v5367_v54 = vmul.f32 %v8343_v32, %v5366_v51  ;;  %v5373_v55 = vmul.f32 %v8345_v12, %v5361_v34  ;;  %vm5379_vm13 = vweird.f32 %v8345_v12 }
0x1bbc   : > { %vm5380_vm15 = vmor %vm5378_vm14, %vm5379_vm13  ;;  %5734 = vmatpush.bf16.msra.mxu1 %v7667_v58 }
0x1bbd   : > { %v5374_v6 = vmul.f32 %v8345_v12, %v5373_v55  ;;  %v5371_v50 = vsel %vm5370_vm12, %v8343_v32, %v5367_v54 }
0x1bbe   : > { %v5382_v26 = vmul.f32 %v5371_v50, %v10406_v18  ;;  %v7674_v50 = vld [vmem:[%s10925_s4 + $0x60] sm:$0xff] }
0x1bbf   : > { %v5375_v9 = vmul.f32 0.5, %v5374_v6  ;;  %v7666_v6 = vld [vmem:[%s10925_s4 + $0x20] sm:$0xff]  ;;  %5749 = vmatpush.bf16.msrb.mxu0 %v7674_v50 }
0x1bc0   : > { %v5387_v7 = vmul.f32 %v8015_v38, %v5382_v26  ;;  %5735 = vmatpush.bf16.msra.mxu1 %v7666_v6  ;;  %v7670_v6 = vld [vmem:[%s10925_s4 + $0x40] sm:$0xff] }
0x1bc1   : > { %v5376_v24 = vsub.f32 1.5, %v5375_v9 }
0x1bc2   : > { %v5392_v8 = vadd.f32 %v8016_v19, %v5387_v7 }
0x1bc3   : > { %v5377_v44 = vmul.f32 %v8345_v12, %v5376_v24 }
0x1bc5   : > { %v5381_v31 = vsel %vm5380_vm15, %v8345_v12, %v5377_v44 }
0x1bc6   : > { %v5383_v43 = vmul.f32 %v5381_v31, %v10413_v30 }
0x1bc8   : > { %v5388_v42 = vmul.f32 %v8015_v38, %v5383_v43  ;;  %v7665_v43 = vld [vmem:[%s10925_s4 + $0x18] sm:$0xff] }
0x1bc9   : > { %5736 = vmatpush.bf16.msra.mxu1 %v7665_v43 }
0x1bca   : > { %v5393_v40 = vadd.f32 %v8016_v19, %v5388_v42  ;;  %v7673_v42 = vld [vmem:[%s10925_s4 + $0x58] sm:$0xff] }
0x1bcb   : > { %5750 = vmatpush.bf16.msrb.mxu0 %v7673_v42 }
0x1bcc   : > { %v5394_v11 = vpack.c.bf16 %v5393_v40, %v5392_v8 }
0x1bce   : > { %7297 = vmatmul.msk.bf16.vlgmr.msrb.gmra.mxu2 %vm1789_vm10, %v5394_v11  ;;  %7298 = vmatmul.msk.bf16.vlgmr.msrb.gmra.mxu3 %vm1789_vm10, %v5394_v11 }
0x1c51   : > { %v5452_v18 = vpop.f32.mrf.mxu2  ;;  %v5466_v29 = vpop.f32.mrf.mxu3 }
0x1c52   : > { %v10443_v62 = vadd.f32 %v5452_v18, %v5396_v41  ;;  %v10445_v52 = vadd.f32 %v5466_v29, %v5397_v53 }
0x1c54   : > { %v10448_v30 = vmul.f32 0.70710677, %v10443_v62  ;;  %v10451_v20 = vmul.f32 0.70710677, %v10445_v52 }
0x1c56   : > { %v5483_v27 = vand.u32 2147483647, %v10448_v30  ;;  %v10455_v39 = vand.u32 2147483647, %v10451_v20 }
0x1c58   : > { %v5487_v21 = vmul.f32 0.3275911, %v5483_v27  ;;  %v5488_v15 = vmul.f32 0.3275911, %v10455_v39  ;;  %v5591_v32 = vsub.f32 0.0, %v5483_v27  ;;  %v5592_v34 = vsub.f32 0.0, %v10455_v39 }
0x1c59   : > { %v5454_v36 = vpop.f32.mrf.mxu2  ;;  %v5468_v48 = vpop.f32.mrf.mxu3 }
0x1c5a   : > { %v5491_v1 = vadd.f32 1.0, %v5487_v21  ;;  %v10458_v25 = vadd.f32 1.0, %v5488_v15  ;;  %v10460_v28 = vadd.f32 %v5454_v36, %v5396_v41  ;;  %v10464_v60 = vadd.f32 %v5468_v48, %v5397_v53  ;;  %v7664_v48 = vld [vmem:[%s10925_s4 + $0x10] sm:$0xff] }
0x1c5b   : > { %v5595_v19 = vmul.f32 %v5591_v32, %v5483_v27  ;;  %v5596_v11 = vmul.f32 %v5592_v34, %v10455_v39  ;;  %5737 = vmatpush.bf16.msra.mxu1 %v7664_v48 }
0x1c5c   : > { %8346 = vrcp.f32 %v5491_v1  ;;  %v10468_v16 = vmul.f32 0.70710677, %v10460_v28  ;;  %v10473_v14 = vmul.f32 0.70710677, %v10464_v60  ;;  %v5504_v3 = vand.u32 2147483647, %v5491_v1 }
0x1c5d   : > { %8348 = vrcp.f32 %v10458_v25  ;;  %v5506_v61 = vand.u32 2147483648, %v5491_v1  ;;  %v5521_v55 = vand.u32 2147483648, %v10458_v25  ;;  %v5519_v24 = vand.u32 2147483647, %v10458_v25 }
0x1c5e   : > { %v10476_v56 = vand.u32 2147483647, %v10468_v16  ;;  %v10479_v33 = vand.u32 2147483647, %v10473_v14  ;;  %vm5500_vm4 = vweird.f32 %v5491_v1  ;;  %vm5515_vm6 = vweird.f32 %v10458_v25 }
0x1c5f   : > { %v5507_v26 = vor.u32 1.1754944e-38, %v5506_v61  ;;  %vm5505_vm7 = vcmp.eq.f32.partialorder %v5504_v3, 8.507059e+37  ;;  %v5522_v7 = vor.u32 1.1754944e-38, %v5521_v55  ;;  %vm5520_vm11 = vcmp.eq.f32.partialorder %v5519_v24, 8.507059e+37  ;;  %v7662_v55 = vld [vmem:[%s10925_s4] sm:$0xff] }
0x1c60   : > { %v5489_v23 = vmul.f32 0.3275911, %v10476_v56  ;;  %v5490_v0 = vmul.f32 0.3275911, %v10479_v33  ;;  %v5599_v15 = vmul.f32 1.442695, %v5595_v19 }
0x1c61   : > { %v5601_v39 = vmul.f32 1.442695, %v5596_v11  ;;  %v5593_v3 = vsub.f32 0.0, %v10476_v56 }
0x1c62   : > { %v8347_v45 = vpop.eup %8346  ;;  %v10487_v5 = vadd.f32 1.0, %v5489_v23  ;;  %v10489_v12 = vadd.f32 1.0, %v5490_v0  ;;  %v7663_v0 = vld [vmem:[%s10925_s4 + $0x8] sm:$0xff] }
0x1c63   : > { %v8349_v57 = vpop.eup %8348  ;;  %v5496_v22 = vmul.f32 %v8347_v45, %v5491_v1  ;;  %vm5501_vm2 = vweird.f32 %v8347_v45  ;;  %v7672_v1 = vld [vmem:[%s10925_s4 + $0x50] sm:$0xff]  ;;  %5738 = vmatpush.bf16.msra.mxu1 %v7663_v0 }
0x1c64   : > { %v5511_v59 = vmul.f32 %v8349_v57, %v10458_v25  ;;  %8350 = vrcp.f32 %v10487_v5  ;;  %vm5516_vm3 = vweird.f32 %v8349_v57  ;;  %vm5502_vm5 = vmor %vm5500_vm4, %vm5501_vm2  ;;  %v5534_v2 = vand.u32 2147483647, %v10487_v5  ;;  %5751 = vmatpush.bf16.msrb.mxu0 %v7672_v1 }
0x1c65   : > { %v5497_v46 = vsub.f32 1.0, %v5496_v22  ;;  %8352 = vrcp.f32 %v10489_v12  ;;  %vm5517_vm8 = vmor %vm5515_vm6, %vm5516_vm3  ;;  %v5536_v35 = vand.u32 2147483648, %v10487_v5  ;;  %v5551_v23 = vand.u32 2147483648, %v10489_v12 }
0x1c66   : > { %v5512_v51 = vsub.f32 1.0, %v5511_v59  ;;  %v5549_v59 = vand.u32 2147483647, %v10489_v12  ;;  %vm5530_vm14 = vweird.f32 %v10487_v5  ;;  %vm5545_vm2 = vweird.f32 %v10489_v12 }
0x1c67   : > { %v5498_v54 = vmul.f32 %v8347_v45, %v5497_v46  ;;  %v7671_v46 = vld [vmem:[%s10925_s4 + $0x48] sm:$0xff]  ;;  %vm5535_vm3 = vcmp.eq.f32.partialorder %v5534_v2, 8.507059e+37  ;;  %5739 = vmatpush.bf16.msra.mxu1 %v7662_v55  ;;  %8354 = vpow2.f32 %v5599_v15  ;;  %vm5475_vm6 = vcmp.ge.f32.partialorder %v10448_v30, 0.0 }
0x1c68   : > { %v5513_v9 = vmul.f32 %v8349_v57, %v5512_v51  ;;  %v5537_v51 = vor.u32 1.1754944e-38, %v5536_v35  ;;  %5752 = vmatpush.bf16.msrb.mxu0 %v7671_v46  ;;  %8356 = vpow2.f32 %v5601_v39  ;;  %v5479_v46 = vsel %vm5475_vm6, 1.0, %v8525_v47 }
0x1c69   : > { %v5499_v38 = vadd.f32 %v8347_v45, %v5498_v54 }
0x1c6a   : > { %v5514_v44 = vadd.f32 %v8349_v57, %v5513_v9  ;;  %v8351_v63 = vpop.eup %8350 }
0x1c6b   : > { %v5503_v31 = vsel %vm5502_vm5, %v8347_v45, %v5499_v38  ;;  %v8353_v18 = vpop.eup %8352  ;;  %v5526_v27 = vmul.f32 %v8351_v63, %v10487_v5  ;;  %vm5531_vm12 = vweird.f32 %v8351_v63  ;;  %v5552_v5 = vor.u32 1.1754944e-38, %v5551_v23 }
0x1c6c   : > { %v10500_v8 = vsel %vm5505_vm7, %v5507_v26, %v5503_v31  ;;  %v5518_v40 = vsel %vm5517_vm8, %v8349_v57, %v5514_v44  ;;  %v5541_v36 = vmul.f32 %v8353_v18, %v10489_v12  ;;  %vm5546_vm13 = vweird.f32 %v8353_v18  ;;  %vm5532_vm15 = vmor %vm5530_vm14, %vm5531_vm12  ;;  %5753 = vmatpush.bf16.msrb.mxu0 %v7670_v6 }
0x1c6d   : > { %v5555_v41 = vmul.f32 1.0614054, %v10500_v8  ;;  %v10504_v53 = vsel %vm5520_vm11, %v5522_v7, %v5518_v40  ;;  %v5527_v17 = vsub.f32 1.0, %v5526_v27  ;;  %vm5547_vm4 = vmor %vm5545_vm2, %vm5546_vm13  ;;  %vm5550_vm5 = vcmp.eq.f32.partialorder %v5549_v59, 8.507059e+37  ;;  %v8355_v35 = vpop.eup %8354 }
0x1c6e   : > { %v5556_v29 = vmul.f32 1.0614054, %v10504_v53  ;;  %v5542_v45 = vsub.f32 1.0, %v5541_v36  ;;  %v5594_v12 = vsub.f32 0.0, %v10479_v33  ;;  %vm5476_vm7 = vcmp.ge.f32.partialorder %v10451_v20, 0.0 }
0x1c6f   : > { %v5559_v21 = vadd.f32 -1.4531521, %v5555_v41  ;;  %v5528_v22 = vmul.f32 %v8351_v63, %v5527_v17  ;;  %vm5477_vm8 = vcmp.ge.f32.partialorder %v10468_v16, 0.0  ;;  %vm5478_vm11 = vcmp.ge.f32.partialorder %v10473_v14, 0.0 }
0x1c70   : > { %v5560_v25 = vadd.f32 -1.4531521, %v5556_v29  ;;  %v5543_v4 = vmul.f32 %v8353_v18, %v5542_v45  ;;  %v5598_v27 = vmul.f32 %v5594_v12, %v10479_v33  ;;  %v8357_v45 = vpop.eup %8356  ;;  %v5481_v20 = vsel %vm5477_vm8, 1.0, %v8525_v47 }
0x1c71   : > { %v5563_v49 = vmul.f32 %v5559_v21, %v10500_v8  ;;  %v5529_v34 = vadd.f32 %v8351_v63, %v5528_v22  ;;  %v5621_v16 = vmul.f32 0.5, %v10460_v28  ;;  %v5622_v14 = vmul.f32 0.5, %v10464_v60 }
0x1c72   : > { %v5564_v57 = vmul.f32 %v5560_v25, %v10504_v53  ;;  %v5544_v54 = vadd.f32 %v8353_v18, %v5543_v4  ;;  %v5605_v2 = vmul.f32 1.442695, %v5598_v27 }
0x1c73   : > { %v5567_v58 = vadd.f32 1.4214138, %v5563_v49  ;;  %v5533_v9 = vsel %vm5532_vm15, %v8351_v63, %v5529_v34  ;;  %v5597_v63 = vmul.f32 %v5593_v3, %v10476_v56 }
0x1c74   : > { %v5568_v32 = vadd.f32 1.4214138, %v5564_v57  ;;  %v5538_v38 = vsel %vm5535_vm3, %v5537_v51, %v5533_v9  ;;  %v5548_v26 = vsel %vm5547_vm4, %v8353_v18, %v5544_v54 }
0x1c75   : > { %v5571_v61 = vmul.f32 %v5567_v58, %v10500_v8  ;;  %v5557_v31 = vmul.f32 1.0614054, %v5538_v38  ;;  %v5553_v19 = vsel %vm5550_vm5, %v5552_v5, %v5548_v26  ;;  %v5603_v25 = vmul.f32 1.442695, %v5597_v63  ;;  %v8017_v63 = vld [vmem:[%s8709_s6] ss:$0 sm:$0xff] }
0x1c76   : > { %v5572_v50 = vmul.f32 %v5568_v32, %v10504_v53  ;;  %v5558_v43 = vmul.f32 1.0614054, %v5553_v19  ;;  %v5482_v5 = vsel %vm5478_vm11, 1.0, %v8525_v47  ;;  %v5619_v26 = vmul.f32 0.5, %v10443_v62 }
0x1c77   : > { %v5575_v24 = vadd.f32 -0.28449672, %v5571_v61  ;;  %v5561_v40 = vadd.f32 -1.4531521, %v5557_v31  ;;  %8358 = vpow2.f32 %v5603_v25  ;;  %v5480_v61 = vsel %vm5476_vm7, 1.0, %v8525_v47 }
0x1c78   : > { %v5576_v44 = vadd.f32 -0.28449672, %v5572_v50  ;;  %v5562_v41 = vadd.f32 -1.4531521, %v5558_v43  ;;  %8360 = vpow2.f32 %v5605_v2  ;;  %v5620_v31 = vmul.f32 0.5, %v10445_v52 }
0x1c79   : > { %v5579_v7 = vmul.f32 %v5575_v24, %v10500_v8  ;;  %v5565_v29 = vmul.f32 %v5561_v40, %v5538_v38 }
0x1c7a   : > { %v5580_v42 = vmul.f32 %v5576_v44, %v10504_v53  ;;  %v5566_v21 = vmul.f32 %v5562_v41, %v5553_v19 }
0x1c7b   : > { %v5583_v11 = vadd.f32 0.2548296, %v5579_v7  ;;  %v5569_v48 = vadd.f32 1.4214138, %v5565_v29 }
0x1c7c   : > { %v5584_v18 = vadd.f32 0.2548296, %v5580_v42  ;;  %v5570_v17 = vadd.f32 1.4214138, %v5566_v21 }
0x1c7d   : > { %v5587_v36 = vmul.f32 %v5583_v11, %v10500_v8  ;;  %v5573_v49 = vmul.f32 %v5569_v48, %v5538_v38  ;;  %v8359_v0 = vpop.eup %8358 }
0x1c7e   : > { %v5588_v1 = vmul.f32 %v5584_v18, %v10504_v53  ;;  %v5574_v15 = vmul.f32 %v5570_v17, %v5553_v19  ;;  %v8361_v34 = vpop.eup %8360 }
0x1c7f   : > { %v5607_v56 = vmul.f32 %v8355_v35, %v5587_v36  ;;  %v5577_v57 = vadd.f32 -0.28449672, %v5573_v49 }
0x1c80   : > { %v5608_v22 = vmul.f32 %v8357_v45, %v5588_v1  ;;  %v5578_v39 = vadd.f32 -0.28449672, %v5574_v15 }
0x1c81   : > { %v5581_v23 = vmul.f32 %v5577_v57, %v5538_v38  ;;  %v5611_v8 = vsub.f32 1.0, %v5607_v56  ;;  %v7461_v57 = vld [vmem:[%s10956_s5 + $0x70] sm:$0xf] }
0x1c82   : > { %v5582_v33 = vmul.f32 %v5578_v39, %v5553_v19  ;;  %v5612_v53 = vsub.f32 1.0, %v5608_v22  ;;  %v7685_v22 = vld [vmem:[%s10956_s5 + $0x74] sm:$0xf0]  ;;  %v7684_v39 = vld [vmem:[%s10956_s5 + $0x74] sm:$0xf] }
0x1c83   : > { %v5585_v58 = vadd.f32 0.2548296, %v5581_v23  ;;  %v5615_v3 = vmul.f32 %v5611_v8, %v5479_v46  ;;  %v7462_v23 = vor.u32 %v7685_v22, %v7461_v57  ;;  %v7455_v46 = vld [vmem:[%s10956_s5 + $0x68] sm:$0xf0] }
0x1c84   : > { %v5586_v4 = vadd.f32 0.2548296, %v5582_v33  ;;  %v5616_v54 = vmul.f32 %v5612_v53, %v5480_v61  ;;  %v7463_v33 = vld [vmem:[%s10956_s5 + $0x78] sm:$0xf0]  ;;  %v7683_v53 = vld [vmem:[%s10956_s5 + $0x64] sm:$0xf0] }
0x1c85   : > { %v5589_v59 = vmul.f32 %v5585_v58, %v5538_v38  ;;  %v5623_v50 = vadd.f32 1.0, %v5615_v3  ;;  %v7466_v8 = vor.u32 %v7684_v39, %v7463_v33  ;;  %5954 = vmatpush.bf16.msra.mxu2 %v7462_v23  ;;  %v7453_v58 = vld [vmem:[%s10956_s5 + $0x60] sm:$0xf]  ;;  %v7445_v61 = vld [vmem:[%s10956_s5 + $0x50] sm:$0xf] }
0x1c86   : > { %v5590_v32 = vmul.f32 %v5586_v4, %v5553_v19  ;;  %v5624_v24 = vadd.f32 1.0, %v5616_v54  ;;  %v7682_v4 = vld [vmem:[%s10956_s5 + $0x64] sm:$0xf] }
0x1c87   : > { %v5609_v51 = vmul.f32 %v8359_v0, %v5589_v59  ;;  %v5627_v12 = vmul.f32 %v5623_v50, %v5619_v26  ;;  %5968 = vmatpush.bf16.msra.mxu3 %v7466_v8  ;;  %v7454_v0 = vor.u32 %v7683_v53, %v7453_v58  ;;  %v7679_v50 = vld [vmem:[%s10956_s5 + $0x44] sm:$0xf0] }
0x1c88   : > { %v5610_v30 = vmul.f32 %v8361_v34, %v5590_v32  ;;  %v5628_v43 = vmul.f32 %v5624_v24, %v5620_v31  ;;  %v7458_v34 = vor.u32 %v7682_v4, %v7455_v46  ;;  %v7439_v24 = vld [vmem:[%s10956_s5 + $0x48] sm:$0xf0] }
0x1c89   : > { %v5613_v55 = vsub.f32 1.0, %v5609_v51  ;;  %5955 = vmatpush.bf16.msra.mxu2 %v7454_v0  ;;  %v7681_v51 = vld [vmem:[%s10956_s5 + $0x54] sm:$0xf0] }
0x1c8a   : > { %v5614_v6 = vsub.f32 1.0, %v5610_v30  ;;  %v7446_v54 = vor.u32 %v7681_v51, %v7445_v61  ;;  %v7680_v30 = vld [vmem:[%s10956_s5 + $0x54] sm:$0xf] }
0x1c8b   : > { %v5617_v9 = vmul.f32 %v5613_v55, %v5481_v20  ;;  %5969 = vmatpush.bf16.msra.mxu3 %v7458_v34  ;;  %v7447_v55 = vld [vmem:[%s10956_s5 + $0x58] sm:$0xf0] }
0x1c8c   : > { %v5618_v38 = vmul.f32 %v5614_v6, %v5482_v5  ;;  %v7450_v20 = vor.u32 %v7680_v30, %v7447_v55  ;;  %v7437_v6 = vld [vmem:[%s10956_s5 + $0x40] sm:$0xf] }
0x1c8d   : > { %v5625_v44 = vadd.f32 1.0, %v5617_v9  ;;  %v7678_v9 = vld [vmem:[%s10956_s5 + $0x44] sm:$0xf]  ;;  %5956 = vmatpush.bf16.msra.mxu2 %v7446_v54  ;;  %v7438_v5 = vor.u32 %v7679_v50, %v7437_v6 }
0x1c8e   : > { %v5626_v19 = vadd.f32 1.0, %v5618_v38  ;;  %v7442_v38 = vor.u32 %v7678_v9, %v7439_v24  ;;  %v7829_v54 = vld [vmem:[%s10962_s15 + $0x20] sm:$0xff]  }
0x1c8f   : > { %v5629_v7 = vmul.f32 %v5625_v44, %v5621_v16  ;;  %5970 = vmatpush.bf16.msra.mxu3 %v7450_v20  ;;  %v7797_v30 = vunpack.c.l.bf16 %v7829_v54  ;;  %v7798_v50 = vunpack.c.h.bf16 %v7829_v54 }
0x1c90   : > { %v5630_v42 = vmul.f32 %v5626_v19, %v5622_v14 }
0x1c91   : > { %v5631_v40 = vpack.c.bf16 %v5629_v7, %v5627_v12  ;;  %5957 = vmatpush.bf16.msra.mxu2 %v7438_v5 }
0x1c92   : > { %v5632_v11 = vpack.c.bf16 %v5630_v42, %v5628_v43 }
0x1c93   : > { %5740 = vmatmul.bf16.vlgmr.msra.gmra.mxu1 %v5631_v40  ;;  %5971 = vmatpush.bf16.msra.mxu3 %v7442_v38  ;;  %v7830_v38 = vld [vmem:[%s10962_s15 + $0x28] sm:$0xff]  }
0x1c94   : > { %5754 = vmatmul.bf16.vlgmr.msrb.gmra.mxu0 %v5632_v11 }
0x1d10   : > { %v5741_v41 = vpop.f32.mrf.mxu1 }
0x1d11   : > { %v5742_v18 = vadd.f32 %v8017_v63, %v5741_v41  ;;  %v5755_v62 = vpop.f32.mrf.mxu0 }
0x1d13   : > { %v5756_v29 = vadd.f32 %v5755_v62, %v5742_v18  ;;  %v8018_v62 = vld [vmem:[%s10957_s26 + $0x1] ss:$0 sm:$0xff] }
0x1d15   : > { %v10548_v28 = vadd.f32 %v5756_v29, %v10395_v37 }
0x1d17   : > { %v5847_v52 = vsel %vm1789_vm10, %v10548_v28, 0.0 }
0x1d18   : > { %v5743_v60 = vpop.f32.mrf.mxu1  ;;  %5848 = vadd.xlane.f32.xlu0 %v5847_v52 }
0x1d19   : > { %v5744_v27 = vadd.f32 %v8017_v63, %v5743_v60  ;;  %v5757_v21 = vpop.f32.mrf.mxu0 }
0x1d1b   : > { %v5758_v36 = vadd.f32 %v5757_v21, %v5744_v27  ;;  %v8019_v27 = vld [vmem:[%s10958_s9 + $0x1] ss:$0 sm:$0xff] }
0x1d1d   : > { %v10553_v48 = vadd.f32 %v5758_v36, %v10400_v10 }
0x1d1f   : > { %v5850_v1 = vsel %vm1789_vm10, %v10553_v48, 0.0 }
0x1d20   : > { %5851 = vadd.xlane.f32.xlu2 %v5850_v1 }
0x1d8b   : > { %v5849_v37 = vpop.xlane.xlu0 %5848 }
0x1d8c   : > { %v5853_v25 = vmul.f32 %v5849_v37, %v10286_v13 }
0x1d8e   : > { %v10559_v17 = vsub.f32 %v10548_v28, %v5853_v25 }
0x1d90   : > { %v5857_v49 = vmul.f32 %v10559_v17, %v10559_v17 }
0x1d92   : > { %v5859_v2 = vsel %vm1789_vm10, %v5857_v49, 0.0 }
0x1d93   : > { %v5852_v10 = vpop.xlane.xlu2 %5851  ;;  %5860 = vadd.xlane.f32.xlu1 %v5859_v2 }
0x1d94   : > { %v5854_v35 = vmul.f32 %v5852_v10, %v10286_v13 }
0x1d96   : > { %v10566_v15 = vsub.f32 %v10553_v48, %v5854_v35 }
0x1d98   : > { %v5858_v45 = vmul.f32 %v10566_v15, %v10566_v15 }
0x1d9a   : > { %v5862_v56 = vsel %vm1789_vm10, %v5858_v45, 0.0 }
0x1d9b   : > { %5863 = vadd.xlane.f32.xlu0 %v5862_v56 }
0x1e06   : > { %v5861_v59 = vpop.xlane.xlu1 %5860 }
0x1e07   : > { %v5865_v32 = vmul.f32 %v5861_v59, %v10286_v13 }
0x1e09   : > { %v5867_v3 = vadd.f32 1e-05, %v5865_v32 }
0x1e0b   : > { %8362 = vrsqrt.f32 %v5867_v3  ;;  %vm5875_vm13 = vweird.f32 %v5867_v3 }
0x1e0e   : > { %v5864_v26 = vpop.xlane.xlu0 %5863 }
0x1e0f   : > { %v5866_v16 = vmul.f32 %v5864_v26, %v10286_v13  ;;  %v7801_v26 = vunpack.c.l.bf16 %v7830_v38 }
0x1e11   : > { %v8363_v44 = vpop.eup %8362  ;;  %v5868_v31 = vadd.f32 1e-05, %v5866_v16  ;;  %v7831_v16 = vld [vmem:[%s10962_s15 + $0x30] sm:$0xff]  }
0x1e12   : > { %v5870_v14 = vmul.f32 %v8363_v44, %v5867_v3  ;;  %vm5876_vm12 = vweird.f32 %v8363_v44 }
0x1e13   : > { %8364 = vrsqrt.f32 %v5868_v31  ;;  %vm5877_vm14 = vmor %vm5875_vm13, %vm5876_vm12  ;;  %vm5885_vm2 = vweird.f32 %v5868_v31 }
0x1e14   : > { %v5871_v19 = vmul.f32 %v8363_v44, %v5870_v14  ;;  %v7805_v14 = vunpack.c.l.bf16 %v7831_v16 }
0x1e16   : > { %v5872_v12 = vmul.f32 0.5, %v5871_v19 }
0x1e18   : > { %v5873_v7 = vsub.f32 1.5, %v5872_v12 }
0x1e19   : > { %v8365_v43 = vpop.eup %8364 }
0x1e1a   : > { %v5874_v42 = vmul.f32 %v8363_v44, %v5873_v7  ;;  %v5880_v40 = vmul.f32 %v8365_v43, %v5868_v31  ;;  %vm5886_vm15 = vweird.f32 %v8365_v43  ;;  %v7802_v7 = vunpack.c.h.bf16 %v7830_v38 }
0x1e1b   : > { %vm5887_vm3 = vmor %vm5885_vm2, %vm5886_vm15 }
0x1e1c   : > { %v5881_v11 = vmul.f32 %v8365_v43, %v5880_v40  ;;  %v5878_v63 = vsel %vm5877_vm14, %v8363_v44, %v5874_v42 }
0x1e1d   : > { %v5889_v29 = vmul.f32 %v5878_v63, %v10559_v17  ;;  %v7373_v17 = vld [vmem:[%s10959_s10 + $0x2] sm:$0x3]  ;;  %v7806_v63 = vunpack.c.h.bf16 %v7831_v16 }
0x1e1e   : > { %v5882_v41 = vmul.f32 0.5, %v5881_v11  ;;  %v5903_v35 = vperm.slane %v7373_v17, 0  ;;  %v5904_v45 = vperm.slane %v7373_v17, 1 }
0x1e1f   : > { %v5894_v21 = vmul.f32 %v8018_v62, %v5889_v29 }
0x1e20   : > { %v5883_v18 = vsub.f32 1.5, %v5882_v41  ;;  %v7832_v41 = vld [vmem:[%s10962_s15 + $0x38] sm:$0xff]  }
0x1e21   : > { %v5899_v37 = vadd.f32 %v8019_v27, %v5894_v21  ;;  %v7809_v29 = vunpack.c.l.bf16 %v7832_v41 }
0x1e22   : > { %v5884_v52 = vmul.f32 %v8365_v43, %v5883_v18 }
0x1e24   : > { %v5888_v60 = vsel %vm5887_vm3, %v8365_v43, %v5884_v52 }
0x1e25   : > { %v5890_v36 = vmul.f32 %v5888_v60, %v10566_v15 }
0x1e27   : > { %v5895_v1 = vmul.f32 %v8018_v62, %v5890_v36 }
0x1e29   : > { %v5900_v25 = vadd.f32 %v8019_v27, %v5895_v1  ;;  %v7810_v1 = vunpack.c.h.bf16 %v7832_v41 }
0x1e2b   : > { %v5901_v49 = vpack.c.bf16 %v5900_v25, %v5899_v37 }
0x1e2d   : > { %7467 = vmatmul.msk.bf16.vlgmr.msra.gmra.mxu2 %vm1789_vm10, %v5901_v49  ;;  %7468 = vmatmul.msk.bf16.vlgmr.msra.gmra.mxu3 %vm1789_vm10, %v5901_v49 }
0x1eb0   : > { %v5959_v2 = vpop.f32.mrf.mxu2  ;;  %v5973_v10 = vpop.f32.mrf.mxu3 }
0x1eb1   : > { %v5960_v22 = vadd.f32 %v5959_v2, %v5903_v35  ;;  %v5974_v39 = vadd.f32 %v5973_v10, %v5904_v45 }
0x1eb8   : > { %v5961_v56 = vpop.f32.mrf.mxu2  ;;  %v5975_v57 = vpop.f32.mrf.mxu3 }
0x1eb9   : > { %v5962_v23 = vadd.f32 %v5961_v56, %v5903_v35  ;;  %v5976_v33 = vadd.f32 %v5975_v57, %v5904_v45 }
0x1ebb   : > { %v5978_v15 = vpack.c.bf16 %v5962_v23, %v5960_v22  ;;  %v10596_v8 = vpack.c.bf16 %v5976_v33, %v5974_v39 }
0x1ebd   : > { %6038 = vmatpush.bf16.msrb.mxu3 %v10596_v8  ;;  %6119 = vrot.lane.b32.xlu0 %v5978_v15, %s10960_s12 }
0x1ebe   : > { %6049 = vrot.lane.b32.xlu1 %v5978_v15, %s10947_s13  ;;  %5983 = vrot.lane.b32.xlu2 %v5978_v15, %s10948_s17 }
0x1ec5   : > { %6117 = vrot.lane.b32.xlu0 %v5978_v15, %s10946_s8 }
0x1ec6   : > { %6188 = vrot.lane.b32.xlu1 %v5978_v15, %s10949_s16  ;;  %6047 = vrot.lane.b32.xlu2 %v5978_v15, %s10945_s3 }
0x1ece   : > { %6186 = vrot.lane.b32.xlu2 %v5978_v15, %s10961_s14 }
0x1f18   : > { %v5984_v58 = vpop.permute.xlu2 %5983 }
0x1f19   : > { %v5989_v53 = vsel %vm1735_vm9, %v5984_v58, 0 }
0x1f1a   : > { %5998 = vmatpush.bf16.xpose.msrb.mxu2 %v5989_v53 }
0x1f20   : > { %v6048_v34 = vpop.permute.xlu2 %6047 }
0x1f21   : > { %7469 = vmatmul.msk.bf16.vlgmr.msrb.gmra.mxu2 %vm1735_vm9, %v5978_v15 }
0x1f28   : > { %v6187_v51 = vpop.permute.xlu2 %6186 }
0x1f2f   : > { %v6120_v4 = vpop.permute.xlu0 %6119 }
0x1f30   : > { %v6125_v59 = vsel %vm1735_vm9, %v6120_v4, 0  ;;  %v6050_v0 = vpop.permute.xlu1 %6049 }
0x1f31   : > { %v6055_v46 = vsel %vm1735_vm9, %v6050_v0, 0  ;;  %6134 = vmatpush.bf16.xpose.msra.mxu2 %v6125_v59 }
0x1f32   : > { %6064 = vmatpush.bf16.xpose.msrb.mxu1 %v6055_v46 }
0x1f37   : > { %v6118_v32 = vpop.permute.xlu0 %6117 }
0x1f38   : > { %v6189_v3 = vpop.permute.xlu1 %6188  ;;  %7473 = vmatmul.msk.bf16.vlgmr.msra.gmra.mxu2 %vm1735_vm9, %v6118_v32 }
0x1f39   : > { %v6194_v61 = vsel %vm1735_vm9, %v6189_v3, 0  ;;  %7471 = vmatmul.msk.bf16.vlgmr.msrb.gmra.mxu1 %vm1735_vm9, %v6048_v34 }
0x1f3a   : > { %6203 = vmatpush.bf16.xpose.msra.mxu1 %v6194_v61 }
0x1f49   : > { %7475 = vmatmul.msk.bf16.vlgmr.msra.gmra.mxu1 %vm1735_vm9, %v6187_v51 }
0x1fa4   : > { %v6000_v55 = vpop.f32.mrf.mxu2 }
0x1fa5   : > { %v6001_v20 = vadd.f32 %v7797_v30, %v6000_v55 }
0x1fa7   : > { %v6005_v6 = vsel %vm1735_vm9, %v6001_v20, -inf }
0x1fa8   : > { %6006 = vmax.xlane.f32.xlu0 %v6005_v6 }
0x1fac   : > { %v6002_v9 = vpop.f32.mrf.mxu2 }
0x1fad   : > { %v6003_v5 = vadd.f32 %v7798_v50, %v6002_v9 }
0x1faf   : > { %v6008_v24 = vsel %vm1735_vm9, %v6003_v5, -inf }
0x1fb0   : > { %6009 = vmax.xlane.f32.xlu1 %v6008_v24 }
0x1fb6   : > { %v6066_v44 = vpop.f32.mrf.mxu1 }
0x1fb7   : > { %v6067_v31 = vadd.f32 %v7801_v26, %v6066_v44 }
0x1fb9   : > { %v6071_v19 = vsel %vm1735_vm9, %v6067_v31, -inf }
0x1fba   : > { %6072 = vmax.xlane.f32.xlu2 %v6071_v19 }
0x1fbb   : > { %v6136_v12 = vpop.f32.mrf.mxu2 }
0x1fbc   : > { %v6137_v43 = vadd.f32 %v7805_v14, %v6136_v12 }
0x1fbe   : > { %v6068_v42 = vpop.f32.mrf.mxu1  ;;  %v6141_v40 = vsel %vm1735_vm9, %v6137_v43, -inf }
0x1fbf   : > { %v6069_v11 = vadd.f32 %v7802_v7, %v6068_v42  ;;  %6142 = vmax.xlane.f32.xlu1 %v6141_v40 }
0x1fc1   : > { %v6074_v18 = vsel %vm1735_vm9, %v6069_v11, -inf }
0x1fc2   : > { %6075 = vmax.xlane.f32.xlu0 %v6074_v18 }
0x1fc3   : > { %v6138_v62 = vpop.f32.mrf.mxu2 }
0x1fc4   : > { %v6139_v52 = vadd.f32 %v7806_v63, %v6138_v62 }
0x1fc6   : > { %v6205_v60 = vpop.f32.mrf.mxu1  ;;  %v6144_v27 = vsel %vm1735_vm9, %v6139_v52, -inf }
0x1fc7   : > { %v6206_v21 = vadd.f32 %v7809_v29, %v6205_v60  ;;  %6145 = vmax.xlane.f32.xlu2 %v6144_v27 }
0x1fc9   : > { %v6210_v36 = vsel %vm1735_vm9, %v6206_v21, -inf }
0x1fca   : > { %6211 = vmax.xlane.f32.xlu0 %v6210_v36 }
0x1fce   : > { %v6207_v37 = vpop.f32.mrf.mxu1 }
0x1fcf   : > { %v6208_v25 = vadd.f32 %v7810_v1, %v6207_v37 }
0x1fd1   : > { %v6213_v49 = vsel %vm1735_vm9, %v6208_v25, -inf }
0x1fd2   : > { %6214 = vmax.xlane.f32.xlu1 %v6213_v49 }
0x1fde   : > { %6095 = vrot.lane.b32.xlu0 %v10596_v8, %s10945_s3  ;;  %s7714_s3 = sshll.u32 %s8742_s0, 4 }
0x201b   : > { %v6007_v2 = vpop.xlane.xlu0 %6006 }
0x201c   : > { %v6011_v10 = vsub.f32 %v6001_v20, %v6007_v2 }
0x201e   : > { %v6013_v17 = vmul.f32 1.442695, %v6011_v10 }
0x2020   : > { %8366 = vpow2.f32 %v6013_v17 }
0x2023   : > { %v6010_v35 = vpop.xlane.xlu1 %6009 }
0x2024   : > { %v6012_v45 = vsub.f32 %v6003_v5, %v6010_v35 }
0x2026   : > { %v8367_v56 = vpop.eup %8366  ;;  %v6015_v57 = vmul.f32 1.442695, %v6012_v45 }
0x2027   : > { %v6017_v22 = vsel %vm1735_vm9, %v8367_v56, 0.0 }
0x2028   : > { %8368 = vpow2.f32 %v6015_v57  ;;  %6018 = vadd.xlane.f32.xlu2 %v6017_v22 }
0x202d   : > { %v6073_v39 = vpop.xlane.xlu2 %6072 }
0x202e   : > { %v8369_v23 = vpop.eup %8368  ;;  %v6077_v33 = vsub.f32 %v6067_v31, %v6073_v39 }
0x202f   : > { %v6020_v15 = vsel %vm1735_vm9, %v8369_v23, 0.0 }
0x2030   : > { %v6079_v58 = vmul.f32 1.442695, %v6077_v33  ;;  %6021 = vadd.xlane.f32.xlu0 %v6020_v15 }
0x2032   : > { %8370 = vpow2.f32 %v6079_v58  ;;  %v6143_v3 = vpop.xlane.xlu1 %6142 }
0x2033   : > { %v6147_v55 = vsub.f32 %v6137_v43, %v6143_v3 }
0x2035   : > { %v6076_v53 = vpop.xlane.xlu0 %6075  ;;  %v6149_v50 = vmul.f32 1.442695, %v6147_v55  ;;  %v7686_v55 = vld [vmem:[%s10963_s19 + $0x20] sm:$0xff] }
0x2036   : > { %v6078_v4 = vsub.f32 %v6069_v11, %v6076_v53 }
0x2038   : > { %v8371_v59 = vpop.eup %8370  ;;  %v6081_v0 = vmul.f32 1.442695, %v6078_v4 }
0x2039   : > { %v6083_v46 = vsel %vm1735_vm9, %v8371_v59, 0.0 }
0x203a   : > { %8372 = vpow2.f32 %v6081_v0  ;;  %6084 = vadd.xlane.f32.xlu1 %v6083_v46  ;;  %v6146_v32 = vpop.xlane.xlu2 %6145 }
0x203b   : > { %v6148_v34 = vsub.f32 %v6139_v52, %v6146_v32 }
0x203d   : > { %v6151_v61 = vmul.f32 1.442695, %v6148_v34  ;;  %v6212_v51 = vpop.xlane.xlu0 %6211 }
0x203e   : > { %v6216_v54 = vsub.f32 %v6206_v21, %v6212_v51  ;;  %v7689_v51 = vld [vmem:[%s10963_s19 + $0x38] sm:$0xff] }
0x203f   : > { %8374 = vpow2.f32 %v6151_v61  ;;  %6315 = vmatpush.bf16.msrb.mxu2 %v7689_v51  ;;  %v7690_v51 = vld [vmem:[%s10965_s21 + $0x44] sm:$0xf] }
0x2040   : > { %v8373_v30 = vpop.eup %8372  ;;  %v6218_v20 = vmul.f32 1.442695, %v6216_v54  ;;  %v7688_v54 = vld [vmem:[%s10963_s19 + $0x30] sm:$0xff] }
0x2041   : > { %v6086_v6 = vsel %vm1735_vm9, %v8373_v30, 0.0 }
0x2042   : > { %8376 = vpow2.f32 %v6218_v20  ;;  %6087 = vadd.xlane.f32.xlu2 %v6086_v6 }
0x2043   : > { %8378 = vpow2.f32 %v6149_v50  ;;  %6316 = vmatpush.bf16.msrb.mxu2 %v7688_v54 }
0x2044   : > { %6164 = vrot.lane.b32.xlu0 %v10596_v8, %s10946_s8 }
0x2045   : > { %v6215_v9 = vpop.xlane.xlu1 %6214  ;;  %v8375_v5 = vpop.eup %8374 }
0x2046   : > { %v6217_v24 = vsub.f32 %v6208_v25, %v6215_v9  ;;  %v6156_v44 = vsel %vm1735_vm9, %v8375_v5, 0.0 }
0x2048   : > { %v8377_v38 = vpop.eup %8376  ;;  %v6220_v26 = vmul.f32 1.442695, %v6217_v24 }
0x2049   : > { %v6222_v16 = vsel %vm1735_vm9, %v8377_v38, 0.0  ;;  %v8379_v31 = vpop.eup %8378 }
0x204a   : > { %8380 = vpow2.f32 %v6220_v26  ;;  %6223 = vadd.xlane.f32.xlu1 %v6222_v16  ;;  %6157 = vadd.xlane.f32.xlu2 %v6156_v44  ;;  %v6153_v12 = vsel %vm1735_vm9, %v8379_v31, 0.0 }
0x2050   : > { %v8381_v14 = vpop.eup %8380  ;;  %v6096_v19 = vpop.permute.xlu0 %6095 }
0x2051   : > { %6108 = vmatpush.bf16.msra.mxu0 %v6096_v19  ;;  %v6225_v7 = vsel %vm1735_vm9, %v8381_v14, 0.0 }
0x2052   : > { %6154 = vadd.xlane.f32.xlu1 %v6153_v12  ;;  %6226 = vadd.xlane.f32.xlu2 %v6225_v7 }
0x206b   : > { %6233 = vrot.lane.b32.xlu1 %v10596_v8, %s10961_s14  ;;  %s6776_s14 = scalar_lea.hbm %s8719_s27, %s7714_s3  ;;  %s8438_s3 = scalar_lea.hbm %s8719_s27, 32 }
0x209b   : > { %v6019_v43 = vpop.xlane.xlu2 %6018 }
0x209c   : > { %8382 = vrcp.f32 %v6019_v43 }
0x20a2   : > { %v8383_v40 = vpop.eup %8382 }
0x20a3   : > { %v6022_v42 = vpop.xlane.xlu0 %6021  ;;  %v6025_v63 = vmul.f32 %v8383_v40, %v8367_v56 }
0x20a4   : > { %8384 = vrcp.f32 %v6022_v42  ;;  %v8020_v42 = vld [vmem:[%s10964_s20 + $0x1] ss:$0 sm:$0xff] }
0x20aa   : > { %v8385_v11 = vpop.eup %8384 }
0x20ab   : > { %v6026_v41 = vmul.f32 %v8385_v11, %v8369_v23 }
0x20ad   : > { %v6027_v18 = vpack.c.bf16 %v6026_v41, %v6025_v63  ;;  %v6085_v62 = vpop.xlane.xlu1 %6084 }
0x20ae   : > { %8386 = vrcp.f32 %v6085_v62 }
0x20af   : > { %7470 = vmatmul.msk.bf16.vlgmr.msrb.gmra.mxu3 %vm1735_vm9, %v6027_v18 }
0x20b4   : > { %v8387_v60 = vpop.eup %8386 }
0x20b5   : > { %v6088_v29 = vpop.xlane.xlu2 %6087  ;;  %v6091_v8 = vmul.f32 %v8387_v60, %v8371_v59 }
0x20b6   : > { %8388 = vrcp.f32 %v6088_v29  ;;  %v6165_v52 = vpop.permute.xlu0 %6164 }
0x20b7   : > { %6177 = vmatpush.bf16.msra.mxu3 %v6165_v52 }
0x20bc   : > { %v8389_v27 = vpop.eup %8388 }
0x20bd   : > { %v6092_v21 = vmul.f32 %v8389_v27, %v8373_v30  ;;  %v6224_v36 = vpop.xlane.xlu1 %6223  ;;  %v6158_v37 = vpop.xlane.xlu2 %6157  ;;  %v7687_v30 = vld [vmem:[%s10963_s19 + $0x28] sm:$0xff] }
0x20be   : > { %8390 = vrcp.f32 %v6158_v37  ;;  %6317 = vmatpush.bf16.msrb.mxu2 %v7687_v30  ;;  %v7498_v30 = vld [vmem:[%s10965_s21 + $0x48] sm:$0xf0] }
0x20bf   : > { %v6093_v1 = vpack.c.bf16 %v6092_v21, %v6091_v8 }
0x20c1   : > { %7472 = vmatmul.msk.bf16.vlgmr.msra.gmra.mxu0 %vm1735_vm9, %v6093_v1 }
0x20c2   : > { %6318 = vmatpush.bf16.msrb.mxu2 %v7686_v55  ;;  %v7501_v55 = vor.u32 %v7690_v51, %v7498_v30 }
0x20c4   : > { %v8391_v49 = vpop.eup %8390 }
0x20c5   : > { %v6155_v25 = vpop.xlane.xlu1 %6154  ;;  %v6162_v10 = vmul.f32 %v8391_v49, %v8375_v5  ;;  %v6227_v45 = vpop.xlane.xlu2 %6226  ;;  %v7520_v49 = vld [vmem:[%s10965_s21 + $0x70] sm:$0xf] }
0x20c6   : > { %8392 = vrcp.f32 %v6155_v25 }
0x20c7   : > { %8394 = vrcp.f32 %v6227_v45 }
0x20c8   : > { %8396 = vrcp.f32 %v6224_v36 }
0x20cc   : > { %v8393_v2 = vpop.eup %8392 }
0x20cd   : > { %v6161_v17 = vmul.f32 %v8393_v2, %v8379_v31  ;;  %v8395_v56 = vpop.eup %8394  ;;  %v7697_v2 = vld [vmem:[%s10965_s21 + $0x74] sm:$0xf0] }
0x20ce   : > { %v8397_v57 = vpop.eup %8396  ;;  %v6231_v22 = vmul.f32 %v8395_v56, %v8381_v14  ;;  %v7512_v56 = vld [vmem:[%s10965_s21 + $0x60] sm:$0xf] }
0x20cf   : > { %v6163_v35 = vpack.c.bf16 %v6162_v10, %v6161_v17  ;;  %v6230_v39 = vmul.f32 %v8397_v57, %v8377_v38  ;;  %v7696_v10 = vld [vmem:[%s10965_s21 + $0x74] sm:$0xf]  ;;  %v7521_v17 = vor.u32 %v7697_v2, %v7520_v49  ;;  %v7695_v57 = vld [vmem:[%s10965_s21 + $0x64] sm:$0xf0]  ;;  %v7713_v49 = vld [vmem:[%s10925_s4 + $0xf8] sm:$0xff] }
0x20d0   : > { %6738 = vmatpush.bf16.msra.mxu2 %v7713_v49 }
0x20d1   : > { %7474 = vmatmul.msk.bf16.vlgmr.msra.gmra.mxu3 %vm1735_vm9, %v6163_v35  ;;  %v6232_v33 = vpack.c.bf16 %v6231_v22, %v6230_v39  ;;  %v7522_v35 = vld [vmem:[%s10965_s21 + $0x78] sm:$0xf0]  ;;  %v7694_v22 = vld [vmem:[%s10965_s21 + $0x64] sm:$0xf]  ;;  %v7513_v39 = vor.u32 %v7695_v57, %v7512_v56  ;;  %v7712_v57 = vld [vmem:[%s10925_s4 + $0xf0] sm:$0xff] }
0x20d2   : > { %v7525_v45 = vor.u32 %v7696_v10, %v7522_v35  ;;  %6439 = vmatpush.bf16.msrb.mxu3 %v7521_v17 }
0x20d4   : > { %6453 = vmatpush.bf16.msrb.mxu1 %v7525_v45  ;;  %6739 = vmatpush.bf16.msra.mxu2 %v7712_v57 }
0x20d6   : > { %6440 = vmatpush.bf16.msrb.mxu3 %v7513_v39 }
0x20dd   : > { %v6234_v23 = vpop.permute.xlu1 %6233 }
0x20de   : > { %6246 = vmatpush.bf16.msrb.mxu0 %v6234_v23  ;;  %v7514_v23 = vld [vmem:[%s10965_s21 + $0x68] sm:$0xf0] }
0x20e1   : > { %7476 = vmatmul.msk.bf16.vlgmr.msrb.gmra.mxu0 %vm1735_vm9, %v6232_v33 }
0x2132   : > { %v6040_v58 = vpop.f32.mrf.mxu3 }
0x213a   : > { %v6042_v59 = vpop.f32.mrf.mxu3 }
0x213e   : > { %v6110_v15 = vpop.f32.mrf.mxu0 }
0x2146   : > { %v6112_v53 = vpop.f32.mrf.mxu0 }
0x2147   : > { %v7976_v4 = vpack.i.bf16 %v6112_v53, %v6110_v15  ;;  %v7517_v15 = vor.u32 %v7694_v22, %v7514_v23  ;;  %v7504_v53 = vld [vmem:[%s10965_s21 + $0x50] sm:$0xf]  ;;  %v7705_v23 = vld [vmem:[%s10925_s4 + $0xb8] sm:$0xff] }
0x2148   : > { %6724 = vmatpush.bf16.msra.mxu0 %v7705_v23 }
0x2149   : > { %7977 = vrot.lane.b32.xlu2 %v7976_v4, %s10949_s16  ;;  %6454 = vmatpush.bf16.msrb.mxu1 %v7517_v15  ;;  %v7693_v4 = vld [vmem:[%s10965_s21 + $0x54] sm:$0xf0]  ;;  %s6779_s16 = sshll.u32 %s6776_s14, 4  ;;  %s6780_s16 = int_to_ptr.hbm [resolvable:$true] %s6779_s16 }
0x2154   : > { %v6179_v0 = vpop.f32.mrf.mxu3 }
0x215c   : > { %v6181_v46 = vpop.f32.mrf.mxu3 }
0x215d   : > { %v7981_v32 = vpack.i.bf16 %v6181_v46, %v6179_v0  ;;  %v7505_v46 = vor.u32 %v7693_v4, %v7504_v53 }
0x215e   : > { %v6248_v34 = vpop.f32.mrf.mxu0 }
0x215f   : > { %7982 = vrot.lane.b32.xlu0 %v7981_v32, %s10960_s12  ;;  %v7506_v32 = vld [vmem:[%s10965_s21 + $0x58] sm:$0xf0]  ;;  %6441 = vmatpush.bf16.msrb.mxu3 %v7505_v46 }
0x2166   : > { %v6250_v3 = vpop.f32.mrf.mxu0 }
0x2167   : > { %v7986_v61 = vpack.i.bf16 %v6250_v3, %v6248_v34  ;;  %v7496_v3 = vld [vmem:[%s10965_s21 + $0x40] sm:$0xf] }
0x2169   : > { %7987 = vrot.lane.b32.xlu0 %v7986_v61, %s10947_s13  ;;  %v7691_v61 = vld [vmem:[%s10965_s21 + $0x44] sm:$0xf0]  ;;  %s1097_s13 = sand.u32 1, %s8472_s1  }
0x216a   : > { %v7497_v54 = vor.u32 %v7691_v61, %v7496_v3  ;;  %v7710_v61 = vld [vmem:[%s10925_s4 + $0xe0] sm:$0xff]  ;;  %s6907_s17 = sshll.u32 %s1097_s13, 4  ;;  %s6762_s0 = scalar_lea.sflag [#allocation3], %s1097_s13 }
0x216b   : > { %s1099_s8 = scalar_lea.vmem [#allocation2], %s6907_s17  ;;  %s8432_s17 = sshra.s32 %s6780_s16, 4  ;;  %s8433_s17 = int_to_ptr.hbm [resolvable:$true] %s8432_s17 }
0x216c   : > { %6442 = vmatpush.bf16.msrb.mxu3 %v7497_v54  ;;  %s6777_s12 = sshll.u32 %s1099_s8, 4  ;;  %p8439_p0 = scmp.lt.s32.totalorder %s8433_s17, %s8719_s27  ;;  %s6778_s12 = int_to_ptr.vmem [resolvable:$true] %s6777_s12 }
0x21a3   : > { %v7978_v6 = vpop.permute.xlu2 %7977 }
0x21a4   : > { %v7980_v50 = vunpack.i.h.bf16 %v7978_v6  ;;  %v7979_v9 = vunpack.i.l.bf16 %v7978_v6 }
0x21a6   : > { %v6278_v26 = vsel %vm1735_vm9, %v6042_v59, %v7980_v50  ;;  %v6277_v16 = vsel %vm1735_vm9, %v6040_v58, %v7979_v9  ;;  %v7692_v59 = vld [vmem:[%s10965_s21 + $0x54] sm:$0xf] }
0x21a7   : > { %v7509_v34 = vor.u32 %v7692_v59, %v7506_v32 }
0x21a9   : > { %6455 = vmatpush.bf16.msrb.mxu1 %v7509_v34 }
0x21ad   : > { %6456 = vmatpush.bf16.msrb.mxu1 %v7501_v55  ;;  %v7703_v55 = vld [vmem:[%s10925_s4 + $0xa8] sm:$0xff] }
0x21d1   : > { %v7983_v20 = vpop.permute.xlu0 %7982 }
0x21d2   : > { %v7985_v5 = vunpack.i.h.bf16 %v7983_v20  ;;  %v7984_v24 = vunpack.i.l.bf16 %v7983_v20 }
0x21d4   : > { %v6279_v14 = vsel %vm1195_vm1, %v6277_v16, %v7984_v24  ;;  %v6280_v19 = vsel %vm1195_vm1, %v6278_v26, %v7985_v5 }
0x21db   : > { %v7988_v38 = vpop.permute.xlu0 %7987 }
0x21dc   : > { %v7990_v44 = vunpack.i.h.bf16 %v7988_v38  ;;  %v7989_v31 = vunpack.i.l.bf16 %v7988_v38 }
0x21de   : > { %v6281_v12 = vsel %vm1151_vm0, %v6279_v14, %v7989_v31  ;;  %v6282_v7 = vsel %vm1151_vm0, %v6280_v19, %v7990_v44 }
0x21df   : > { %v6283_v43 = vpack.c.bf16 %v6282_v7, %v6281_v12  ;;  %v8021_v7 = vld [vmem:[%s10966_s24 + $0x1] ss:$0 sm:$0xff] }
0x21e1   : > { %7493 = vmatmul.msk.bf16.vlgmr.msrb.gmra.mxu2 %vm1789_vm10, %v6283_v43 }
0x2264   : > { %v6320_v40 = vpop.f32.mrf.mxu2 }
0x2265   : > { %v6325_v11 = vadd.f32 %v6320_v40, %v10548_v28 }
0x2267   : > { %v10660_v63 = vadd.f32 %v8020_v42, %v6325_v11  ;;  %v8022_v11 = vld [vmem:[%s10967_s25 + $0x1] ss:$0 sm:$0xff] }
0x2269   : > { %v6332_v41 = vsel %vm1789_vm10, %v10660_v63, 0.0 }
0x226a   : > { %6333 = vadd.xlane.f32.xlu0 %v6332_v41 }
0x226c   : > { %v6322_v18 = vpop.f32.mrf.mxu2 }
0x226d   : > { %v6326_v62 = vadd.f32 %v6322_v18, %v10553_v48 }
0x226f   : > { %v10665_v29 = vadd.f32 %v8020_v42, %v6326_v62 }
0x2271   : > { %v6335_v52 = vsel %vm1789_vm10, %v10665_v29, 0.0 }
0x2272   : > { %6336 = vadd.xlane.f32.xlu2 %v6335_v52 }
0x22dd   : > { %v6334_v60 = vpop.xlane.xlu0 %6333 }
0x22de   : > { %v6338_v28 = vmul.f32 %v6334_v60, %v10286_v13 }
0x22e0   : > { %v10671_v27 = vsub.f32 %v10660_v63, %v6338_v28 }
0x22e2   : > { %v6342_v8 = vmul.f32 %v10671_v27, %v10671_v27 }
0x22e4   : > { %v6344_v48 = vsel %vm1789_vm10, %v6342_v8, 0.0  ;;  %v7401_v8 = vld [vmem:[%s10968_s29 + $0x2] sm:$0x3] }
0x22e5   : > { %6345 = vadd.xlane.f32.xlu1 %v6344_v48  ;;  %v6337_v21 = vpop.xlane.xlu2 %6336 }
0x22e6   : > { %v6339_v36 = vmul.f32 %v6337_v21, %v10286_v13 }
0x22e8   : > { %v10678_v1 = vsub.f32 %v10665_v29, %v6339_v36 }
0x22ea   : > { %v6343_v37 = vmul.f32 %v10678_v1, %v10678_v1 }
0x22ec   : > { %v6347_v25 = vsel %vm1789_vm10, %v6343_v37, 0.0  ;;  %v6388_v37 = vperm.slane %v7401_v8, 0 }
0x22ed   : > { %6348 = vadd.xlane.f32.xlu2 %v6347_v25 }
0x2358   : > { %v6346_v33 = vpop.xlane.xlu1 %6345 }
0x2359   : > { %v6350_v58 = vmul.f32 %v6346_v33, %v10286_v13 }
0x235b   : > { %v6352_v0 = vadd.f32 1e-05, %v6350_v58  ;;  %v7711_v58 = vld [vmem:[%s10925_s4 + $0xe8] sm:$0xff] }
0x235c   : > { %6740 = vmatpush.bf16.msra.mxu2 %v7711_v58 }
0x235d   : > { %8398 = vrsqrt.f32 %v6352_v0  ;;  %vm6360_vm1 = vweird.f32 %v6352_v0 }
0x2360   : > { %v6349_v20 = vpop.xlane.xlu2 %6348  ;;  %6741 = vmatpush.bf16.msra.mxu2 %v7710_v61 }
0x2361   : > { %v6351_v6 = vmul.f32 %v6349_v20, %v10286_v13 }
0x2363   : > { %v8399_v50 = vpop.eup %8398  ;;  %v6353_v9 = vadd.f32 1e-05, %v6351_v6 }
0x2364   : > { %v6355_v5 = vmul.f32 %v8399_v50, %v6352_v0  ;;  %vm6361_vm0 = vweird.f32 %v8399_v50  ;;  %v7704_v0 = vld [vmem:[%s10925_s4 + $0xb0] sm:$0xff] }
0x2365   : > { %8400 = vrsqrt.f32 %v6353_v9  ;;  %vm6362_vm9 = vmor %vm6360_vm1, %vm6361_vm0  ;;  %vm6370_vm5 = vweird.f32 %v6353_v9  ;;  %6725 = vmatpush.bf16.msra.mxu0 %v7704_v0  ;;  %v7706_v0 = vld [vmem:[%s10925_s4 + $0xc0] sm:$0xff] }
0x2366   : > { %v6356_v24 = vmul.f32 %v8399_v50, %v6355_v5 }
0x2368   : > { %v6357_v38 = vmul.f32 0.5, %v6356_v24 }
0x2369   : > { %6726 = vmatpush.bf16.msra.mxu0 %v7703_v55 }
0x236a   : > { %v6358_v26 = vsub.f32 1.5, %v6357_v38 }
0x236b   : > { %v8401_v16 = vpop.eup %8400 }
0x236c   : > { %v6359_v44 = vmul.f32 %v8399_v50, %v6358_v26  ;;  %v6365_v31 = vmul.f32 %v8401_v16, %v6353_v9  ;;  %vm6371_vm4 = vweird.f32 %v8401_v16  ;;  %v7709_v9 = vld [vmem:[%s10925_s4 + $0xd8] sm:$0xff] }
0x236d   : > { %vm6372_vm6 = vmor %vm6370_vm5, %vm6371_vm4  ;;  %6742 = vmatpush.bf16.msra.mxu2 %v7709_v9 }
0x236e   : > { %v6366_v14 = vmul.f32 %v8401_v16, %v6365_v31  ;;  %v6363_v19 = vsel %vm6362_vm9, %v8399_v50, %v6359_v44 }
0x236f   : > { %v6374_v43 = vmul.f32 %v6363_v19, %v10671_v27  ;;  %v6389_v27 = vperm.slane %v7401_v8, 1  ;;  %v7707_v8 = vld [vmem:[%s10925_s4 + $0xc8] sm:$0xff] }
0x2370   : > { %v6367_v13 = vmul.f32 0.5, %v6366_v14 }
0x2371   : > { %v6379_v41 = vmul.f32 %v8021_v7, %v6374_v43 }
0x2372   : > { %v6368_v12 = vsub.f32 1.5, %v6367_v13  ;;  %v7708_v13 = vld [vmem:[%s10925_s4 + $0xd0] sm:$0xff] }
0x2373   : > { %v6384_v52 = vadd.f32 %v8022_v11, %v6379_v41  ;;  %6743 = vmatpush.bf16.msra.mxu2 %v7708_v13  ;;  %v7701_v41 = vld [vmem:[%s10925_s4 + $0x98] sm:$0xff] }
0x2374   : > { %v6369_v42 = vmul.f32 %v8401_v16, %v6368_v12 }
0x2376   : > { %v6373_v40 = vsel %vm6372_vm6, %v8401_v16, %v6369_v42  ;;  %v7702_v16 = vld [vmem:[%s10925_s4 + $0xa0] sm:$0xff] }
0x2377   : > { %v6375_v18 = vmul.f32 %v6373_v40, %v10678_v1  ;;  %6727 = vmatpush.bf16.msra.mxu0 %v7702_v16  ;;  %6744 = vmatpush.bf16.msra.mxu2 %v7707_v8 }
0x2379   : > { %v6380_v62 = vmul.f32 %v8021_v7, %v6375_v18 }
0x237b   : > { %v6385_v60 = vadd.f32 %v8022_v11, %v6380_v62  ;;  %6728 = vmatpush.bf16.msra.mxu0 %v7701_v41  ;;  %6745 = vmatpush.bf16.msra.mxu2 %v7706_v0 }
0x237d   : > { %v6386_v28 = vpack.c.bf16 %v6385_v60, %v6384_v52 }
0x237f   : > { %7526 = vmatmul.msk.bf16.vlgmr.msrb.gmra.mxu3 %vm1789_vm10, %v6386_v28  ;;  %7527 = vmatmul.msk.bf16.vlgmr.msrb.gmra.mxu1 %vm1789_vm10, %v6386_v28 }
0x23fc   : > { %v6458_v48 = vpop.f32.mrf.mxu1 }
0x23fd   : > { %v10708_v21 = vadd.f32 %v6458_v48, %v6389_v27 }
0x23ff   : > { %v10711_v36 = vmul.f32 0.70710677, %v10708_v21 }
0x2401   : > { %v6476_v1 = vand.u32 2147483647, %v10711_v36 }
0x2402   : > { %v6444_v25 = vpop.f32.mrf.mxu3 }
0x2403   : > { %v6480_v2 = vmul.f32 0.3275911, %v6476_v1  ;;  %v10715_v10 = vadd.f32 %v6444_v25, %v6388_v37  ;;  %v6584_v5 = vsub.f32 0.0, %v6476_v1 }
0x2404   : > { %v6460_v17 = vpop.f32.mrf.mxu1 }
0x2405   : > { %v6484_v35 = vadd.f32 1.0, %v6480_v2  ;;  %v10718_v45 = vmul.f32 0.70710677, %v10715_v10  ;;  %v10720_v56 = vadd.f32 %v6460_v17, %v6389_v27  ;;  %v6588_v7 = vmul.f32 %v6584_v5, %v6476_v1  ;;  %v7700_v17 = vld [vmem:[%s10925_s4 + $0x90] sm:$0xff] }
0x2406   : > { %6729 = vmatpush.bf16.msra.mxu0 %v7700_v17 }
0x2407   : > { %8402 = vrcp.f32 %v6484_v35  ;;  %v10724_v22 = vand.u32 2147483647, %v10718_v45  ;;  %v10727_v39 = vmul.f32 0.70710677, %v10720_v56  ;;  %v6513_v20 = vand.u32 2147483648, %v6484_v35 }
0x2408   : > { %v6511_v50 = vand.u32 2147483647, %v6484_v35  ;;  %vm6507_vm8 = vweird.f32 %v6484_v35  ;;  %v6593_v27 = vmul.f32 1.442695, %v6588_v7 }
0x2409   : > { %v6479_v33 = vmul.f32 0.3275911, %v10724_v22  ;;  %v10733_v53 = vand.u32 2147483647, %v10727_v39  ;;  %v6514_v44 = vor.u32 1.1754944e-38, %v6513_v20  ;;  %v6583_v28 = vsub.f32 0.0, %v10724_v22 }
0x240a   : > { %v6446_v15 = vpop.f32.mrf.mxu3  ;;  %vm6512_vm12 = vcmp.eq.f32.partialorder %v6511_v50, 8.507059e+37  ;;  %v7699_v20 = vld [vmem:[%s10925_s4 + $0x88] sm:$0xff] }
0x240b   : > { %v10735_v4 = vadd.f32 %v6446_v15, %v6388_v37  ;;  %v10737_v59 = vadd.f32 1.0, %v6479_v33  ;;  %v6482_v32 = vmul.f32 0.3275911, %v10733_v53  ;;  %v6587_v58 = vmul.f32 %v6583_v28, %v10724_v22  ;;  %6730 = vmatpush.bf16.msra.mxu0 %v7699_v20 }
0x240d   : > { %v8403_v46 = vpop.eup %8402  ;;  %v10742_v34 = vmul.f32 0.70710677, %v10735_v4  ;;  %8404 = vrcp.f32 %v10737_v59  ;;  %v10746_v51 = vadd.f32 1.0, %v6482_v32  ;;  %v6498_v11 = vand.u32 2147483648, %v10737_v59 }
0x240e   : > { %v6503_v3 = vmul.f32 %v8403_v46, %v6484_v35  ;;  %vm6508_vm7 = vweird.f32 %v8403_v46  ;;  %v6496_v62 = vand.u32 2147483647, %v10737_v59  ;;  %vm6492_vm14 = vweird.f32 %v10737_v59 }
0x240f   : > { %v10749_v30 = vand.u32 2147483647, %v10742_v34  ;;  %8406 = vrcp.f32 %v10746_v51  ;;  %vm6509_vm11 = vmor %vm6507_vm8, %vm6508_vm7  ;;  %v6499_v25 = vor.u32 1.1754944e-38, %v6498_v11  ;;  %v6541_v49 = vand.u32 2147483647, %v10746_v51 }
0x2410   : > { %v6504_v54 = vsub.f32 1.0, %v6503_v3  ;;  %v6543_v2 = vand.u32 2147483648, %v10746_v51  ;;  %vm6497_vm2 = vcmp.eq.f32.partialorder %v6496_v62, 8.507059e+37  ;;  %vm6537_vm0 = vweird.f32 %v10746_v51 }
0x2411   : > { %v6481_v24 = vmul.f32 0.3275911, %v10749_v30  ;;  %v6586_v3 = vsub.f32 0.0, %v10733_v53  ;;  %vm6542_vm9 = vcmp.eq.f32.partialorder %v6541_v49, 8.507059e+37  ;;  %vm6468_vm8 = vcmp.ge.f32.partialorder %v10711_v36, 0.0 }
0x2412   : > { %v6505_v6 = vmul.f32 %v8403_v46, %v6504_v54  ;;  %v6544_v54 = vor.u32 1.1754944e-38, %v6543_v2 }
0x2413   : > { %v8405_v38 = vpop.eup %8404  ;;  %v10757_v14 = vadd.f32 1.0, %v6481_v24 }
0x2414   : > { %v6506_v26 = vadd.f32 %v8403_v46, %v6505_v6  ;;  %v6488_v31 = vmul.f32 %v8405_v38, %v10737_v59  ;;  %vm6493_vm13 = vweird.f32 %v8405_v38 }
0x2415   : > { %8408 = vrcp.f32 %v10757_v14  ;;  %v8407_v42 = vpop.eup %8406  ;;  %vm6494_vm15 = vmor %vm6492_vm14, %vm6493_vm13  ;;  %v6526_v50 = vand.u32 2147483647, %v10757_v14  ;;  %v6528_v9 = vand.u32 2147483648, %v10757_v14  ;;  %vm6522_vm5 = vweird.f32 %v10757_v14 }
0x2416   : > { %v6510_v19 = vsel %vm6509_vm11, %v8403_v46, %v6506_v26  ;;  %v6489_v43 = vsub.f32 1.0, %v6488_v31  ;;  %v6533_v52 = vmul.f32 %v8407_v42, %v10746_v51  ;;  %vm6538_vm3 = vweird.f32 %v8407_v42 }
0x2417   : > { %v10760_v12 = vsel %vm6512_vm12, %v6514_v44, %v6510_v19  ;;  %vm6539_vm1 = vmor %vm6537_vm0, %vm6538_vm3  ;;  %v6591_v44 = vmul.f32 1.442695, %v6587_v58  ;;  %v7698_v19 = vld [vmem:[%s10925_s4 + $0x80] sm:$0xff]  ;;  %8410 = vpow2.f32 %v6593_v27  ;;  %vm6527_vm7 = vcmp.eq.f32.partialorder %v6526_v50, 8.507059e+37  ;;  %s8434_s4 = scalar_lea.hbm %s8433_s17, 16 }
0x2418   : > { %v6548_v40 = vmul.f32 1.0614054, %v10760_v12  ;;  %v6490_v18 = vmul.f32 %v8405_v38, %v6489_v43  ;;  %v6534_v37 = vsub.f32 1.0, %v6533_v52  ;;  %v6529_v43 = vor.u32 1.1754944e-38, %v6528_v9  ;;  %6731 = vmatpush.bf16.msra.mxu0 %v7698_v19  ;;  %p8435_p11 = scmp.ne.s32.totalorder %s8433_s17, %s8434_s4  ;;  %p8440_p1 = scmp.lt.s32.totalorder %s8438_s3, %s8434_s4 }
0x2419   : > { %v6585_v52 = vsub.f32 0.0, %v10749_v30  ;;  %8412 = vpow2.f32 %v6591_v44  ;;  %vm6470_vm11 = vcmp.ge.f32.partialorder %v10727_v39, 0.0  ;;  %vm6467_vm12 = vcmp.ge.f32.partialorder %v10718_v45, 0.0 }
0x241a   : > { %v6552_v60 = vadd.f32 -1.4531521, %v6548_v40  ;;  %v6491_v48 = vadd.f32 %v8405_v38, %v6490_v18  ;;  %v6535_v23 = vmul.f32 %v8407_v42, %v6534_v37  ;;  %v6590_v40 = vmul.f32 %v6586_v3, %v10733_v53  ;;  %p8436_p12 = pnand %p8435_p11, %p8759_p5  ;;  %p8441_p2 = por %p8440_p1, %p8439_p0 }
0x241b   : > { %v8409_v35 = vpop.eup %8408  ;;  %v6474_v36 = vsel %vm6470_vm11, 1.0, %v8525_v47  ;;  %vm6469_vm13 = vcmp.ge.f32.partialorder %v10742_v34, 0.0  ;;  %v6612_v39 = vmul.f32 0.5, %v10708_v21  ;;  %v6614_v44 = vmul.f32 0.5, %v10720_v56 }
0x241c   : > { %v6556_v1 = vmul.f32 %v6552_v60, %v10760_v12  ;;  %v6495_v57 = vsel %vm6494_vm15, %v8405_v38, %v6491_v48  ;;  %v6518_v59 = vmul.f32 %v8409_v35, %v10757_v14  ;;  %v6536_v32 = vadd.f32 %v8407_v42, %v6535_v23  ;;  %p8437_p13 = pneg %p8436_p12 }
0x241d   : > { %v10775_v15 = vsel %vm6497_vm2, %v6499_v25, %v6495_v57  ;;  %vm6523_vm4 = vweird.f32 %v8409_v35  ;;  %v6597_v27 = vmul.f32 1.442695, %v6590_v40  ;;  %v8411_v37 = vpop.eup %8410  ;;  %v6589_v25 = vmul.f32 %v6585_v52, %v10749_v30 }
0x241e   : > { %v6560_v33 = vadd.f32 1.4214138, %v6556_v1  ;;  %v6547_v46 = vmul.f32 1.0614054, %v10775_v15  ;;  %v6519_v55 = vsub.f32 1.0, %v6518_v59  ;;  %v6540_v6 = vsel %vm6539_vm1, %v8407_v42, %v6536_v32  ;;  %vm6524_vm6 = vmor %vm6522_vm5, %vm6523_vm4  ;;  %p8442_p3 = pnand %p8441_p2, %p8437_p13 }
0x241f   : > { %v6545_v51 = vsel %vm6542_vm9, %v6544_v54, %v6540_v6  ;;  %8414 = vpow2.f32 %v6597_v27  ;;  %v8413_v59 = vpop.eup %8412  ;;  %v6472_v54 = vsel %vm6468_vm8, 1.0, %v8525_v47  ;;  %v6613_v34 = vmul.f32 0.5, %v10735_v4 }
0x2420   : > { %v6564_v61 = vmul.f32 %v6560_v33, %v10760_v12  ;;  %v6551_v22 = vadd.f32 -1.4531521, %v6547_v46  ;;  %v6520_v24 = vmul.f32 %v8409_v35, %v6519_v55  ;;  %v6550_v26 = vmul.f32 1.0614054, %v6545_v51 }
0x2421   : > { %v6595_v33 = vmul.f32 1.442695, %v6589_v25 }
0x2422   : > { %v6568_v5 = vadd.f32 -0.28449672, %v6564_v61  ;;  %v6555_v38 = vmul.f32 %v6551_v22, %v10775_v15  ;;  %v6521_v31 = vadd.f32 %v8409_v35, %v6520_v24  ;;  %v6554_v7 = vadd.f32 -1.4531521, %v6550_v26 }
0x2423   : > { %8416 = vpow2.f32 %v6595_v33 }
0x2424   : > { %v6572_v16 = vmul.f32 %v6568_v5, %v10760_v12  ;;  %v6559_v13 = vadd.f32 1.4214138, %v6555_v38  ;;  %v6525_v11 = vsel %vm6524_vm6, %v8409_v35, %v6521_v31  ;;  %v6558_v18 = vmul.f32 %v6554_v7, %v6545_v51 }
0x2425   : > { %v6530_v62 = vsel %vm6527_vm7, %v6529_v43, %v6525_v11  ;;  %v8415_v30 = vpop.eup %8414  ;;  %v6473_v7 = vsel %vm6469_vm13, 1.0, %v8525_v47  ;;  %v6611_v11 = vmul.f32 0.5, %v10715_v10 }
0x2426   : > { %v6576_v42 = vadd.f32 0.2548296, %v6572_v16  ;;  %v6563_v41 = vmul.f32 %v6559_v13, %v10775_v15  ;;  %v6549_v60 = vmul.f32 1.0614054, %v6530_v62  ;;  %v6562_v8 = vadd.f32 1.4214138, %v6558_v18 }
0x2428   : > { %v6580_v14 = vmul.f32 %v6576_v42, %v10760_v12  ;;  %v6567_v28 = vadd.f32 -0.28449672, %v6563_v41  ;;  %v6553_v48 = vadd.f32 -1.4531521, %v6549_v60  ;;  %v6566_v53 = vmul.f32 %v6562_v8, %v6545_v51 }
0x2429   : > { %v8417_v5 = vpop.eup %8416 }
0x242a   : > { %v6571_v1 = vmul.f32 %v6567_v28, %v10775_v15  ;;  %v6557_v49 = vmul.f32 %v6553_v48, %v6530_v62  ;;  %v6600_v2 = vmul.f32 %v8411_v37, %v6580_v14  ;;  %v6570_v35 = vadd.f32 -0.28449672, %v6566_v53 }
0x242c   : > { %v6575_v17 = vadd.f32 0.2548296, %v6571_v1  ;;  %v6561_v57 = vadd.f32 1.4214138, %v6557_v49  ;;  %v6574_v12 = vmul.f32 %v6570_v35, %v6545_v51  ;;  %v6604_v0 = vsub.f32 1.0, %v6600_v2 }
0x242e   : > { %v6579_v23 = vmul.f32 %v6575_v17, %v10775_v15  ;;  %v6565_v58 = vmul.f32 %v6561_v57, %v6530_v62  ;;  %v6578_v46 = vadd.f32 0.2548296, %v6574_v12  ;;  %v6608_v20 = vmul.f32 %v6604_v0, %v6472_v54 }
0x2430   : > { %v6599_v32 = vmul.f32 %v8413_v59, %v6579_v23  ;;  %v6569_v3 = vadd.f32 -0.28449672, %v6565_v58  ;;  %v6582_v61 = vmul.f32 %v6578_v46, %v6545_v51  ;;  %v6616_v24 = vadd.f32 1.0, %v6608_v20 }
0x2431   : > { %v6471_v51 = vsel %vm6467_vm12, 1.0, %v8525_v47 }
0x2432   : > { %v6573_v55 = vmul.f32 %v6569_v3, %v6530_v62  ;;  %v6602_v15 = vmul.f32 %v8415_v30, %v6582_v61  ;;  %v6603_v22 = vsub.f32 1.0, %v6599_v32  ;;  %v6620_v19 = vmul.f32 %v6616_v24, %v6612_v39 }
0x2434   : > { %v6577_v6 = vadd.f32 0.2548296, %v6573_v55  ;;  %v6606_v50 = vsub.f32 1.0, %v6602_v15  ;;  %v6607_v26 = vmul.f32 %v6603_v22, %v6471_v51 }
0x2436   : > { %v6581_v9 = vmul.f32 %v6577_v6, %v6530_v62  ;;  %v6610_v38 = vmul.f32 %v6606_v50, %v6474_v36  ;;  %v6615_v43 = vadd.f32 1.0, %v6607_v26  ;;  %v8023_v62 = vld [vmem:[%s8709_s6 + $0x1] ss:$0 sm:$0xff] }
0x2438   : > { %v6601_v16 = vmul.f32 %v8417_v5, %v6581_v9  ;;  %v6618_v45 = vadd.f32 1.0, %v6610_v38  ;;  %v6619_v21 = vmul.f32 %v6615_v43, %v6611_v11 }
0x243a   : > { %v6605_v31 = vsub.f32 1.0, %v6601_v16  ;;  %v6622_v13 = vmul.f32 %v6618_v45, %v6614_v44 }
0x243c   : > { %v6609_v42 = vmul.f32 %v6605_v31, %v6473_v7  ;;  %v6624_v40 = vpack.c.bf16 %v6622_v13, %v6620_v19 }
0x243e   : > { %v6617_v41 = vadd.f32 1.0, %v6609_v42  ;;  %6746 = vmatmul.bf16.vlgmr.msra.gmra.mxu2 %v6624_v40 }
0x2440   : > { %v6621_v56 = vmul.f32 %v6617_v41, %v6613_v34 }
0x2442   : > { %v6623_v18 = vpack.c.bf16 %v6621_v56, %v6619_v21 }
0x2444   : > { %6732 = vmatmul.bf16.vlgmr.msra.gmra.mxu0 %v6623_v18 }
0x24c1   : > { %v6733_v52 = vpop.f32.mrf.mxu0  ;;  %v6747_v47 = vpop.f32.mrf.mxu2 }
0x24c2   : > { %v6734_v60 = vadd.f32 %v8023_v62, %v6733_v52 }
0x24c4   : > { %v6748_v14 = vadd.f32 %v6747_v47, %v6734_v60 }
0x24c6   : > { %v6752_v28 = vadd.f32 %v6748_v14, %v10660_v63 }
0x24c8   : > { %6754 = vst.msk [vmem:[%s1099_s8] sm:$0xff] %vm1789_vm10, %v6752_v28 }
0x24c9   : > { %v6735_v10 = vpop.f32.mrf.mxu0  ;;  %v6749_v8 = vpop.f32.mrf.mxu2 }
0x24ca   : > { %v6736_v4 = vadd.f32 %v8023_v62, %v6735_v10 }
0x24cc   : > { %v6750_v27 = vadd.f32 %v6749_v8, %v6736_v4 }
0x24ce   : > { %v6753_v48 = vadd.f32 %v6750_v27, %v10665_v29 }
0x24d0   : > { %6755 = vst.msk [vmem:[%s1099_s8 + $0x8] sm:$0xff] %vm1789_vm10, %v6753_v48 }
0x24d1   : > { %8445 = shalt.err (!%p8442_p3)
}
0x24d2   : > { %s8529_s14 = smov 128   ;;  %s8530_s5 = smov 8  }
0x24d3   : > { %7833 = dma.vmem_to_hbm [thread:$0]  (%p8759_p5), %s6778_s12, 256, %s6780_s16, %s6762_s0, %s8529_s14, %s8529_s14, %s8530_s5  }
0x24d4 PF: > { %p7839_p4 = scmp.ge.s32.totalorder %s8480_s7, 2  ;;  %s6802_s13 = sand.u32 1, %s8468_s28  }
0x24d5   : > { %s6803_s8 = scalar_lea.sflag [#allocation3], %s6802_s13 }
0x24d6   : > { %p7836_p7 = pnand %p7839_p4, %p8763_p6 }
0x24d8   : > { %p7837_p8 = pneg %p7836_p7 }
0x24da   : > { %8463 = dma.done.wait (%p7837_p8), %s6803_s8, 256  }
0x24db   : > { %8465 = vsyncadd (%p7837_p8), %s6803_s8, 4294967040  ;;  %p84_p9 = scmp.ge.s32.totalorder %s8746_s11, 4   ;;  %s10969_s28 = smov %s8472_s1 }
0x24dc   : > { %s10970_s1 = smov %s8476_s2  ;;  %s10971_s2 = smov %s8757_s18 }
0x24dd   : > { %s10972_s7 = smov %s8746_s11  ;;  %86 = sbr.rel (!%p84_p9) target bundleno = 88 (0x58), region = 272 }
0x24e2   :  { %6809 = vsyncpa [#allocation3], 1 }
0x24e3   :  { %6811 = vsyncpa [#allocation3 + $0x1], 1 }

</bundles_post_ra>
